<compile_context>
chip_gen: v6e
topology: v6e:2x2x1
jax: 0.10.0
libtpu: 0.0.40
codegen_flags: <defaults>
</compile_context>

<pallas_src>
import functools

import jax
import jax.numpy as jnp
from jax.experimental import pallas as pl
from jax.experimental.pallas import tpu as pltpu

NC = 1
NDF = 64
BN_EPS = 1e-5


# --------------------------------------------------------------------------
# Fused GEMM kernel: y = act(BN(a @ w [+ b]))
# --------------------------------------------------------------------------
def _epilogue(y, b_ref, g_ref, bb_ref, *, act, bn, real_m):
    if b_ref is not None:
        y = y + b_ref[...]
    if bn:
        # One-pass train-mode batch statistics over the REAL (un-padded) rows.
        # Padded rows are exact zeros (no bias under BN) so they contribute
        # nothing to the sums; normalize by the real row count.
        inv_m = 1.0 / float(real_m)
        mean = jnp.sum(y, axis=0, keepdims=True) * inv_m
        msq = jnp.sum(y * y, axis=0, keepdims=True) * inv_m
        var = jnp.maximum(msq - mean * mean, 0.0)
        y = (y - mean) * jax.lax.rsqrt(var + BN_EPS) * g_ref[...] + bb_ref[...]
    if act == "lrelu":
        y = jnp.where(y > 0, y, 0.2 * y)
    elif act == "sigmoid":
        # exp on the EUP + approximate reciprocal on the EUP; VALU stays free.
        y = pl.reciprocal(1.0 + jnp.exp(-y), approx=True)
    return y


def _gemm_kernel(*refs, act, bn, bias, tiled_k, real_m):
    it = iter(refs)
    a_ref = next(it)
    w_ref = next(it)
    b_ref = next(it) if bias else None
    g_ref = next(it) if bn else None
    bb_ref = next(it) if bn else None
    o_ref = next(it)
    acc_ref = next(it) if tiled_k else None

    if tiled_k:
        k = pl.program_id(1)

        @pl.when(k == 0)
        def _():
            acc_ref[...] = jnp.zeros_like(acc_ref)

        acc_ref[...] += jnp.dot(a_ref[...], w_ref[...],
                                preferred_element_type=jnp.float32)

        @pl.when(k == pl.num_programs(1) - 1)
        def _():
            o_ref[...] = _epilogue(acc_ref[...], b_ref, g_ref, bb_ref,
                                   act=act, bn=bn,
                                   real_m=real_m).astype(o_ref.dtype)
    else:
        # Single K step: no scratch accumulator, write the epilogue directly.
        y = jnp.dot(a_ref[...], w_ref[...], preferred_element_type=jnp.float32)
        o_ref[...] = _epilogue(y, b_ref, g_ref, bb_ref, act=act, bn=bn,
                               real_m=real_m).astype(o_ref.dtype)


def matmul_fused(a, w, b=None, gamma=None, beta=None, act="none",
                 real_m=None, out_dtype=jnp.float32):
    """y = act(BN(a @ w [+ b]));  a:(M,K) bf16, w:(K,N) bf16, b/gamma/beta:(1,N)."""
    M, K = a.shape
    K2, N = w.shape
    assert K == K2
    assert a.dtype == jnp.bfloat16 and w.dtype == jnp.bfloat16

    bn = gamma is not None
    bias = b is not None
    # BN's mean subtraction cancels a per-column bias -> never pass both.
    assert not (bn and bias), "bias is redundant under fused BatchNorm"
    if real_m is None:
        real_m = M

    # K tiling only for the big fc1 GEMM: K=6272 -> two 3136-wide steps, a
    # 3.2 MB bf16 weight tile that double-buffers comfortably on v5e/v6e/v7x.
    tk = K // 2 if (K > 4096 and (K // 2) % 128 == 0) else K
    nk = K // tk
    tiled_k = nk > 1
    # Split the wide fc1 output in two 512-lane blocks; the N axis is
    # "parallel" so dual-TensorCore chips (v7x) stream half the weight each.
    tn = 512 if (N >= 1024 and N % 512 == 0) else N
    nj = N // tn

    # BN statistics are computed over the M axis inside the epilogue, so BN
    # fusion is only correct while the M BlockSpec covers the full M.
    tm = M
    if bn:
        assert tm == M, "fused BatchNorm requires the full M in a single block"
        # TODO(synk): add a two-pass / cross-block Welford BN path for large
        # batches whose (M, K) block no longer fits VMEM (tightest on v7x).

    in_specs = [
        pl.BlockSpec((tm, tk), lambda j, k: (0, k)),
        pl.BlockSpec((tk, tn), lambda j, k: (k, j)),
    ]
    args = [a, w]
    if bias:
        in_specs.append(pl.BlockSpec((1, tn), lambda j, k: (0, j)))
        args.append(b)
    if bn:
        in_specs += [pl.BlockSpec((1, tn), lambda j, k: (0, j)),
                     pl.BlockSpec((1, tn), lambda j, k: (0, j))]
        args += [gamma, beta]

    scratch = [pltpu.VMEM((tm, tn), jnp.float32)] if tiled_k else []

    kern = functools.partial(_gemm_kernel, act=act, bn=bn, bias=bias,
                             tiled_k=tiled_k, real_m=real_m)

    cost = pl.CostEstimate(
        flops=2 * M * K * N,
        transcendentals=M * N if act == "sigmoid" else 0,
        bytes_accessed=(a.size + w.size) * 2 + M * N * jnp.dtype(out_dtype).itemsize)

    return pl.pallas_call(
        kern,
        out_shape=jax.ShapeDtypeStruct((M, N), out_dtype),
        grid=(nj, nk),
        in_specs=in_specs,
        out_specs=pl.BlockSpec((tm, tn), lambda j, k: (0, j)),
        scratch_shapes=scratch,
        compiler_params=pltpu.CompilerParams(
            dimension_semantics=("parallel", "arbitrary"),
            vmem_limit_bytes=32 * 1024 * 1024),
        cost_estimate=cost,
    )(*args)


# --------------------------------------------------------------------------
# Plain-JAX glue: NHWC im2col patch extraction (layout plumbing only, bf16)
# --------------------------------------------------------------------------
def im2col_nhwc(x, k, stride, pad):
    """x: (B,H,W,C) -> (B*Ho*Wo, k*k*C), patches flattened in (kh, kw, C) order."""
    B, H, W, C = x.shape
    xp = jnp.pad(x, ((0, 0), (pad, pad), (pad, pad), (0, 0)))
    Ho = (H + 2 * pad - k) // stride + 1
    Wo = (W + 2 * pad - k) // stride + 1
    cols = []
    for i in range(k):
        for j in range(k):
            cols.append(xp[:, i:i + stride * Ho:stride,
                               j:j + stride * Wo:stride, :])
    p = jnp.stack(cols, axis=3)                   # (B, Ho, Wo, k*k, C)
    return p.reshape(B * Ho * Wo, k * k * C), Ho, Wo


def _pad_rows(x, mult=16):
    """Zero-pad rows to a multiple of `mult` (unmasked stores / full vregs)."""
    r = (-x.shape[0]) % mult
    return jnp.pad(x, ((0, r), (0, 0))) if r else x


# --------------------------------------------------------------------------
# Discriminator forward (NHWC end-to-end, bf16 activations, f32 accumulation)
# --------------------------------------------------------------------------
def d_forward(params, x):
    B = x.shape[0]
    # NCHW -> NHWC once (C=1, trivial) and a single cast of the raw input.
    x = jnp.transpose(x, (0, 2, 3, 1)).astype(jnp.bfloat16)

    # conv1 + LeakyReLU (fused into the GEMM epilogue), bf16 output
    p1, H1, W1 = im2col_nhwc(x, 4, 2, 1)          # (B*196, 16) bf16
    m1 = p1.shape[0]
    y1 = matmul_fused(_pad_rows(p1), params["w1m"], b=params["b1"],
                      act="lrelu", out_dtype=jnp.bfloat16)
    x1 = y1[:m1].reshape(B, H1, W1, NDF)          # NHWC, no transpose

    # conv2 + BatchNorm2d (stats over B*H*W per channel) + LeakyReLU, fused.
    # No bias: BN cancels it.
    p2, H2, W2 = im2col_nhwc(x1, 4, 2, 1)         # (B*49, 1024) bf16
    m2 = p2.shape[0]
    y2 = matmul_fused(_pad_rows(p2), params["w2m"],
                      gamma=params["g2"], beta=params["bn_b2"],
                      act="lrelu", real_m=m2, out_dtype=jnp.bfloat16)

    # Flatten in H-W-C order; fw1 rows were permuted at init to match
    # PyTorch's C-H-W .view order, so no transpose is needed here.
    flat = y2[:m2].reshape(B, H2 * W2 * NDF * 2)  # (B, 6272) bf16

    # fc1 + BatchNorm1d + LeakyReLU (fused epilogue). Rows padded 2 -> 16;
    # BN stats normalize by the real batch size B.
    h = matmul_fused(_pad_rows(flat), params["fw1"],
                     gamma=params["fg1"], beta=params["fbn_b1"],
                     act="lrelu", real_m=B, out_dtype=jnp.bfloat16)

    # fc2 (N padded to 128 lanes for unmasked stores) + Sigmoid fused.
    out = matmul_fused(h, params["fw2_pad"], b=params["fb2_pad"],
                       act="sigmoid", out_dtype=jnp.float32)
    return out[:B, :1]                            # (B, 1)


def init_params(key):
    ks = jax.random.split(key, 4)

    def rn(k, shape, scale):
        return (scale * jax.random.normal(k, shape)).astype(jnp.float32)

    p = {}
    # conv1: PyTorch weight (O=64, C=1, kh=4, kw=4) -> (kh*kw*C, O) bf16 matrix
    w1 = rn(ks[0], (NDF, NC, 4, 4), 0.05)
    p["w1m"] = w1.transpose(2, 3, 1, 0).reshape(4 * 4 * NC, NDF).astype(jnp.bfloat16)
    p["b1"] = jnp.zeros((1, NDF), jnp.float32)

    # conv2: (128, 64, 4, 4) -> (kh*kw*C, O) bf16 matrix; conv bias omitted
    # because the fused BatchNorm cancels it exactly.
    w2 = rn(ks[1], (NDF * 2, NDF, 4, 4), 0.05)
    p["w2m"] = w2.transpose(2, 3, 1, 0).reshape(4 * 4 * NDF, NDF * 2).astype(jnp.bfloat16)
    p["g2"] = jnp.ones((1, NDF * 2), jnp.float32)
    p["bn_b2"] = jnp.zeros((1, NDF * 2), jnp.float32)

    # fc1: PyTorch rows are in C-H-W .view order; permute once to H-W-C so the
    # NHWC-flattened activations can be used without a runtime transpose.
    fw1 = rn(ks[2], (NDF * 2 * 7 * 7, 1024), 0.02)             # (6272, 1024)
    fw1 = fw1.reshape(NDF * 2, 7, 7, 1024).transpose(1, 2, 0, 3)
    p["fw1"] = fw1.reshape(NDF * 2 * 7 * 7, 1024).astype(jnp.bfloat16)
    p["fg1"] = jnp.ones((1, 1024), jnp.float32)
    p["fbn_b1"] = jnp.zeros((1, 1024), jnp.float32)

    # fc2: (1024, 1) zero-padded to 128 output lanes (padded cols sliced off).
    fw2 = rn(ks[3], (1024, 1), 0.02)
    p["fw2_pad"] = jnp.pad(fw2, ((0, 0), (0, 127))).astype(jnp.bfloat16)
    p["fb2_pad"] = jnp.zeros((1, 128), jnp.float32)
    return p


if __name__ == "__main__":
    key = jax.random.PRNGKey(0)
    kx, kp = jax.random.split(key)
    # 28x28 input is implied by the fc input size ndf*2*7*7.
    x = jax.random.normal(kx, (2, NC, 28, 28), dtype=jnp.float32)
    params = init_params(kp)

    out = jax.jit(d_forward)(params, x)
    out = jax.block_until_ready(out)

    assert out.shape == (2, 1), out.shape
    assert bool(jnp.all(jnp.isfinite(out)))
    assert bool(jnp.all((out >= 0.0) & (out <= 1.0)))  # sigmoid range
    print("KERNEL_OK")
</pallas_src>

<mosaic_0001>
module attributes {stable_mosaic.version = 11 : i64} {
  func.func @_gemm_kernel(%arg0: i32, %arg1: i32, %arg2: memref<400x16xbf16, #tpu.memory_space<vmem>>, %arg3: memref<16x64xbf16, #tpu.memory_space<vmem>>, %arg4: memref<1x64xf32, #tpu.memory_space<vmem>>, %arg5: memref<400x64xbf16, #tpu.memory_space<vmem>>) attributes {dimension_semantics = [#tpu.dimension_semantics<parallel>, #tpu.dimension_semantics<arbitrary>], iteration_bounds = array<i64: 1, 1>, scalar_prefetch = 0 : i64, scratch_operands = 0 : i64, tpu.core_type = #tpu.core_type<tc>, window_params = [{transform_indices = @transform_0, window_bounds = array<i64: 400, 16>}, {transform_indices = @transform_1, window_bounds = array<i64: 16, 64>}, {transform_indices = @transform_2, window_bounds = array<i64: 1, 64>}, {transform_indices = @transform_3, window_bounds = array<i64: 400, 64>}]} {
    %c0 = arith.constant 0 : index
    %c0_0 = arith.constant 0 : index
    %0 = vector.load %arg2[%c0, %c0_0] : memref<400x16xbf16, #tpu.memory_space<vmem>>, vector<400x16xbf16>
    %c0_1 = arith.constant 0 : index
    %c0_2 = arith.constant 0 : index
    %1 = vector.load %arg3[%c0_1, %c0_2] : memref<16x64xbf16, #tpu.memory_space<vmem>>, vector<16x64xbf16>
    %cst = arith.constant dense<0.000000e+00> : vector<400x64xf32>
    %2 = tpu.matmul %0, %1, %cst {dimension_numbers = #tpu.dot_dimension_numbers<[1], [0], [0], [1], [0, 0, 1, 1], [], []>} : vector<400x16xbf16>, vector<16x64xbf16>, vector<400x64xf32> -> vector<400x64xf32>
    %c0_3 = arith.constant 0 : index
    %c0_4 = arith.constant 0 : index
    %3 = vector.load %arg4[%c0_3, %c0_4] : memref<1x64xf32, #tpu.memory_space<vmem>>, vector<1x64xf32>
    %4 = vector.broadcast %3 : vector<1x64xf32> to vector<400x64xf32>
    %5 = arith.addf %2, %4 : vector<400x64xf32>
    %cst_5 = arith.constant 0.000000e+00 : f32
    %6 = vector.broadcast %cst_5 : f32 to vector<400x64xf32>
    %7 = arith.cmpf ogt, %5, %6 : vector<400x64xf32>
    %cst_6 = arith.constant 2.000000e-01 : f32
    %8 = vector.broadcast %cst_6 : f32 to vector<400x64xf32>
    %9 = arith.mulf %8, %5 : vector<400x64xf32>
    %10 = arith.select %7, %5, %9 : vector<400x64xi1>, vector<400x64xf32>
    %11 = arith.truncf %10 : vector<400x64xf32> to vector<400x64xbf16>
    %c0_7 = arith.constant 0 : index
    %c0_8 = arith.constant 0 : index
    %12 = vector.load %arg5[%c0_7, %c0_8] : memref<400x64xbf16, #tpu.memory_space<vmem>>, vector<400x64xbf16>
    tpu.vector_store %arg5[%c0_7, %c0_8], %11 {strides = array<i32>} : memref<400x64xbf16, #tpu.memory_space<vmem>>, vector<400x64xbf16>,
    return
  }
  func.func @transform_0(%arg0: i32, %arg1: i32) -> (i32, i32) {
    %c0_i32 = arith.constant 0 : i32
    %c0_i32_0 = arith.constant 0 : i32
    return %c0_i32, %arg1 : i32, i32
  }
  func.func @transform_1(%arg0: i32, %arg1: i32) -> (i32, i32) {
    %c0_i32 = arith.constant 0 : i32
    return %arg1, %arg0 : i32, i32
  }
  func.func @transform_2(%arg0: i32, %arg1: i32) -> (i32, i32) {
    %c0_i32 = arith.constant 0 : i32
    %c0_i32_0 = arith.constant 0 : i32
    return %c0_i32, %arg0 : i32, i32
  }
  func.func @transform_3(%arg0: i32, %arg1: i32) -> (i32, i32) {
    %c0_i32 = arith.constant 0 : i32
    %c0_i32_0 = arith.constant 0 : i32
    return %c0_i32, %arg0 : i32, i32
  }
}

module attributes {stable_mosaic.version = 11 : i64} {
  func.func @_gemm_kernel(%arg0: i32, %arg1: i32, %arg2: memref<112x1024xbf16, #tpu.memory_space<vmem>>, %arg3: memref<1024x128xbf16, #tpu.memory_space<vmem>>, %arg4: memref<1x128xf32, #tpu.memory_space<vmem>>, %arg5: memref<1x128xf32, #tpu.memory_space<vmem>>, %arg6: memref<112x128xbf16, #tpu.memory_space<vmem>>) attributes {dimension_semantics = [#tpu.dimension_semantics<parallel>, #tpu.dimension_semantics<arbitrary>], iteration_bounds = array<i64: 1, 1>, scalar_prefetch = 0 : i64, scratch_operands = 0 : i64, tpu.core_type = #tpu.core_type<tc>, window_params = [{transform_indices = @transform_0, window_bounds = array<i64: 112, 1024>}, {transform_indices = @transform_1, window_bounds = array<i64: 1024, 128>}, {transform_indices = @transform_2, window_bounds = array<i64: 1, 128>}, {transform_indices = @transform_3, window_bounds = array<i64: 1, 128>}, {transform_indices = @transform_4, window_bounds = array<i64: 112, 128>}]} {
    %c0 = arith.constant 0 : index
    %c0_0 = arith.constant 0 : index
    %0 = vector.load %arg2[%c0, %c0_0] : memref<112x1024xbf16, #tpu.memory_space<vmem>>, vector<112x1024xbf16>
    %c0_1 = arith.constant 0 : index
    %c0_2 = arith.constant 0 : index
    %1 = vector.load %arg3[%c0_1, %c0_2] : memref<1024x128xbf16, #tpu.memory_space<vmem>>, vector<1024x128xbf16>
    %cst = arith.constant dense<0.000000e+00> : vector<112x128xf32>
    %2 = tpu.matmul %0, %1, %cst {dimension_numbers = #tpu.dot_dimension_numbers<[1], [0], [0], [1], [0, 0, 1, 1], [], []>} : vector<112x1024xbf16>, vector<1024x128xbf16>, vector<112x128xf32> -> vector<112x128xf32>
    %cst_3 = arith.constant dense<0.000000e+00> : vector<128xf32>
    %3 = vector.multi_reduction <add>, %2, %cst_3 [0] : vector<112x128xf32> to vector<128xf32>
    %4 = vector.shape_cast %3 : vector<128xf32> to vector<1x128xf32>
    %cst_4 = arith.constant 0.0102040814 : f32
    %5 = vector.broadcast %cst_4 : f32 to vector<1x128xf32>
    %6 = arith.mulf %4, %5 : vector<1x128xf32>
    %7 = arith.mulf %2, %2 : vector<112x128xf32>
    %cst_5 = arith.constant dense<0.000000e+00> : vector<128xf32>
    %8 = vector.multi_reduction <add>, %7, %cst_5 [0] : vector<112x128xf32> to vector<128xf32>
    %9 = vector.shape_cast %8 : vector<128xf32> to vector<1x128xf32>
    %cst_6 = arith.constant 0.0102040814 : f32
    %10 = vector.broadcast %cst_6 : f32 to vector<1x128xf32>
    %11 = arith.mulf %9, %10 : vector<1x128xf32>
    %12 = arith.mulf %6, %6 : vector<1x128xf32>
    %13 = arith.subf %11, %12 : vector<1x128xf32>
    %cst_7 = arith.constant 0.000000e+00 : f32
    %14 = vector.broadcast %cst_7 : f32 to vector<1x128xf32>
    %15 = arith.maximumf %13, %14 : vector<1x128xf32>
    %16 = vector.broadcast %6 : vector<1x128xf32> to vector<112x128xf32>
    %17 = arith.subf %2, %16 : vector<112x128xf32>
    %cst_8 = arith.constant 9.99999974E-6 : f32
    %18 = vector.broadcast %cst_8 : f32 to vector<1x128xf32>
    %19 = arith.addf %15, %18 : vector<1x128xf32>
    %20 = math.rsqrt %19 : vector<1x128xf32>
    %21 = vector.broadcast %20 : vector<1x128xf32> to vector<112x128xf32>
    %22 = arith.mulf %17, %21 : vector<112x128xf32>
    %c0_9 = arith.constant 0 : index
    %c0_10 = arith.constant 0 : index
    %23 = vector.load %arg4[%c0_9, %c0_10] : memref<1x128xf32, #tpu.memory_space<vmem>>, vector<1x128xf32>
    %24 = vector.broadcast %23 : vector<1x128xf32> to vector<112x128xf32>
    %25 = arith.mulf %22, %24 : vector<112x128xf32>
    %c0_11 = arith.constant 0 : index
    %c0_12 = arith.constant 0 : index
    %26 = vector.load %arg5[%c0_11, %c0_12] : memref<1x128xf32, #tpu.memory_space<vmem>>, vector<1x128xf32>
    %27 = vector.broadcast %26 : vector<1x128xf32> to vector<112x128xf32>
    %28 = arith.addf %25, %27 : vector<112x128xf32>
    %cst_13 = arith.constant 0.000000e+00 : f32
    %29 = vector.broadcast %cst_13 : f32 to vector<112x128xf32>
    %30 = arith.cmpf ogt, %28, %29 : vector<112x128xf32>
    %cst_14 = arith.constant 2.000000e-01 : f32
    %31 = vector.broadcast %cst_14 : f32 to vector<112x128xf32>
    %32 = arith.mulf %31, %28 : vector<112x128xf32>
    %33 = arith.select %30, %28, %32 : vector<112x128xi1>, vector<112x128xf32>
    %34 = arith.truncf %33 : vector<112x128xf32> to vector<112x128xbf16>
    %c0_15 = arith.constant 0 : index
    %c0_16 = arith.constant 0 : index
    %35 = vector.load %arg6[%c0_15, %c0_16] : memref<112x128xbf16, #tpu.memory_space<vmem>>, vector<112x128xbf16>
    tpu.vector_store %arg6[%c0_15, %c0_16], %34 {strides = array<i32>} : memref<112x128xbf16, #tpu.memory_space<vmem>>, vector<112x128xbf16>,
    return
  }
  func.func @transform_0(%arg0: i32, %arg1: i32) -> (i32, i32) {
    %c0_i32 = arith.constant 0 : i32
    %c0_i32_0 = arith.constant 0 : i32
    return %c0_i32, %arg1 : i32, i32
  }
  func.func @transform_1(%arg0: i32, %arg1: i32) -> (i32, i32) {
    %c0_i32 = arith.constant 0 : i32
    return %arg1, %arg0 : i32, i32
  }
  func.func @transform_2(%arg0: i32, %arg1: i32) -> (i32, i32) {
    %c0_i32 = arith.constant 0 : i32
    %c0_i32_0 = arith.constant 0 : i32
    return %c0_i32, %arg0 : i32, i32
  }
  func.func @transform_3(%arg0: i32, %arg1: i32) -> (i32, i32) {
    %c0_i32 = arith.constant 0 : i32
    %c0_i32_0 = arith.constant 0 : i32
    return %c0_i32, %arg0 : i32, i32
  }
  func.func @transform_4(%arg0: i32, %arg1: i32) -> (i32, i32) {
    %c0_i32 = arith.constant 0 : i32
    %c0_i32_0 = arith.constant 0 : i32
    return %c0_i32, %arg0 : i32, i32
  }
}

module attributes {stable_mosaic.version = 11 : i64} {
  func.func @_gemm_kernel(%arg0: i32, %arg1: i32, %arg2: memref<16x1024xbf16, #tpu.memory_space<vmem>>, %arg3: memref<1024x128xbf16, #tpu.memory_space<vmem>>, %arg4: memref<1x128xf32, #tpu.memory_space<vmem>>, %arg5: memref<16x128xf32, #tpu.memory_space<vmem>>) attributes {dimension_semantics = [#tpu.dimension_semantics<parallel>, #tpu.dimension_semantics<arbitrary>], iteration_bounds = array<i64: 1, 1>, scalar_prefetch = 0 : i64, scratch_operands = 0 : i64, tpu.core_type = #tpu.core_type<tc>, window_params = [{transform_indices = @transform_0, window_bounds = array<i64: 16, 1024>}, {transform_indices = @transform_1, window_bounds = array<i64: 1024, 128>}, {transform_indices = @transform_2, window_bounds = array<i64: 1, 128>}, {transform_indices = @transform_3, window_bounds = array<i64: 16, 128>}]} {
    %c0 = arith.constant 0 : index
    %c0_0 = arith.constant 0 : index
    %0 = vector.load %arg2[%c0, %c0_0] : memref<16x1024xbf16, #tpu.memory_space<vmem>>, vector<16x1024xbf16>
    %c0_1 = arith.constant 0 : index
    %c0_2 = arith.constant 0 : index
    %1 = vector.load %arg3[%c0_1, %c0_2] : memref<1024x128xbf16, #tpu.memory_space<vmem>>, vector<1024x128xbf16>
    %cst = arith.constant dense<0.000000e+00> : vector<16x128xf32>
    %2 = tpu.matmul %0, %1, %cst {dimension_numbers = #tpu.dot_dimension_numbers<[1], [0], [0], [1], [0, 0, 1, 1], [], []>} : vector<16x1024xbf16>, vector<1024x128xbf16>, vector<16x128xf32> -> vector<16x128xf32>
    %c0_3 = arith.constant 0 : index
    %c0_4 = arith.constant 0 : index
    %3 = vector.load %arg4[%c0_3, %c0_4] : memref<1x128xf32, #tpu.memory_space<vmem>>, vector<1x128xf32>
    %4 = vector.broadcast %3 : vector<1x128xf32> to vector<16x128xf32>
    %5 = arith.addf %2, %4 : vector<16x128xf32>
    %cst_5 = arith.constant 0.000000e+00 : f32
    %6 = vector.broadcast %cst_5 : f32 to vector<16x128xf32>
    %7 = arith.subf %6, %5 : vector<16x128xf32>
    %8 = math.exp %7 : vector<16x128xf32>
    %cst_6 = arith.constant 1.000000e+00 : f32
    %9 = vector.broadcast %cst_6 : f32 to vector<16x128xf32>
    %10 = arith.addf %9, %8 : vector<16x128xf32>
    %11 = tpu.reciprocal %10 {approx = true} : vector<16x128xf32> -> vector<16x128xf32>
    %c0_7 = arith.constant 0 : index
    %c0_8 = arith.constant 0 : index
    %12 = vector.load %arg5[%c0_7, %c0_8] : memref<16x128xf32, #tpu.memory_space<vmem>>, vector<16x128xf32>
    tpu.vector_store %arg5[%c0_7, %c0_8], %11 {strides = array<i32>} : memref<16x128xf32, #tpu.memory_space<vmem>>, vector<16x128xf32>,
    return
  }
  func.func @transform_0(%arg0: i32, %arg1: i32) -> (i32, i32) {
    %c0_i32 = arith.constant 0 : i32
    %c0_i32_0 = arith.constant 0 : i32
    return %c0_i32, %arg1 : i32, i32
  }
  func.func @transform_1(%arg0: i32, %arg1: i32) -> (i32, i32) {
    %c0_i32 = arith.constant 0 : i32
    return %arg1, %arg0 : i32, i32
  }
  func.func @transform_2(%arg0: i32, %arg1: i32) -> (i32, i32) {
    %c0_i32 = arith.constant 0 : i32
    %c0_i32_0 = arith.constant 0 : i32
    return %c0_i32, %arg0 : i32, i32
  }
  func.func @transform_3(%arg0: i32, %arg1: i32) -> (i32, i32) {
    %c0_i32 = arith.constant 0 : i32
    %c0_i32_0 = arith.constant 0 : i32
    return %c0_i32, %arg0 : i32, i32
  }
}

module attributes {stable_mosaic.version = 11 : i64} {
  func.func @_gemm_kernel(%arg0: i32, %arg1: i32, %arg2: memref<16x6272xbf16, #tpu.memory_space<vmem>>, %arg3: memref<6272x512xbf16, #tpu.memory_space<vmem>>, %arg4: memref<1x512xf32, #tpu.memory_space<vmem>>, %arg5: memref<1x512xf32, #tpu.memory_space<vmem>>, %arg6: memref<16x512xbf16, #tpu.memory_space<vmem>>) attributes {dimension_semantics = [#tpu.dimension_semantics<parallel>, #tpu.dimension_semantics<arbitrary>], iteration_bounds = array<i64: 2, 1>, scalar_prefetch = 0 : i64, scratch_operands = 0 : i64, tpu.core_type = #tpu.core_type<tc>, window_params = [{transform_indices = @transform_0, window_bounds = array<i64: 16, 6272>}, {transform_indices = @transform_1, window_bounds = array<i64: 6272, 512>}, {transform_indices = @transform_2, window_bounds = array<i64: 1, 512>}, {transform_indices = @transform_3, window_bounds = array<i64: 1, 512>}, {transform_indices = @transform_4, window_bounds = array<i64: 16, 512>}]} {
    %c0 = arith.constant 0 : index
    %c0_0 = arith.constant 0 : index
    %0 = vector.load %arg2[%c0, %c0_0] : memref<16x6272xbf16, #tpu.memory_space<vmem>>, vector<16x6272xbf16>
    %c0_1 = arith.constant 0 : index
    %c0_2 = arith.constant 0 : index
    %1 = vector.load %arg3[%c0_1, %c0_2] : memref<6272x512xbf16, #tpu.memory_space<vmem>>, vector<6272x512xbf16>
    %cst = arith.constant dense<0.000000e+00> : vector<16x512xf32>
    %2 = tpu.matmul %0, %1, %cst {dimension_numbers = #tpu.dot_dimension_numbers<[1], [0], [0], [1], [0, 0, 1, 1], [], []>} : vector<16x6272xbf16>, vector<6272x512xbf16>, vector<16x512xf32> -> vector<16x512xf32>
    %cst_3 = arith.constant dense<0.000000e+00> : vector<512xf32>
    %3 = vector.multi_reduction <add>, %2, %cst_3 [0] : vector<16x512xf32> to vector<512xf32>
    %4 = vector.shape_cast %3 : vector<512xf32> to vector<1x512xf32>
    %cst_4 = arith.constant 5.000000e-01 : f32
    %5 = vector.broadcast %cst_4 : f32 to vector<1x512xf32>
    %6 = arith.mulf %4, %5 : vector<1x512xf32>
    %7 = arith.mulf %2, %2 : vector<16x512xf32>
    %cst_5 = arith.constant dense<0.000000e+00> : vector<512xf32>
    %8 = vector.multi_reduction <add>, %7, %cst_5 [0] : vector<16x512xf32> to vector<512xf32>
    %9 = vector.shape_cast %8 : vector<512xf32> to vector<1x512xf32>
    %cst_6 = arith.constant 5.000000e-01 : f32
    %10 = vector.broadcast %cst_6 : f32 to vector<1x512xf32>
    %11 = arith.mulf %9, %10 : vector<1x512xf32>
    %12 = arith.mulf %6, %6 : vector<1x512xf32>
    %13 = arith.subf %11, %12 : vector<1x512xf32>
    %cst_7 = arith.constant 0.000000e+00 : f32
    %14 = vector.broadcast %cst_7 : f32 to vector<1x512xf32>
    %15 = arith.maximumf %13, %14 : vector<1x512xf32>
    %16 = vector.broadcast %6 : vector<1x512xf32> to vector<16x512xf32>
    %17 = arith.subf %2, %16 : vector<16x512xf32>
    %cst_8 = arith.constant 9.99999974E-6 : f32
    %18 = vector.broadcast %cst_8 : f32 to vector<1x512xf32>
    %19 = arith.addf %15, %18 : vector<1x512xf32>
    %20 = math.rsqrt %19 : vector<1x512xf32>
    %21 = vector.broadcast %20 : vector<1x512xf32> to vector<16x512xf32>
    %22 = arith.mulf %17, %21 : vector<16x512xf32>
    %c0_9 = arith.constant 0 : index
    %c0_10 = arith.constant 0 : index
    %23 = vector.load %arg4[%c0_9, %c0_10] : memref<1x512xf32, #tpu.memory_space<vmem>>, vector<1x512xf32>
    %24 = vector.broadcast %23 : vector<1x512xf32> to vector<16x512xf32>
    %25 = arith.mulf %22, %24 : vector<16x512xf32>
    %c0_11 = arith.constant 0 : index
    %c0_12 = arith.constant 0 : index
    %26 = vector.load %arg5[%c0_11, %c0_12] : memref<1x512xf32, #tpu.memory_space<vmem>>, vector<1x512xf32>
    %27 = vector.broadcast %26 : vector<1x512xf32> to vector<16x512xf32>
    %28 = arith.addf %25, %27 : vector<16x512xf32>
    %cst_13 = arith.constant 0.000000e+00 : f32
    %29 = vector.broadcast %cst_13 : f32 to vector<16x512xf32>
    %30 = arith.cmpf ogt, %28, %29 : vector<16x512xf32>
    %cst_14 = arith.constant 2.000000e-01 : f32
    %31 = vector.broadcast %cst_14 : f32 to vector<16x512xf32>
    %32 = arith.mulf %31, %28 : vector<16x512xf32>
    %33 = arith.select %30, %28, %32 : vector<16x512xi1>, vector<16x512xf32>
    %34 = arith.truncf %33 : vector<16x512xf32> to vector<16x512xbf16>
    %c0_15 = arith.constant 0 : index
    %c0_16 = arith.constant 0 : index
    %35 = vector.load %arg6[%c0_15, %c0_16] : memref<16x512xbf16, #tpu.memory_space<vmem>>, vector<16x512xbf16>
    tpu.vector_store %arg6[%c0_15, %c0_16], %34 {strides = array<i32>} : memref<16x512xbf16, #tpu.memory_space<vmem>>, vector<16x512xbf16>,
    return
  }
  func.func @transform_0(%arg0: i32, %arg1: i32) -> (i32, i32) {
    %c0_i32 = arith.constant 0 : i32
    %c0_i32_0 = arith.constant 0 : i32
    return %c0_i32, %arg1 : i32, i32
  }
  func.func @transform_1(%arg0: i32, %arg1: i32) -> (i32, i32) {
    %c0_i32 = arith.constant 0 : i32
    return %arg1, %arg0 : i32, i32
  }
  func.func @transform_2(%arg0: i32, %arg1: i32) -> (i32, i32) {
    %c0_i32 = arith.constant 0 : i32
    %c0_i32_0 = arith.constant 0 : i32
    return %c0_i32, %arg0 : i32, i32
  }
  func.func @transform_3(%arg0: i32, %arg1: i32) -> (i32, i32) {
    %c0_i32 = arith.constant 0 : i32
    %c0_i32_0 = arith.constant 0 : i32
    return %c0_i32, %arg0 : i32, i32
  }
  func.func @transform_4(%arg0: i32, %arg1: i32) -> (i32, i32) {
    %c0_i32 = arith.constant 0 : i32
    %c0_i32_0 = arith.constant 0 : i32
    return %c0_i32, %arg0 : i32, i32
  }
}

</mosaic_0001>

<bundles_post_ra>
// kernel: d_forward.4
= control target key start
LH: loop header
LB: loop body
LE: loop exit
PB: predicated region body
PF: predicated region fallthrough
CT: control target
= control target key end

     0   :  { %8 = vsyncpa [#allocation3], 0  ;;  %s1741_s0 = inlined_call_operand.vmem [shape: bf16[400,16], index: 0, kind: input, shape index: {}]   ;;  %s1742_s1 = inlined_call_operand.hbm [shape: bf16[16,64], index: 1, kind: input, shape index: {}]   ;;  %s1743_s2 = inlined_call_operand.hbm [shape: f32[1,64], index: 2, kind: input, shape index: {}]   ;;  %s1744_s3 = inlined_call_operand.vmem [shape: bf16[400,64], index: 3, kind: output, shape index: {}]  }
   0x1   :  { %9 = vsyncpa [#allocation5], 0  ;;  %s1305_s12 = smov [#allocation2]  }
   0x2   :  { %s17_s13 = sshll.u32 %s1305_s12, 4  ;;  %s18_s13 = int_to_ptr.vmem [resolvable:$true] %s17_s13 }
   0x3   :  { %s1269_s14 = scalar_lea.vmem %s18_s13, 128  ;;  %p1274_p1 = scmp.lt.s32.totalorder %s18_s13, %s18_s13 }
   0x4   :  { %p1270_p0 = scmp.ne.s32.totalorder %s18_s13, %s1269_s14  ;;  %p1275_p2 = scmp.lt.s32.totalorder %s1269_s14, %s1269_s14 }
   0x6   :  { %p1276_p3 = por %p1275_p2, %p1274_p1 }
   0x8   :  { %p1277_p4 = pnand %p1276_p3, %p1270_p0 }
   0xa   :  { %1280 = shalt.err (!%p1277_p4)
}
   0xb   :  { %s1306_s15 = smov 64   ;;  %s1307_s16 = smov 4  }
   0xc   :  { %23 = dma.hbm_to_vmem [thread:$0]  %s1742_s1, 128, %s18_s13, [#allocation3], %s1306_s15, %s1306_s15, %s1307_s16  }
   0xd   :  { %s1308_s19 = smov [#allocation4]  }
   0xe   :  { %s30_s20 = sshll.u32 %s1308_s19, 4  ;;  %s31_s20 = int_to_ptr.vmem [resolvable:$true] %s30_s20 }
   0xf   :  { %s1289_s21 = scalar_lea.vmem %s31_s20, 16  ;;  %s1293_s22 = scalar_lea.vmem %s31_s20, 32 }
  0x10   :  { %p1290_p5 = scmp.ne.s32.totalorder %s31_s20, %s1289_s21  ;;  %p1294_p6 = scmp.lt.s32.totalorder %s31_s20, %s31_s20 }
  0x11   :  { %p1295_p7 = scmp.lt.s32.totalorder %s1293_s22, %s1289_s21 }
  0x13   :  { %p1296_p8 = por %p1295_p7, %p1294_p6 }
  0x15   :  { %p1297_p9 = pnand %p1296_p8, %p1290_p5 }
  0x17   :  { %1300 = shalt.err (!%p1297_p9)
}
  0x18   :  { %33 = dma.hbm_to_vmem [thread:$0]  %s1743_s2, 16, %s31_s20, [#allocation5]  }
  0x19   :  { %1301 = dma.done.wait [#allocation3], 128  }
  0x1a   :  { %1302 = vsyncadd [#allocation3], 4294967168 }
  0x1b   :  { %1303 = dma.done.wait [#allocation5], 16  }
  0x1c   :  { %1304 = vsyncadd [#allocation5], 4294967280  ;;  %v1309_v0 = vmov 0.0   ;;  %vm1310_vm0 = vmmov 0   ;;  %v1235_v1 = vld [vmem:[#allocation2] sm:$0xff]   ;;  %vm231_vm1 = vcmask 130048  }
  0x1d   :  { %1125 = vmatprep.subr.bf16.mxu0 %v1309_v0  ;;  %1227 = vmatprep.subr.bf16.mxu1 %v1309_v0  ;;  %v1236_v2 = vld [vmem:[%s1741_s0] sm:$0xff]   ;;  %v1237_v3 = vld [vmem:[%s1741_s0 + $0x68] sm:$0xff]   ;;  %v1239_v5 = vld [vmem:[%s1741_s0 + $0x70] sm:$0xff]   ;;  %vm890_vm4 = vcmask 519168  }
  0x1e   :  { %1127 = vmatprep.mubr.msk.bf16.mxu0 %vm1310_vm0, %v1309_v0  ;;  %1179 = vmatprep.mubr.msk.bf16.mxu1 %vm1310_vm0, %v1309_v0  ;;  %v1238_v4 = vld [vmem:[%s1741_s0 + $0x8] sm:$0xff]   ;;  %v1240_v6 = vld [vmem:[%s1741_s0 + $0x10] sm:$0xff]   ;;  %v1241_v7 = vld [vmem:[%s1741_s0 + $0x78] sm:$0xff]  }
  0x1f   :  { %1126 = vmatpush3.bf16.msra.mxu0 %v1235_v1  ;;  %1228 = vmatpush3.bf16.msra.mxu1 %v1235_v1  ;;  %v1242_v8 = vld [vmem:[%s1741_s0 + $0x18] sm:$0xff]   ;;  %v1243_v9 = vld [vmem:[%s1741_s0 + $0x80] sm:$0xff]   ;;  %v1245_v11 = vld [vmem:[%s1741_s0 + $0x88] sm:$0xff]  }
  0x20   :  { %v1244_v10 = vld [vmem:[%s1741_s0 + $0x20] sm:$0xff]   ;;  %v1246_v12 = vld [vmem:[%s1741_s0 + $0x28] sm:$0xff]   ;;  %v1247_v13 = vld [vmem:[%s1741_s0 + $0x90] sm:$0xff]  }
  0x21   :  { %v1248_v14 = vld [vmem:[%s1741_s0 + $0x30] sm:$0xff]   ;;  %v1249_v15 = vld [vmem:[%s1741_s0 + $0x98] sm:$0xff]   ;;  %v1251_v17 = vld [vmem:[%s1741_s0 + $0xa0] sm:$0xff]  }
  0x22   :  { %1128 = vmatmul.mubr.msk.bf16.vlgmr.msra.gmra.mxu0 %vm231_vm1, %v1236_v2  ;;  %1180 = vmatmul.mubr.msk.bf16.vlgmr.msra.gmra.mxu1 %vm231_vm1, %v1237_v3  ;;  %v1250_v16 = vld [vmem:[%s1741_s0 + $0x38] sm:$0xff]   ;;  %v1252_v18 = vld [vmem:[%s1741_s0 + $0x40] sm:$0xff]   ;;  %v1253_v19 = vld [vmem:[%s1741_s0 + $0xa8] sm:$0xff]  }
  0x23   :  { %1131 = vmatprep.mubr.msk.bf16.mxu0 %vm1310_vm0, %v1309_v0  ;;  %1183 = vmatprep.mubr.msk.bf16.mxu1 %vm1310_vm0, %v1309_v0  ;;  %v1254_v20 = vld [vmem:[%s1741_s0 + $0x48] sm:$0xff]   ;;  %v1255_v21 = vld [vmem:[%s1741_s0 + $0xb0] sm:$0xff]   ;;  %v1257_v23 = vld [vmem:[%s1741_s0 + $0xb8] sm:$0xff]  }
  0x24   :  { %v1256_v22 = vld [vmem:[%s1741_s0 + $0x50] sm:$0xff]   ;;  %v1258_v24 = vld [vmem:[%s1741_s0 + $0x58] sm:$0xff]   ;;  %v1259_v25 = vld [vmem:[%s1741_s0 + $0xc0] sm:$0xff]  }
  0x25   :  { %v1260_v26 = vld [vmem:[%s1741_s0 + $0x60] sm:$0xff]   ;;  %v1489_v27 = vld [vmem:[#allocation4] ss:$0 sm:$0xff] }
  0x2a   :  { %1132 = vmatmul.mubr.msk.bf16.gmra.mxu0 %vm231_vm1, %v1238_v4  ;;  %1184 = vmatmul.mubr.msk.bf16.gmra.mxu1 %vm231_vm1, %v1239_v5 }
  0x2b   :  { %1135 = vmatprep.mubr.msk.bf16.mxu0 %vm1310_vm0, %v1309_v0  ;;  %1187 = vmatprep.mubr.msk.bf16.mxu1 %vm1310_vm0, %v1309_v0 }
  0x32   :  { %1136 = vmatmul.mubr.msk.bf16.gmra.mxu0 %vm231_vm1, %v1240_v6  ;;  %1188 = vmatmul.mubr.msk.bf16.gmra.mxu1 %vm231_vm1, %v1241_v7 }
  0x33   :  { %1139 = vmatprep.mubr.msk.bf16.mxu0 %vm1310_vm0, %v1309_v0  ;;  %1191 = vmatprep.mubr.msk.bf16.mxu1 %vm1310_vm0, %v1309_v0 }
  0x3a   :  { %1140 = vmatmul.mubr.msk.bf16.gmra.mxu0 %vm231_vm1, %v1242_v8  ;;  %1192 = vmatmul.mubr.msk.bf16.gmra.mxu1 %vm231_vm1, %v1243_v9 }
  0x3b   :  { %1143 = vmatprep.mubr.msk.bf16.mxu0 %vm1310_vm0, %v1309_v0  ;;  %1195 = vmatprep.mubr.msk.bf16.mxu1 %vm1310_vm0, %v1309_v0 }
  0x42   :  { %1144 = vmatmul.mubr.msk.bf16.gmra.mxu0 %vm231_vm1, %v1244_v10  ;;  %1196 = vmatmul.mubr.msk.bf16.gmra.mxu1 %vm231_vm1, %v1245_v11 }
  0x43   :  { %1147 = vmatprep.mubr.msk.bf16.mxu0 %vm1310_vm0, %v1309_v0  ;;  %1199 = vmatprep.mubr.msk.bf16.mxu1 %vm1310_vm0, %v1309_v0 }
  0x4a   :  { %1148 = vmatmul.mubr.msk.bf16.gmra.mxu0 %vm231_vm1, %v1246_v12  ;;  %1200 = vmatmul.mubr.msk.bf16.gmra.mxu1 %vm231_vm1, %v1247_v13 }
  0x4b   :  { %1151 = vmatprep.mubr.msk.bf16.mxu0 %vm1310_vm0, %v1309_v0  ;;  %1203 = vmatprep.mubr.msk.bf16.mxu1 %vm1310_vm0, %v1309_v0 }
  0x52   :  { %1152 = vmatmul.mubr.msk.bf16.gmra.mxu0 %vm231_vm1, %v1248_v14  ;;  %1204 = vmatmul.mubr.msk.bf16.gmra.mxu1 %vm231_vm1, %v1249_v15 }
  0x53   :  { %1155 = vmatprep.mubr.msk.bf16.mxu0 %vm1310_vm0, %v1309_v0  ;;  %1207 = vmatprep.mubr.msk.bf16.mxu1 %vm1310_vm0, %v1309_v0 }
  0x5a   :  { %1156 = vmatmul.mubr.msk.bf16.gmra.mxu0 %vm231_vm1, %v1250_v16  ;;  %1208 = vmatmul.mubr.msk.bf16.gmra.mxu1 %vm231_vm1, %v1251_v17 }
  0x5b   :  { %1159 = vmatprep.mubr.msk.bf16.mxu0 %vm1310_vm0, %v1309_v0  ;;  %1211 = vmatprep.mubr.msk.bf16.mxu1 %vm1310_vm0, %v1309_v0 }
  0x62   :  { %1160 = vmatmul.mubr.msk.bf16.gmra.mxu0 %vm231_vm1, %v1252_v18  ;;  %1212 = vmatmul.mubr.msk.bf16.gmra.mxu1 %vm231_vm1, %v1253_v19 }
  0x63   :  { %1163 = vmatprep.mubr.msk.bf16.mxu0 %vm1310_vm0, %v1309_v0  ;;  %1215 = vmatprep.mubr.msk.bf16.mxu1 %vm1310_vm0, %v1309_v0 }
  0x6a   :  { %1164 = vmatmul.mubr.msk.bf16.gmra.mxu0 %vm231_vm1, %v1254_v20  ;;  %1216 = vmatmul.mubr.msk.bf16.gmra.mxu1 %vm231_vm1, %v1255_v21 }
  0x6b   :  { %1167 = vmatprep.mubr.msk.bf16.mxu0 %vm1310_vm0, %v1309_v0  ;;  %1219 = vmatprep.mubr.msk.bf16.mxu1 %vm1310_vm0, %v1309_v0 }
  0x72   :  { %1168 = vmatmul.mubr.msk.bf16.gmra.mxu0 %vm231_vm1, %v1256_v22  ;;  %1220 = vmatmul.mubr.msk.bf16.gmra.mxu1 %vm231_vm1, %v1257_v23 }
  0x73   :  { %1171 = vmatprep.mubr.msk.bf16.mxu0 %vm1310_vm0, %v1309_v0  ;;  %1223 = vmatprep.mubr.msk.bf16.mxu1 %vm1310_vm0, %v1309_v0 }
  0x7a   :  { %1172 = vmatmul.mubr.msk.bf16.gmra.mxu0 %vm231_vm1, %v1258_v24  ;;  %1224 = vmatmul.mubr.msk.bf16.gmra.mxu1 %vm231_vm1, %v1259_v25 }
  0x7b   :  { %1175 = vmatprep.mubr.msk.bf16.mxu0 %vm1310_vm0, %v1309_v0 }
  0x82   :  { %1176 = vmatmul.mubr.msk.bf16.gmra.mxu0 %vm231_vm1, %v1260_v26 }
  0xe2   :  { %v341_v28 = vpop.f32.mrf.mxu0  ;;  %v445_v29 = vpop.f32.mrf.mxu1 }
  0xe3   :  { %v342_v30 = vadd.f32 %v1489_v27, %v341_v28  ;;  %v446_v31 = vadd.f32 %v1489_v27, %v445_v29 }
  0xe4   :  { %v1129_v32 = vpop.f32.mrf.mxu0  ;;  %v1181_v33 = vpop.f32.mrf.mxu1 }
  0xe5   :  { %vm540_vm2 = vcmp.gt.f32.partialorder %v342_v30, 0.0  ;;  %v590_v34 = vmul.f32 0.2, %v342_v30  ;;  %vm566_vm3 = vcmp.gt.f32.partialorder %v446_v31, 0.0  ;;  %v616_v35 = vmul.f32 0.2, %v446_v31 }
  0xe6   :  { %v344_v36 = vpop.f32.mrf.mxu0  ;;  %v448_v37 = vpop.f32.mrf.mxu1 }
  0xe7   :  { %v640_v38 = vsel %vm540_vm2, %v342_v30, %v590_v34  ;;  %v666_v39 = vsel %vm566_vm3, %v446_v31, %v616_v35  ;;  %v345_v40 = vadd.f32 %v1489_v27, %v344_v36  ;;  %v449_v41 = vadd.f32 %v1489_v27, %v448_v37 }
  0xe8   :  { %v1049_v42 = vpack.c.bf16 %v640_v38, %v640_v38  ;;  %v1075_v43 = vpack.c.bf16 %v666_v39, %v666_v39  ;;  %v1130_v44 = vpop.f32.mrf.mxu0  ;;  %v1182_v45 = vpop.f32.mrf.mxu1 }
  0xe9   :  { %vm541_vm5 = vcmp.gt.f32.partialorder %v345_v40, 0.0  ;;  %v591_v46 = vmul.f32 0.2, %v345_v40  ;;  %vm567_vm6 = vcmp.gt.f32.partialorder %v449_v41, 0.0  ;;  %v617_v47 = vmul.f32 0.2, %v449_v41 }
  0xea   :  { %891 = vst.msk [vmem:[%s1744_s3] sm:$0xf] %vm890_vm4, %v1049_v42  ;;  %917 = vst.msk [vmem:[%s1744_s3 + $0x68] sm:$0xf] %vm890_vm4, %v1075_v43  ;;  %v349_v48 = vpop.f32.mrf.mxu0  ;;  %v453_v49 = vpop.f32.mrf.mxu1 }
  0xeb   :  { %v641_v50 = vsel %vm541_vm5, %v345_v40, %v591_v46  ;;  %v667_v51 = vsel %vm567_vm6, %v449_v41, %v617_v47  ;;  %v350_v52 = vadd.f32 %v1489_v27, %v349_v48  ;;  %v454_v53 = vadd.f32 %v1489_v27, %v453_v49 }
  0xec   :  { %v1050_v54 = vpack.c.bf16 %v641_v50, %v641_v50  ;;  %v1076_v55 = vpack.c.bf16 %v667_v51, %v667_v51  ;;  %v1133_v56 = vpop.f32.mrf.mxu0  ;;  %v1185_v57 = vpop.f32.mrf.mxu1 }
  0xed   :  { %vm542_vm7 = vcmp.gt.f32.partialorder %v350_v52, 0.0  ;;  %v592_v58 = vmul.f32 0.2, %v350_v52  ;;  %vm568_vm8 = vcmp.gt.f32.partialorder %v454_v53, 0.0  ;;  %v618_v59 = vmul.f32 0.2, %v454_v53 }
  0xee   :  { %892 = vst.msk [vmem:[%s1744_s3 + $0x4] sm:$0xf] %vm890_vm4, %v1050_v54  ;;  %918 = vst.msk [vmem:[%s1744_s3 + $0x6c] sm:$0xf] %vm890_vm4, %v1076_v55  ;;  %v352_v60 = vpop.f32.mrf.mxu0  ;;  %v456_v61 = vpop.f32.mrf.mxu1 }
  0xef   :  { %v642_v62 = vsel %vm542_vm7, %v350_v52, %v592_v58  ;;  %v668_v63 = vsel %vm568_vm8, %v454_v53, %v618_v59  ;;  %v353_v0 = vadd.f32 %v1489_v27, %v352_v60  ;;  %v457_v1 = vadd.f32 %v1489_v27, %v456_v61 }
  0xf0   :  { %v1051_v2 = vpack.c.bf16 %v642_v62, %v642_v62  ;;  %v1077_v3 = vpack.c.bf16 %v668_v63, %v668_v63  ;;  %v1134_v4 = vpop.f32.mrf.mxu0  ;;  %v1186_v5 = vpop.f32.mrf.mxu1 }
  0xf1   :  { %vm543_vm9 = vcmp.gt.f32.partialorder %v353_v0, 0.0  ;;  %v593_v6 = vmul.f32 0.2, %v353_v0  ;;  %vm569_vm10 = vcmp.gt.f32.partialorder %v457_v1, 0.0  ;;  %v619_v7 = vmul.f32 0.2, %v457_v1 }
  0xf2   :  { %893 = vst.msk [vmem:[%s1744_s3 + $0x8] sm:$0xf] %vm890_vm4, %v1051_v2  ;;  %919 = vst.msk [vmem:[%s1744_s3 + $0x70] sm:$0xf] %vm890_vm4, %v1077_v3  ;;  %v357_v8 = vpop.f32.mrf.mxu0  ;;  %v461_v9 = vpop.f32.mrf.mxu1 }
  0xf3   :  { %v643_v10 = vsel %vm543_vm9, %v353_v0, %v593_v6  ;;  %v669_v11 = vsel %vm569_vm10, %v457_v1, %v619_v7  ;;  %v358_v12 = vadd.f32 %v1489_v27, %v357_v8  ;;  %v462_v13 = vadd.f32 %v1489_v27, %v461_v9 }
  0xf4   :  { %v1052_v14 = vpack.c.bf16 %v643_v10, %v643_v10  ;;  %v1078_v15 = vpack.c.bf16 %v669_v11, %v669_v11  ;;  %v1137_v16 = vpop.f32.mrf.mxu0  ;;  %v1189_v17 = vpop.f32.mrf.mxu1 }
  0xf5   :  { %vm544_vm11 = vcmp.gt.f32.partialorder %v358_v12, 0.0  ;;  %v594_v18 = vmul.f32 0.2, %v358_v12  ;;  %vm570_vm12 = vcmp.gt.f32.partialorder %v462_v13, 0.0  ;;  %v620_v19 = vmul.f32 0.2, %v462_v13 }
  0xf6   :  { %894 = vst.msk [vmem:[%s1744_s3 + $0xc] sm:$0xf] %vm890_vm4, %v1052_v14  ;;  %920 = vst.msk [vmem:[%s1744_s3 + $0x74] sm:$0xf] %vm890_vm4, %v1078_v15  ;;  %v360_v20 = vpop.f32.mrf.mxu0  ;;  %v464_v21 = vpop.f32.mrf.mxu1 }
  0xf7   :  { %v644_v22 = vsel %vm544_vm11, %v358_v12, %v594_v18  ;;  %v670_v23 = vsel %vm570_vm12, %v462_v13, %v620_v19  ;;  %v361_v24 = vadd.f32 %v1489_v27, %v360_v20  ;;  %v465_v25 = vadd.f32 %v1489_v27, %v464_v21 }
  0xf8   :  { %v1053_v26 = vpack.c.bf16 %v644_v22, %v644_v22  ;;  %v1079_v28 = vpack.c.bf16 %v670_v23, %v670_v23  ;;  %v1138_v29 = vpop.f32.mrf.mxu0  ;;  %v1190_v30 = vpop.f32.mrf.mxu1 }
  0xf9   :  { %vm545_vm13 = vcmp.gt.f32.partialorder %v361_v24, 0.0  ;;  %v595_v31 = vmul.f32 0.2, %v361_v24  ;;  %vm571_vm14 = vcmp.gt.f32.partialorder %v465_v25, 0.0  ;;  %v621_v32 = vmul.f32 0.2, %v465_v25 }
  0xfa   :  { %895 = vst.msk [vmem:[%s1744_s3 + $0x10] sm:$0xf] %vm890_vm4, %v1053_v26  ;;  %921 = vst.msk [vmem:[%s1744_s3 + $0x78] sm:$0xf] %vm890_vm4, %v1079_v28  ;;  %v365_v33 = vpop.f32.mrf.mxu0  ;;  %v469_v34 = vpop.f32.mrf.mxu1 }
  0xfb   :  { %v645_v35 = vsel %vm545_vm13, %v361_v24, %v595_v31  ;;  %v671_v36 = vsel %vm571_vm14, %v465_v25, %v621_v32  ;;  %v366_v37 = vadd.f32 %v1489_v27, %v365_v33  ;;  %v470_v38 = vadd.f32 %v1489_v27, %v469_v34 }
  0xfc   :  { %v1054_v39 = vpack.c.bf16 %v645_v35, %v645_v35  ;;  %v1080_v40 = vpack.c.bf16 %v671_v36, %v671_v36  ;;  %v1141_v41 = vpop.f32.mrf.mxu0  ;;  %v1193_v42 = vpop.f32.mrf.mxu1 }
  0xfd   :  { %vm546_vm15 = vcmp.gt.f32.partialorder %v366_v37, 0.0  ;;  %v596_v43 = vmul.f32 0.2, %v366_v37  ;;  %vm572_vm0 = vcmp.gt.f32.partialorder %v470_v38, 0.0  ;;  %v622_v44 = vmul.f32 0.2, %v470_v38 }
  0xfe   :  { %896 = vst.msk [vmem:[%s1744_s3 + $0x14] sm:$0xf] %vm890_vm4, %v1054_v39  ;;  %922 = vst.msk [vmem:[%s1744_s3 + $0x7c] sm:$0xf] %vm890_vm4, %v1080_v40  ;;  %v368_v45 = vpop.f32.mrf.mxu0  ;;  %v472_v46 = vpop.f32.mrf.mxu1 }
  0xff   :  { %v646_v47 = vsel %vm546_vm15, %v366_v37, %v596_v43  ;;  %v672_v48 = vsel %vm572_vm0, %v470_v38, %v622_v44  ;;  %v369_v49 = vadd.f32 %v1489_v27, %v368_v45  ;;  %v473_v50 = vadd.f32 %v1489_v27, %v472_v46 }
 0x100   :  { %v1055_v51 = vpack.c.bf16 %v646_v47, %v646_v47  ;;  %v1081_v52 = vpack.c.bf16 %v672_v48, %v672_v48  ;;  %v1142_v53 = vpop.f32.mrf.mxu0  ;;  %v1194_v54 = vpop.f32.mrf.mxu1 }
 0x101   :  { %vm547_vm1 = vcmp.gt.f32.partialorder %v369_v49, 0.0  ;;  %v597_v55 = vmul.f32 0.2, %v369_v49  ;;  %vm573_vm2 = vcmp.gt.f32.partialorder %v473_v50, 0.0  ;;  %v623_v56 = vmul.f32 0.2, %v473_v50 }
 0x102   :  { %897 = vst.msk [vmem:[%s1744_s3 + $0x18] sm:$0xf] %vm890_vm4, %v1055_v51  ;;  %923 = vst.msk [vmem:[%s1744_s3 + $0x80] sm:$0xf] %vm890_vm4, %v1081_v52  ;;  %v373_v57 = vpop.f32.mrf.mxu0  ;;  %v477_v58 = vpop.f32.mrf.mxu1 }
 0x103   :  { %v647_v59 = vsel %vm547_vm1, %v369_v49, %v597_v55  ;;  %v673_v60 = vsel %vm573_vm2, %v473_v50, %v623_v56  ;;  %v374_v61 = vadd.f32 %v1489_v27, %v373_v57  ;;  %v478_v62 = vadd.f32 %v1489_v27, %v477_v58 }
 0x104   :  { %v1056_v63 = vpack.c.bf16 %v647_v59, %v647_v59  ;;  %v1082_v0 = vpack.c.bf16 %v673_v60, %v673_v60  ;;  %v1145_v1 = vpop.f32.mrf.mxu0  ;;  %v1197_v2 = vpop.f32.mrf.mxu1 }
 0x105   :  { %vm548_vm3 = vcmp.gt.f32.partialorder %v374_v61, 0.0  ;;  %v598_v3 = vmul.f32 0.2, %v374_v61  ;;  %vm574_vm5 = vcmp.gt.f32.partialorder %v478_v62, 0.0  ;;  %v624_v4 = vmul.f32 0.2, %v478_v62 }
 0x106   :  { %898 = vst.msk [vmem:[%s1744_s3 + $0x1c] sm:$0xf] %vm890_vm4, %v1056_v63  ;;  %924 = vst.msk [vmem:[%s1744_s3 + $0x84] sm:$0xf] %vm890_vm4, %v1082_v0  ;;  %v376_v5 = vpop.f32.mrf.mxu0  ;;  %v480_v6 = vpop.f32.mrf.mxu1 }
 0x107   :  { %v648_v7 = vsel %vm548_vm3, %v374_v61, %v598_v3  ;;  %v674_v8 = vsel %vm574_vm5, %v478_v62, %v624_v4  ;;  %v377_v9 = vadd.f32 %v1489_v27, %v376_v5  ;;  %v481_v10 = vadd.f32 %v1489_v27, %v480_v6 }
 0x108   :  { %v1057_v11 = vpack.c.bf16 %v648_v7, %v648_v7  ;;  %v1083_v12 = vpack.c.bf16 %v674_v8, %v674_v8  ;;  %v1146_v13 = vpop.f32.mrf.mxu0  ;;  %v1198_v14 = vpop.f32.mrf.mxu1 }
 0x109   :  { %vm549_vm6 = vcmp.gt.f32.partialorder %v377_v9, 0.0  ;;  %v599_v15 = vmul.f32 0.2, %v377_v9  ;;  %vm575_vm7 = vcmp.gt.f32.partialorder %v481_v10, 0.0  ;;  %v625_v16 = vmul.f32 0.2, %v481_v10 }
 0x10a   :  { %899 = vst.msk [vmem:[%s1744_s3 + $0x20] sm:$0xf] %vm890_vm4, %v1057_v11  ;;  %925 = vst.msk [vmem:[%s1744_s3 + $0x88] sm:$0xf] %vm890_vm4, %v1083_v12  ;;  %v381_v17 = vpop.f32.mrf.mxu0  ;;  %v485_v18 = vpop.f32.mrf.mxu1 }
 0x10b   :  { %v649_v19 = vsel %vm549_vm6, %v377_v9, %v599_v15  ;;  %v675_v20 = vsel %vm575_vm7, %v481_v10, %v625_v16  ;;  %v382_v21 = vadd.f32 %v1489_v27, %v381_v17  ;;  %v486_v22 = vadd.f32 %v1489_v27, %v485_v18 }
 0x10c   :  { %v1058_v23 = vpack.c.bf16 %v649_v19, %v649_v19  ;;  %v1084_v24 = vpack.c.bf16 %v675_v20, %v675_v20  ;;  %v1149_v25 = vpop.f32.mrf.mxu0  ;;  %v1201_v26 = vpop.f32.mrf.mxu1 }
 0x10d   :  { %vm550_vm8 = vcmp.gt.f32.partialorder %v382_v21, 0.0  ;;  %v600_v28 = vmul.f32 0.2, %v382_v21  ;;  %vm576_vm9 = vcmp.gt.f32.partialorder %v486_v22, 0.0  ;;  %v626_v29 = vmul.f32 0.2, %v486_v22 }
 0x10e   :  { %900 = vst.msk [vmem:[%s1744_s3 + $0x24] sm:$0xf] %vm890_vm4, %v1058_v23  ;;  %926 = vst.msk [vmem:[%s1744_s3 + $0x8c] sm:$0xf] %vm890_vm4, %v1084_v24  ;;  %v384_v30 = vpop.f32.mrf.mxu0  ;;  %v488_v31 = vpop.f32.mrf.mxu1 }
 0x10f   :  { %v650_v32 = vsel %vm550_vm8, %v382_v21, %v600_v28  ;;  %v676_v33 = vsel %vm576_vm9, %v486_v22, %v626_v29  ;;  %v385_v34 = vadd.f32 %v1489_v27, %v384_v30  ;;  %v489_v35 = vadd.f32 %v1489_v27, %v488_v31 }
 0x110   :  { %v1059_v36 = vpack.c.bf16 %v650_v32, %v650_v32  ;;  %v1085_v37 = vpack.c.bf16 %v676_v33, %v676_v33  ;;  %v1150_v38 = vpop.f32.mrf.mxu0  ;;  %v1202_v39 = vpop.f32.mrf.mxu1 }
 0x111   :  { %vm551_vm10 = vcmp.gt.f32.partialorder %v385_v34, 0.0  ;;  %v601_v40 = vmul.f32 0.2, %v385_v34  ;;  %vm577_vm11 = vcmp.gt.f32.partialorder %v489_v35, 0.0  ;;  %v627_v41 = vmul.f32 0.2, %v489_v35 }
 0x112   :  { %901 = vst.msk [vmem:[%s1744_s3 + $0x28] sm:$0xf] %vm890_vm4, %v1059_v36  ;;  %927 = vst.msk [vmem:[%s1744_s3 + $0x90] sm:$0xf] %vm890_vm4, %v1085_v37  ;;  %v389_v42 = vpop.f32.mrf.mxu0  ;;  %v493_v43 = vpop.f32.mrf.mxu1 }
 0x113   :  { %v651_v44 = vsel %vm551_vm10, %v385_v34, %v601_v40  ;;  %v677_v45 = vsel %vm577_vm11, %v489_v35, %v627_v41  ;;  %v390_v46 = vadd.f32 %v1489_v27, %v389_v42  ;;  %v494_v47 = vadd.f32 %v1489_v27, %v493_v43 }
 0x114   :  { %v1060_v48 = vpack.c.bf16 %v651_v44, %v651_v44  ;;  %v1086_v49 = vpack.c.bf16 %v677_v45, %v677_v45  ;;  %v1153_v50 = vpop.f32.mrf.mxu0  ;;  %v1205_v51 = vpop.f32.mrf.mxu1 }
 0x115   :  { %vm552_vm12 = vcmp.gt.f32.partialorder %v390_v46, 0.0  ;;  %v602_v52 = vmul.f32 0.2, %v390_v46  ;;  %vm578_vm13 = vcmp.gt.f32.partialorder %v494_v47, 0.0  ;;  %v628_v53 = vmul.f32 0.2, %v494_v47 }
 0x116   :  { %902 = vst.msk [vmem:[%s1744_s3 + $0x2c] sm:$0xf] %vm890_vm4, %v1060_v48  ;;  %928 = vst.msk [vmem:[%s1744_s3 + $0x94] sm:$0xf] %vm890_vm4, %v1086_v49  ;;  %v392_v54 = vpop.f32.mrf.mxu0  ;;  %v496_v55 = vpop.f32.mrf.mxu1 }
 0x117   :  { %v652_v56 = vsel %vm552_vm12, %v390_v46, %v602_v52  ;;  %v678_v57 = vsel %vm578_vm13, %v494_v47, %v628_v53  ;;  %v393_v58 = vadd.f32 %v1489_v27, %v392_v54  ;;  %v497_v59 = vadd.f32 %v1489_v27, %v496_v55 }
 0x118   :  { %v1061_v60 = vpack.c.bf16 %v652_v56, %v652_v56  ;;  %v1087_v61 = vpack.c.bf16 %v678_v57, %v678_v57  ;;  %v1154_v62 = vpop.f32.mrf.mxu0  ;;  %v1206_v63 = vpop.f32.mrf.mxu1 }
 0x119   :  { %vm553_vm14 = vcmp.gt.f32.partialorder %v393_v58, 0.0  ;;  %v603_v0 = vmul.f32 0.2, %v393_v58  ;;  %vm579_vm15 = vcmp.gt.f32.partialorder %v497_v59, 0.0  ;;  %v629_v1 = vmul.f32 0.2, %v497_v59 }
 0x11a   :  { %903 = vst.msk [vmem:[%s1744_s3 + $0x30] sm:$0xf] %vm890_vm4, %v1061_v60  ;;  %929 = vst.msk [vmem:[%s1744_s3 + $0x98] sm:$0xf] %vm890_vm4, %v1087_v61  ;;  %v397_v2 = vpop.f32.mrf.mxu0  ;;  %v501_v3 = vpop.f32.mrf.mxu1 }
 0x11b   :  { %v653_v4 = vsel %vm553_vm14, %v393_v58, %v603_v0  ;;  %v679_v5 = vsel %vm579_vm15, %v497_v59, %v629_v1  ;;  %v398_v6 = vadd.f32 %v1489_v27, %v397_v2  ;;  %v502_v7 = vadd.f32 %v1489_v27, %v501_v3 }
 0x11c   :  { %v1062_v8 = vpack.c.bf16 %v653_v4, %v653_v4  ;;  %v1088_v9 = vpack.c.bf16 %v679_v5, %v679_v5  ;;  %v1157_v10 = vpop.f32.mrf.mxu0  ;;  %v1209_v11 = vpop.f32.mrf.mxu1 }
 0x11d   :  { %vm554_vm0 = vcmp.gt.f32.partialorder %v398_v6, 0.0  ;;  %v604_v12 = vmul.f32 0.2, %v398_v6  ;;  %vm580_vm1 = vcmp.gt.f32.partialorder %v502_v7, 0.0  ;;  %v630_v13 = vmul.f32 0.2, %v502_v7 }
 0x11e   :  { %904 = vst.msk [vmem:[%s1744_s3 + $0x34] sm:$0xf] %vm890_vm4, %v1062_v8  ;;  %930 = vst.msk [vmem:[%s1744_s3 + $0x9c] sm:$0xf] %vm890_vm4, %v1088_v9  ;;  %v400_v14 = vpop.f32.mrf.mxu0  ;;  %v504_v15 = vpop.f32.mrf.mxu1 }
 0x11f   :  { %v654_v16 = vsel %vm554_vm0, %v398_v6, %v604_v12  ;;  %v680_v17 = vsel %vm580_vm1, %v502_v7, %v630_v13  ;;  %v401_v18 = vadd.f32 %v1489_v27, %v400_v14  ;;  %v505_v19 = vadd.f32 %v1489_v27, %v504_v15 }
 0x120   :  { %v1063_v20 = vpack.c.bf16 %v654_v16, %v654_v16  ;;  %v1089_v21 = vpack.c.bf16 %v680_v17, %v680_v17  ;;  %v1158_v22 = vpop.f32.mrf.mxu0  ;;  %v1210_v23 = vpop.f32.mrf.mxu1 }
 0x121   :  { %vm555_vm2 = vcmp.gt.f32.partialorder %v401_v18, 0.0  ;;  %v605_v24 = vmul.f32 0.2, %v401_v18  ;;  %vm581_vm3 = vcmp.gt.f32.partialorder %v505_v19, 0.0  ;;  %v631_v25 = vmul.f32 0.2, %v505_v19 }
 0x122   :  { %905 = vst.msk [vmem:[%s1744_s3 + $0x38] sm:$0xf] %vm890_vm4, %v1063_v20  ;;  %931 = vst.msk [vmem:[%s1744_s3 + $0xa0] sm:$0xf] %vm890_vm4, %v1089_v21  ;;  %v405_v26 = vpop.f32.mrf.mxu0  ;;  %v509_v28 = vpop.f32.mrf.mxu1 }
 0x123   :  { %v655_v29 = vsel %vm555_vm2, %v401_v18, %v605_v24  ;;  %v681_v30 = vsel %vm581_vm3, %v505_v19, %v631_v25  ;;  %v406_v31 = vadd.f32 %v1489_v27, %v405_v26  ;;  %v510_v32 = vadd.f32 %v1489_v27, %v509_v28 }
 0x124   :  { %v1064_v33 = vpack.c.bf16 %v655_v29, %v655_v29  ;;  %v1090_v34 = vpack.c.bf16 %v681_v30, %v681_v30  ;;  %v1161_v35 = vpop.f32.mrf.mxu0  ;;  %v1213_v36 = vpop.f32.mrf.mxu1 }
 0x125   :  { %vm556_vm5 = vcmp.gt.f32.partialorder %v406_v31, 0.0  ;;  %v606_v37 = vmul.f32 0.2, %v406_v31  ;;  %vm582_vm6 = vcmp.gt.f32.partialorder %v510_v32, 0.0  ;;  %v632_v38 = vmul.f32 0.2, %v510_v32 }
 0x126   :  { %906 = vst.msk [vmem:[%s1744_s3 + $0x3c] sm:$0xf] %vm890_vm4, %v1064_v33  ;;  %932 = vst.msk [vmem:[%s1744_s3 + $0xa4] sm:$0xf] %vm890_vm4, %v1090_v34  ;;  %v408_v39 = vpop.f32.mrf.mxu0  ;;  %v512_v40 = vpop.f32.mrf.mxu1 }
 0x127   :  { %v656_v41 = vsel %vm556_vm5, %v406_v31, %v606_v37  ;;  %v682_v42 = vsel %vm582_vm6, %v510_v32, %v632_v38  ;;  %v409_v43 = vadd.f32 %v1489_v27, %v408_v39  ;;  %v513_v44 = vadd.f32 %v1489_v27, %v512_v40 }
 0x128   :  { %v1065_v45 = vpack.c.bf16 %v656_v41, %v656_v41  ;;  %v1091_v46 = vpack.c.bf16 %v682_v42, %v682_v42  ;;  %v1162_v47 = vpop.f32.mrf.mxu0  ;;  %v1214_v48 = vpop.f32.mrf.mxu1 }
 0x129   :  { %vm557_vm7 = vcmp.gt.f32.partialorder %v409_v43, 0.0  ;;  %v607_v49 = vmul.f32 0.2, %v409_v43  ;;  %vm583_vm8 = vcmp.gt.f32.partialorder %v513_v44, 0.0  ;;  %v633_v50 = vmul.f32 0.2, %v513_v44 }
 0x12a   :  { %907 = vst.msk [vmem:[%s1744_s3 + $0x40] sm:$0xf] %vm890_vm4, %v1065_v45  ;;  %933 = vst.msk [vmem:[%s1744_s3 + $0xa8] sm:$0xf] %vm890_vm4, %v1091_v46  ;;  %v413_v51 = vpop.f32.mrf.mxu0  ;;  %v517_v52 = vpop.f32.mrf.mxu1 }
 0x12b   :  { %v657_v53 = vsel %vm557_vm7, %v409_v43, %v607_v49  ;;  %v683_v54 = vsel %vm583_vm8, %v513_v44, %v633_v50  ;;  %v414_v55 = vadd.f32 %v1489_v27, %v413_v51  ;;  %v518_v56 = vadd.f32 %v1489_v27, %v517_v52 }
 0x12c   :  { %v1066_v57 = vpack.c.bf16 %v657_v53, %v657_v53  ;;  %v1092_v58 = vpack.c.bf16 %v683_v54, %v683_v54  ;;  %v1165_v59 = vpop.f32.mrf.mxu0  ;;  %v1217_v60 = vpop.f32.mrf.mxu1 }
 0x12d   :  { %vm558_vm9 = vcmp.gt.f32.partialorder %v414_v55, 0.0  ;;  %v608_v61 = vmul.f32 0.2, %v414_v55  ;;  %vm584_vm10 = vcmp.gt.f32.partialorder %v518_v56, 0.0  ;;  %v634_v62 = vmul.f32 0.2, %v518_v56 }
 0x12e   :  { %908 = vst.msk [vmem:[%s1744_s3 + $0x44] sm:$0xf] %vm890_vm4, %v1066_v57  ;;  %934 = vst.msk [vmem:[%s1744_s3 + $0xac] sm:$0xf] %vm890_vm4, %v1092_v58  ;;  %v416_v63 = vpop.f32.mrf.mxu0  ;;  %v520_v0 = vpop.f32.mrf.mxu1 }
 0x12f   :  { %v658_v1 = vsel %vm558_vm9, %v414_v55, %v608_v61  ;;  %v684_v2 = vsel %vm584_vm10, %v518_v56, %v634_v62  ;;  %v417_v3 = vadd.f32 %v1489_v27, %v416_v63  ;;  %v521_v4 = vadd.f32 %v1489_v27, %v520_v0 }
 0x130   :  { %v1067_v5 = vpack.c.bf16 %v658_v1, %v658_v1  ;;  %v1093_v6 = vpack.c.bf16 %v684_v2, %v684_v2  ;;  %v1166_v7 = vpop.f32.mrf.mxu0  ;;  %v1218_v8 = vpop.f32.mrf.mxu1 }
 0x131   :  { %vm559_vm11 = vcmp.gt.f32.partialorder %v417_v3, 0.0  ;;  %v609_v9 = vmul.f32 0.2, %v417_v3  ;;  %vm585_vm12 = vcmp.gt.f32.partialorder %v521_v4, 0.0  ;;  %v635_v10 = vmul.f32 0.2, %v521_v4 }
 0x132   :  { %909 = vst.msk [vmem:[%s1744_s3 + $0x48] sm:$0xf] %vm890_vm4, %v1067_v5  ;;  %935 = vst.msk [vmem:[%s1744_s3 + $0xb0] sm:$0xf] %vm890_vm4, %v1093_v6  ;;  %v421_v11 = vpop.f32.mrf.mxu0  ;;  %v525_v12 = vpop.f32.mrf.mxu1 }
 0x133   :  { %v659_v13 = vsel %vm559_vm11, %v417_v3, %v609_v9  ;;  %v685_v14 = vsel %vm585_vm12, %v521_v4, %v635_v10  ;;  %v422_v15 = vadd.f32 %v1489_v27, %v421_v11  ;;  %v526_v16 = vadd.f32 %v1489_v27, %v525_v12 }
 0x134   :  { %v1068_v17 = vpack.c.bf16 %v659_v13, %v659_v13  ;;  %v1094_v18 = vpack.c.bf16 %v685_v14, %v685_v14  ;;  %v1169_v19 = vpop.f32.mrf.mxu0  ;;  %v1221_v20 = vpop.f32.mrf.mxu1 }
 0x135   :  { %vm560_vm13 = vcmp.gt.f32.partialorder %v422_v15, 0.0  ;;  %v610_v21 = vmul.f32 0.2, %v422_v15  ;;  %vm586_vm14 = vcmp.gt.f32.partialorder %v526_v16, 0.0  ;;  %v636_v22 = vmul.f32 0.2, %v526_v16 }
 0x136   :  { %910 = vst.msk [vmem:[%s1744_s3 + $0x4c] sm:$0xf] %vm890_vm4, %v1068_v17  ;;  %936 = vst.msk [vmem:[%s1744_s3 + $0xb4] sm:$0xf] %vm890_vm4, %v1094_v18  ;;  %v424_v23 = vpop.f32.mrf.mxu0  ;;  %v528_v24 = vpop.f32.mrf.mxu1 }
 0x137   :  { %v660_v25 = vsel %vm560_vm13, %v422_v15, %v610_v21  ;;  %v686_v26 = vsel %vm586_vm14, %v526_v16, %v636_v22  ;;  %v425_v28 = vadd.f32 %v1489_v27, %v424_v23  ;;  %v529_v29 = vadd.f32 %v1489_v27, %v528_v24 }
 0x138   :  { %v1069_v30 = vpack.c.bf16 %v660_v25, %v660_v25  ;;  %v1095_v31 = vpack.c.bf16 %v686_v26, %v686_v26  ;;  %v1170_v32 = vpop.f32.mrf.mxu0  ;;  %v1222_v33 = vpop.f32.mrf.mxu1 }
 0x139   :  { %vm561_vm15 = vcmp.gt.f32.partialorder %v425_v28, 0.0  ;;  %v611_v34 = vmul.f32 0.2, %v425_v28  ;;  %vm587_vm0 = vcmp.gt.f32.partialorder %v529_v29, 0.0  ;;  %v637_v35 = vmul.f32 0.2, %v529_v29 }
 0x13a   :  { %911 = vst.msk [vmem:[%s1744_s3 + $0x50] sm:$0xf] %vm890_vm4, %v1069_v30  ;;  %937 = vst.msk [vmem:[%s1744_s3 + $0xb8] sm:$0xf] %vm890_vm4, %v1095_v31  ;;  %v429_v36 = vpop.f32.mrf.mxu0  ;;  %v533_v37 = vpop.f32.mrf.mxu1 }
 0x13b   :  { %v661_v38 = vsel %vm561_vm15, %v425_v28, %v611_v34  ;;  %v687_v39 = vsel %vm587_vm0, %v529_v29, %v637_v35  ;;  %v430_v40 = vadd.f32 %v1489_v27, %v429_v36  ;;  %v534_v41 = vadd.f32 %v1489_v27, %v533_v37 }
 0x13c   :  { %v1070_v42 = vpack.c.bf16 %v661_v38, %v661_v38  ;;  %v1096_v43 = vpack.c.bf16 %v687_v39, %v687_v39  ;;  %v1173_v44 = vpop.f32.mrf.mxu0  ;;  %v1225_v45 = vpop.f32.mrf.mxu1 }
 0x13d   :  { %vm562_vm1 = vcmp.gt.f32.partialorder %v430_v40, 0.0  ;;  %v612_v46 = vmul.f32 0.2, %v430_v40  ;;  %vm588_vm2 = vcmp.gt.f32.partialorder %v534_v41, 0.0  ;;  %v638_v47 = vmul.f32 0.2, %v534_v41 }
 0x13e   :  { %912 = vst.msk [vmem:[%s1744_s3 + $0x54] sm:$0xf] %vm890_vm4, %v1070_v42  ;;  %938 = vst.msk [vmem:[%s1744_s3 + $0xbc] sm:$0xf] %vm890_vm4, %v1096_v43  ;;  %v432_v48 = vpop.f32.mrf.mxu0  ;;  %v536_v49 = vpop.f32.mrf.mxu1 }
 0x13f   :  { %v662_v50 = vsel %vm562_vm1, %v430_v40, %v612_v46  ;;  %v688_v51 = vsel %vm588_vm2, %v534_v41, %v638_v47  ;;  %v433_v52 = vadd.f32 %v1489_v27, %v432_v48  ;;  %v537_v53 = vadd.f32 %v1489_v27, %v536_v49 }
 0x140   :  { %v1071_v54 = vpack.c.bf16 %v662_v50, %v662_v50  ;;  %v1097_v55 = vpack.c.bf16 %v688_v51, %v688_v51  ;;  %v1174_v56 = vpop.f32.mrf.mxu0  ;;  %v1226_v57 = vpop.f32.mrf.mxu1 }
 0x141   :  { %vm563_vm3 = vcmp.gt.f32.partialorder %v433_v52, 0.0  ;;  %v613_v58 = vmul.f32 0.2, %v433_v52  ;;  %vm589_vm5 = vcmp.gt.f32.partialorder %v537_v53, 0.0  ;;  %v639_v59 = vmul.f32 0.2, %v537_v53 }
 0x142   :  { %913 = vst.msk [vmem:[%s1744_s3 + $0x58] sm:$0xf] %vm890_vm4, %v1071_v54  ;;  %939 = vst.msk [vmem:[%s1744_s3 + $0xc0] sm:$0xf] %vm890_vm4, %v1097_v55  ;;  %v437_v60 = vpop.f32.mrf.mxu0 }
 0x143   :  { %v663_v61 = vsel %vm563_vm3, %v433_v52, %v613_v58  ;;  %v689_v62 = vsel %vm589_vm5, %v537_v53, %v639_v59  ;;  %v438_v63 = vadd.f32 %v1489_v27, %v437_v60 }
 0x144   :  { %v1072_v0 = vpack.c.bf16 %v663_v61, %v663_v61  ;;  %v1098_v1 = vpack.c.bf16 %v689_v62, %v689_v62  ;;  %v1177_v2 = vpop.f32.mrf.mxu0 }
 0x145   :  { %vm564_vm6 = vcmp.gt.f32.partialorder %v438_v63, 0.0  ;;  %v614_v3 = vmul.f32 0.2, %v438_v63 }
 0x146   :  { %914 = vst.msk [vmem:[%s1744_s3 + $0x5c] sm:$0xf] %vm890_vm4, %v1072_v0  ;;  %940 = vst.msk [vmem:[%s1744_s3 + $0xc4] sm:$0xf] %vm890_vm4, %v1098_v1  ;;  %v440_v4 = vpop.f32.mrf.mxu0 }
 0x147   :  { %v664_v5 = vsel %vm564_vm6, %v438_v63, %v614_v3  ;;  %v441_v6 = vadd.f32 %v1489_v27, %v440_v4 }
 0x148   :  { %v1073_v7 = vpack.c.bf16 %v664_v5, %v664_v5  ;;  %v1178_v8 = vpop.f32.mrf.mxu0 }
 0x149   :  { %vm565_vm7 = vcmp.gt.f32.partialorder %v441_v6, 0.0  ;;  %v615_v9 = vmul.f32 0.2, %v441_v6 }
 0x14a   :  { %915 = vst.msk [vmem:[%s1744_s3 + $0x60] sm:$0xf] %vm890_vm4, %v1073_v7 }
 0x14b   :  { %v665_v10 = vsel %vm565_vm7, %v441_v6, %v615_v9 }
 0x14c   :  { %v1074_v11 = vpack.c.bf16 %v665_v10, %v665_v10 }
 0x14e   :  { %916 = vst.msk [vmem:[%s1744_s3 + $0x64] sm:$0xf] %vm890_vm4, %v1074_v11 }
 0x14f   :  { %945 = vsyncpa [#allocation3], 1 }
 0x150   :  { %946 = vsyncpa [#allocation5], 1 }

// kernel: d_forward.7
= control target key start
LH: loop header
LB: loop body
LE: loop exit
PB: predicated region body
PF: predicated region fallthrough
CT: control target
= control target key end

     0   :  { %s1240_s1 = inlined_call_operand.vmem [shape: bf16[1024,128], index: 1, kind: input, shape index: {}]   ;;  %s1241_s0 = inlined_call_operand.vmem [shape: bf16[16,1024], index: 0, kind: input, shape index: {}]   ;;  %s1242_s2 = inlined_call_operand.vmem [shape: f32[1,128], index: 2, kind: input, shape index: {}]   ;;  %s1243_s3 = inlined_call_operand.vmem [shape: f32[16,128], index: 3, kind: output, shape index: {}]  }
   0x1   :  { %v923_v0 = vld [vmem:[%s1240_s1 + $0x78] sm:$0xff]   ;;  %v927_v4 = vld [vmem:[%s1240_s1 + $0x70] sm:$0xff]   ;;  %v931_v8 = vld [vmem:[%s1240_s1 + $0x68] sm:$0xff]  }
   0x2   :  { %v924_v1 = vld [vmem:[%s1240_s1 + $0xf8] sm:$0xff]   ;;  %835 = vmatprep.subr.bf16.mxu0 %v923_v0  ;;  %v928_v5 = vld [vmem:[%s1240_s1 + $0xf0] sm:$0xff]   ;;  %v932_v9 = vld [vmem:[%s1240_s1 + $0xe8] sm:$0xff]  }
   0x3   :  { %v925_v2 = vld [vmem:[%s1240_s1 + $0x38] sm:$0xff]   ;;  %857 = vmatprep.subr.bf16.mxu1 %v924_v1  ;;  %v929_v6 = vld [vmem:[%s1240_s1 + $0x30] sm:$0xff]   ;;  %v933_v10 = vld [vmem:[%s1240_s1 + $0x28] sm:$0xff]  }
   0x4   :  { %v926_v3 = vld [vmem:[%s1240_s1 + $0xb8] sm:$0xff]   ;;  %836 = vmatpush3.bf16.msra.mxu0 %v925_v2  ;;  %v930_v7 = vld [vmem:[%s1240_s1 + $0xb0] sm:$0xff]   ;;  %v934_v11 = vld [vmem:[%s1240_s1 + $0xa8] sm:$0xff]  }
   0x5   :  { %858 = vmatpush3.bf16.msra.mxu1 %v926_v3  ;;  %837 = vmatprep.subr.bf16.mxu0 %v927_v4  ;;  %v935_v12 = vld [vmem:[%s1240_s1 + $0x60] sm:$0xff]   ;;  %v939_v16 = vld [vmem:[%s1240_s1 + $0x58] sm:$0xff]   ;;  %v943_v20 = vld [vmem:[%s1240_s1 + $0x50] sm:$0xff]  }
   0x6   :  { %859 = vmatprep.subr.bf16.mxu1 %v928_v5  ;;  %v936_v13 = vld [vmem:[%s1240_s1 + $0xe0] sm:$0xff]   ;;  %v940_v17 = vld [vmem:[%s1240_s1 + $0xd8] sm:$0xff]   ;;  %v944_v21 = vld [vmem:[%s1240_s1 + $0xd0] sm:$0xff]  }
   0x7   :  { %v937_v14 = vld [vmem:[%s1240_s1 + $0x20] sm:$0xff]   ;;  %v941_v18 = vld [vmem:[%s1240_s1 + $0x18] sm:$0xff]   ;;  %v945_v22 = vld [vmem:[%s1240_s1 + $0x10] sm:$0xff]  }
   0x8   :  { %838 = vmatpush3.bf16.msra.mxu0 %v929_v6  ;;  %v938_v15 = vld [vmem:[%s1240_s1 + $0xa0] sm:$0xff]   ;;  %v942_v19 = vld [vmem:[%s1240_s1 + $0x98] sm:$0xff]   ;;  %v946_v23 = vld [vmem:[%s1240_s1 + $0x90] sm:$0xff]  }
   0x9   :  { %860 = vmatpush3.bf16.msra.mxu1 %v930_v7  ;;  %839 = vmatprep.subr.bf16.mxu0 %v931_v8  ;;  %v947_v24 = vld [vmem:[%s1240_s1 + $0x48] sm:$0xff]   ;;  %v951_v28 = vld [vmem:[%s1240_s1 + $0x40] sm:$0xff]   ;;  %v955_v40 = vld [vmem:[%s1240_s1 + $0x178] sm:$0xff]  }
   0xa   :  { %861 = vmatprep.subr.bf16.mxu1 %v932_v9  ;;  %v948_v25 = vld [vmem:[%s1240_s1 + $0xc8] sm:$0xff]   ;;  %v952_v29 = vld [vmem:[%s1240_s1 + $0xc0] sm:$0xff]   ;;  %v956_v41 = vld [vmem:[%s1240_s1 + $0x1f8] sm:$0xff]  }
   0xb   :  { %v949_v26 = vld [vmem:[%s1240_s1 + $0x8] sm:$0xff]   ;;  %v953_v30 = vld [vmem:[%s1240_s1] sm:$0xff]   ;;  %v957_v42 = vld [vmem:[%s1240_s1 + $0x138] sm:$0xff]  }
   0xc   :  { %840 = vmatpush3.bf16.msra.mxu0 %v933_v10  ;;  %v950_v27 = vld [vmem:[%s1240_s1 + $0x88] sm:$0xff]   ;;  %v954_v31 = vld [vmem:[%s1240_s1 + $0x80] sm:$0xff]   ;;  %v958_v43 = vld [vmem:[%s1240_s1 + $0x1b8] sm:$0xff]  }
   0xd   :  { %862 = vmatpush3.bf16.msra.mxu1 %v934_v11  ;;  %841 = vmatprep.subr.bf16.mxu0 %v935_v12  ;;  %v15_v32 = vld [vmem:[%s1241_s0] sm:$0xff]  ;;  %v16_v34 = vld [vmem:[%s1241_s0 + $0x8] sm:$0xff]  ;;  %v959_v44 = vld [vmem:[%s1240_s1 + $0x170] sm:$0xff]  }
   0xe   :  { %863 = vmatprep.subr.bf16.mxu1 %v936_v13  ;;  %v19_v33 = vld [vmem:[%s1241_s0 + $0x20] sm:$0xff]  ;;  %v20_v37 = vld [vmem:[%s1241_s0 + $0x28] sm:$0xff]  ;;  %v960_v45 = vld [vmem:[%s1240_s1 + $0x1f0] sm:$0xff]  }
   0xf   :  { %v763_v35 = vcombine.low %v15_v32, %v19_v33  ;;  %v764_v36 = vcombine.high %v15_v32, %v19_v33  ;;  %v765_v38 = vcombine.low %v16_v34, %v20_v37  ;;  %v766_v39 = vcombine.high %v16_v34, %v20_v37  ;;  %v961_v46 = vld [vmem:[%s1240_s1 + $0x130] sm:$0xff]   ;;  %v963_v48 = vld [vmem:[%s1240_s1 + $0x168] sm:$0xff]   ;;  %v967_v52 = vld [vmem:[%s1240_s1 + $0x160] sm:$0xff]  }
  0x10   :  { %842 = vmatpush3.bf16.msra.mxu0 %v937_v14  ;;  %v962_v47 = vld [vmem:[%s1240_s1 + $0x1b0] sm:$0xff]   ;;  %v964_v49 = vld [vmem:[%s1240_s1 + $0x1e8] sm:$0xff]   ;;  %v968_v53 = vld [vmem:[%s1240_s1 + $0x1e0] sm:$0xff]  }
  0x11   :  { %864 = vmatpush3.bf16.msra.mxu1 %v938_v15  ;;  %843 = vmatprep.subr.bf16.mxu0 %v939_v16  ;;  %v965_v50 = vld [vmem:[%s1240_s1 + $0x128] sm:$0xff]   ;;  %v969_v54 = vld [vmem:[%s1240_s1 + $0x120] sm:$0xff]   ;;  %v971_v56 = vld [vmem:[%s1240_s1 + $0x158] sm:$0xff]  }
  0x12   :  { %865 = vmatprep.subr.bf16.mxu1 %v940_v17  ;;  %614 = vmatprep.mubr.bf16.mxu0 %v764_v36  ;;  %v966_v51 = vld [vmem:[%s1240_s1 + $0x1a8] sm:$0xff]   ;;  %v970_v55 = vld [vmem:[%s1240_s1 + $0x1a0] sm:$0xff]   ;;  %v972_v57 = vld [vmem:[%s1240_s1 + $0x1d8] sm:$0xff]  }
  0x13   :  { %655 = vmatprep.mubr.bf16.mxu1 %v766_v39  ;;  %v973_v58 = vld [vmem:[%s1240_s1 + $0x118] sm:$0xff]   ;;  %v975_v60 = vld [vmem:[%s1240_s1 + $0x150] sm:$0xff]   ;;  %v979_v0 = vld [vmem:[%s1240_s1 + $0x148] sm:$0xff]  }
  0x14   :  { %844 = vmatpush3.bf16.msra.mxu0 %v941_v18  ;;  %v974_v59 = vld [vmem:[%s1240_s1 + $0x198] sm:$0xff]   ;;  %v976_v61 = vld [vmem:[%s1240_s1 + $0x1d0] sm:$0xff]   ;;  %v980_v1 = vld [vmem:[%s1240_s1 + $0x1c8] sm:$0xff]  }
  0x15   :  { %866 = vmatpush3.bf16.msra.mxu1 %v942_v19  ;;  %845 = vmatprep.subr.bf16.mxu0 %v943_v20  ;;  %v977_v62 = vld [vmem:[%s1240_s1 + $0x110] sm:$0xff]   ;;  %v981_v2 = vld [vmem:[%s1240_s1 + $0x108] sm:$0xff]   ;;  %v983_v4 = vld [vmem:[%s1240_s1 + $0x140] sm:$0xff]  }
  0x16   :  { %867 = vmatprep.subr.bf16.mxu1 %v944_v21  ;;  %v978_v63 = vld [vmem:[%s1240_s1 + $0x190] sm:$0xff]   ;;  %v982_v3 = vld [vmem:[%s1240_s1 + $0x188] sm:$0xff]   ;;  %v984_v5 = vld [vmem:[%s1240_s1 + $0x1c0] sm:$0xff]  }
  0x17   :  { %v985_v6 = vld [vmem:[%s1240_s1 + $0x100] sm:$0xff]   ;;  %v17_v8 = vld [vmem:[%s1241_s0 + $0x10] sm:$0xff]  ;;  %v18_v12 = vld [vmem:[%s1241_s0 + $0x18] sm:$0xff] }
  0x18   :  { %846 = vmatpush3.bf16.msra.mxu0 %v945_v22  ;;  %v986_v7 = vld [vmem:[%s1240_s1 + $0x180] sm:$0xff]   ;;  %v21_v9 = vld [vmem:[%s1241_s0 + $0x30] sm:$0xff]  ;;  %v22_v13 = vld [vmem:[%s1241_s0 + $0x38] sm:$0xff] }
  0x19   :  { %868 = vmatpush3.bf16.msra.mxu1 %v946_v23  ;;  %847 = vmatprep.subr.bf16.mxu0 %v947_v24  ;;  %v767_v10 = vcombine.low %v17_v8, %v21_v9  ;;  %v768_v11 = vcombine.high %v17_v8, %v21_v9  ;;  %v769_v14 = vcombine.low %v18_v12, %v22_v13  ;;  %v762_v23 = vld [vmem:[%s1242_s2] ss:$0 sm:$0xff] }
  0x1a   :  { %869 = vmatprep.subr.bf16.mxu1 %v948_v25  ;;  %v770_v15 = vcombine.high %v18_v12, %v22_v13 }
  0x1c   :  { %848 = vmatpush3.bf16.msra.mxu0 %v949_v26 }
  0x1d   :  { %870 = vmatpush3.bf16.msra.mxu1 %v950_v27  ;;  %849 = vmatprep.subr.bf16.mxu0 %v951_v28 }
  0x1e   :  { %871 = vmatprep.subr.bf16.mxu1 %v952_v29 }
  0x20   :  { %850 = vmatpush3.bf16.msra.mxu0 %v953_v30 }
  0x21   :  { %872 = vmatpush3.bf16.msra.mxu1 %v954_v31  ;;  %879 = vmatprep.subr.bf16.mxu0 %v955_v40 }
  0x22   :  { %901 = vmatprep.subr.bf16.mxu1 %v956_v41 }
  0x23   :  { %615 = vmatmul.mubr.bf16.vlgmr.msra.gmra.mxu0 %v763_v35 }
  0x24   :  { %656 = vmatmul.mubr.bf16.vlgmr.msra.gmra.mxu1 %v765_v38  ;;  %880 = vmatpush3.bf16.msra.mxu0 %v957_v42 }
  0x25   :  { %902 = vmatpush3.bf16.msra.mxu1 %v958_v43  ;;  %881 = vmatprep.subr.bf16.mxu0 %v959_v44 }
  0x26   :  { %903 = vmatprep.subr.bf16.mxu1 %v960_v45  ;;  %696 = vmatprep.mubr.bf16.mxu0 %v768_v11 }
  0x27   :  { %737 = vmatprep.mubr.bf16.mxu1 %v770_v15 }
  0x28   :  { %882 = vmatpush3.bf16.msra.mxu0 %v961_v46 }
  0x29   :  { %904 = vmatpush3.bf16.msra.mxu1 %v962_v47  ;;  %883 = vmatprep.subr.bf16.mxu0 %v963_v48 }
  0x2a   :  { %905 = vmatprep.subr.bf16.mxu1 %v964_v49 }
  0x2c   :  { %884 = vmatpush3.bf16.msra.mxu0 %v965_v50 }
  0x2d   :  { %906 = vmatpush3.bf16.msra.mxu1 %v966_v51  ;;  %885 = vmatprep.subr.bf16.mxu0 %v967_v52 }
  0x2e   :  { %907 = vmatprep.subr.bf16.mxu1 %v968_v53 }
  0x30   :  { %886 = vmatpush3.bf16.msra.mxu0 %v969_v54 }
  0x31   :  { %908 = vmatpush3.bf16.msra.mxu1 %v970_v55  ;;  %887 = vmatprep.subr.bf16.mxu0 %v971_v56 }
  0x32   :  { %909 = vmatprep.subr.bf16.mxu1 %v972_v57 }
  0x34   :  { %888 = vmatpush3.bf16.msra.mxu0 %v973_v58 }
  0x35   :  { %910 = vmatpush3.bf16.msra.mxu1 %v974_v59  ;;  %889 = vmatprep.subr.bf16.mxu0 %v975_v60 }
  0x36   :  { %911 = vmatprep.subr.bf16.mxu1 %v976_v61 }
  0x38   :  { %890 = vmatpush3.bf16.msra.mxu0 %v977_v62 }
  0x39   :  { %912 = vmatpush3.bf16.msra.mxu1 %v978_v63  ;;  %891 = vmatprep.subr.bf16.mxu0 %v979_v0 }
  0x3a   :  { %913 = vmatprep.subr.bf16.mxu1 %v980_v1 }
  0x3c   :  { %892 = vmatpush3.bf16.msra.mxu0 %v981_v2 }
  0x3d   :  { %914 = vmatpush3.bf16.msra.mxu1 %v982_v3  ;;  %893 = vmatprep.subr.bf16.mxu0 %v983_v4 }
  0x3e   :  { %915 = vmatprep.subr.bf16.mxu1 %v984_v5 }
  0x40   :  { %894 = vmatpush3.bf16.msra.mxu0 %v985_v6 }
  0x41   :  { %916 = vmatpush3.bf16.msra.mxu1 %v986_v7 }
  0x43   :  { %697 = vmatmul.mubr.bf16.vlgmr.msra.gmra.mxu0 %v767_v10 }
  0x44   :  { %738 = vmatmul.mubr.bf16.vlgmr.msra.gmra.mxu1 %v769_v14 }
  0xe3   :  { %v851_v16 = vpop.f32.mrf.mxu0 }
  0xe4   :  { %v873_v17 = vpop.f32.mrf.mxu1 }
  0xe5   :  { %v852_v18 = vpop.f32.mrf.mxu0 }
  0xe6   :  { %v874_v19 = vpop.f32.mrf.mxu1  ;;  %v853_v21 = vadd.f32 %v852_v18, %v851_v16 }
  0xe7   :  { %v854_v20 = vpop.f32.mrf.mxu0  ;;  %v875_v26 = vadd.f32 %v874_v19, %v873_v17 }
  0xe8   :  { %v876_v22 = vpop.f32.mrf.mxu1  ;;  %v617_v25 = vadd.f32 %v853_v21, %v762_v23 }
  0xe9   :  { %v855_v24 = vpop.f32.mrf.mxu0 }
  0xea   :  { %v856_v27 = vadd.f32 %v855_v24, %v854_v20  ;;  %v877_v28 = vpop.f32.mrf.mxu1  ;;  %v658_v32 = vadd.f32 %v875_v26, %v617_v25 }
  0xeb   :  { %v878_v37 = vadd.f32 %v877_v28, %v876_v22 }
  0xec   :  { %v620_v33 = vadd.f32 %v856_v27, %v762_v23 }
  0xee   :  { %v661_v42 = vadd.f32 %v878_v37, %v620_v33 }
 0x103   :  { %v895_v29 = vpop.f32.mrf.mxu0 }
 0x104   :  { %v917_v30 = vpop.f32.mrf.mxu1 }
 0x105   :  { %v896_v31 = vpop.f32.mrf.mxu0 }
 0x106   :  { %v897_v34 = vadd.f32 %v896_v31, %v895_v29  ;;  %v918_v35 = vpop.f32.mrf.mxu1 }
 0x107   :  { %v898_v36 = vpop.f32.mrf.mxu0  ;;  %v919_v39 = vadd.f32 %v918_v35, %v917_v30 }
 0x108   :  { %v699_v38 = vadd.f32 %v897_v34, %v658_v32  ;;  %v920_v40 = vpop.f32.mrf.mxu1 }
 0x109   :  { %v899_v41 = vpop.f32.mrf.mxu0 }
 0x10a   :  { %v740_v43 = vadd.f32 %v919_v39, %v699_v38  ;;  %v900_v44 = vadd.f32 %v899_v41, %v898_v36  ;;  %v921_v45 = vpop.f32.mrf.mxu1 }
 0x10b   :  { %v922_v48 = vadd.f32 %v921_v45, %v920_v40 }
 0x10c   :  { %v746_v46 = vsub.f32 0.0, %v740_v43  ;;  %v702_v47 = vadd.f32 %v900_v44, %v661_v42 }
 0x10e   :  { %v748_v49 = vmul.f32 1.442695, %v746_v46  ;;  %v743_v50 = vadd.f32 %v922_v48, %v702_v47 }
 0x110   :  { %987 = vpow2.f32 %v748_v49  ;;  %v747_v51 = vsub.f32 0.0, %v743_v50 }
 0x112   :  { %v750_v52 = vmul.f32 1.442695, %v747_v51 }
 0x114   :  { %989 = vpow2.f32 %v750_v52 }
 0x11d   :  { %v988_v53 = vpop.eup %987 }
 0x11e   :  { %v752_v54 = vadd.f32 1.0, %v988_v53 }
 0x120   :  { %991 = vrcp.f32 %v752_v54 }
 0x121   :  { %v990_v55 = vpop.eup %989 }
 0x122   :  { %v753_v56 = vadd.f32 1.0, %v990_v55 }
 0x124   :  { %993 = vrcp.f32 %v753_v56 }
 0x12d   :  { %v992_v57 = vpop.eup %991 }
 0x12e   :  { %756 = vst [vmem:[%s1243_s3] sm:$0xff] %v992_v57 }
 0x131   :  { %v994_v58 = vpop.eup %993 }
 0x132   :  { %757 = vst [vmem:[%s1243_s3 + $0x8] sm:$0xff] %v994_v58 }

// kernel: d_forward.5
= control target key start
LH: loop header
LB: loop body
LE: loop exit
PB: predicated region body
PF: predicated region fallthrough
CT: control target
= control target key end

     0   :  { %9 = vsyncpa [#allocation3], 0  ;;  %s2471_s0 = inlined_call_operand.vmem [shape: bf16[112,1024], index: 0, kind: input, shape index: {}]   ;;  %s2472_s1 = inlined_call_operand.hbm [shape: bf16[1024,128], index: 1, kind: input, shape index: {}]   ;;  %s2473_s2 = inlined_call_operand.hbm [shape: f32[1,128], index: 2, kind: input, shape index: {}]   ;;  %s2474_s3 = inlined_call_operand.hbm [shape: f32[1,128], index: 3, kind: input, shape index: {}]   ;;  %s2475_s4 = inlined_call_operand.vmem [shape: bf16[112,128], index: 4, kind: output, shape index: {}]  }
   0x1   :  { %10 = vsyncpa [#allocation5], 0  ;;  %s2064_s15 = smov [#allocation4]   ;;  %s2065_s17 = smov [#allocation2]  }
   0x2   :  { %s31_s16 = sshll.u32 %s2064_s15, 4  ;;  %s18_s18 = sshll.u32 %s2065_s17, 4  ;;  %s32_s16 = int_to_ptr.vmem [resolvable:$true] %s31_s16  ;;  %s19_s18 = int_to_ptr.vmem [resolvable:$true] %s18_s18 }
   0x3   :  { %s2008_s19 = scalar_lea.vmem %s32_s16, 16  ;;  %s2012_s20 = scalar_lea.vmem %s32_s16, 32 }
   0x4   :  { %p2009_p0 = scmp.ne.s32.totalorder %s32_s16, %s2008_s19  ;;  %p2013_p1 = scmp.lt.s32.totalorder %s32_s16, %s32_s16 }
   0x5   :  { %p2014_p2 = scmp.lt.s32.totalorder %s2012_s20, %s2008_s19 }
   0x7   :  { %p2015_p3 = por %p2014_p2, %p2013_p1 }
   0x9   :  { %p2016_p4 = pnand %p2015_p3, %p2009_p0 }
   0xb   :  { %2019 = shalt.err (!%p2016_p4)
}
   0xc   :  { %34 = dma.hbm_to_vmem [thread:$0]  %s2473_s2, 16, %s32_s16, [#allocation5]  }
   0xd   :  { %s2028_s23 = scalar_lea.vmem %s19_s18, 8192  ;;  %p2033_p6 = scmp.lt.s32.totalorder %s19_s18, %s19_s18 }
   0xe   :  { %p2029_p5 = scmp.ne.s32.totalorder %s19_s18, %s2028_s23  ;;  %p2034_p7 = scmp.lt.s32.totalorder %s2028_s23, %s2028_s23 }
  0x10   :  { %p2035_p8 = por %p2034_p7, %p2033_p6 }
  0x12   :  { %p2036_p9 = pnand %p2035_p8, %p2029_p5 }
  0x14   :  { %2039 = shalt.err (!%p2036_p9)
}
  0x15   :  { %s2066_s24 = smov 64   ;;  %s2067_s25 = smov 4  }
  0x16   :  { %24 = dma.hbm_to_vmem [thread:$0]  %s2472_s1, 8192, %s19_s18, [#allocation3], %s2066_s24, %s2066_s24, %s2067_s25  }
  0x17   :  { %s2068_s28 = smov [#allocation6]  }
  0x18   :  { %s41_s29 = sshll.u32 %s2068_s28, 4  ;;  %s42_s29 = int_to_ptr.vmem [resolvable:$true] %s41_s29 }
  0x19   :  { %s2048_s30 = scalar_lea.vmem %s42_s29, 16  ;;  %s2052_s5 = scalar_lea.vmem %s42_s29, 32 }
  0x1a   :  { %p2049_p10 = scmp.ne.s32.totalorder %s42_s29, %s2048_s30  ;;  %p2053_p11 = scmp.lt.s32.totalorder %s42_s29, %s42_s29 }
  0x1b   :  { %p2054_p12 = scmp.lt.s32.totalorder %s2052_s5, %s2048_s30 }
  0x1d   :  { %p2055_p13 = por %p2054_p12, %p2053_p11 }
  0x1f   :  { %p2056_p0 = pnand %p2055_p13, %p2049_p10 }
  0x21   :  { %2059 = shalt.err (!%p2056_p0)
}
  0x22   :  { %44 = dma.hbm_to_vmem [thread:$0]  %s2474_s3, 16, %s42_s29, [#allocation5]  }
  0x23   :  { %2060 = dma.done.wait [#allocation3], 8192  }
  0x24   :  { %2061 = vsyncadd [#allocation3], 4294959104 }
  0x25   :  { %2062 = dma.done.wait [#allocation5], 32  }
  0x26   :  { %2063 = vsyncadd [#allocation5], 4294967264  ;;  %v1934_v0 = vld [vmem:[#allocation2 + $0x78] sm:$0xff]   ;;  %v1938_v4 = vld [vmem:[#allocation2 + $0x70] sm:$0xff]  }
  0x27   :  { %v1935_v1 = vld [vmem:[#allocation2 + $0xf8] sm:$0xff]   ;;  %1697 = vmatprep.subr.bf16.mxu0 %v1934_v0  ;;  %v1939_v5 = vld [vmem:[#allocation2 + $0xf0] sm:$0xff]   ;;  %v1942_v8 = vld [vmem:[#allocation2 + $0x68] sm:$0xff]  }
  0x28   :  { %v1936_v2 = vld [vmem:[#allocation2 + $0x38] sm:$0xff]   ;;  %1755 = vmatprep.subr.bf16.mxu1 %v1935_v1  ;;  %v1940_v6 = vld [vmem:[#allocation2 + $0x30] sm:$0xff]   ;;  %v1943_v9 = vld [vmem:[#allocation2 + $0xe8] sm:$0xff]  }
  0x29   :  { %v1937_v3 = vld [vmem:[#allocation2 + $0xb8] sm:$0xff]   ;;  %1698 = vmatpush3.bf16.msra.mxu0 %v1936_v2  ;;  %v1941_v7 = vld [vmem:[#allocation2 + $0xb0] sm:$0xff]   ;;  %v1944_v10 = vld [vmem:[#allocation2 + $0x28] sm:$0xff]  }
  0x2a   :  { %1756 = vmatpush3.bf16.msra.mxu1 %v1937_v3  ;;  %1699 = vmatprep.subr.bf16.mxu0 %v1938_v4  ;;  %v1945_v11 = vld [vmem:[#allocation2 + $0xa8] sm:$0xff]   ;;  %v1946_v12 = vld [vmem:[#allocation2 + $0x60] sm:$0xff]   ;;  %v1950_v16 = vld [vmem:[#allocation2 + $0x58] sm:$0xff]  }
  0x2b   :  { %1757 = vmatprep.subr.bf16.mxu1 %v1939_v5  ;;  %v1947_v13 = vld [vmem:[#allocation2 + $0xe0] sm:$0xff]   ;;  %v1951_v17 = vld [vmem:[#allocation2 + $0xd8] sm:$0xff]   ;;  %v1954_v20 = vld [vmem:[#allocation2 + $0x50] sm:$0xff]  }
  0x2c   :  { %v1948_v14 = vld [vmem:[#allocation2 + $0x20] sm:$0xff]   ;;  %v1952_v18 = vld [vmem:[#allocation2 + $0x18] sm:$0xff]   ;;  %v1955_v21 = vld [vmem:[#allocation2 + $0xd0] sm:$0xff]  }
  0x2d   :  { %1700 = vmatpush3.bf16.msra.mxu0 %v1940_v6  ;;  %v1949_v15 = vld [vmem:[#allocation2 + $0xa0] sm:$0xff]   ;;  %v1953_v19 = vld [vmem:[#allocation2 + $0x98] sm:$0xff]   ;;  %v1956_v22 = vld [vmem:[#allocation2 + $0x10] sm:$0xff]  }
  0x2e   :  { %1758 = vmatpush3.bf16.msra.mxu1 %v1941_v7  ;;  %1701 = vmatprep.subr.bf16.mxu0 %v1942_v8  ;;  %v1957_v23 = vld [vmem:[#allocation2 + $0x90] sm:$0xff]   ;;  %v1958_v24 = vld [vmem:[#allocation2 + $0x48] sm:$0xff]   ;;  %v1962_v28 = vld [vmem:[#allocation2 + $0x40] sm:$0xff]  }
  0x2f   :  { %1759 = vmatprep.subr.bf16.mxu1 %v1943_v9  ;;  %v1959_v25 = vld [vmem:[#allocation2 + $0xc8] sm:$0xff]   ;;  %v1963_v29 = vld [vmem:[#allocation2 + $0xc0] sm:$0xff]   ;;  %v1966_v40 = vld [vmem:[#allocation2 + $0x178] sm:$0xff]  }
  0x30   :  { %v1960_v26 = vld [vmem:[#allocation2 + $0x8] sm:$0xff]   ;;  %v1964_v30 = vld [vmem:[#allocation2] sm:$0xff]   ;;  %v1967_v41 = vld [vmem:[#allocation2 + $0x138] sm:$0xff]  }
  0x31   :  { %1702 = vmatpush3.bf16.msra.mxu0 %v1944_v10  ;;  %v1961_v27 = vld [vmem:[#allocation2 + $0x88] sm:$0xff]   ;;  %v1965_v31 = vld [vmem:[#allocation2 + $0x80] sm:$0xff]   ;;  %v1968_v42 = vld [vmem:[#allocation2 + $0x1f8] sm:$0xff]  }
  0x32   :  { %1760 = vmatpush3.bf16.msra.mxu1 %v1945_v11  ;;  %1703 = vmatprep.subr.bf16.mxu0 %v1946_v12  ;;  %v55_v32 = vld [vmem:[%s2471_s0] sm:$0xff]  ;;  %v56_v34 = vld [vmem:[%s2471_s0 + $0x8] sm:$0xff]  ;;  %v1969_v43 = vld [vmem:[#allocation2 + $0x1b8] sm:$0xff]  }
  0x33   :  { %1761 = vmatprep.subr.bf16.mxu1 %v1947_v13  ;;  %v59_v33 = vld [vmem:[%s2471_s0 + $0x20] sm:$0xff]  ;;  %v60_v37 = vld [vmem:[%s2471_s0 + $0x28] sm:$0xff]  ;;  %v1970_v50 = vld [vmem:[#allocation2 + $0x170] sm:$0xff]  }
  0x34   :  { %v1506_v35 = vcombine.low %v55_v32, %v59_v33  ;;  %v1507_v36 = vcombine.high %v55_v32, %v59_v33  ;;  %v1508_v38 = vcombine.low %v56_v34, %v60_v37  ;;  %v1509_v39 = vcombine.high %v56_v34, %v60_v37  ;;  %v63_v44 = vld [vmem:[%s2471_s0 + $0x40] sm:$0xff]  ;;  %v64_v47 = vld [vmem:[%s2471_s0 + $0x48] sm:$0xff]  ;;  %v1971_v52 = vld [vmem:[#allocation2 + $0x130] sm:$0xff]  }
  0x35   :  { %1704 = vmatpush3.bf16.msra.mxu0 %v1948_v14  ;;  %v67_v45 = vld [vmem:[%s2471_s0 + $0x60] sm:$0xff]  ;;  %v68_v48 = vld [vmem:[%s2471_s0 + $0x68] sm:$0xff]  ;;  %v1972_v54 = vld [vmem:[#allocation2 + $0x1f0] sm:$0xff]  }
  0x36   :  { %1762 = vmatpush3.bf16.msra.mxu1 %v1949_v15  ;;  %1705 = vmatprep.subr.bf16.mxu0 %v1950_v16  ;;  %v1515_v46 = vcombine.high %v63_v44, %v67_v45  ;;  %v1517_v49 = vcombine.high %v64_v47, %v68_v48  ;;  %v1514_v51 = vcombine.low %v63_v44, %v67_v45  ;;  %v1973_v55 = vld [vmem:[#allocation2 + $0x1b0] sm:$0xff]   ;;  %v1974_v56 = vld [vmem:[#allocation2 + $0x168] sm:$0xff]   ;;  %v71_v57 = vld [vmem:[%s2471_s0 + $0x80] sm:$0xff] }
  0x37   :  { %1763 = vmatprep.subr.bf16.mxu1 %v1951_v17  ;;  %935 = vmatprep.mubr.bf16.mxu0 %v1507_v36  ;;  %v1516_v53 = vcombine.low %v64_v47, %v68_v48  ;;  %v75_v58 = vld [vmem:[%s2471_s0 + $0xa0] sm:$0xff]  ;;  %v72_v59 = vld [vmem:[%s2471_s0 + $0x88] sm:$0xff]  ;;  %v1982_v14 = vld [vmem:[#allocation2 + $0x158] sm:$0xff]  }
  0x38   :  { %1024 = vmatprep.mubr.bf16.mxu1 %v1509_v39  ;;  %v76_v60 = vld [vmem:[%s2471_s0 + $0xa8] sm:$0xff]  ;;  %v1523_v61 = vcombine.high %v71_v57, %v75_v58  ;;  %v1522_v2 = vcombine.low %v71_v57, %v75_v58  ;;  %v1978_v3 = vld [vmem:[#allocation2 + $0x160] sm:$0xff]   ;;  %v1983_v15 = vld [vmem:[#allocation2 + $0x118] sm:$0xff]  }
  0x39   :  { %1706 = vmatpush3.bf16.msra.mxu0 %v1952_v18  ;;  %v1525_v62 = vcombine.high %v72_v59, %v76_v60  ;;  %v1975_v63 = vld [vmem:[#allocation2 + $0x128] sm:$0xff]   ;;  %v1524_v4 = vcombine.low %v72_v59, %v76_v60  ;;  %v1979_v5 = vld [vmem:[#allocation2 + $0x120] sm:$0xff]   ;;  %v1984_v17 = vld [vmem:[#allocation2 + $0x1d8] sm:$0xff]  }
  0x3a   :  { %1764 = vmatpush3.bf16.msra.mxu1 %v1953_v19  ;;  %1707 = vmatprep.subr.bf16.mxu0 %v1954_v20  ;;  %v1976_v0 = vld [vmem:[#allocation2 + $0x1e8] sm:$0xff]   ;;  %v79_v6 = vld [vmem:[%s2471_s0 + $0xc0] sm:$0xff]  ;;  %v62_v57 = vld [vmem:[%s2471_s0 + $0x38] sm:$0xff] }
  0x3b   :  { %1765 = vmatprep.subr.bf16.mxu1 %v1955_v21  ;;  %v1977_v1 = vld [vmem:[#allocation2 + $0x1a8] sm:$0xff]   ;;  %v83_v7 = vld [vmem:[%s2471_s0 + $0xe0] sm:$0xff] }
  0x3c   :  { %v80_v8 = vld [vmem:[%s2471_s0 + $0xc8] sm:$0xff]  ;;  %v1531_v9 = vcombine.high %v79_v6, %v83_v7  ;;  %v1980_v12 = vld [vmem:[#allocation2 + $0x1e0] sm:$0xff]   ;;  %v1530_v16 = vcombine.low %v79_v6, %v83_v7  ;;  %v73_v6 = vld [vmem:[%s2471_s0 + $0x90] sm:$0xff] }
  0x3d   :  { %1708 = vmatpush3.bf16.msra.mxu0 %v1956_v22  ;;  %v84_v10 = vld [vmem:[%s2471_s0 + $0xe8] sm:$0xff]  ;;  %v1981_v13 = vld [vmem:[#allocation2 + $0x1a0] sm:$0xff]   ;;  %v77_v7 = vld [vmem:[%s2471_s0 + $0xb0] sm:$0xff] }
  0x3e   :  { %1766 = vmatpush3.bf16.msra.mxu1 %v1957_v23  ;;  %1709 = vmatprep.subr.bf16.mxu0 %v1958_v24  ;;  %v1533_v11 = vcombine.high %v80_v8, %v84_v10  ;;  %v87_v18 = vld [vmem:[%s2471_s0 + $0x100] sm:$0xff]  ;;  %v1532_v20 = vcombine.low %v80_v8, %v84_v10  ;;  %v88_v22 = vld [vmem:[%s2471_s0 + $0x108] sm:$0xff]  ;;  %v74_v8 = vld [vmem:[%s2471_s0 + $0x98] sm:$0xff] }
  0x3f   :  { %1767 = vmatprep.subr.bf16.mxu1 %v1959_v25  ;;  %v91_v19 = vld [vmem:[%s2471_s0 + $0x120] sm:$0xff]  ;;  %v92_v23 = vld [vmem:[%s2471_s0 + $0x128] sm:$0xff]  ;;  %v1985_v25 = vld [vmem:[#allocation2 + $0x198] sm:$0xff]  }
  0x40   :  { %v1539_v21 = vcombine.high %v87_v18, %v91_v19  ;;  %v1541_v24 = vcombine.high %v88_v22, %v92_v23  ;;  %v96_v32 = vld [vmem:[%s2471_s0 + $0x148] sm:$0xff]  ;;  %v1538_v34 = vcombine.low %v87_v18, %v91_v19  ;;  %v1540_v36 = vcombine.low %v88_v22, %v92_v23  ;;  %v1995_v47 = vld [vmem:[#allocation2 + $0x100] sm:$0xff]   ;;  %v89_v22 = vld [vmem:[%s2471_s0 + $0x110] sm:$0xff] }
  0x41   :  { %1710 = vmatpush3.bf16.msra.mxu0 %v1960_v26  ;;  %v1986_v26 = vld [vmem:[#allocation2 + $0x150] sm:$0xff]   ;;  %v100_v33 = vld [vmem:[%s2471_s0 + $0x168] sm:$0xff]  ;;  %v1526_v18 = vcombine.low %v73_v6, %v77_v7 }
  0x42   :  { %1768 = vmatpush3.bf16.msra.mxu1 %v1961_v27  ;;  %1711 = vmatprep.subr.bf16.mxu0 %v1962_v28  ;;  %v1987_v27 = vld [vmem:[#allocation2 + $0x110] sm:$0xff]   ;;  %v1549_v39 = vcombine.high %v96_v32, %v100_v33  ;;  %v104_v44 = vld [vmem:[%s2471_s0 + $0x188] sm:$0xff] }
  0x43   :  { %1769 = vmatprep.subr.bf16.mxu1 %v1963_v29  ;;  %v1988_v28 = vld [vmem:[#allocation2 + $0x1d0] sm:$0xff]   ;;  %v108_v45 = vld [vmem:[%s2471_s0 + $0x1a8] sm:$0xff] }
  0x44   :  { %v1989_v29 = vld [vmem:[#allocation2 + $0x190] sm:$0xff]   ;;  %v1556_v59 = vcombine.low %v104_v44, %v108_v45 }
  0x45   :  { %1712 = vmatpush3.bf16.msra.mxu0 %v1964_v30  ;;  %v95_v30 = vld [vmem:[%s2471_s0 + $0x140] sm:$0xff]  ;;  %v93_v23 = vld [vmem:[%s2471_s0 + $0x130] sm:$0xff] }
  0x46   :  { %1770 = vmatpush3.bf16.msra.mxu1 %v1965_v31  ;;  %1813 = vmatprep.subr.bf16.mxu0 %v1966_v40  ;;  %v99_v31 = vld [vmem:[%s2471_s0 + $0x160] sm:$0xff]  ;;  %v1992_v40 = vld [vmem:[#allocation2 + $0x1c8] sm:$0xff]  }
  0x47   :  { %1871 = vmatprep.subr.bf16.mxu1 %v1968_v42  ;;  %v1547_v37 = vcombine.high %v95_v30, %v99_v31  ;;  %v103_v42 = vld [vmem:[%s2471_s0 + $0x180] sm:$0xff]  ;;  %v1546_v48 = vcombine.low %v95_v30, %v99_v31  ;;  %v97_v30 = vld [vmem:[%s2471_s0 + $0x150] sm:$0xff] }
  0x48   :  { %936 = vmatmul.mubr.bf16.vlgmr.msra.gmra.mxu0 %v1506_v35  ;;  %v1990_v35 = vld [vmem:[#allocation2 + $0x148] sm:$0xff]   ;;  %v101_v31 = vld [vmem:[%s2471_s0 + $0x170] sm:$0xff] }
  0x49   :  { %1025 = vmatmul.mubr.bf16.vlgmr.msra.gmra.mxu1 %v1508_v38  ;;  %1814 = vmatpush3.bf16.msra.mxu0 %v1967_v41  ;;  %v1991_v38 = vld [vmem:[#allocation2 + $0x108] sm:$0xff]  }
  0x4a   :  { %1872 = vmatpush3.bf16.msra.mxu1 %v1969_v43  ;;  %943 = vmatprep.mubr.bf16.mxu0 %v1515_v46  ;;  %v1993_v41 = vld [vmem:[#allocation2 + $0x188] sm:$0xff]   ;;  %v107_v43 = vld [vmem:[%s2471_s0 + $0x1a0] sm:$0xff] }
  0x4b   :  { %1032 = vmatprep.mubr.bf16.mxu1 %v1517_v49  ;;  %1815 = vmatprep.subr.bf16.mxu0 %v1970_v50  ;;  %v1994_v46 = vld [vmem:[#allocation2 + $0x140] sm:$0xff]   ;;  %v1548_v50 = vcombine.low %v96_v32, %v100_v33  ;;  %v1554_v58 = vcombine.low %v103_v42, %v107_v43  ;;  %v98_v32 = vld [vmem:[%s2471_s0 + $0x158] sm:$0xff] }
  0x4c   :  { %1873 = vmatprep.subr.bf16.mxu1 %v1972_v54  ;;  %v1996_v49 = vld [vmem:[#allocation2 + $0x1c0] sm:$0xff]   ;;  %v57_v54 = vld [vmem:[%s2471_s0 + $0x10] sm:$0xff]  ;;  %v102_v33 = vld [vmem:[%s2471_s0 + $0x178] sm:$0xff] }
  0x4d   :  { %1816 = vmatpush3.bf16.msra.mxu0 %v1971_v52  ;;  %v1997_v52 = vld [vmem:[#allocation2 + $0x180] sm:$0xff]  }
  0x4e   :  { %1874 = vmatpush3.bf16.msra.mxu1 %v1973_v55  ;;  %1817 = vmatprep.subr.bf16.mxu0 %v1974_v56  ;;  %v61_v55 = vld [vmem:[%s2471_s0 + $0x30] sm:$0xff]  ;;  %v58_v56 = vld [vmem:[%s2471_s0 + $0x18] sm:$0xff] }
  0x4f   :  { %1875 = vmatprep.subr.bf16.mxu1 %v1976_v0  ;;  %v1511_v60 = vcombine.high %v57_v54, %v61_v55  ;;  %v66_v0 = vld [vmem:[%s2471_s0 + $0x58] sm:$0xff] }
  0x50   :  { %944 = vmatmul.mubr.bf16.gmra.mxu0 %v1514_v51  ;;  %v1555_v51 = vcombine.high %v103_v42, %v107_v43  ;;  %v1550_v42 = vcombine.low %v97_v30, %v101_v31  ;;  %v1552_v43 = vcombine.low %v98_v32, %v102_v33 }
  0x51   :  { %1033 = vmatmul.mubr.bf16.gmra.mxu1 %v1516_v53  ;;  %951 = vmatprep.mubr.bf16.mxu0 %v1523_v61  ;;  %v1557_v53 = vcombine.high %v104_v44, %v108_v45  ;;  %v1513_v61 = vcombine.high %v58_v56, %v62_v57 }
  0x52   :  { %1040 = vmatprep.mubr.bf16.mxu1 %v1525_v62  ;;  %1818 = vmatpush3.bf16.msra.mxu0 %v1975_v63  ;;  %v65_v62 = vld [vmem:[%s2471_s0 + $0x50] sm:$0xff] }
  0x53   :  { %1876 = vmatpush3.bf16.msra.mxu1 %v1977_v1  ;;  %1819 = vmatprep.subr.bf16.mxu0 %v1978_v3  ;;  %v69_v63 = vld [vmem:[%s2471_s0 + $0x70] sm:$0xff]  ;;  %v70_v1 = vld [vmem:[%s2471_s0 + $0x78] sm:$0xff]  ;;  %v1512_v3 = vcombine.low %v58_v56, %v62_v57 }
  0x54   :  { %1877 = vmatprep.subr.bf16.mxu1 %v1980_v12  ;;  %v1518_v10 = vcombine.low %v65_v62, %v69_v63  ;;  %v1527_v12 = vcombine.high %v73_v6, %v77_v7 }
  0x56   :  { %1820 = vmatpush3.bf16.msra.mxu0 %v1979_v5  ;;  %v1521_v5 = vcombine.high %v66_v0, %v70_v1 }
  0x57   :  { %1878 = vmatpush3.bf16.msra.mxu1 %v1981_v13  ;;  %1821 = vmatprep.subr.bf16.mxu0 %v1982_v14  ;;  %v81_v14 = vld [vmem:[%s2471_s0 + $0xd0] sm:$0xff] }
  0x58   :  { %952 = vmatmul.mubr.bf16.gmra.mxu0 %v1522_v2  ;;  %1879 = vmatprep.subr.bf16.mxu1 %v1984_v17  ;;  %v1510_v2 = vcombine.low %v57_v54, %v61_v55  ;;  %v86_v17 = vld [vmem:[%s2471_s0 + $0xf8] sm:$0xff] }
  0x59   :  { %1041 = vmatmul.mubr.bf16.gmra.mxu1 %v1524_v4  ;;  %959 = vmatprep.mubr.bf16.mxu0 %v1531_v9  ;;  %v1519_v4 = vcombine.high %v65_v62, %v69_v63  ;;  %v78_v9 = vld [vmem:[%s2471_s0 + $0xb8] sm:$0xff] }
  0x5a   :  { %1048 = vmatprep.mubr.bf16.mxu1 %v1533_v11  ;;  %1822 = vmatpush3.bf16.msra.mxu0 %v1983_v15  ;;  %v1520_v11 = vcombine.low %v66_v0, %v70_v1  ;;  %v1529_v13 = vcombine.high %v74_v8, %v78_v9  ;;  %v85_v15 = vld [vmem:[%s2471_s0 + $0xf0] sm:$0xff]  ;;  %v1528_v19 = vcombine.low %v74_v8, %v78_v9 }
  0x5b   :  { %1880 = vmatpush3.bf16.msra.mxu1 %v1985_v25  ;;  %1823 = vmatprep.subr.bf16.mxu0 %v1986_v26  ;;  %v94_v25 = vld [vmem:[%s2471_s0 + $0x138] sm:$0xff]  ;;  %v1534_v26 = vcombine.low %v81_v14, %v85_v15 }
  0x5c   :  { %1881 = vmatprep.subr.bf16.mxu1 %v1988_v28  ;;  %v1543_v28 = vcombine.high %v89_v22, %v93_v23 }
  0x5e   :  { %1824 = vmatpush3.bf16.msra.mxu0 %v1987_v27 }
  0x5f   :  { %1882 = vmatpush3.bf16.msra.mxu1 %v1989_v29  ;;  %1825 = vmatprep.subr.bf16.mxu0 %v1990_v35 }
  0x60   :  { %960 = vmatmul.mubr.bf16.gmra.mxu0 %v1530_v16  ;;  %1883 = vmatprep.subr.bf16.mxu1 %v1992_v40  ;;  %v82_v16 = vld [vmem:[%s2471_s0 + $0xd8] sm:$0xff] }
  0x61   :  { %1049 = vmatmul.mubr.bf16.gmra.mxu1 %v1532_v20  ;;  %967 = vmatprep.mubr.bf16.mxu0 %v1539_v21  ;;  %v1535_v20 = vcombine.high %v81_v14, %v85_v15  ;;  %v1537_v21 = vcombine.high %v82_v16, %v86_v17  ;;  %v1536_v27 = vcombine.low %v82_v16, %v86_v17  ;;  %v106_v40 = vld [vmem:[%s2471_s0 + $0x198] sm:$0xff] }
  0x62   :  { %1056 = vmatprep.mubr.bf16.mxu1 %v1541_v24  ;;  %1826 = vmatpush3.bf16.msra.mxu0 %v1991_v38  ;;  %v90_v24 = vld [vmem:[%s2471_s0 + $0x118] sm:$0xff]  ;;  %v105_v38 = vld [vmem:[%s2471_s0 + $0x190] sm:$0xff] }
  0x63   :  { %1884 = vmatpush3.bf16.msra.mxu1 %v1993_v41  ;;  %1827 = vmatprep.subr.bf16.mxu0 %v1994_v46  ;;  %v1545_v29 = vcombine.high %v90_v24, %v94_v25  ;;  %v1544_v35 = vcombine.low %v90_v24, %v94_v25  ;;  %v110_v41 = vld [vmem:[%s2471_s0 + $0x1b8] sm:$0xff] }
  0x64   :  { %1885 = vmatprep.subr.bf16.mxu1 %v1996_v49  ;;  %v1561_v45 = vcombine.high %v106_v40, %v110_v41 }
  0x66   :  { %1828 = vmatpush3.bf16.msra.mxu0 %v1995_v47  ;;  %v1560_v47 = vcombine.low %v106_v40, %v110_v41 }
  0x67   :  { %1886 = vmatpush3.bf16.msra.mxu1 %v1997_v52 }
  0x68   :  { %968 = vmatmul.mubr.bf16.gmra.mxu0 %v1538_v34  ;;  %v1542_v34 = vcombine.low %v89_v22, %v93_v23 }
  0x69   :  { %1057 = vmatmul.mubr.bf16.gmra.mxu1 %v1540_v36  ;;  %975 = vmatprep.mubr.bf16.mxu0 %v1547_v37  ;;  %v1551_v36 = vcombine.high %v97_v30, %v101_v31  ;;  %v1553_v37 = vcombine.high %v98_v32, %v102_v33 }
  0x6a   :  { %1064 = vmatprep.mubr.bf16.mxu1 %v1549_v39  ;;  %v109_v39 = vld [vmem:[%s2471_s0 + $0x1b0] sm:$0xff] }
  0x6b   :  { %v1559_v44 = vcombine.high %v105_v38, %v109_v39  ;;  %v1558_v46 = vcombine.low %v105_v38, %v109_v39 }
  0x70   :  { %976 = vmatmul.mubr.bf16.gmra.mxu0 %v1546_v48 }
  0x71   :  { %1065 = vmatmul.mubr.bf16.gmra.mxu1 %v1548_v50  ;;  %983 = vmatprep.mubr.bf16.mxu0 %v1555_v51 }
  0x72   :  { %1072 = vmatprep.mubr.bf16.mxu1 %v1557_v53 }
  0x78   :  { %984 = vmatmul.mubr.bf16.gmra.mxu0 %v1554_v58 }
  0x79   :  { %1073 = vmatmul.mubr.bf16.gmra.mxu1 %v1556_v59  ;;  %1113 = vmatprep.mubr.bf16.mxu0 %v1511_v60 }
  0x7a   :  { %1202 = vmatprep.mubr.bf16.mxu1 %v1513_v61 }
  0x80   :  { %1114 = vmatmul.mubr.bf16.vlgmr.msra.gmra.mxu0 %v1510_v2 }
  0x81   :  { %1203 = vmatmul.mubr.bf16.vlgmr.msra.gmra.mxu1 %v1512_v3  ;;  %1121 = vmatprep.mubr.bf16.mxu0 %v1519_v4 }
  0x82   :  { %1210 = vmatprep.mubr.bf16.mxu1 %v1521_v5 }
  0x88   :  { %1122 = vmatmul.mubr.bf16.gmra.mxu0 %v1518_v10 }
  0x89   :  { %1211 = vmatmul.mubr.bf16.gmra.mxu1 %v1520_v11  ;;  %1129 = vmatprep.mubr.bf16.mxu0 %v1527_v12 }
  0x8a   :  { %1218 = vmatprep.mubr.bf16.mxu1 %v1529_v13 }
  0x90   :  { %1130 = vmatmul.mubr.bf16.gmra.mxu0 %v1526_v18 }
  0x91   :  { %1219 = vmatmul.mubr.bf16.gmra.mxu1 %v1528_v19  ;;  %1137 = vmatprep.mubr.bf16.mxu0 %v1535_v20 }
  0x92   :  { %1226 = vmatprep.mubr.bf16.mxu1 %v1537_v21 }
  0x98   :  { %1138 = vmatmul.mubr.bf16.gmra.mxu0 %v1534_v26 }
  0x99   :  { %1227 = vmatmul.mubr.bf16.gmra.mxu1 %v1536_v27  ;;  %1145 = vmatprep.mubr.bf16.mxu0 %v1543_v28 }
  0x9a   :  { %1234 = vmatprep.mubr.bf16.mxu1 %v1545_v29 }
  0xa0   :  { %1146 = vmatmul.mubr.bf16.gmra.mxu0 %v1542_v34 }
  0xa1   :  { %1235 = vmatmul.mubr.bf16.gmra.mxu1 %v1544_v35  ;;  %1153 = vmatprep.mubr.bf16.mxu0 %v1551_v36 }
  0xa2   :  { %1242 = vmatprep.mubr.bf16.mxu1 %v1553_v37 }
  0xa8   :  { %1154 = vmatmul.mubr.bf16.gmra.mxu0 %v1550_v42 }
  0xa9   :  { %1243 = vmatmul.mubr.bf16.gmra.mxu1 %v1552_v43  ;;  %1161 = vmatprep.mubr.bf16.mxu0 %v1559_v44 }
  0xaa   :  { %1250 = vmatprep.mubr.bf16.mxu1 %v1561_v45 }
  0xb0   :  { %1162 = vmatmul.mubr.bf16.gmra.mxu0 %v1558_v46 }
  0xb1   :  { %1251 = vmatmul.mubr.bf16.gmra.mxu1 %v1560_v47 }
 0x108   :  { %v1713_v48 = vpop.f32.mrf.mxu0 }
 0x109   :  { %v1771_v49 = vpop.f32.mrf.mxu1 }
 0x10a   :  { %v1714_v50 = vpop.f32.mrf.mxu0 }
 0x10b   :  { %v1715_v51 = vadd.f32 %v1714_v50, %v1713_v48  ;;  %v1772_v52 = vpop.f32.mrf.mxu1 }
 0x10c   :  { %v1773_v53 = vadd.f32 %v1772_v52, %v1771_v49  ;;  %v1716_v54 = vpop.f32.mrf.mxu0 }
 0x10d   :  { %v1774_v55 = vpop.f32.mrf.mxu1 }
 0x10e   :  { %v2271_v56 = vadd.f32 %v1773_v53, %v1715_v51  ;;  %v1717_v57 = vpop.f32.mrf.mxu0 }
 0x10f   :  { %v1718_v58 = vadd.f32 %v1717_v57, %v1716_v54  ;;  %v1775_v59 = vpop.f32.mrf.mxu1 }
 0x110   :  { %v1776_v60 = vadd.f32 %v1775_v59, %v1774_v55  ;;  %v1719_v61 = vpop.f32.mrf.mxu0 }
 0x111   :  { %v1777_v62 = vpop.f32.mrf.mxu1 }
 0x112   :  { %v2273_v63 = vadd.f32 %v1776_v60, %v1718_v58  ;;  %v1720_v0 = vpop.f32.mrf.mxu0 }
 0x113   :  { %v1721_v1 = vadd.f32 %v1720_v0, %v1719_v61  ;;  %v1778_v2 = vpop.f32.mrf.mxu1 }
 0x114   :  { %v1779_v3 = vadd.f32 %v1778_v2, %v1777_v62  ;;  %v1722_v4 = vpop.f32.mrf.mxu0 }
 0x115   :  { %v1780_v5 = vpop.f32.mrf.mxu1 }
 0x116   :  { %v2275_v6 = vadd.f32 %v1779_v3, %v1721_v1  ;;  %v1723_v7 = vpop.f32.mrf.mxu0 }
 0x117   :  { %v1724_v8 = vadd.f32 %v1723_v7, %v1722_v4  ;;  %v1781_v9 = vpop.f32.mrf.mxu1 }
 0x118   :  { %v1782_v10 = vadd.f32 %v1781_v9, %v1780_v5  ;;  %v1725_v11 = vpop.f32.mrf.mxu0 }
 0x119   :  { %v1783_v12 = vpop.f32.mrf.mxu1 }
 0x11a   :  { %v2277_v13 = vadd.f32 %v1782_v10, %v1724_v8  ;;  %v1726_v14 = vpop.f32.mrf.mxu0 }
 0x11b   :  { %v1727_v15 = vadd.f32 %v1726_v14, %v1725_v11  ;;  %v1784_v16 = vpop.f32.mrf.mxu1 }
 0x11c   :  { %v1785_v17 = vadd.f32 %v1784_v16, %v1783_v12  ;;  %v1728_v18 = vpop.f32.mrf.mxu0 }
 0x11d   :  { %v1786_v19 = vpop.f32.mrf.mxu1 }
 0x11e   :  { %v2279_v20 = vadd.f32 %v1785_v17, %v1727_v15  ;;  %v1729_v21 = vpop.f32.mrf.mxu0 }
 0x11f   :  { %v1730_v22 = vadd.f32 %v1729_v21, %v1728_v18  ;;  %v1787_v23 = vpop.f32.mrf.mxu1 }
 0x120   :  { %v1788_v24 = vadd.f32 %v1787_v23, %v1786_v19  ;;  %v1731_v25 = vpop.f32.mrf.mxu0 }
 0x121   :  { %v1789_v26 = vpop.f32.mrf.mxu1 }
 0x122   :  { %v2281_v27 = vadd.f32 %v1788_v24, %v1730_v22  ;;  %v1732_v28 = vpop.f32.mrf.mxu0 }
 0x123   :  { %v1733_v29 = vadd.f32 %v1732_v28, %v1731_v25  ;;  %v1790_v30 = vpop.f32.mrf.mxu1 }
 0x124   :  { %v1791_v31 = vadd.f32 %v1790_v30, %v1789_v26  ;;  %v1734_v32 = vpop.f32.mrf.mxu0 }
 0x125   :  { %v1792_v33 = vpop.f32.mrf.mxu1 }
 0x126   :  { %v2283_v34 = vadd.f32 %v1791_v31, %v1733_v29  ;;  %v1735_v35 = vpop.f32.mrf.mxu0 }
 0x127   :  { %v1736_v36 = vadd.f32 %v1735_v35, %v1734_v32  ;;  %v1793_v37 = vpop.f32.mrf.mxu1 }
 0x128   :  { %v1794_v38 = vadd.f32 %v1793_v37, %v1792_v33  ;;  %v1737_v39 = vpop.f32.mrf.mxu0 }
 0x129   :  { %v1795_v40 = vpop.f32.mrf.mxu1 }
 0x12a   :  { %v2285_v41 = vadd.f32 %v1794_v38, %v1736_v36  ;;  %v1738_v42 = vpop.f32.mrf.mxu0 }
 0x12b   :  { %v1739_v43 = vadd.f32 %v1738_v42, %v1737_v39  ;;  %v1796_v44 = vpop.f32.mrf.mxu1 }
 0x12c   :  { %v1797_v45 = vadd.f32 %v1796_v44, %v1795_v40  ;;  %v2287_v46 = vpop.f32.mrf.mxu0 }
 0x12d   :  { %v2289_v47 = vpop.f32.mrf.mxu1 }
 0x12e   :  { %v2291_v48 = vadd.f32 %v1797_v45, %v1739_v43  ;;  %v2293_v49 = vpop.f32.mrf.mxu0 }
 0x12f   :  { %v2295_v50 = vpop.f32.mrf.mxu1 }
 0x130   :  { %v2297_v51 = vpop.f32.mrf.mxu0 }
 0x131   :  { %v2299_v52 = vpop.f32.mrf.mxu1 }
 0x132   :  { %v2301_v53 = vpop.f32.mrf.mxu0 }
 0x133   :  { %v2303_v54 = vpop.f32.mrf.mxu1 }
 0x134   :  { %v2305_v55 = vpop.f32.mrf.mxu0 }
 0x135   :  { %v2307_v57 = vpop.f32.mrf.mxu1 }
 0x136   :  { %v2309_v58 = vpop.f32.mrf.mxu0 }
 0x137   :  { %v2311_v59 = vpop.f32.mrf.mxu1 }
 0x138   :  { %v2313_v60 = vpop.f32.mrf.mxu0 }
 0x139   :  { %v2315_v61 = vpop.f32.mrf.mxu1 }
 0x13a   :  { %v2317_v62 = vpop.f32.mrf.mxu0 }
 0x13b   :  { %v2319_v0 = vpop.f32.mrf.mxu1 }
 0x13c   :  { %v2321_v1 = vpop.f32.mrf.mxu0 }
 0x13d   :  { %v2323_v2 = vpop.f32.mrf.mxu1 }
 0x13e   :  { %v2325_v3 = vpop.f32.mrf.mxu0 }
 0x13f   :  { %v2327_v4 = vpop.f32.mrf.mxu1 }
 0x140   :  { %v1829_v5 = vpop.f32.mrf.mxu0 }
 0x141   :  { %v1887_v7 = vpop.f32.mrf.mxu1 }
 0x142   :  { %v1830_v8 = vpop.f32.mrf.mxu0 }
 0x143   :  { %v1831_v9 = vadd.f32 %v1830_v8, %v1829_v5  ;;  %v1888_v10 = vpop.f32.mrf.mxu1 }
 0x144   :  { %v1832_v11 = vpop.f32.mrf.mxu0  ;;  %v1889_v15 = vadd.f32 %v1888_v10, %v1887_v7 }
 0x145   :  { %v1116_v12 = vadd.f32 %v1831_v9, %v2271_v56  ;;  %v1890_v14 = vpop.f32.mrf.mxu1 }
 0x146   :  { %v1833_v16 = vpop.f32.mrf.mxu0 }
 0x147   :  { %v1834_v17 = vadd.f32 %v1833_v16, %v1832_v11  ;;  %v1891_v18 = vpop.f32.mrf.mxu1  ;;  %v2330_v19 = vadd.f32 %v1889_v15, %v1116_v12 }
 0x148   :  { %v1835_v21 = vpop.f32.mrf.mxu0  ;;  %v1892_v23 = vadd.f32 %v1891_v18, %v1890_v14 }
 0x149   :  { %v1119_v22 = vadd.f32 %v1834_v17, %v2273_v63  ;;  %v1893_v24 = vpop.f32.mrf.mxu1  ;;  %v1279_v56 = vmul.f32 %v2330_v19, %v2330_v19 }
 0x14a   :  { %v1836_v25 = vpop.f32.mrf.mxu0 }
 0x14b   :  { %v2333_v26 = vadd.f32 %v1892_v23, %v1119_v22  ;;  %v1837_v28 = vadd.f32 %v1836_v25, %v1835_v21  ;;  %v1894_v29 = vpop.f32.mrf.mxu1 }
 0x14c   :  { %v1838_v30 = vpop.f32.mrf.mxu0  ;;  %v1895_v63 = vadd.f32 %v1894_v29, %v1893_v24 }
 0x14d   :  { %v1259_v31 = vadd.f32 %v2333_v26, %v2330_v19  ;;  %v1280_v32 = vmul.f32 %v2333_v26, %v2333_v26  ;;  %v1124_v33 = vadd.f32 %v1837_v28, %v2275_v6  ;;  %v1896_v35 = vpop.f32.mrf.mxu1 }
 0x14e   :  { %v1839_v36 = vpop.f32.mrf.mxu0 }
 0x14f   :  { %v1293_v37 = vadd.f32 %v1280_v32, %v1279_v56  ;;  %v2342_v38 = vadd.f32 %v1895_v63, %v1124_v33  ;;  %v1840_v39 = vadd.f32 %v1839_v36, %v1838_v30  ;;  %v1897_v40 = vpop.f32.mrf.mxu1 }
 0x150   :  { %v1841_v42 = vpop.f32.mrf.mxu0  ;;  %v1898_v5 = vadd.f32 %v1897_v40, %v1896_v35 }
 0x151   :  { %v1260_v43 = vadd.f32 %v1259_v31, %v2342_v38  ;;  %v1281_v44 = vmul.f32 %v2342_v38, %v2342_v38  ;;  %v1127_v45 = vadd.f32 %v1840_v39, %v2277_v13  ;;  %v1899_v7 = vpop.f32.mrf.mxu1 }
 0x152   :  { %v1842_v8 = vpop.f32.mrf.mxu0 }
 0x153   :  { %v1294_v6 = vadd.f32 %v1293_v37, %v1281_v44  ;;  %v2348_v9 = vadd.f32 %v1898_v5, %v1127_v45  ;;  %v1843_v10 = vadd.f32 %v1842_v8, %v1841_v42  ;;  %v1900_v11 = vpop.f32.mrf.mxu1 }
 0x154   :  { %v1844_v12 = vpop.f32.mrf.mxu0  ;;  %v1901_v17 = vadd.f32 %v1900_v11, %v1899_v7 }
 0x155   :  { %v1261_v14 = vadd.f32 %v1260_v43, %v2348_v9  ;;  %v1282_v15 = vmul.f32 %v2348_v9, %v2348_v9  ;;  %v1132_v16 = vadd.f32 %v1843_v10, %v2279_v20  ;;  %v1902_v18 = vpop.f32.mrf.mxu1 }
 0x156   :  { %v1845_v21 = vpop.f32.mrf.mxu0 }
 0x157   :  { %v1295_v13 = vadd.f32 %v1294_v6, %v1282_v15  ;;  %v2354_v22 = vadd.f32 %v1901_v17, %v1132_v16  ;;  %v1846_v23 = vadd.f32 %v1845_v21, %v1844_v12  ;;  %v1903_v24 = vpop.f32.mrf.mxu1  ;;  %v1800_v15 = vadd.f32 %v2295_v50, %v2289_v47 }
 0x158   :  { %v1847_v25 = vpop.f32.mrf.mxu0  ;;  %v1904_v30 = vadd.f32 %v1903_v24, %v1902_v18  ;;  %v1745_v47 = vadd.f32 %v2301_v53, %v2297_v51  ;;  %v1803_v50 = vadd.f32 %v2303_v54, %v2299_v52  ;;  %v1748_v51 = vadd.f32 %v2309_v58, %v2305_v55 }
 0x159   :  { %v1262_v28 = vadd.f32 %v1261_v14, %v2354_v22  ;;  %v1283_v29 = vmul.f32 %v2354_v22, %v2354_v22  ;;  %v1135_v56 = vadd.f32 %v1846_v23, %v2281_v27  ;;  %v1905_v31 = vpop.f32.mrf.mxu1  ;;  %v1806_v52 = vadd.f32 %v2311_v59, %v2307_v57 }
 0x15a   :  { %v1848_v32 = vpop.f32.mrf.mxu0  ;;  %v1067_v54 = vadd.f32 %v1803_v50, %v1745_v47  ;;  %v1751_v57 = vadd.f32 %v2317_v62, %v2313_v60  ;;  %v1809_v59 = vadd.f32 %v2319_v0, %v2315_v61 }
 0x15b   :  { %v1296_v20 = vadd.f32 %v1295_v13, %v1283_v29  ;;  %v2360_v33 = vadd.f32 %v1904_v30, %v1135_v56  ;;  %v1849_v63 = vadd.f32 %v1848_v32, %v1847_v25  ;;  %v1906_v35 = vpop.f32.mrf.mxu1 }
 0x15c   :  { %v1850_v36 = vpop.f32.mrf.mxu0  ;;  %v1907_v42 = vadd.f32 %v1906_v35, %v1905_v31  ;;  %v1075_v60 = vadd.f32 %v1809_v59, %v1751_v57 }
 0x15d   :  { %v1263_v37 = vadd.f32 %v1262_v28, %v2360_v33  ;;  %v1284_v39 = vmul.f32 %v2360_v33, %v2360_v33  ;;  %v1140_v40 = vadd.f32 %v1849_v63, %v2283_v34  ;;  %v1908_v43 = vpop.f32.mrf.mxu1  ;;  %v1742_v34 = vadd.f32 %v2293_v49, %v2287_v46 }
 0x15e   :  { %v1851_v44 = vpop.f32.mrf.mxu0 }
 0x15f   :  { %v1297_v27 = vadd.f32 %v1296_v20, %v1284_v39  ;;  %v2366_v45 = vadd.f32 %v1907_v42, %v1140_v40  ;;  %v1852_v5 = vadd.f32 %v1851_v44, %v1850_v36  ;;  %v1909_v7 = vpop.f32.mrf.mxu1  ;;  %v1062_v46 = vadd.f32 %v1800_v15, %v1742_v34 }
 0x160   :  { %v1853_v8 = vpop.f32.mrf.mxu0  ;;  %v1910_v12 = vadd.f32 %v1909_v7, %v1908_v43 }
 0x161   :  { %v1264_v6 = vadd.f32 %v1263_v37, %v2366_v45  ;;  %v1285_v10 = vmul.f32 %v2366_v45, %v2366_v45  ;;  %v1143_v11 = vadd.f32 %v1852_v5, %v2285_v41  ;;  %v1911_v14 = vpop.f32.mrf.mxu1 }
 0x162   :  { %v1854_v16 = vpop.f32.mrf.mxu0 }
 0x163   :  { %v1298_v17 = vadd.f32 %v1297_v27, %v1285_v10  ;;  %v2376_v18 = vadd.f32 %v1910_v12, %v1143_v11  ;;  %v1855_v21 = vadd.f32 %v1854_v16, %v1853_v8  ;;  %v1912_v13 = vpop.f32.mrf.mxu1 }
 0x164   :  { %v1856_v23 = vpop.f32.mrf.mxu0  ;;  %v1913_v28 = vadd.f32 %v1912_v13, %v1911_v14  ;;  %v1812_v13 = vadd.f32 %v2327_v4, %v2323_v2 }
 0x165   :  { %v1265_v24 = vadd.f32 %v1264_v6, %v2376_v18  ;;  %v1286_v41 = vmul.f32 %v2376_v18, %v2376_v18  ;;  %v1148_v25 = vadd.f32 %v1855_v21, %v2291_v48  ;;  %v1914_v29 = vpop.f32.mrf.mxu1  ;;  %v1070_v6 = vadd.f32 %v1806_v52, %v1748_v51 }
 0x166   :  { %v1857_v49 = vpop.f32.mrf.mxu0  ;;  %v1754_v21 = vadd.f32 %v2325_v3, %v2321_v1 }
 0x167   :  { %v1299_v56 = vadd.f32 %v1298_v17, %v1286_v41  ;;  %v2386_v30 = vadd.f32 %v1913_v28, %v1148_v25  ;;  %v1858_v31 = vadd.f32 %v1857_v49, %v1856_v23  ;;  %v1915_v32 = vpop.f32.mrf.mxu1 }
 0x168   :  { %v1859_v20 = vpop.f32.mrf.mxu0  ;;  %v1916_v36 = vadd.f32 %v1915_v32, %v1914_v29 }
 0x169   :  { %v1266_v63 = vadd.f32 %v1265_v24, %v2386_v30  ;;  %v1287_v48 = vmul.f32 %v2386_v30, %v2386_v30  ;;  %v1151_v35 = vadd.f32 %v1858_v31, %v1062_v46  ;;  %v1917_v37 = vpop.f32.mrf.mxu1  ;;  %v1078_v46 = vadd.f32 %v1812_v13, %v1754_v21 }
 0x16a   :  { %v1860_v53 = vpop.f32.mrf.mxu0 }
 0x16b   :  { %v1300_v39 = vadd.f32 %v1299_v56, %v1287_v48  ;;  %v2395_v40 = vadd.f32 %v1916_v36, %v1151_v35  ;;  %v1861_v42 = vadd.f32 %v1860_v53, %v1859_v20  ;;  %v1918_v43 = vpop.f32.mrf.mxu1 }
 0x16c   :  { %v1862_v44 = vpop.f32.mrf.mxu0  ;;  %v1919_v55 = vadd.f32 %v1918_v43, %v1917_v37 }
 0x16d   :  { %v1267_v27 = vadd.f32 %v1266_v63, %v2395_v40  ;;  %v1288_v5 = vmul.f32 %v2395_v40, %v2395_v40  ;;  %v1156_v7 = vadd.f32 %v1861_v42, %v1067_v54  ;;  %v1920_v8 = vpop.f32.mrf.mxu1 }
 0x16e   :  { %v1863_v58 = vpop.f32.mrf.mxu0 }
 0x16f   :  { %v1301_v10 = vadd.f32 %v1300_v39, %v1288_v5  ;;  %v1864_v11 = vadd.f32 %v1863_v58, %v1862_v44  ;;  %v1921_v12 = vpop.f32.mrf.mxu1  ;;  %v2404_v14 = vadd.f32 %v1919_v55, %v1156_v7 }
 0x170   :  { %v1865_v34 = vpop.f32.mrf.mxu0  ;;  %v1922_v16 = vadd.f32 %v1921_v12, %v1920_v8 }
 0x171   :  { %v1159_v15 = vadd.f32 %v1864_v11, %v1070_v6  ;;  %v1923_v17 = vpop.f32.mrf.mxu1  ;;  %v1289_v24 = vmul.f32 %v2404_v14, %v2404_v14  ;;  %v1268_v1 = vadd.f32 %v1267_v27, %v2404_v14 }
 0x172   :  { %v1866_v23 = vpop.f32.mrf.mxu0 }
 0x173   :  { %v2410_v62 = vadd.f32 %v1922_v16, %v1159_v15  ;;  %v1867_v61 = vadd.f32 %v1866_v23, %v1865_v34  ;;  %v1924_v0 = vpop.f32.mrf.mxu1  ;;  %v1302_v50 = vadd.f32 %v1301_v10, %v1289_v24 }
 0x174   :  { %v1868_v41 = vpop.f32.mrf.mxu0  ;;  %v1925_v28 = vadd.f32 %v1924_v0, %v1923_v17 }
 0x175   :  { %v1164_v25 = vadd.f32 %v1867_v61, %v1075_v60  ;;  %v1926_v29 = vpop.f32.mrf.mxu1  ;;  %v1290_v2 = vmul.f32 %v2410_v62, %v2410_v62  ;;  %v1269_v56 = vadd.f32 %v1268_v1, %v2410_v62 }
 0x176   :  { %v1869_v47 = vpop.f32.mrf.mxu0 }
 0x177   :  { %v2417_v3 = vadd.f32 %v1925_v28, %v1164_v25  ;;  %v1870_v4 = vadd.f32 %v1869_v47, %v1868_v41  ;;  %v1927_v49 = vpop.f32.mrf.mxu1  ;;  %v1303_v63 = vadd.f32 %v1302_v50, %v1290_v2 }
 0x178   :  { %v1928_v20 = vadd.f32 %v1927_v49, %v1926_v29 }
 0x179   :  { %v1291_v31 = vmul.f32 %v2417_v3, %v2417_v3  ;;  %v1167_v32 = vadd.f32 %v1870_v4, %v1078_v46  ;;  %v1270_v48 = vadd.f32 %v1269_v56, %v2417_v3 }
 0x17b   :  { %v1256_v35 = vadd.f32 %v1928_v20, %v1167_v32  ;;  %v1304_v36 = vadd.f32 %v1303_v63, %v1291_v31  ;;  %v1627_v31 = vld [vmem:[#allocation6] ss:$0 sm:$0xff] }
 0x17d   :  { %v1271_v37 = vadd.f32 %v1270_v48, %v1256_v35  ;;  %v1292_v51 = vmul.f32 %v1256_v35, %v1256_v35 }
 0x17f   :  { %v1272_v52 = vrot.slane %v1271_v37, 4  ;;  %v1305_v53 = vadd.f32 %v1304_v36, %v1292_v51 }
 0x181   :  { %v1273_v54 = vadd.f32 %v1272_v52, %v1271_v37  ;;  %v1306_v39 = vrot.slane %v1305_v53, 4 }
 0x183   :  { %v1274_v42 = vrot.slane %v1273_v54, 2  ;;  %v1307_v43 = vadd.f32 %v1306_v39, %v1305_v53 }
 0x185   :  { %v1275_v44 = vadd.f32 %v1274_v42, %v1273_v54  ;;  %v1308_v27 = vrot.slane %v1307_v43, 2 }
 0x187   :  { %v1276_v5 = vrot.slane %v1275_v44, 1  ;;  %v1309_v7 = vadd.f32 %v1308_v27, %v1307_v43 }
 0x189   :  { %v1277_v8 = vadd.f32 %v1276_v5, %v1275_v44  ;;  %v1310_v6 = vrot.slane %v1309_v7, 1 }
 0x18b   :  { %v1278_v55 = vmul.f32 0.010204081, %v1277_v8  ;;  %v1311_v58 = vadd.f32 %v1310_v6, %v1309_v7 }
 0x18d   :  { %v1312_v57 = vmul.f32 0.010204081, %v1311_v58  ;;  %v1313_v59 = vmul.f32 %v1278_v55, %v1278_v55  ;;  %v1316_v10 = vsub.f32 %v2330_v19, %v1278_v55  ;;  %v1317_v11 = vsub.f32 %v2333_v26, %v1278_v55 }
 0x18e   :  { %v1318_v12 = vsub.f32 %v2342_v38, %v1278_v55  ;;  %v1319_v34 = vsub.f32 %v2348_v9, %v1278_v55  ;;  %v1320_v15 = vsub.f32 %v2354_v22, %v1278_v55  ;;  %v1321_v16 = vsub.f32 %v2360_v33, %v1278_v55 }
 0x18f   :  { %v1314_v17 = vsub.f32 %v1312_v57, %v1313_v59  ;;  %v1322_v21 = vsub.f32 %v2366_v45, %v1278_v55  ;;  %v1323_v13 = vsub.f32 %v2376_v18, %v1278_v55  ;;  %v1324_v23 = vsub.f32 %v2386_v30, %v1278_v55  ;;  %v1626_v18 = vld [vmem:[#allocation4] ss:$0 sm:$0xff] }
 0x190   :  { %v1325_v60 = vsub.f32 %v2395_v40, %v1278_v55  ;;  %v1326_v38 = vsub.f32 %v2404_v14, %v1278_v55  ;;  %v1327_v9 = vsub.f32 %v2410_v62, %v1278_v55  ;;  %v1328_v22 = vsub.f32 %v2417_v3, %v1278_v55 }
 0x191   :  { %v1315_v19 = vmax.f32 %v1314_v17, 0.0  ;;  %v1329_v33 = vsub.f32 %v1256_v35, %v1278_v55 }
 0x193   :  { %v1330_v61 = vadd.f32 1e-05, %v1315_v19 }
 0x195   :  { %1998 = vrsqrt.f32 %v1330_v61 }
 0x1a2   :  { %v1999_v26 = vpop.eup %1998 }
 0x1a3   :  { %v1332_v0 = vmul.f32 %v1999_v26, %v1316_v10  ;;  %v1333_v24 = vmul.f32 %v1999_v26, %v1317_v11  ;;  %v1334_v45 = vmul.f32 %v1999_v26, %v1318_v12  ;;  %v1335_v41 = vmul.f32 %v1999_v26, %v1319_v34 }
 0x1a4   :  { %v1336_v25 = vmul.f32 %v1999_v26, %v1320_v15  ;;  %v1337_v30 = vmul.f32 %v1999_v26, %v1321_v16  ;;  %v1338_v28 = vmul.f32 %v1999_v26, %v1322_v21  ;;  %v1339_v40 = vmul.f32 %v1999_v26, %v1323_v13 }
 0x1a5   :  { %v1340_v29 = vmul.f32 %v1999_v26, %v1324_v23  ;;  %v1341_v46 = vmul.f32 %v1999_v26, %v1325_v60  ;;  %v1342_v47 = vmul.f32 %v1999_v26, %v1326_v38  ;;  %v1343_v1 = vmul.f32 %v1999_v26, %v1327_v9 }
 0x1a6   :  { %v1344_v2 = vmul.f32 %v1999_v26, %v1328_v22  ;;  %v1345_v14 = vmul.f32 %v1999_v26, %v1329_v33  ;;  %v1353_v4 = vmul.f32 %v1626_v18, %v1332_v0  ;;  %v1354_v62 = vmul.f32 %v1626_v18, %v1333_v24 }
 0x1a7   :  { %v1355_v49 = vmul.f32 %v1626_v18, %v1334_v45  ;;  %v1356_v3 = vmul.f32 %v1626_v18, %v1335_v41  ;;  %v1357_v50 = vmul.f32 %v1626_v18, %v1336_v25  ;;  %v1358_v56 = vmul.f32 %v1626_v18, %v1337_v30 }
 0x1a8   :  { %v1359_v32 = vmul.f32 %v1626_v18, %v1338_v28  ;;  %v1360_v20 = vmul.f32 %v1626_v18, %v1339_v40  ;;  %v1361_v63 = vmul.f32 %v1626_v18, %v1340_v29  ;;  %v1362_v48 = vmul.f32 %v1626_v18, %v1341_v46 }
 0x1a9   :  { %v1363_v35 = vmul.f32 %v1626_v18, %v1342_v47  ;;  %v1364_v36 = vmul.f32 %v1626_v18, %v1343_v1  ;;  %v1365_v37 = vmul.f32 %v1626_v18, %v1344_v2  ;;  %v1366_v51 = vmul.f32 %v1626_v18, %v1345_v14 }
 0x1aa   :  { %v1374_v52 = vadd.f32 %v1627_v31, %v1353_v4  ;;  %v1375_v53 = vadd.f32 %v1627_v31, %v1354_v62  ;;  %v1376_v54 = vadd.f32 %v1627_v31, %v1355_v49  ;;  %v1377_v39 = vadd.f32 %v1627_v31, %v1356_v3 }
 0x1ab   :  { %v1378_v42 = vadd.f32 %v1627_v31, %v1357_v50  ;;  %v1379_v43 = vadd.f32 %v1627_v31, %v1358_v56  ;;  %v1380_v44 = vadd.f32 %v1627_v31, %v1359_v32  ;;  %v1381_v27 = vadd.f32 %v1627_v31, %v1360_v20 }
 0x1ac   :  { %v1382_v5 = vadd.f32 %v1627_v31, %v1361_v63  ;;  %v1383_v7 = vadd.f32 %v1627_v31, %v1362_v48  ;;  %v1384_v8 = vadd.f32 %v1627_v31, %v1363_v35  ;;  %v1385_v6 = vadd.f32 %v1627_v31, %v1364_v36 }
 0x1ad   :  { %v1386_v55 = vadd.f32 %v1627_v31, %v1365_v37  ;;  %v1387_v58 = vadd.f32 %v1627_v31, %v1366_v51  ;;  %vm1388_vm0 = vcmp.gt.f32.partialorder %v1374_v52, 0.0  ;;  %vm1389_vm1 = vcmp.gt.f32.partialorder %v1375_v53, 0.0 }
 0x1ae   :  { %vm1390_vm2 = vcmp.gt.f32.partialorder %v1376_v54, 0.0  ;;  %vm1391_vm3 = vcmp.gt.f32.partialorder %v1377_v39, 0.0  ;;  %vm1392_vm4 = vcmp.gt.f32.partialorder %v1378_v42, 0.0  ;;  %vm1393_vm5 = vcmp.gt.f32.partialorder %v1379_v43, 0.0 }
 0x1af   :  { %vm1394_vm6 = vcmp.gt.f32.partialorder %v1380_v44, 0.0  ;;  %vm1395_vm7 = vcmp.gt.f32.partialorder %v1381_v27, 0.0  ;;  %vm1396_vm8 = vcmp.gt.f32.partialorder %v1382_v5, 0.0  ;;  %vm1397_vm9 = vcmp.gt.f32.partialorder %v1383_v7, 0.0 }
 0x1b0   :  { %vm1398_vm10 = vcmp.gt.f32.partialorder %v1384_v8, 0.0  ;;  %vm1399_vm11 = vcmp.gt.f32.partialorder %v1385_v6, 0.0  ;;  %vm1400_vm12 = vcmp.gt.f32.partialorder %v1386_v55, 0.0  ;;  %vm1401_vm13 = vcmp.gt.f32.partialorder %v1387_v58, 0.0 }
 0x1b1   :  { %v1402_v57 = vmul.f32 0.2, %v1374_v52  ;;  %v1403_v59 = vmul.f32 0.2, %v1375_v53  ;;  %v1404_v10 = vmul.f32 0.2, %v1376_v54 }
 0x1b2   :  { %v1405_v11 = vmul.f32 0.2, %v1377_v39  ;;  %v1406_v12 = vmul.f32 0.2, %v1378_v42  ;;  %v1407_v34 = vmul.f32 0.2, %v1379_v43 }
 0x1b3   :  { %v1408_v15 = vmul.f32 0.2, %v1380_v44  ;;  %v1409_v16 = vmul.f32 0.2, %v1381_v27  ;;  %v1410_v17 = vmul.f32 0.2, %v1382_v5  ;;  %v1416_v21 = vsel %vm1388_vm0, %v1374_v52, %v1402_v57 }
 0x1b4   :  { %v1411_v13 = vmul.f32 0.2, %v1383_v7  ;;  %v1412_v23 = vmul.f32 0.2, %v1384_v8  ;;  %v1413_v60 = vmul.f32 0.2, %v1385_v6  ;;  %v1417_v19 = vsel %vm1389_vm1, %v1375_v53, %v1403_v59 }
 0x1b5   :  { %v1414_v61 = vmul.f32 0.2, %v1386_v55  ;;  %v1415_v26 = vmul.f32 0.2, %v1387_v58  ;;  %v1418_v38 = vsel %vm1390_vm2, %v1376_v54, %v1404_v10  ;;  %v1419_v9 = vsel %vm1391_vm3, %v1377_v39, %v1405_v11 }
 0x1b6   :  { %v1420_v22 = vsel %vm1392_vm4, %v1378_v42, %v1406_v12  ;;  %v1421_v33 = vsel %vm1393_vm5, %v1379_v43, %v1407_v34  ;;  %v1422_v0 = vsel %vm1394_vm6, %v1380_v44, %v1408_v15  ;;  %v1423_v24 = vsel %vm1395_vm7, %v1381_v27, %v1409_v16 }
 0x1b7   :  { %v1424_v45 = vsel %vm1396_vm8, %v1382_v5, %v1410_v17  ;;  %v1425_v41 = vsel %vm1397_vm9, %v1383_v7, %v1411_v13  ;;  %v1426_v18 = vsel %vm1398_vm10, %v1384_v8, %v1412_v23  ;;  %v1427_v25 = vsel %vm1399_vm11, %v1385_v6, %v1413_v60 }
 0x1b8   :  { %v1428_v30 = vsel %vm1400_vm12, %v1386_v55, %v1414_v61  ;;  %v1429_v28 = vsel %vm1401_vm13, %v1387_v58, %v1415_v26  ;;  %v1659_v40 = vpack.c.bf16 %v1417_v19, %v1416_v21  ;;  %v1664_v29 = vpack.c.bf16 %v1419_v9, %v1418_v38 }
 0x1b9   :  { %v1669_v46 = vpack.c.bf16 %v1421_v33, %v1420_v22  ;;  %v1674_v47 = vpack.c.bf16 %v1423_v24, %v1422_v0  ;;  %v1679_v1 = vpack.c.bf16 %v1425_v41, %v1424_v45  ;;  %v1684_v2 = vpack.c.bf16 %v1427_v25, %v1426_v18 }
 0x1ba   :  { %1660 = vst [vmem:[%s2475_s4] sm:$0xff] %v1659_v40   ;;  %1691 = vst [vmem:[%s2475_s4 + $0x8] sm:$0xff] %v1664_v29   ;;  %v1689_v14 = vpack.c.bf16 %v1429_v28, %v1428_v30 }
 0x1bb   :  { %1692 = vst [vmem:[%s2475_s4 + $0x10] sm:$0xff] %v1669_v46   ;;  %1693 = vst [vmem:[%s2475_s4 + $0x18] sm:$0xff] %v1674_v47  }
 0x1bc   :  { %1694 = vst [vmem:[%s2475_s4 + $0x20] sm:$0xff] %v1679_v1   ;;  %1695 = vst [vmem:[%s2475_s4 + $0x28] sm:$0xff] %v1684_v2  }
 0x1bd   :  { %1696 = vst [vmem:[%s2475_s4 + $0x30] sm:$0xff] %v1689_v14  }
 0x1be   :  { %1504 = vsyncpa [#allocation3], 1 }
 0x1bf   :  { %1505 = vsyncpa [#allocation5], 1 }

// kernel: d_forward.6
= control target key start
LH: loop header
LB: loop body
LE: loop exit
PB: predicated region body
PF: predicated region fallthrough
CT: control target
= control target key end

     0   :  { %s19529_s0 = inlined_call_operand.vmem [shape: bf16[16,6272], index: 0, kind: input, shape index: {}]   ;;  %s19530_s1 = inlined_call_operand.hbm [shape: bf16[6272,1024], index: 1, kind: input, shape index: {}]   ;;  %s19531_s2 = inlined_call_operand.hbm [shape: f32[1,1024], index: 2, kind: input, shape index: {}]   ;;  %s19532_s3 = inlined_call_operand.hbm [shape: f32[1,1024], index: 3, kind: input, shape index: {}]   ;;  %s19533_s4 = inlined_call_operand.vmem [shape: bf16[16,1024], index: 4, kind: output, shape index: {}]  }
   0x1   :  { %19538 = sst [smem:[#allocation25_spill]] %s19530_s1 }
   0x2   :  { %19539 = sst [smem:[#allocation26_spill]] %s19531_s2 }
   0x3   :  { %9 = vsyncpa [#allocation3], 0 }
   0x4   :  { %11 = vsyncpa [#allocation3 + $0x1], 0 }
   0x5   :  { %12 = vsyncpa [#allocation5], 0 }
   0x6   :  { %14 = vsyncpa [#allocation5 + $0x1], 0  ;;  %s16946_s15 = smov 0   ;;  %s16948_s16 = smov 0  }
   0x7   :  { %s16950_s17 = smov 0   ;;  %s16952_s18 = smov 0  }
   0x8   :  { %s16954_s19 = smov 0   ;;  %s16956_s20 = smov 0  }
   0x9 LB: > { %s16975_s21 = sadd.s32 4294967295, %s16912_s20   ;;  %s32_s22 = sadd.s32 1, %s16908_s19  ;;  %s16912_s20 = sphi %s16956_s20, %s20_s20   ;;  %s16908_s19 = sphi %s16954_s19, %s19595_s19   ;;  %s16904_s18 = sphi %s16952_s18, %s19594_s18   ;;  %s16900_s17 = sphi %s16950_s17, %s19593_s17   ;;  %s16896_s16 = sphi %s16948_s16, %s19592_s16   ;;  %s16892_s15 = sphi %s16946_s15, %s19591_s15  }
   0xa   : > { %p34_p0 = scmp.ge.s32.totalorder %s32_s22, 2  ;;  %s67_s23 = sadd.s32 1, %s16900_s17 }
   0xb   : > { %p74_p1 = scmp.ne.s32.totalorder %s16900_s17, %s16896_s16  ;;  %p75_p2 = scmp.eq.s32.totalorder %s16912_s20, 0 }
   0xc   : > { %s19597_s22 = smov (%p34_p0, %s32_s22), 0  ;;  %p80_p4 = scmp.ne.s32.totalorder %s16896_s16, %s16892_s15 }
   0xd   : > { %p16984_p3 = por %p75_p2, %p74_p1  ;;  %s63_s25 = ssub.s32 %s16908_s19, %s19597_s22 }
   0xe   : > { %p81_p5 = scmp.eq.s32.totalorder %s16975_s21, 0  ;;  %p65_p6 = scmp.eq.s32.totalorder %s63_s25, 0 }
   0xf   : > { %p156_p7 = scmp.eq.s32.totalorder %s16975_s21, 1  ;;  %p14237_p10 = scmp.lt.s32.totalorder %s16912_s20, 2 }
  0x10   : > { %p16993_p8 = por %p81_p5, %p80_p4  ;;  %s17006_s29 = sand.u32 1, %s16900_s17  }
  0x11   : > { %s16998_s27 = scalar_select %p65_p6, %s16900_s17, %s67_s23  }
  0x12   : > { %p17000_p9 = por %p156_p7, %p74_p1  ;;  %s215_s30 = sand.u32 1, %s16912_s20  }
  0x13   : > { %s14219_s5 = smul.u32 12544, %s17006_s29  ;;  %p17012_p11 = pnand %p14237_p10, %p16984_p3 }
  0x14   : > { %s19534_s7 = sshll.u32 %s17006_s29, 2  ;;  %s14212_s10 = sshll.u32 %s16908_s19, 6 }
  0x15   : > { %s195_s8 = scalar_lea.vmem [#allocation2], %s14219_s5  ;;  %s219_s11 = scalar_lea.vmem [#allocation4], %s19534_s7 }
  0x16   : > { %s205_s9 = sshll.u32 %s195_s8, 4  ;;  %s227_s12 = sshll.u32 %s219_s11, 4  ;;  %s17017_s9 = int_to_ptr.vmem [resolvable:$true] %s205_s9  ;;  %s228_s12 = int_to_ptr.vmem [resolvable:$true] %s227_s12 }
  0x17   : > { %s19544_s2 = sld [smem:[#allocation26_spill]]  ;;  %s17025_s23 = scalar_lea.sflag [#allocation5], %s215_s30 }
  0x18   : > { %p16776_p12 = pneg %p17012_p11  ;;  %s16787_s24 = scalar_lea.vmem %s228_s12, 64 }
  0x19   : > { %p16788_p13 = scmp.ne.s32.totalorder %s228_s12, %s16787_s24  ;;  %s16914_s25 = smov [#allocation4]  }
  0x1a   : > { %s16792_s5 = sshll.u32 %s16914_s25, 4  ;;  %s16793_s5 = int_to_ptr.vmem [resolvable:$false] %s16792_s5 }
  0x1b   : > { %p16790_p0 = pnand %p16788_p13, %p16776_p12  ;;  %s16794_s8 = scalar_lea.vmem %s16793_s5, 128 }
  0x1c   : > { %p16795_p2 = scmp.lt.s32.totalorder %s228_s12, %s16793_s5  ;;  %p16796_p3 = scmp.lt.s32.totalorder %s16794_s8, %s16787_s24 }
  0x1d   : > { %s225_s15 = scalar_lea.hbm %s19544_s2, %s14212_s10  ;;  %p16791_p1 = pneg %p16790_p0 }
  0x1e   : > { %p16797_p4 = por %p16796_p3, %p16795_p2 }
  0x20   : > { %p16798_p5 = pnand %p16797_p4, %p16791_p1 }
  0x22   : > { %16801 = shalt.err (!%p16798_p5)
}
  0x23   : > { %14233 = dma.hbm_to_vmem [thread:$0]  (!%p17012_p11), %s225_s15, 64, %s228_s12, %s17025_s23  }
  0x24   : > { %s17038_s13 = scalar_lea.hbm %s19532_s3, %s14212_s10  ;;  %p12581_p6 = scmp.ge.s32.totalorder %s16912_s20, 1 }
  0x25   : > { %p251_p7 = scmp.lt.s32.totalorder %s16912_s20, 3  ;;  %s14211_s14 = sshll.u32 %s16908_s19, 8 }
  0x26   : > { %s19546_s1 = sld [smem:[#allocation25_spill]]  ;;  %s192_s7 = scalar_lea.sflag [#allocation3], %s17006_s29 }
  0x27   : > { %p17043_p10 = pnand %p12581_p6, %p251_p7  ;;  %s16815_s2 = scalar_lea.vmem %s17017_s9, 200704 }
  0x28   : > { %p16816_p13 = scmp.ne.s32.totalorder %s17017_s9, %s16815_s2  ;;  %s16915_s10 = smov [#allocation2]  }
  0x29   : > { %s16820_s12 = sshll.u32 %s16915_s10, 4  ;;  %s16821_s12 = int_to_ptr.vmem [resolvable:$false] %s16820_s12 }
  0x2a   : > { %p16818_p0 = pnand %p16816_p13, %p16776_p12  ;;  %s16822_s15 = scalar_lea.vmem %s16821_s12, 401408 }
  0x2b   : > { %p16823_p2 = scmp.lt.s32.totalorder %s17017_s9, %s16821_s12  ;;  %p16824_p3 = scmp.lt.s32.totalorder %s16822_s15, %s16815_s2 }
  0x2c   : > { %s204_s8 = scalar_lea.hbm %s19546_s1, %s14211_s14  ;;  %p16819_p1 = pneg %p16818_p0 }
  0x2d   : > { %p16825_p4 = por %p16824_p3, %p16823_p2 }
  0x2f   : > { %p16826_p5 = pnand %p16825_p4, %p16819_p1 }
  0x31   : > { %16829 = shalt.err (!%p16826_p5)
}
  0x32   : > { %s16916_s30 = smov 512   ;;  %s16917_s11 = smov 256  }
  0x33   : > { %s16918_s14 = smov 16   ;;  %s19547_s25 = sshll.u32 %s17006_s29, 2 }
  0x34   : > { %14230 = dma.hbm_to_vmem [thread:$0]  (!%p17012_p11), %s204_s8, 200704, %s17017_s9, %s192_s7, %s16916_s30, %s16917_s11, %s16918_s14  }
  0x35   : > { %s238_s5 = scalar_lea.vmem [#allocation6], %s19547_s25  ;;  %s16919_s2 = smov [#allocation6]  }
  0x36   : > { %s246_s1 = sshll.u32 %s238_s5, 4  ;;  %s16848_s12 = sshll.u32 %s16919_s2, 4  ;;  %s247_s1 = int_to_ptr.vmem [resolvable:$true] %s246_s1  ;;  %s16849_s12 = int_to_ptr.vmem [resolvable:$false] %s16848_s12 }
  0x37   : > { %s16843_s10 = scalar_lea.vmem %s247_s1, 64  ;;  %s16850_s15 = scalar_lea.vmem %s16849_s12, 128 }
  0x38   : > { %p16844_p6 = scmp.ne.s32.totalorder %s247_s1, %s16843_s10  ;;  %p16851_p0 = scmp.lt.s32.totalorder %s247_s1, %s16849_s12 }
  0x39   : > { %p16852_p1 = scmp.lt.s32.totalorder %s16850_s15, %s16843_s10 }
  0x3a   : > { %p16846_p7 = pnand %p16844_p6, %p16776_p12 }
  0x3b   : > { %p16853_p2 = por %p16852_p1, %p16851_p0 }
  0x3c   : > { %p16847_p13 = pneg %p16846_p7 }
  0x3e   : > { %p16854_p3 = pnand %p16853_p2, %p16847_p13 }
  0x40   : > { %16857 = shalt.err (!%p16854_p3)
}
  0x41   : > { %14236 = dma.hbm_to_vmem [thread:$0]  (!%p17012_p11), %s17038_s13, 64, %s247_s1, %s17025_s23  }
  0x42   : > { %255 = sbr.rel (%p17043_p10) target bundleno = 1909 (0x775), region = 36 }
  0x47   : > { %s17072_s29 = sand.u32 1, %s16896_s16  }
  0x48   : > { %s14220_s7 = smul.u32 12544, %s17072_s29  ;;  %s258_s9 = scalar_lea.sflag [#allocation3], %s17072_s29 }
  0x4a   : > { %s17076_s8 = scalar_lea.vmem [#allocation2], %s14220_s7 }
  0x4b   : > { %16883 = dma.done.wait (%p16993_p8), %s258_s9, 200704  }
  0x4c   : > { %16885 = vsyncadd (%p16993_p8), %s258_s9, 4294766592  ;;  %s266_s1 = sand.u32 1, %s16975_s21   ;;  %s12582_s6 = sshll.u32 %s17072_s29, 2 }
  0x4d   : > { %s267_s23 = scalar_lea.sflag [#allocation5], %s266_s1  ;;  %s17086_s13 = scalar_lea.vmem [#allocation4], %s12582_s6 }
  0x4e   : > { %16887 = dma.done.wait (%p16993_p8), %s267_s23, 128  }
  0x4f   : > { %16889 = vsyncadd (%p16993_p8), %s267_s23, 4294967168  ;;  %v14290_v0 = vld [vmem:[%s17076_s8 + $0xe4] ss:$16 sps:$4 sm:$0xff]   ;;  %v14294_v2 = vld [vmem:[%s17076_s8 + $0xe0] ss:$16 sps:$4 sm:$0xff]   ;;  %s18606_s24 = scalar_lea.vmem [#allocation6], %s12582_s6 }
  0x50   : > { %v14292_v1 = vld [vmem:[%s17076_s8 + $0x2e4] ss:$16 sps:$4 sm:$0xff]   ;;  %10034 = vmatprep.subr.bf16.mxu0 %v14290_v0  ;;  %v14295_v3 = vld [vmem:[%s17076_s8 + $0x2e0] ss:$16 sps:$4 sm:$0xff]   ;;  %s12584_s6 = sshll.u32 %s17072_s29, 5 }
  0x51   : > { %10077 = vmatprep.subr.bf16.mxu1 %v14292_v1  ;;  %v14296_v4 = vld [vmem:[%s17076_s8 + $0xc4] ss:$16 sps:$4 sm:$0xff]   ;;  %10035 = vmatpush1.bf16.msra.mxu0 %v14294_v2  ;;  %v14300_v6 = vld [vmem:[%s17076_s8 + $0xc0] ss:$16 sps:$4 sm:$0xff]   ;;  %s18641_s30 = scalar_lea.vmem [#allocation7], %s12584_s6 }
  0x52   : > { %10078 = vmatpush1.bf16.msra.mxu1 %v14295_v3  ;;  %v14298_v5 = vld [vmem:[%s17076_s8 + $0x2c4] ss:$16 sps:$4 sm:$0xff]   ;;  %10036 = vmatprep.subr.bf16.mxu0 %v14296_v4  ;;  %v14301_v7 = vld [vmem:[%s17076_s8 + $0x2c0] ss:$16 sps:$4 sm:$0xff]  }
  0x53   : > { %10079 = vmatprep.subr.bf16.mxu1 %v14298_v5  ;;  %v14302_v8 = vld [vmem:[%s17076_s8 + $0xa4] ss:$16 sps:$4 sm:$0xff]   ;;  %v14306_v10 = vld [vmem:[%s17076_s8 + $0xa0] ss:$16 sps:$4 sm:$0xff]   ;;  %v14389_v5 = vld [vmem:[%s19529_s0 + $0x8] ss:$196 sps:$4 sm:$0xff]  }
  0x54   : > { %v14304_v9 = vld [vmem:[%s17076_s8 + $0x2a4] ss:$16 sps:$4 sm:$0xff]   ;;  %v14307_v11 = vld [vmem:[%s17076_s8 + $0x2a0] ss:$16 sps:$4 sm:$0xff]  }
  0x55   : > { %10037 = vmatpush1.bf16.msra.mxu0 %v14300_v6  ;;  %v14308_v12 = vld [vmem:[%s17076_s8 + $0x84] ss:$16 sps:$4 sm:$0xff]   ;;  %v14312_v14 = vld [vmem:[%s17076_s8 + $0x80] ss:$16 sps:$4 sm:$0xff]  }
  0x56   : > { %10080 = vmatpush1.bf16.msra.mxu1 %v14301_v7  ;;  %10038 = vmatprep.subr.bf16.mxu0 %v14302_v8  ;;  %v14310_v13 = vld [vmem:[%s17076_s8 + $0x284] ss:$16 sps:$4 sm:$0xff]   ;;  %v14313_v15 = vld [vmem:[%s17076_s8 + $0x280] ss:$16 sps:$4 sm:$0xff]  }
  0x57   : > { %10081 = vmatprep.subr.bf16.mxu1 %v14304_v9  ;;  %v14314_v16 = vld [vmem:[%s17076_s8 + $0x64] ss:$16 sps:$4 sm:$0xff]   ;;  %v14318_v18 = vld [vmem:[%s17076_s8 + $0x60] ss:$16 sps:$4 sm:$0xff]  }
  0x58   : > { %v14316_v17 = vld [vmem:[%s17076_s8 + $0x264] ss:$16 sps:$4 sm:$0xff]   ;;  %v14319_v19 = vld [vmem:[%s17076_s8 + $0x260] ss:$16 sps:$4 sm:$0xff]  }
  0x59   : > { %10039 = vmatpush1.bf16.msra.mxu0 %v14306_v10  ;;  %v14320_v20 = vld [vmem:[%s17076_s8 + $0x44] ss:$16 sps:$4 sm:$0xff]   ;;  %v14324_v22 = vld [vmem:[%s17076_s8 + $0x40] ss:$16 sps:$4 sm:$0xff]  }
  0x5a   : > { %10082 = vmatpush1.bf16.msra.mxu1 %v14307_v11  ;;  %10040 = vmatprep.subr.bf16.mxu0 %v14308_v12  ;;  %v14322_v21 = vld [vmem:[%s17076_s8 + $0x244] ss:$16 sps:$4 sm:$0xff]   ;;  %v14325_v23 = vld [vmem:[%s17076_s8 + $0x240] ss:$16 sps:$4 sm:$0xff]  }
  0x5b   : > { %10083 = vmatprep.subr.bf16.mxu1 %v14310_v13  ;;  %v14326_v24 = vld [vmem:[%s17076_s8 + $0x24] ss:$16 sps:$4 sm:$0xff]   ;;  %v14330_v26 = vld [vmem:[%s17076_s8 + $0x20] ss:$16 sps:$4 sm:$0xff]  }
  0x5c   : > { %v14328_v25 = vld [vmem:[%s17076_s8 + $0x224] ss:$16 sps:$4 sm:$0xff]   ;;  %v14331_v27 = vld [vmem:[%s17076_s8 + $0x220] ss:$16 sps:$4 sm:$0xff]  }
  0x5d   : > { %10041 = vmatpush1.bf16.msra.mxu0 %v14312_v14  ;;  %v14332_v28 = vld [vmem:[%s17076_s8 + $0x4] ss:$16 sps:$4 sm:$0xff]   ;;  %v14336_v30 = vld [vmem:[%s17076_s8] ss:$16 sps:$4 sm:$0xff]  }
  0x5e   : > { %10084 = vmatpush1.bf16.msra.mxu1 %v14313_v15  ;;  %10042 = vmatprep.subr.bf16.mxu0 %v14314_v16  ;;  %v14334_v29 = vld [vmem:[%s17076_s8 + $0x204] ss:$16 sps:$4 sm:$0xff]   ;;  %v14337_v31 = vld [vmem:[%s17076_s8 + $0x200] ss:$16 sps:$4 sm:$0xff]  }
  0x5f   : > { %10085 = vmatprep.subr.bf16.mxu1 %v14316_v17  ;;  %v14338_v32 = vld [vmem:[%s17076_s8 + $0x1e4] ss:$16 sps:$4 sm:$0xff]   ;;  %v14342_v34 = vld [vmem:[%s17076_s8 + $0x1e0] ss:$16 sps:$4 sm:$0xff]  }
  0x60   : > { %v14340_v33 = vld [vmem:[%s17076_s8 + $0x3e4] ss:$16 sps:$4 sm:$0xff]   ;;  %v14343_v35 = vld [vmem:[%s17076_s8 + $0x3e0] ss:$16 sps:$4 sm:$0xff]  }
  0x61   : > { %10043 = vmatpush1.bf16.msra.mxu0 %v14318_v18  ;;  %v14344_v36 = vld [vmem:[%s17076_s8 + $0x1c4] ss:$16 sps:$4 sm:$0xff]   ;;  %v14348_v38 = vld [vmem:[%s17076_s8 + $0x1c0] ss:$16 sps:$4 sm:$0xff]  }
  0x62   : > { %10086 = vmatpush1.bf16.msra.mxu1 %v14319_v19  ;;  %10044 = vmatprep.subr.bf16.mxu0 %v14320_v20  ;;  %v14346_v37 = vld [vmem:[%s17076_s8 + $0x3c4] ss:$16 sps:$4 sm:$0xff]   ;;  %v14349_v39 = vld [vmem:[%s17076_s8 + $0x3c0] ss:$16 sps:$4 sm:$0xff]  }
  0x63   : > { %10087 = vmatprep.subr.bf16.mxu1 %v14322_v21  ;;  %v14350_v40 = vld [vmem:[%s17076_s8 + $0x1a4] ss:$16 sps:$4 sm:$0xff]   ;;  %v14354_v42 = vld [vmem:[%s17076_s8 + $0x1a0] ss:$16 sps:$4 sm:$0xff]  }
  0x64   : > { %v14352_v41 = vld [vmem:[%s17076_s8 + $0x3a4] ss:$16 sps:$4 sm:$0xff]   ;;  %v14355_v43 = vld [vmem:[%s17076_s8 + $0x3a0] ss:$16 sps:$4 sm:$0xff]  }
  0x65   : > { %10045 = vmatpush1.bf16.msra.mxu0 %v14324_v22  ;;  %v14356_v44 = vld [vmem:[%s17076_s8 + $0x184] ss:$16 sps:$4 sm:$0xff]   ;;  %v14360_v46 = vld [vmem:[%s17076_s8 + $0x180] ss:$16 sps:$4 sm:$0xff]  }
  0x66   : > { %10088 = vmatpush1.bf16.msra.mxu1 %v14325_v23  ;;  %10046 = vmatprep.subr.bf16.mxu0 %v14326_v24  ;;  %v14358_v45 = vld [vmem:[%s17076_s8 + $0x384] ss:$16 sps:$4 sm:$0xff]   ;;  %v14361_v47 = vld [vmem:[%s17076_s8 + $0x380] ss:$16 sps:$4 sm:$0xff]  }
  0x67   : > { %10089 = vmatprep.subr.bf16.mxu1 %v14328_v25  ;;  %v14362_v48 = vld [vmem:[%s17076_s8 + $0x164] ss:$16 sps:$4 sm:$0xff]   ;;  %v14391_v51 = vld [vmem:[%s19529_s0 + $0xc] ss:$196 sps:$4 sm:$0xff]  }
  0x68   : > { %v14388_v49 = vld [vmem:[%s19529_s0 + $0x4] ss:$196 sps:$4 sm:$0xff]   ;;  %v14366_v52 = vld [vmem:[%s17076_s8 + $0x160] ss:$16 sps:$4 sm:$0xff]   ;;  %10109 = vmatprep.mubr.bf16.mxu1 %v14391_v51 }
  0x69   : > { %10047 = vmatpush1.bf16.msra.mxu0 %v14330_v26  ;;  %v14364_v50 = vld [vmem:[%s17076_s8 + $0x364] ss:$16 sps:$4 sm:$0xff]   ;;  %10066 = vmatprep.mubr.bf16.mxu0 %v14388_v49  ;;  %v14367_v53 = vld [vmem:[%s17076_s8 + $0x360] ss:$16 sps:$4 sm:$0xff]  }
  0x6a   : > { %10090 = vmatpush1.bf16.msra.mxu1 %v14331_v27  ;;  %10048 = vmatprep.subr.bf16.mxu0 %v14332_v28  ;;  %v14368_v54 = vld [vmem:[%s17076_s8 + $0x144] ss:$16 sps:$4 sm:$0xff]   ;;  %v14372_v56 = vld [vmem:[%s17076_s8 + $0x140] ss:$16 sps:$4 sm:$0xff]  }
  0x6b   : > { %10091 = vmatprep.subr.bf16.mxu1 %v14334_v29  ;;  %v14370_v55 = vld [vmem:[%s17076_s8 + $0x344] ss:$16 sps:$4 sm:$0xff]   ;;  %v14373_v57 = vld [vmem:[%s17076_s8 + $0x340] ss:$16 sps:$4 sm:$0xff]  }
  0x6c   : > { %v14374_v58 = vld [vmem:[%s17076_s8 + $0x124] ss:$16 sps:$4 sm:$0xff]   ;;  %v14378_v60 = vld [vmem:[%s17076_s8 + $0x120] ss:$16 sps:$4 sm:$0xff]  }
  0x6d   : > { %10049 = vmatpush1.bf16.msra.mxu0 %v14336_v30  ;;  %v14376_v59 = vld [vmem:[%s17076_s8 + $0x324] ss:$16 sps:$4 sm:$0xff]   ;;  %v14379_v61 = vld [vmem:[%s17076_s8 + $0x320] ss:$16 sps:$4 sm:$0xff]  }
  0x6e   : > { %10092 = vmatpush1.bf16.msra.mxu1 %v14337_v31  ;;  %10050 = vmatprep.subr.bf16.mxu0 %v14338_v32  ;;  %v14380_v62 = vld [vmem:[%s17076_s8 + $0x104] ss:$16 sps:$4 sm:$0xff]   ;;  %v14384_v0 = vld [vmem:[%s17076_s8 + $0x100] ss:$16 sps:$4 sm:$0xff]  }
  0x6f   : > { %10093 = vmatprep.subr.bf16.mxu1 %v14340_v33  ;;  %v14382_v63 = vld [vmem:[%s17076_s8 + $0x304] ss:$16 sps:$4 sm:$0xff]   ;;  %v14385_v1 = vld [vmem:[%s17076_s8 + $0x300] ss:$16 sps:$4 sm:$0xff]  }
  0x70   : > { %v14394_v2 = vld [vmem:[%s17076_s8 + $0x4e4] ss:$16 sps:$4 sm:$0xff]   ;;  %v14392_v6 = vld [vmem:[%s17076_s8 + $0x4e0] ss:$16 sps:$4 sm:$0xff]  }
  0x71   : > { %10051 = vmatpush2.bf16.msra.mxu0 %v14342_v34  ;;  %v14397_v3 = vld [vmem:[%s17076_s8 + $0x6e4] ss:$16 sps:$4 sm:$0xff]   ;;  %v14395_v7 = vld [vmem:[%s17076_s8 + $0x6e0] ss:$16 sps:$4 sm:$0xff]  }
  0x72   : > { %10094 = vmatpush2.bf16.msra.mxu1 %v14343_v35  ;;  %10052 = vmatprep.subr.bf16.mxu0 %v14344_v36  ;;  %v14386_v4 = vld [vmem:[%s19529_s0] ss:$196 sps:$4 sm:$0xff]   ;;  %v14490_v34 = vld [vmem:[%s19529_s0 + $0x14] ss:$196 sps:$4 sm:$0xff]  }
  0x73   : > { %10095 = vmatprep.subr.bf16.mxu1 %v14346_v37  ;;  %v14400_v8 = vld [vmem:[%s17076_s8 + $0x4c4] ss:$16 sps:$4 sm:$0xff]   ;;  %v14398_v10 = vld [vmem:[%s17076_s8 + $0x4c0] ss:$16 sps:$4 sm:$0xff]  }
  0x74   : > { %v14403_v9 = vld [vmem:[%s17076_s8 + $0x6c4] ss:$16 sps:$4 sm:$0xff]   ;;  %v14401_v11 = vld [vmem:[%s17076_s8 + $0x6c0] ss:$16 sps:$4 sm:$0xff]  }
  0x75   : > { %10053 = vmatpush2.bf16.msra.mxu0 %v14348_v38  ;;  %v14406_v12 = vld [vmem:[%s17076_s8 + $0x4a4] ss:$16 sps:$4 sm:$0xff]   ;;  %v14404_v14 = vld [vmem:[%s17076_s8 + $0x4a0] ss:$16 sps:$4 sm:$0xff]  }
  0x76   : > { %10096 = vmatpush2.bf16.msra.mxu1 %v14349_v39  ;;  %10054 = vmatprep.subr.bf16.mxu0 %v14350_v40  ;;  %v14409_v13 = vld [vmem:[%s17076_s8 + $0x6a4] ss:$16 sps:$4 sm:$0xff]   ;;  %v14407_v15 = vld [vmem:[%s17076_s8 + $0x6a0] ss:$16 sps:$4 sm:$0xff]  }
  0x77   : > { %10097 = vmatprep.subr.bf16.mxu1 %v14352_v41  ;;  %v14412_v16 = vld [vmem:[%s17076_s8 + $0x484] ss:$16 sps:$4 sm:$0xff]   ;;  %v14410_v18 = vld [vmem:[%s17076_s8 + $0x480] ss:$16 sps:$4 sm:$0xff]  }
  0x78   : > { %v14415_v17 = vld [vmem:[%s17076_s8 + $0x684] ss:$16 sps:$4 sm:$0xff]   ;;  %v14413_v19 = vld [vmem:[%s17076_s8 + $0x680] ss:$16 sps:$4 sm:$0xff]  }
  0x79   : > { %10055 = vmatpush2.bf16.msra.mxu0 %v14354_v42  ;;  %v14418_v20 = vld [vmem:[%s17076_s8 + $0x464] ss:$16 sps:$4 sm:$0xff]   ;;  %v14416_v22 = vld [vmem:[%s17076_s8 + $0x460] ss:$16 sps:$4 sm:$0xff]  }
  0x7a   : > { %10098 = vmatpush2.bf16.msra.mxu1 %v14355_v43  ;;  %10056 = vmatprep.subr.bf16.mxu0 %v14356_v44  ;;  %v14421_v21 = vld [vmem:[%s17076_s8 + $0x664] ss:$16 sps:$4 sm:$0xff]   ;;  %v14419_v23 = vld [vmem:[%s17076_s8 + $0x660] ss:$16 sps:$4 sm:$0xff]  }
  0x7b   : > { %10099 = vmatprep.subr.bf16.mxu1 %v14358_v45  ;;  %v14424_v24 = vld [vmem:[%s17076_s8 + $0x444] ss:$16 sps:$4 sm:$0xff]   ;;  %v14422_v26 = vld [vmem:[%s17076_s8 + $0x440] ss:$16 sps:$4 sm:$0xff]  }
  0x7c   : > { %v14427_v25 = vld [vmem:[%s17076_s8 + $0x644] ss:$16 sps:$4 sm:$0xff]   ;;  %v14425_v27 = vld [vmem:[%s17076_s8 + $0x640] ss:$16 sps:$4 sm:$0xff]  }
  0x7d   : > { %10057 = vmatpush2.bf16.msra.mxu0 %v14360_v46  ;;  %v14430_v28 = vld [vmem:[%s17076_s8 + $0x424] ss:$16 sps:$4 sm:$0xff]   ;;  %v14428_v30 = vld [vmem:[%s17076_s8 + $0x420] ss:$16 sps:$4 sm:$0xff]  }
  0x7e   : > { %10100 = vmatpush2.bf16.msra.mxu1 %v14361_v47  ;;  %10058 = vmatprep.subr.bf16.mxu0 %v14362_v48  ;;  %v14433_v29 = vld [vmem:[%s17076_s8 + $0x624] ss:$16 sps:$4 sm:$0xff]   ;;  %v14431_v31 = vld [vmem:[%s17076_s8 + $0x620] ss:$16 sps:$4 sm:$0xff]  }
  0x7f   : > { %10101 = vmatprep.subr.bf16.mxu1 %v14364_v50  ;;  %v14436_v32 = vld [vmem:[%s17076_s8 + $0x404] ss:$16 sps:$4 sm:$0xff]   ;;  %v14493_v35 = vld [vmem:[%s19529_s0 + $0x1c] ss:$196 sps:$4 sm:$0xff]  }
  0x80   : > { %v14439_v33 = vld [vmem:[%s17076_s8 + $0x604] ss:$16 sps:$4 sm:$0xff]   ;;  %v14434_v36 = vld [vmem:[%s17076_s8 + $0x400] ss:$16 sps:$4 sm:$0xff]  }
  0x81   : > { %10059 = vmatpush2.bf16.msra.mxu0 %v14366_v52  ;;  %v14437_v37 = vld [vmem:[%s17076_s8 + $0x600] ss:$16 sps:$4 sm:$0xff]   ;;  %v14442_v38 = vld [vmem:[%s17076_s8 + $0x5e4] ss:$16 sps:$4 sm:$0xff]  }
  0x82   : > { %10102 = vmatpush2.bf16.msra.mxu1 %v14367_v53  ;;  %10060 = vmatprep.subr.bf16.mxu0 %v14368_v54  ;;  %v14445_v39 = vld [vmem:[%s17076_s8 + $0x7e4] ss:$16 sps:$4 sm:$0xff]   ;;  %v14440_v40 = vld [vmem:[%s17076_s8 + $0x5e0] ss:$16 sps:$4 sm:$0xff]  }
  0x83   : > { %10103 = vmatprep.subr.bf16.mxu1 %v14370_v55  ;;  %v14443_v41 = vld [vmem:[%s17076_s8 + $0x7e0] ss:$16 sps:$4 sm:$0xff]   ;;  %v14448_v42 = vld [vmem:[%s17076_s8 + $0x5c4] ss:$16 sps:$4 sm:$0xff]  }
  0x84   : > { %v14451_v43 = vld [vmem:[%s17076_s8 + $0x7c4] ss:$16 sps:$4 sm:$0xff]   ;;  %v14446_v44 = vld [vmem:[%s17076_s8 + $0x5c0] ss:$16 sps:$4 sm:$0xff]  }
  0x85   : > { %10061 = vmatpush2.bf16.msra.mxu0 %v14372_v56  ;;  %v14449_v45 = vld [vmem:[%s17076_s8 + $0x7c0] ss:$16 sps:$4 sm:$0xff]   ;;  %v14454_v46 = vld [vmem:[%s17076_s8 + $0x5a4] ss:$16 sps:$4 sm:$0xff]  }
  0x86   : > { %10104 = vmatpush2.bf16.msra.mxu1 %v14373_v57  ;;  %10062 = vmatprep.subr.bf16.mxu0 %v14374_v58  ;;  %v14457_v47 = vld [vmem:[%s17076_s8 + $0x7a4] ss:$16 sps:$4 sm:$0xff]   ;;  %v14452_v48 = vld [vmem:[%s17076_s8 + $0x5a0] ss:$16 sps:$4 sm:$0xff]  }
  0x87   : > { %10105 = vmatprep.subr.bf16.mxu1 %v14376_v59  ;;  %v14455_v49 = vld [vmem:[%s17076_s8 + $0x7a0] ss:$16 sps:$4 sm:$0xff]   ;;  %v14460_v50 = vld [vmem:[%s17076_s8 + $0x584] ss:$16 sps:$4 sm:$0xff]  }
  0x88   : > { %v14463_v51 = vld [vmem:[%s17076_s8 + $0x784] ss:$16 sps:$4 sm:$0xff]   ;;  %v14458_v52 = vld [vmem:[%s17076_s8 + $0x580] ss:$16 sps:$4 sm:$0xff]  }
  0x89   : > { %10063 = vmatpush2.bf16.msra.mxu0 %v14378_v60  ;;  %v14461_v53 = vld [vmem:[%s17076_s8 + $0x780] ss:$16 sps:$4 sm:$0xff]   ;;  %v14466_v54 = vld [vmem:[%s17076_s8 + $0x564] ss:$16 sps:$4 sm:$0xff]  }
  0x8a   : > { %10106 = vmatpush2.bf16.msra.mxu1 %v14379_v61  ;;  %10064 = vmatprep.subr.bf16.mxu0 %v14380_v62  ;;  %v14469_v55 = vld [vmem:[%s17076_s8 + $0x764] ss:$16 sps:$4 sm:$0xff]   ;;  %v14464_v56 = vld [vmem:[%s17076_s8 + $0x560] ss:$16 sps:$4 sm:$0xff]  }
  0x8b   : > { %10107 = vmatprep.subr.bf16.mxu1 %v14382_v63  ;;  %v14467_v57 = vld [vmem:[%s17076_s8 + $0x760] ss:$16 sps:$4 sm:$0xff]   ;;  %v14472_v58 = vld [vmem:[%s17076_s8 + $0x544] ss:$16 sps:$4 sm:$0xff]  }
  0x8c   : > { %v14475_v59 = vld [vmem:[%s17076_s8 + $0x744] ss:$16 sps:$4 sm:$0xff]   ;;  %v14470_v60 = vld [vmem:[%s17076_s8 + $0x540] ss:$16 sps:$4 sm:$0xff]  }
  0x8d   : > { %10065 = vmatpush2.bf16.msra.mxu0 %v14384_v0  ;;  %v14473_v61 = vld [vmem:[%s17076_s8 + $0x740] ss:$16 sps:$4 sm:$0xff]   ;;  %v14478_v62 = vld [vmem:[%s17076_s8 + $0x524] ss:$16 sps:$4 sm:$0xff]  }
  0x8e   : > { %10108 = vmatpush2.bf16.msra.mxu1 %v14385_v1  ;;  %10120 = vmatprep.subr.bf16.mxu0 %v14394_v2  ;;  %v14481_v63 = vld [vmem:[%s17076_s8 + $0x724] ss:$16 sps:$4 sm:$0xff]   ;;  %v14476_v0 = vld [vmem:[%s17076_s8 + $0x520] ss:$16 sps:$4 sm:$0xff]  }
  0x8f   : > { %10163 = vmatprep.subr.bf16.mxu1 %v14397_v3  ;;  %v14479_v1 = vld [vmem:[%s17076_s8 + $0x720] ss:$16 sps:$4 sm:$0xff]   ;;  %v14484_v2 = vld [vmem:[%s17076_s8 + $0x504] ss:$16 sps:$4 sm:$0xff]  }
  0x90   : > { %10067 = vmatmul.mubr.bf16.vlgmr.msra.gmra.mxu0 %v14386_v4  ;;  %v14487_v3 = vld [vmem:[%s17076_s8 + $0x704] ss:$16 sps:$4 sm:$0xff]   ;;  %v14482_v4 = vld [vmem:[%s17076_s8 + $0x500] ss:$16 sps:$4 sm:$0xff]  }
  0x91   : > { %10110 = vmatmul.mubr.bf16.vlgmr.msra.gmra.mxu1 %v14389_v5  ;;  %10121 = vmatpush1.bf16.msra.mxu0 %v14392_v6  ;;  %v14485_v5 = vld [vmem:[%s17076_s8 + $0x700] ss:$16 sps:$4 sm:$0xff]   ;;  %v14496_v6 = vld [vmem:[%s17076_s8 + $0x8e4] ss:$16 sps:$4 sm:$0xff]  }
  0x92   : > { %10164 = vmatpush1.bf16.msra.mxu1 %v14395_v7  ;;  %10122 = vmatprep.subr.bf16.mxu0 %v14400_v8  ;;  %v14499_v7 = vld [vmem:[%s17076_s8 + $0xae4] ss:$16 sps:$4 sm:$0xff]  }
  0x93   : > { %10165 = vmatprep.subr.bf16.mxu1 %v14403_v9  ;;  %10152 = vmatprep.mubr.bf16.mxu0 %v14490_v34  ;;  %v14488_v8 = vld [vmem:[%s19529_s0 + $0x10] ss:$196 sps:$4 sm:$0xff]   ;;  %v14491_v9 = vld [vmem:[%s19529_s0 + $0x18] ss:$196 sps:$4 sm:$0xff]  }
  0x94   : > { %10195 = vmatprep.mubr.bf16.mxu1 %v14493_v35  ;;  %v14532_v34 = vld [vmem:[%s17076_s8 + $0x824] ss:$16 sps:$4 sm:$0xff]  }
  0x95   : > { %10123 = vmatpush1.bf16.msra.mxu0 %v14398_v10  ;;  %v14494_v10 = vld [vmem:[%s17076_s8 + $0x8e0] ss:$16 sps:$4 sm:$0xff]   ;;  %v14535_v35 = vld [vmem:[%s17076_s8 + $0xa24] ss:$16 sps:$4 sm:$0xff]  }
  0x96   : > { %10166 = vmatpush1.bf16.msra.mxu1 %v14401_v11  ;;  %10124 = vmatprep.subr.bf16.mxu0 %v14406_v12  ;;  %v14497_v11 = vld [vmem:[%s17076_s8 + $0xae0] ss:$16 sps:$4 sm:$0xff]   ;;  %v14502_v12 = vld [vmem:[%s17076_s8 + $0x8c4] ss:$16 sps:$4 sm:$0xff]  }
  0x97   : > { %10167 = vmatprep.subr.bf16.mxu1 %v14409_v13  ;;  %v14505_v13 = vld [vmem:[%s17076_s8 + $0xac4] ss:$16 sps:$4 sm:$0xff]  }
  0x99   : > { %10125 = vmatpush1.bf16.msra.mxu0 %v14404_v14  ;;  %v14500_v14 = vld [vmem:[%s17076_s8 + $0x8c0] ss:$16 sps:$4 sm:$0xff]  }
  0x9a   : > { %10168 = vmatpush1.bf16.msra.mxu1 %v14407_v15  ;;  %10126 = vmatprep.subr.bf16.mxu0 %v14412_v16  ;;  %v14503_v15 = vld [vmem:[%s17076_s8 + $0xac0] ss:$16 sps:$4 sm:$0xff]   ;;  %v14508_v16 = vld [vmem:[%s17076_s8 + $0x8a4] ss:$16 sps:$4 sm:$0xff]  }
  0x9b   : > { %10169 = vmatprep.subr.bf16.mxu1 %v14415_v17  ;;  %v14511_v17 = vld [vmem:[%s17076_s8 + $0xaa4] ss:$16 sps:$4 sm:$0xff]  }
  0x9d   : > { %10127 = vmatpush1.bf16.msra.mxu0 %v14410_v18  ;;  %v14506_v18 = vld [vmem:[%s17076_s8 + $0x8a0] ss:$16 sps:$4 sm:$0xff]  }
  0x9e   : > { %10170 = vmatpush1.bf16.msra.mxu1 %v14413_v19  ;;  %10128 = vmatprep.subr.bf16.mxu0 %v14418_v20  ;;  %v14592_v19 = vld [vmem:[%s19529_s0 + $0x24] ss:$196 sps:$4 sm:$0xff]   ;;  %v14509_v20 = vld [vmem:[%s17076_s8 + $0xaa0] ss:$16 sps:$4 sm:$0xff]  }
  0x9f   : > { %10171 = vmatprep.subr.bf16.mxu1 %v14421_v21  ;;  %v14595_v21 = vld [vmem:[%s19529_s0 + $0x2c] ss:$196 sps:$4 sm:$0xff]  }
  0xa1   : > { %10129 = vmatpush1.bf16.msra.mxu0 %v14416_v22  ;;  %v14514_v22 = vld [vmem:[%s17076_s8 + $0x884] ss:$16 sps:$4 sm:$0xff]  }
  0xa2   : > { %10172 = vmatpush1.bf16.msra.mxu1 %v14419_v23  ;;  %10130 = vmatprep.subr.bf16.mxu0 %v14424_v24  ;;  %v14517_v23 = vld [vmem:[%s17076_s8 + $0xa84] ss:$16 sps:$4 sm:$0xff]   ;;  %v14512_v24 = vld [vmem:[%s17076_s8 + $0x880] ss:$16 sps:$4 sm:$0xff]  }
  0xa3   : > { %10173 = vmatprep.subr.bf16.mxu1 %v14427_v25  ;;  %v14515_v25 = vld [vmem:[%s17076_s8 + $0xa80] ss:$16 sps:$4 sm:$0xff]  }
  0xa5   : > { %10131 = vmatpush1.bf16.msra.mxu0 %v14422_v26  ;;  %v14520_v26 = vld [vmem:[%s17076_s8 + $0x864] ss:$16 sps:$4 sm:$0xff]  }
  0xa6   : > { %10174 = vmatpush1.bf16.msra.mxu1 %v14425_v27  ;;  %10132 = vmatprep.subr.bf16.mxu0 %v14430_v28  ;;  %v14523_v27 = vld [vmem:[%s17076_s8 + $0xa64] ss:$16 sps:$4 sm:$0xff]   ;;  %v14518_v28 = vld [vmem:[%s17076_s8 + $0x860] ss:$16 sps:$4 sm:$0xff]  }
  0xa7   : > { %10175 = vmatprep.subr.bf16.mxu1 %v14433_v29  ;;  %v14521_v29 = vld [vmem:[%s17076_s8 + $0xa60] ss:$16 sps:$4 sm:$0xff]  }
  0xa9   : > { %10133 = vmatpush1.bf16.msra.mxu0 %v14428_v30  ;;  %v14526_v30 = vld [vmem:[%s17076_s8 + $0x844] ss:$16 sps:$4 sm:$0xff]  }
  0xaa   : > { %10176 = vmatpush1.bf16.msra.mxu1 %v14431_v31  ;;  %10134 = vmatprep.subr.bf16.mxu0 %v14436_v32  ;;  %v14529_v31 = vld [vmem:[%s17076_s8 + $0xa44] ss:$16 sps:$4 sm:$0xff]   ;;  %v14524_v32 = vld [vmem:[%s17076_s8 + $0x840] ss:$16 sps:$4 sm:$0xff]  }
  0xab   : > { %10177 = vmatprep.subr.bf16.mxu1 %v14439_v33  ;;  %v14527_v33 = vld [vmem:[%s17076_s8 + $0xa40] ss:$16 sps:$4 sm:$0xff]  }
  0xad   : > { %10135 = vmatpush1.bf16.msra.mxu0 %v14434_v36  ;;  %v14530_v36 = vld [vmem:[%s17076_s8 + $0x820] ss:$16 sps:$4 sm:$0xff]  }
  0xae   : > { %10178 = vmatpush1.bf16.msra.mxu1 %v14437_v37  ;;  %10136 = vmatprep.subr.bf16.mxu0 %v14442_v38  ;;  %v14533_v37 = vld [vmem:[%s17076_s8 + $0xa20] ss:$16 sps:$4 sm:$0xff]   ;;  %v14538_v38 = vld [vmem:[%s17076_s8 + $0x804] ss:$16 sps:$4 sm:$0xff]  }
  0xaf   : > { %10179 = vmatprep.subr.bf16.mxu1 %v14445_v39  ;;  %v14541_v39 = vld [vmem:[%s17076_s8 + $0xa04] ss:$16 sps:$4 sm:$0xff]  }
  0xb1   : > { %10137 = vmatpush2.bf16.msra.mxu0 %v14440_v40  ;;  %v14536_v40 = vld [vmem:[%s17076_s8 + $0x800] ss:$16 sps:$4 sm:$0xff]  }
  0xb2   : > { %10180 = vmatpush2.bf16.msra.mxu1 %v14443_v41  ;;  %10138 = vmatprep.subr.bf16.mxu0 %v14448_v42  ;;  %v14539_v41 = vld [vmem:[%s17076_s8 + $0xa00] ss:$16 sps:$4 sm:$0xff]   ;;  %v14544_v42 = vld [vmem:[%s17076_s8 + $0x9e4] ss:$16 sps:$4 sm:$0xff]  }
  0xb3   : > { %10181 = vmatprep.subr.bf16.mxu1 %v14451_v43  ;;  %v14547_v43 = vld [vmem:[%s17076_s8 + $0xbe4] ss:$16 sps:$4 sm:$0xff]  }
  0xb5   : > { %10139 = vmatpush2.bf16.msra.mxu0 %v14446_v44  ;;  %v14542_v44 = vld [vmem:[%s17076_s8 + $0x9e0] ss:$16 sps:$4 sm:$0xff]  }
  0xb6   : > { %10182 = vmatpush2.bf16.msra.mxu1 %v14449_v45  ;;  %10140 = vmatprep.subr.bf16.mxu0 %v14454_v46  ;;  %v14545_v45 = vld [vmem:[%s17076_s8 + $0xbe0] ss:$16 sps:$4 sm:$0xff]   ;;  %v14550_v46 = vld [vmem:[%s17076_s8 + $0x9c4] ss:$16 sps:$4 sm:$0xff]  }
  0xb7   : > { %10183 = vmatprep.subr.bf16.mxu1 %v14457_v47  ;;  %v14553_v47 = vld [vmem:[%s17076_s8 + $0xbc4] ss:$16 sps:$4 sm:$0xff]  }
  0xb9   : > { %10141 = vmatpush2.bf16.msra.mxu0 %v14452_v48  ;;  %v14548_v48 = vld [vmem:[%s17076_s8 + $0x9c0] ss:$16 sps:$4 sm:$0xff]  }
  0xba   : > { %10184 = vmatpush2.bf16.msra.mxu1 %v14455_v49  ;;  %10142 = vmatprep.subr.bf16.mxu0 %v14460_v50  ;;  %v14551_v49 = vld [vmem:[%s17076_s8 + $0xbc0] ss:$16 sps:$4 sm:$0xff]   ;;  %v14556_v50 = vld [vmem:[%s17076_s8 + $0x9a4] ss:$16 sps:$4 sm:$0xff]  }
  0xbb   : > { %10185 = vmatprep.subr.bf16.mxu1 %v14463_v51  ;;  %v14559_v51 = vld [vmem:[%s17076_s8 + $0xba4] ss:$16 sps:$4 sm:$0xff]  }
  0xbd   : > { %10143 = vmatpush2.bf16.msra.mxu0 %v14458_v52  ;;  %v14554_v52 = vld [vmem:[%s17076_s8 + $0x9a0] ss:$16 sps:$4 sm:$0xff]  }
  0xbe   : > { %10186 = vmatpush2.bf16.msra.mxu1 %v14461_v53  ;;  %10144 = vmatprep.subr.bf16.mxu0 %v14466_v54  ;;  %v14557_v53 = vld [vmem:[%s17076_s8 + $0xba0] ss:$16 sps:$4 sm:$0xff]   ;;  %v14562_v54 = vld [vmem:[%s17076_s8 + $0x984] ss:$16 sps:$4 sm:$0xff]  }
  0xbf   : > { %10187 = vmatprep.subr.bf16.mxu1 %v14469_v55  ;;  %v14565_v55 = vld [vmem:[%s17076_s8 + $0xb84] ss:$16 sps:$4 sm:$0xff]  }
  0xc1   : > { %10145 = vmatpush2.bf16.msra.mxu0 %v14464_v56  ;;  %v14560_v56 = vld [vmem:[%s17076_s8 + $0x980] ss:$16 sps:$4 sm:$0xff]  }
  0xc2   : > { %10188 = vmatpush2.bf16.msra.mxu1 %v14467_v57  ;;  %10146 = vmatprep.subr.bf16.mxu0 %v14472_v58  ;;  %v14563_v57 = vld [vmem:[%s17076_s8 + $0xb80] ss:$16 sps:$4 sm:$0xff]   ;;  %v14568_v58 = vld [vmem:[%s17076_s8 + $0x964] ss:$16 sps:$4 sm:$0xff]  }
  0xc3   : > { %10189 = vmatprep.subr.bf16.mxu1 %v14475_v59  ;;  %v14571_v59 = vld [vmem:[%s17076_s8 + $0xb64] ss:$16 sps:$4 sm:$0xff]  }
  0xc5   : > { %10147 = vmatpush2.bf16.msra.mxu0 %v14470_v60  ;;  %v14566_v60 = vld [vmem:[%s17076_s8 + $0x960] ss:$16 sps:$4 sm:$0xff]  }
  0xc6   : > { %10190 = vmatpush2.bf16.msra.mxu1 %v14473_v61  ;;  %10148 = vmatprep.subr.bf16.mxu0 %v14478_v62  ;;  %v14569_v61 = vld [vmem:[%s17076_s8 + $0xb60] ss:$16 sps:$4 sm:$0xff]   ;;  %v14574_v62 = vld [vmem:[%s17076_s8 + $0x944] ss:$16 sps:$4 sm:$0xff]  }
  0xc7   : > { %10191 = vmatprep.subr.bf16.mxu1 %v14481_v63  ;;  %v14577_v63 = vld [vmem:[%s17076_s8 + $0xb44] ss:$16 sps:$4 sm:$0xff]  }
  0xc9   : > { %10149 = vmatpush2.bf16.msra.mxu0 %v14476_v0  ;;  %v14572_v0 = vld [vmem:[%s17076_s8 + $0x940] ss:$16 sps:$4 sm:$0xff]  }
  0xca   : > { %10192 = vmatpush2.bf16.msra.mxu1 %v14479_v1  ;;  %10150 = vmatprep.subr.bf16.mxu0 %v14484_v2  ;;  %v14575_v1 = vld [vmem:[%s17076_s8 + $0xb40] ss:$16 sps:$4 sm:$0xff]   ;;  %v14580_v2 = vld [vmem:[%s17076_s8 + $0x924] ss:$16 sps:$4 sm:$0xff]  }
  0xcb   : > { %10193 = vmatprep.subr.bf16.mxu1 %v14487_v3  ;;  %v14583_v3 = vld [vmem:[%s17076_s8 + $0xb24] ss:$16 sps:$4 sm:$0xff]  }
  0xcd   : > { %10151 = vmatpush2.bf16.msra.mxu0 %v14482_v4  ;;  %v14578_v4 = vld [vmem:[%s17076_s8 + $0x920] ss:$16 sps:$4 sm:$0xff]  }
  0xce   : > { %10194 = vmatpush2.bf16.msra.mxu1 %v14485_v5  ;;  %10206 = vmatprep.subr.bf16.mxu0 %v14496_v6  ;;  %v14581_v5 = vld [vmem:[%s17076_s8 + $0xb20] ss:$16 sps:$4 sm:$0xff]   ;;  %v14586_v6 = vld [vmem:[%s17076_s8 + $0x904] ss:$16 sps:$4 sm:$0xff]  }
  0xcf   : > { %10249 = vmatprep.subr.bf16.mxu1 %v14499_v7  ;;  %v14589_v7 = vld [vmem:[%s17076_s8 + $0xb04] ss:$16 sps:$4 sm:$0xff]  }
  0xd0   : > { %10153 = vmatmul.mubr.bf16.vlgmr.msra.gmra.mxu0 %v14488_v8  ;;  %v14584_v8 = vld [vmem:[%s17076_s8 + $0x900] ss:$16 sps:$4 sm:$0xff]  }
  0xd1   : > { %10196 = vmatmul.mubr.bf16.vlgmr.msra.gmra.mxu1 %v14491_v9  ;;  %10207 = vmatpush1.bf16.msra.mxu0 %v14494_v10  ;;  %v14587_v9 = vld [vmem:[%s17076_s8 + $0xb00] ss:$16 sps:$4 sm:$0xff]   ;;  %v14598_v10 = vld [vmem:[%s17076_s8 + $0xce4] ss:$16 sps:$4 sm:$0xff]  }
  0xd2   : > { %10250 = vmatpush1.bf16.msra.mxu1 %v14497_v11  ;;  %10208 = vmatprep.subr.bf16.mxu0 %v14502_v12  ;;  %v14601_v11 = vld [vmem:[%s17076_s8 + $0xee4] ss:$16 sps:$4 sm:$0xff]  }
  0xd3   : > { %10251 = vmatprep.subr.bf16.mxu1 %v14505_v13  ;;  %10238 = vmatprep.mubr.bf16.mxu0 %v14592_v19  ;;  %v14590_v12 = vld [vmem:[%s19529_s0 + $0x20] ss:$196 sps:$4 sm:$0xff]   ;;  %v14593_v13 = vld [vmem:[%s19529_s0 + $0x28] ss:$196 sps:$4 sm:$0xff]  }
  0xd4   : > { %10281 = vmatprep.mubr.bf16.mxu1 %v14595_v21  ;;  %v14697_v19 = vld [vmem:[%s19529_s0 + $0x3c] ss:$196 sps:$4 sm:$0xff]  }
  0xd5   : > { %10209 = vmatpush1.bf16.msra.mxu0 %v14500_v14  ;;  %v14596_v14 = vld [vmem:[%s17076_s8 + $0xce0] ss:$16 sps:$4 sm:$0xff]  }
  0xd6   : > { %10252 = vmatpush1.bf16.msra.mxu1 %v14503_v15  ;;  %10210 = vmatprep.subr.bf16.mxu0 %v14508_v16  ;;  %v14599_v15 = vld [vmem:[%s17076_s8 + $0xee0] ss:$16 sps:$4 sm:$0xff]   ;;  %v14604_v16 = vld [vmem:[%s17076_s8 + $0xcc4] ss:$16 sps:$4 sm:$0xff]  }
  0xd7   : > { %10253 = vmatprep.subr.bf16.mxu1 %v14511_v17  ;;  %v14607_v17 = vld [vmem:[%s17076_s8 + $0xec4] ss:$16 sps:$4 sm:$0xff]   ;;  %v14605_v21 = vld [vmem:[%s17076_s8 + $0xec0] ss:$16 sps:$4 sm:$0xff]  }
  0xd9   : > { %10211 = vmatpush1.bf16.msra.mxu0 %v14506_v18  ;;  %v14694_v18 = vld [vmem:[%s19529_s0 + $0x34] ss:$196 sps:$4 sm:$0xff]  }
  0xda   : > { %10254 = vmatpush1.bf16.msra.mxu1 %v14509_v20  ;;  %10212 = vmatprep.subr.bf16.mxu0 %v14514_v22  ;;  %v14602_v20 = vld [vmem:[%s17076_s8 + $0xcc0] ss:$16 sps:$4 sm:$0xff]   ;;  %v14610_v22 = vld [vmem:[%s17076_s8 + $0xca4] ss:$16 sps:$4 sm:$0xff]  }
  0xdb   : > { %10255 = vmatprep.subr.bf16.mxu1 %v14517_v23  ;;  %v14613_v23 = vld [vmem:[%s17076_s8 + $0xea4] ss:$16 sps:$4 sm:$0xff]  }
  0xdd   : > { %10213 = vmatpush1.bf16.msra.mxu0 %v14512_v24  ;;  %v14608_v24 = vld [vmem:[%s17076_s8 + $0xca0] ss:$16 sps:$4 sm:$0xff]  }
  0xde   : > { %10256 = vmatpush1.bf16.msra.mxu1 %v14515_v25  ;;  %10214 = vmatprep.subr.bf16.mxu0 %v14520_v26  ;;  %v14611_v25 = vld [vmem:[%s17076_s8 + $0xea0] ss:$16 sps:$4 sm:$0xff]   ;;  %v14616_v26 = vld [vmem:[%s17076_s8 + $0xc84] ss:$16 sps:$4 sm:$0xff]  }
  0xdf   : > { %10257 = vmatprep.subr.bf16.mxu1 %v14523_v27  ;;  %v14619_v27 = vld [vmem:[%s17076_s8 + $0xe84] ss:$16 sps:$4 sm:$0xff]  }
  0xe1   : > { %10215 = vmatpush1.bf16.msra.mxu0 %v14518_v28  ;;  %v14614_v28 = vld [vmem:[%s17076_s8 + $0xc80] ss:$16 sps:$4 sm:$0xff]  }
  0xe2   : > { %10258 = vmatpush1.bf16.msra.mxu1 %v14521_v29  ;;  %10216 = vmatprep.subr.bf16.mxu0 %v14526_v30  ;;  %v14617_v29 = vld [vmem:[%s17076_s8 + $0xe80] ss:$16 sps:$4 sm:$0xff]   ;;  %v14622_v30 = vld [vmem:[%s17076_s8 + $0xc64] ss:$16 sps:$4 sm:$0xff]  }
  0xe3   : > { %10259 = vmatprep.subr.bf16.mxu1 %v14529_v31  ;;  %v14625_v31 = vld [vmem:[%s17076_s8 + $0xe64] ss:$16 sps:$4 sm:$0xff]  }
  0xe5   : > { %10217 = vmatpush1.bf16.msra.mxu0 %v14524_v32  ;;  %v14620_v32 = vld [vmem:[%s17076_s8 + $0xc60] ss:$16 sps:$4 sm:$0xff]  }
  0xe6   : > { %10260 = vmatpush1.bf16.msra.mxu1 %v14527_v33  ;;  %10218 = vmatprep.subr.bf16.mxu0 %v14532_v34  ;;  %v14623_v33 = vld [vmem:[%s17076_s8 + $0xe60] ss:$16 sps:$4 sm:$0xff]   ;;  %v14628_v34 = vld [vmem:[%s17076_s8 + $0xc44] ss:$16 sps:$4 sm:$0xff]  }
  0xe7   : > { %10261 = vmatprep.subr.bf16.mxu1 %v14535_v35  ;;  %v14631_v35 = vld [vmem:[%s17076_s8 + $0xe44] ss:$16 sps:$4 sm:$0xff]  }
  0xe9   : > { %10219 = vmatpush1.bf16.msra.mxu0 %v14530_v36  ;;  %v14626_v36 = vld [vmem:[%s17076_s8 + $0xc40] ss:$16 sps:$4 sm:$0xff]  }
  0xea   : > { %10262 = vmatpush1.bf16.msra.mxu1 %v14533_v37  ;;  %10220 = vmatprep.subr.bf16.mxu0 %v14538_v38  ;;  %v14629_v37 = vld [vmem:[%s17076_s8 + $0xe40] ss:$16 sps:$4 sm:$0xff]   ;;  %v14634_v38 = vld [vmem:[%s17076_s8 + $0xc24] ss:$16 sps:$4 sm:$0xff]  }
  0xeb   : > { %10263 = vmatprep.subr.bf16.mxu1 %v14541_v39  ;;  %v14637_v39 = vld [vmem:[%s17076_s8 + $0xe24] ss:$16 sps:$4 sm:$0xff]  }
  0xed   : > { %10221 = vmatpush1.bf16.msra.mxu0 %v14536_v40  ;;  %v14632_v40 = vld [vmem:[%s17076_s8 + $0xc20] ss:$16 sps:$4 sm:$0xff]  }
  0xee   : > { %10264 = vmatpush1.bf16.msra.mxu1 %v14539_v41  ;;  %10222 = vmatprep.subr.bf16.mxu0 %v14544_v42  ;;  %v14635_v41 = vld [vmem:[%s17076_s8 + $0xe20] ss:$16 sps:$4 sm:$0xff]   ;;  %v14640_v42 = vld [vmem:[%s17076_s8 + $0xc04] ss:$16 sps:$4 sm:$0xff]  }
  0xef   : > { %10265 = vmatprep.subr.bf16.mxu1 %v14547_v43  ;;  %v14643_v43 = vld [vmem:[%s17076_s8 + $0xe04] ss:$16 sps:$4 sm:$0xff]  }
  0xf1   : > { %10223 = vmatpush2.bf16.msra.mxu0 %v14542_v44  ;;  %v14638_v44 = vld [vmem:[%s17076_s8 + $0xc00] ss:$16 sps:$4 sm:$0xff]  }
  0xf2   : > { %10266 = vmatpush2.bf16.msra.mxu1 %v14545_v45  ;;  %10224 = vmatprep.subr.bf16.mxu0 %v14550_v46  ;;  %v14641_v45 = vld [vmem:[%s17076_s8 + $0xe00] ss:$16 sps:$4 sm:$0xff]   ;;  %v14646_v46 = vld [vmem:[%s17076_s8 + $0xde4] ss:$16 sps:$4 sm:$0xff]  }
  0xf3   : > { %10267 = vmatprep.subr.bf16.mxu1 %v14553_v47  ;;  %v14649_v47 = vld [vmem:[%s17076_s8 + $0xfe4] ss:$16 sps:$4 sm:$0xff]  }
  0xf5   : > { %10225 = vmatpush2.bf16.msra.mxu0 %v14548_v48  ;;  %v14644_v48 = vld [vmem:[%s17076_s8 + $0xde0] ss:$16 sps:$4 sm:$0xff]  }
  0xf6   : > { %10268 = vmatpush2.bf16.msra.mxu1 %v14551_v49  ;;  %10226 = vmatprep.subr.bf16.mxu0 %v14556_v50  ;;  %v14647_v49 = vld [vmem:[%s17076_s8 + $0xfe0] ss:$16 sps:$4 sm:$0xff]   ;;  %v14652_v50 = vld [vmem:[%s17076_s8 + $0xdc4] ss:$16 sps:$4 sm:$0xff]  }
  0xf7   : > { %10269 = vmatprep.subr.bf16.mxu1 %v14559_v51  ;;  %v14655_v51 = vld [vmem:[%s17076_s8 + $0xfc4] ss:$16 sps:$4 sm:$0xff]  }
  0xf9   : > { %10227 = vmatpush2.bf16.msra.mxu0 %v14554_v52  ;;  %v14650_v52 = vld [vmem:[%s17076_s8 + $0xdc0] ss:$16 sps:$4 sm:$0xff]  }
  0xfa   : > { %10270 = vmatpush2.bf16.msra.mxu1 %v14557_v53  ;;  %10228 = vmatprep.subr.bf16.mxu0 %v14562_v54  ;;  %v14653_v53 = vld [vmem:[%s17076_s8 + $0xfc0] ss:$16 sps:$4 sm:$0xff]   ;;  %v14658_v54 = vld [vmem:[%s17076_s8 + $0xda4] ss:$16 sps:$4 sm:$0xff]  }
  0xfb   : > { %10271 = vmatprep.subr.bf16.mxu1 %v14565_v55  ;;  %v14661_v55 = vld [vmem:[%s17076_s8 + $0xfa4] ss:$16 sps:$4 sm:$0xff]  }
  0xfd   : > { %10229 = vmatpush2.bf16.msra.mxu0 %v14560_v56  ;;  %v14656_v56 = vld [vmem:[%s17076_s8 + $0xda0] ss:$16 sps:$4 sm:$0xff]  }
  0xfe   : > { %10272 = vmatpush2.bf16.msra.mxu1 %v14563_v57  ;;  %10230 = vmatprep.subr.bf16.mxu0 %v14568_v58  ;;  %v14659_v57 = vld [vmem:[%s17076_s8 + $0xfa0] ss:$16 sps:$4 sm:$0xff]   ;;  %v14664_v58 = vld [vmem:[%s17076_s8 + $0xd84] ss:$16 sps:$4 sm:$0xff]  }
  0xff   : > { %10273 = vmatprep.subr.bf16.mxu1 %v14571_v59  ;;  %v14667_v59 = vld [vmem:[%s17076_s8 + $0xf84] ss:$16 sps:$4 sm:$0xff]  }
 0x101   : > { %10231 = vmatpush2.bf16.msra.mxu0 %v14566_v60  ;;  %v14662_v60 = vld [vmem:[%s17076_s8 + $0xd80] ss:$16 sps:$4 sm:$0xff]  }
 0x102   : > { %10274 = vmatpush2.bf16.msra.mxu1 %v14569_v61  ;;  %10232 = vmatprep.subr.bf16.mxu0 %v14574_v62  ;;  %v14665_v61 = vld [vmem:[%s17076_s8 + $0xf80] ss:$16 sps:$4 sm:$0xff]   ;;  %v14670_v62 = vld [vmem:[%s17076_s8 + $0xd64] ss:$16 sps:$4 sm:$0xff]  }
 0x103   : > { %10275 = vmatprep.subr.bf16.mxu1 %v14577_v63  ;;  %v14673_v63 = vld [vmem:[%s17076_s8 + $0xf64] ss:$16 sps:$4 sm:$0xff]  }
 0x105   : > { %10233 = vmatpush2.bf16.msra.mxu0 %v14572_v0  ;;  %v14668_v0 = vld [vmem:[%s17076_s8 + $0xd60] ss:$16 sps:$4 sm:$0xff]  }
 0x106   : > { %10276 = vmatpush2.bf16.msra.mxu1 %v14575_v1  ;;  %10234 = vmatprep.subr.bf16.mxu0 %v14580_v2  ;;  %v14671_v1 = vld [vmem:[%s17076_s8 + $0xf60] ss:$16 sps:$4 sm:$0xff]   ;;  %v14676_v2 = vld [vmem:[%s17076_s8 + $0xd44] ss:$16 sps:$4 sm:$0xff]  }
 0x107   : > { %10277 = vmatprep.subr.bf16.mxu1 %v14583_v3  ;;  %v14679_v3 = vld [vmem:[%s17076_s8 + $0xf44] ss:$16 sps:$4 sm:$0xff]  }
 0x109   : > { %10235 = vmatpush2.bf16.msra.mxu0 %v14578_v4  ;;  %v14674_v4 = vld [vmem:[%s17076_s8 + $0xd40] ss:$16 sps:$4 sm:$0xff]  }
 0x10a   : > { %10278 = vmatpush2.bf16.msra.mxu1 %v14581_v5  ;;  %10236 = vmatprep.subr.bf16.mxu0 %v14586_v6  ;;  %v14677_v5 = vld [vmem:[%s17076_s8 + $0xf40] ss:$16 sps:$4 sm:$0xff]   ;;  %v14682_v6 = vld [vmem:[%s17076_s8 + $0xd24] ss:$16 sps:$4 sm:$0xff]  }
 0x10b   : > { %10279 = vmatprep.subr.bf16.mxu1 %v14589_v7  ;;  %v14685_v7 = vld [vmem:[%s17076_s8 + $0xf24] ss:$16 sps:$4 sm:$0xff]  }
 0x10d   : > { %10237 = vmatpush2.bf16.msra.mxu0 %v14584_v8  ;;  %v14680_v8 = vld [vmem:[%s17076_s8 + $0xd20] ss:$16 sps:$4 sm:$0xff]  }
 0x10e   : > { %10280 = vmatpush2.bf16.msra.mxu1 %v14587_v9  ;;  %10292 = vmatprep.subr.bf16.mxu0 %v14598_v10  ;;  %v14683_v9 = vld [vmem:[%s17076_s8 + $0xf20] ss:$16 sps:$4 sm:$0xff]   ;;  %v14688_v10 = vld [vmem:[%s17076_s8 + $0xd04] ss:$16 sps:$4 sm:$0xff]  }
 0x10f   : > { %10335 = vmatprep.subr.bf16.mxu1 %v14601_v11  ;;  %v14691_v11 = vld [vmem:[%s17076_s8 + $0xf04] ss:$16 sps:$4 sm:$0xff]  }
 0x110   : > { %10239 = vmatmul.mubr.bf16.vlgmr.msra.gmra.mxu0 %v14590_v12  ;;  %v14686_v12 = vld [vmem:[%s17076_s8 + $0xd00] ss:$16 sps:$4 sm:$0xff]  }
 0x111   : > { %10282 = vmatmul.mubr.bf16.vlgmr.msra.gmra.mxu1 %v14593_v13  ;;  %10293 = vmatpush1.bf16.msra.mxu0 %v14596_v14  ;;  %v14689_v13 = vld [vmem:[%s17076_s8 + $0xf00] ss:$16 sps:$4 sm:$0xff]   ;;  %v14700_v14 = vld [vmem:[%s17076_s8 + $0x10e4] ss:$16 sps:$4 sm:$0xff]  }
 0x112   : > { %10336 = vmatpush1.bf16.msra.mxu1 %v14599_v15  ;;  %10294 = vmatprep.subr.bf16.mxu0 %v14604_v16  ;;  %v14703_v15 = vld [vmem:[%s17076_s8 + $0x12e4] ss:$16 sps:$4 sm:$0xff]  }
 0x113   : > { %10337 = vmatprep.subr.bf16.mxu1 %v14607_v17  ;;  %10324 = vmatprep.mubr.bf16.mxu0 %v14694_v18  ;;  %v14692_v16 = vld [vmem:[%s19529_s0 + $0x30] ss:$196 sps:$4 sm:$0xff]   ;;  %v14695_v17 = vld [vmem:[%s19529_s0 + $0x38] ss:$196 sps:$4 sm:$0xff]  }
 0x114   : > { %10367 = vmatprep.mubr.bf16.mxu1 %v14697_v19  ;;  %v14698_v18 = vld [vmem:[%s17076_s8 + $0x10e0] ss:$16 sps:$4 sm:$0xff]  }
 0x115   : > { %10295 = vmatpush1.bf16.msra.mxu0 %v14602_v20  ;;  %v14701_v19 = vld [vmem:[%s17076_s8 + $0x12e0] ss:$16 sps:$4 sm:$0xff]   ;;  %v14706_v20 = vld [vmem:[%s17076_s8 + $0x10c4] ss:$16 sps:$4 sm:$0xff]  }
 0x116   : > { %10338 = vmatpush1.bf16.msra.mxu1 %v14605_v21  ;;  %10296 = vmatprep.subr.bf16.mxu0 %v14610_v22  ;;  %v14709_v21 = vld [vmem:[%s17076_s8 + $0x12c4] ss:$16 sps:$4 sm:$0xff]  }
 0x117   : > { %10339 = vmatprep.subr.bf16.mxu1 %v14613_v23  ;;  %v14796_v22 = vld [vmem:[%s19529_s0 + $0x44] ss:$196 sps:$4 sm:$0xff]   ;;  %v14799_v23 = vld [vmem:[%s19529_s0 + $0x4c] ss:$196 sps:$4 sm:$0xff]  }
 0x119   : > { %10297 = vmatpush1.bf16.msra.mxu0 %v14608_v24  ;;  %v14704_v24 = vld [vmem:[%s17076_s8 + $0x10c0] ss:$16 sps:$4 sm:$0xff]  }
 0x11a   : > { %10340 = vmatpush1.bf16.msra.mxu1 %v14611_v25  ;;  %10298 = vmatprep.subr.bf16.mxu0 %v14616_v26  ;;  %v14707_v25 = vld [vmem:[%s17076_s8 + $0x12c0] ss:$16 sps:$4 sm:$0xff]   ;;  %v14712_v26 = vld [vmem:[%s17076_s8 + $0x10a4] ss:$16 sps:$4 sm:$0xff]  }
 0x11b   : > { %10341 = vmatprep.subr.bf16.mxu1 %v14619_v27  ;;  %v14715_v27 = vld [vmem:[%s17076_s8 + $0x12a4] ss:$16 sps:$4 sm:$0xff]  }
 0x11d   : > { %10299 = vmatpush1.bf16.msra.mxu0 %v14614_v28  ;;  %v14710_v28 = vld [vmem:[%s17076_s8 + $0x10a0] ss:$16 sps:$4 sm:$0xff]  }
 0x11e   : > { %10342 = vmatpush1.bf16.msra.mxu1 %v14617_v29  ;;  %10300 = vmatprep.subr.bf16.mxu0 %v14622_v30  ;;  %v14713_v29 = vld [vmem:[%s17076_s8 + $0x12a0] ss:$16 sps:$4 sm:$0xff]   ;;  %v14718_v30 = vld [vmem:[%s17076_s8 + $0x1084] ss:$16 sps:$4 sm:$0xff]  }
 0x11f   : > { %10343 = vmatprep.subr.bf16.mxu1 %v14625_v31  ;;  %v14721_v31 = vld [vmem:[%s17076_s8 + $0x1284] ss:$16 sps:$4 sm:$0xff]  }
 0x121   : > { %10301 = vmatpush1.bf16.msra.mxu0 %v14620_v32  ;;  %v14716_v32 = vld [vmem:[%s17076_s8 + $0x1080] ss:$16 sps:$4 sm:$0xff]  }
 0x122   : > { %10344 = vmatpush1.bf16.msra.mxu1 %v14623_v33  ;;  %10302 = vmatprep.subr.bf16.mxu0 %v14628_v34  ;;  %v14719_v33 = vld [vmem:[%s17076_s8 + $0x1280] ss:$16 sps:$4 sm:$0xff]   ;;  %v14724_v34 = vld [vmem:[%s17076_s8 + $0x1064] ss:$16 sps:$4 sm:$0xff]  }
 0x123   : > { %10345 = vmatprep.subr.bf16.mxu1 %v14631_v35  ;;  %v14727_v35 = vld [vmem:[%s17076_s8 + $0x1264] ss:$16 sps:$4 sm:$0xff]  }
 0x125   : > { %10303 = vmatpush1.bf16.msra.mxu0 %v14626_v36  ;;  %v14722_v36 = vld [vmem:[%s17076_s8 + $0x1060] ss:$16 sps:$4 sm:$0xff]  }
 0x126   : > { %10346 = vmatpush1.bf16.msra.mxu1 %v14629_v37  ;;  %10304 = vmatprep.subr.bf16.mxu0 %v14634_v38  ;;  %v14725_v37 = vld [vmem:[%s17076_s8 + $0x1260] ss:$16 sps:$4 sm:$0xff]   ;;  %v14730_v38 = vld [vmem:[%s17076_s8 + $0x1044] ss:$16 sps:$4 sm:$0xff]  }
 0x127   : > { %10347 = vmatprep.subr.bf16.mxu1 %v14637_v39  ;;  %v14733_v39 = vld [vmem:[%s17076_s8 + $0x1244] ss:$16 sps:$4 sm:$0xff]  }
 0x129   : > { %10305 = vmatpush1.bf16.msra.mxu0 %v14632_v40  ;;  %v14728_v40 = vld [vmem:[%s17076_s8 + $0x1040] ss:$16 sps:$4 sm:$0xff]  }
 0x12a   : > { %10348 = vmatpush1.bf16.msra.mxu1 %v14635_v41  ;;  %10306 = vmatprep.subr.bf16.mxu0 %v14640_v42  ;;  %v14731_v41 = vld [vmem:[%s17076_s8 + $0x1240] ss:$16 sps:$4 sm:$0xff]   ;;  %v14736_v42 = vld [vmem:[%s17076_s8 + $0x1024] ss:$16 sps:$4 sm:$0xff]  }
 0x12b   : > { %10349 = vmatprep.subr.bf16.mxu1 %v14643_v43  ;;  %v14739_v43 = vld [vmem:[%s17076_s8 + $0x1224] ss:$16 sps:$4 sm:$0xff]  }
 0x12d   : > { %10307 = vmatpush1.bf16.msra.mxu0 %v14638_v44  ;;  %v14734_v44 = vld [vmem:[%s17076_s8 + $0x1020] ss:$16 sps:$4 sm:$0xff]  }
 0x12e   : > { %10350 = vmatpush1.bf16.msra.mxu1 %v14641_v45  ;;  %10308 = vmatprep.subr.bf16.mxu0 %v14646_v46  ;;  %v14737_v45 = vld [vmem:[%s17076_s8 + $0x1220] ss:$16 sps:$4 sm:$0xff]   ;;  %v14742_v46 = vld [vmem:[%s17076_s8 + $0x1004] ss:$16 sps:$4 sm:$0xff]  }
 0x12f   : > { %10351 = vmatprep.subr.bf16.mxu1 %v14649_v47  ;;  %v14745_v47 = vld [vmem:[%s17076_s8 + $0x1204] ss:$16 sps:$4 sm:$0xff]  }
 0x131   : > { %10309 = vmatpush2.bf16.msra.mxu0 %v14644_v48  ;;  %v14740_v48 = vld [vmem:[%s17076_s8 + $0x1000] ss:$16 sps:$4 sm:$0xff]  }
 0x132   : > { %10352 = vmatpush2.bf16.msra.mxu1 %v14647_v49  ;;  %10310 = vmatprep.subr.bf16.mxu0 %v14652_v50  ;;  %v14743_v49 = vld [vmem:[%s17076_s8 + $0x1200] ss:$16 sps:$4 sm:$0xff]   ;;  %v14748_v50 = vld [vmem:[%s17076_s8 + $0x11e4] ss:$16 sps:$4 sm:$0xff]  }
 0x133   : > { %10353 = vmatprep.subr.bf16.mxu1 %v14655_v51  ;;  %v14751_v51 = vld [vmem:[%s17076_s8 + $0x13e4] ss:$16 sps:$4 sm:$0xff]  }
 0x135   : > { %10311 = vmatpush2.bf16.msra.mxu0 %v14650_v52  ;;  %v14746_v52 = vld [vmem:[%s17076_s8 + $0x11e0] ss:$16 sps:$4 sm:$0xff]  }
 0x136   : > { %10354 = vmatpush2.bf16.msra.mxu1 %v14653_v53  ;;  %10312 = vmatprep.subr.bf16.mxu0 %v14658_v54  ;;  %v14749_v53 = vld [vmem:[%s17076_s8 + $0x13e0] ss:$16 sps:$4 sm:$0xff]   ;;  %v14754_v54 = vld [vmem:[%s17076_s8 + $0x11c4] ss:$16 sps:$4 sm:$0xff]  }
 0x137   : > { %10355 = vmatprep.subr.bf16.mxu1 %v14661_v55  ;;  %v14757_v55 = vld [vmem:[%s17076_s8 + $0x13c4] ss:$16 sps:$4 sm:$0xff]  }
 0x139   : > { %10313 = vmatpush2.bf16.msra.mxu0 %v14656_v56  ;;  %v14752_v56 = vld [vmem:[%s17076_s8 + $0x11c0] ss:$16 sps:$4 sm:$0xff]  }
 0x13a   : > { %10356 = vmatpush2.bf16.msra.mxu1 %v14659_v57  ;;  %10314 = vmatprep.subr.bf16.mxu0 %v14664_v58  ;;  %v14755_v57 = vld [vmem:[%s17076_s8 + $0x13c0] ss:$16 sps:$4 sm:$0xff]   ;;  %v14760_v58 = vld [vmem:[%s17076_s8 + $0x11a4] ss:$16 sps:$4 sm:$0xff]  }
 0x13b   : > { %10357 = vmatprep.subr.bf16.mxu1 %v14667_v59  ;;  %v14763_v59 = vld [vmem:[%s17076_s8 + $0x13a4] ss:$16 sps:$4 sm:$0xff]  }
 0x13d   : > { %10315 = vmatpush2.bf16.msra.mxu0 %v14662_v60  ;;  %v14758_v60 = vld [vmem:[%s17076_s8 + $0x11a0] ss:$16 sps:$4 sm:$0xff]  }
 0x13e   : > { %10358 = vmatpush2.bf16.msra.mxu1 %v14665_v61  ;;  %10316 = vmatprep.subr.bf16.mxu0 %v14670_v62  ;;  %v14761_v61 = vld [vmem:[%s17076_s8 + $0x13a0] ss:$16 sps:$4 sm:$0xff]   ;;  %v14766_v62 = vld [vmem:[%s17076_s8 + $0x1184] ss:$16 sps:$4 sm:$0xff]  }
 0x13f   : > { %10359 = vmatprep.subr.bf16.mxu1 %v14673_v63  ;;  %v14769_v63 = vld [vmem:[%s17076_s8 + $0x1384] ss:$16 sps:$4 sm:$0xff]  }
 0x141   : > { %10317 = vmatpush2.bf16.msra.mxu0 %v14668_v0  ;;  %v14764_v0 = vld [vmem:[%s17076_s8 + $0x1180] ss:$16 sps:$4 sm:$0xff]  }
 0x142   : > { %10360 = vmatpush2.bf16.msra.mxu1 %v14671_v1  ;;  %10318 = vmatprep.subr.bf16.mxu0 %v14676_v2  ;;  %v14767_v1 = vld [vmem:[%s17076_s8 + $0x1380] ss:$16 sps:$4 sm:$0xff]   ;;  %v14772_v2 = vld [vmem:[%s17076_s8 + $0x1164] ss:$16 sps:$4 sm:$0xff]  }
 0x143   : > { %10361 = vmatprep.subr.bf16.mxu1 %v14679_v3  ;;  %v14775_v3 = vld [vmem:[%s17076_s8 + $0x1364] ss:$16 sps:$4 sm:$0xff]  }
 0x145   : > { %10319 = vmatpush2.bf16.msra.mxu0 %v14674_v4  ;;  %v14770_v4 = vld [vmem:[%s17076_s8 + $0x1160] ss:$16 sps:$4 sm:$0xff]  }
 0x146   : > { %10362 = vmatpush2.bf16.msra.mxu1 %v14677_v5  ;;  %10320 = vmatprep.subr.bf16.mxu0 %v14682_v6  ;;  %v14773_v5 = vld [vmem:[%s17076_s8 + $0x1360] ss:$16 sps:$4 sm:$0xff]   ;;  %v14778_v6 = vld [vmem:[%s17076_s8 + $0x1144] ss:$16 sps:$4 sm:$0xff]  }
 0x147   : > { %10363 = vmatprep.subr.bf16.mxu1 %v14685_v7  ;;  %v14781_v7 = vld [vmem:[%s17076_s8 + $0x1344] ss:$16 sps:$4 sm:$0xff]  }
 0x149   : > { %10321 = vmatpush2.bf16.msra.mxu0 %v14680_v8  ;;  %v14776_v8 = vld [vmem:[%s17076_s8 + $0x1140] ss:$16 sps:$4 sm:$0xff]  }
 0x14a   : > { %10364 = vmatpush2.bf16.msra.mxu1 %v14683_v9  ;;  %10322 = vmatprep.subr.bf16.mxu0 %v14688_v10  ;;  %v14779_v9 = vld [vmem:[%s17076_s8 + $0x1340] ss:$16 sps:$4 sm:$0xff]   ;;  %v14784_v10 = vld [vmem:[%s17076_s8 + $0x1124] ss:$16 sps:$4 sm:$0xff]  }
 0x14b   : > { %10365 = vmatprep.subr.bf16.mxu1 %v14691_v11  ;;  %v14787_v11 = vld [vmem:[%s17076_s8 + $0x1324] ss:$16 sps:$4 sm:$0xff]  }
 0x14d   : > { %10323 = vmatpush2.bf16.msra.mxu0 %v14686_v12  ;;  %v14782_v12 = vld [vmem:[%s17076_s8 + $0x1120] ss:$16 sps:$4 sm:$0xff]  }
 0x14e   : > { %10366 = vmatpush2.bf16.msra.mxu1 %v14689_v13  ;;  %10378 = vmatprep.subr.bf16.mxu0 %v14700_v14  ;;  %v14785_v13 = vld [vmem:[%s17076_s8 + $0x1320] ss:$16 sps:$4 sm:$0xff]   ;;  %v14790_v14 = vld [vmem:[%s17076_s8 + $0x1104] ss:$16 sps:$4 sm:$0xff]  }
 0x14f   : > { %10421 = vmatprep.subr.bf16.mxu1 %v14703_v15  ;;  %v14793_v15 = vld [vmem:[%s17076_s8 + $0x1304] ss:$16 sps:$4 sm:$0xff]  }
 0x150   : > { %10325 = vmatmul.mubr.bf16.vlgmr.msra.gmra.mxu0 %v14692_v16  ;;  %v14788_v16 = vld [vmem:[%s17076_s8 + $0x1100] ss:$16 sps:$4 sm:$0xff]  }
 0x151   : > { %10368 = vmatmul.mubr.bf16.vlgmr.msra.gmra.mxu1 %v14695_v17  ;;  %10379 = vmatpush1.bf16.msra.mxu0 %v14698_v18  ;;  %v14791_v17 = vld [vmem:[%s17076_s8 + $0x1300] ss:$16 sps:$4 sm:$0xff]  }
 0x152   : > { %10422 = vmatpush1.bf16.msra.mxu1 %v14701_v19  ;;  %10380 = vmatprep.subr.bf16.mxu0 %v14706_v20  ;;  %v14794_v18 = vld [vmem:[%s19529_s0 + $0x40] ss:$196 sps:$4 sm:$0xff]   ;;  %v14797_v19 = vld [vmem:[%s19529_s0 + $0x48] ss:$196 sps:$4 sm:$0xff]  }
 0x153   : > { %10423 = vmatprep.subr.bf16.mxu1 %v14709_v21  ;;  %10410 = vmatprep.mubr.bf16.mxu0 %v14796_v22  ;;  %v14802_v20 = vld [vmem:[%s17076_s8 + $0x14e4] ss:$16 sps:$4 sm:$0xff]   ;;  %v14800_v22 = vld [vmem:[%s17076_s8 + $0x14e0] ss:$16 sps:$4 sm:$0xff]  }
 0x154   : > { %10453 = vmatprep.mubr.bf16.mxu1 %v14799_v23  ;;  %v14805_v21 = vld [vmem:[%s17076_s8 + $0x16e4] ss:$16 sps:$4 sm:$0xff]   ;;  %v14803_v23 = vld [vmem:[%s17076_s8 + $0x16e0] ss:$16 sps:$4 sm:$0xff]  }
 0x155   : > { %10381 = vmatpush1.bf16.msra.mxu0 %v14704_v24  ;;  %v14808_v24 = vld [vmem:[%s17076_s8 + $0x14c4] ss:$16 sps:$4 sm:$0xff]  }
 0x156   : > { %10424 = vmatpush1.bf16.msra.mxu1 %v14707_v25  ;;  %10382 = vmatprep.subr.bf16.mxu0 %v14712_v26  ;;  %v14811_v25 = vld [vmem:[%s17076_s8 + $0x16c4] ss:$16 sps:$4 sm:$0xff]   ;;  %v14806_v26 = vld [vmem:[%s17076_s8 + $0x14c0] ss:$16 sps:$4 sm:$0xff]  }
 0x157   : > { %10425 = vmatprep.subr.bf16.mxu1 %v14715_v27  ;;  %v14809_v27 = vld [vmem:[%s17076_s8 + $0x16c0] ss:$16 sps:$4 sm:$0xff]  }
 0x159   : > { %10383 = vmatpush1.bf16.msra.mxu0 %v14710_v28  ;;  %v14898_v28 = vld [vmem:[%s19529_s0 + $0x54] ss:$196 sps:$4 sm:$0xff]  }
 0x15a   : > { %10426 = vmatpush1.bf16.msra.mxu1 %v14713_v29  ;;  %10384 = vmatprep.subr.bf16.mxu0 %v14718_v30  ;;  %v14901_v29 = vld [vmem:[%s19529_s0 + $0x5c] ss:$196 sps:$4 sm:$0xff]   ;;  %v14814_v30 = vld [vmem:[%s17076_s8 + $0x14a4] ss:$16 sps:$4 sm:$0xff]  }
 0x15b   : > { %10427 = vmatprep.subr.bf16.mxu1 %v14721_v31  ;;  %v14817_v31 = vld [vmem:[%s17076_s8 + $0x16a4] ss:$16 sps:$4 sm:$0xff]  }
 0x15d   : > { %10385 = vmatpush1.bf16.msra.mxu0 %v14716_v32  ;;  %v14812_v32 = vld [vmem:[%s17076_s8 + $0x14a0] ss:$16 sps:$4 sm:$0xff]  }
 0x15e   : > { %10428 = vmatpush1.bf16.msra.mxu1 %v14719_v33  ;;  %10386 = vmatprep.subr.bf16.mxu0 %v14724_v34  ;;  %v14815_v33 = vld [vmem:[%s17076_s8 + $0x16a0] ss:$16 sps:$4 sm:$0xff]   ;;  %v14820_v34 = vld [vmem:[%s17076_s8 + $0x1484] ss:$16 sps:$4 sm:$0xff]  }
 0x15f   : > { %10429 = vmatprep.subr.bf16.mxu1 %v14727_v35  ;;  %v14823_v35 = vld [vmem:[%s17076_s8 + $0x1684] ss:$16 sps:$4 sm:$0xff]  }
 0x161   : > { %10387 = vmatpush1.bf16.msra.mxu0 %v14722_v36  ;;  %v14818_v36 = vld [vmem:[%s17076_s8 + $0x1480] ss:$16 sps:$4 sm:$0xff]  }
 0x162   : > { %10430 = vmatpush1.bf16.msra.mxu1 %v14725_v37  ;;  %10388 = vmatprep.subr.bf16.mxu0 %v14730_v38  ;;  %v14821_v37 = vld [vmem:[%s17076_s8 + $0x1680] ss:$16 sps:$4 sm:$0xff]   ;;  %v14826_v38 = vld [vmem:[%s17076_s8 + $0x1464] ss:$16 sps:$4 sm:$0xff]  }
 0x163   : > { %10431 = vmatprep.subr.bf16.mxu1 %v14733_v39  ;;  %v14829_v39 = vld [vmem:[%s17076_s8 + $0x1664] ss:$16 sps:$4 sm:$0xff]  }
 0x165   : > { %10389 = vmatpush1.bf16.msra.mxu0 %v14728_v40  ;;  %v14824_v40 = vld [vmem:[%s17076_s8 + $0x1460] ss:$16 sps:$4 sm:$0xff]  }
 0x166   : > { %10432 = vmatpush1.bf16.msra.mxu1 %v14731_v41  ;;  %10390 = vmatprep.subr.bf16.mxu0 %v14736_v42  ;;  %v14827_v41 = vld [vmem:[%s17076_s8 + $0x1660] ss:$16 sps:$4 sm:$0xff]   ;;  %v14832_v42 = vld [vmem:[%s17076_s8 + $0x1444] ss:$16 sps:$4 sm:$0xff]  }
 0x167   : > { %10433 = vmatprep.subr.bf16.mxu1 %v14739_v43  ;;  %v14835_v43 = vld [vmem:[%s17076_s8 + $0x1644] ss:$16 sps:$4 sm:$0xff]  }
 0x169   : > { %10391 = vmatpush1.bf16.msra.mxu0 %v14734_v44  ;;  %v14830_v44 = vld [vmem:[%s17076_s8 + $0x1440] ss:$16 sps:$4 sm:$0xff]  }
 0x16a   : > { %10434 = vmatpush1.bf16.msra.mxu1 %v14737_v45  ;;  %10392 = vmatprep.subr.bf16.mxu0 %v14742_v46  ;;  %v14833_v45 = vld [vmem:[%s17076_s8 + $0x1640] ss:$16 sps:$4 sm:$0xff]   ;;  %v14838_v46 = vld [vmem:[%s17076_s8 + $0x1424] ss:$16 sps:$4 sm:$0xff]  }
 0x16b   : > { %10435 = vmatprep.subr.bf16.mxu1 %v14745_v47  ;;  %v14841_v47 = vld [vmem:[%s17076_s8 + $0x1624] ss:$16 sps:$4 sm:$0xff]  }
 0x16d   : > { %10393 = vmatpush1.bf16.msra.mxu0 %v14740_v48  ;;  %v14836_v48 = vld [vmem:[%s17076_s8 + $0x1420] ss:$16 sps:$4 sm:$0xff]  }
 0x16e   : > { %10436 = vmatpush1.bf16.msra.mxu1 %v14743_v49  ;;  %10394 = vmatprep.subr.bf16.mxu0 %v14748_v50  ;;  %v14839_v49 = vld [vmem:[%s17076_s8 + $0x1620] ss:$16 sps:$4 sm:$0xff]   ;;  %v14844_v50 = vld [vmem:[%s17076_s8 + $0x1404] ss:$16 sps:$4 sm:$0xff]  }
 0x16f   : > { %10437 = vmatprep.subr.bf16.mxu1 %v14751_v51  ;;  %v14847_v51 = vld [vmem:[%s17076_s8 + $0x1604] ss:$16 sps:$4 sm:$0xff]  }
 0x171   : > { %10395 = vmatpush2.bf16.msra.mxu0 %v14746_v52  ;;  %v14842_v52 = vld [vmem:[%s17076_s8 + $0x1400] ss:$16 sps:$4 sm:$0xff]  }
 0x172   : > { %10438 = vmatpush2.bf16.msra.mxu1 %v14749_v53  ;;  %10396 = vmatprep.subr.bf16.mxu0 %v14754_v54  ;;  %v14845_v53 = vld [vmem:[%s17076_s8 + $0x1600] ss:$16 sps:$4 sm:$0xff]   ;;  %v14850_v54 = vld [vmem:[%s17076_s8 + $0x15e4] ss:$16 sps:$4 sm:$0xff]  }
 0x173   : > { %10439 = vmatprep.subr.bf16.mxu1 %v14757_v55  ;;  %v14853_v55 = vld [vmem:[%s17076_s8 + $0x17e4] ss:$16 sps:$4 sm:$0xff]  }
 0x175   : > { %10397 = vmatpush2.bf16.msra.mxu0 %v14752_v56  ;;  %v14848_v56 = vld [vmem:[%s17076_s8 + $0x15e0] ss:$16 sps:$4 sm:$0xff]  }
 0x176   : > { %10440 = vmatpush2.bf16.msra.mxu1 %v14755_v57  ;;  %10398 = vmatprep.subr.bf16.mxu0 %v14760_v58  ;;  %v14851_v57 = vld [vmem:[%s17076_s8 + $0x17e0] ss:$16 sps:$4 sm:$0xff]   ;;  %v14856_v58 = vld [vmem:[%s17076_s8 + $0x15c4] ss:$16 sps:$4 sm:$0xff]  }
 0x177   : > { %10441 = vmatprep.subr.bf16.mxu1 %v14763_v59  ;;  %v14859_v59 = vld [vmem:[%s17076_s8 + $0x17c4] ss:$16 sps:$4 sm:$0xff]  }
 0x179   : > { %10399 = vmatpush2.bf16.msra.mxu0 %v14758_v60  ;;  %v14854_v60 = vld [vmem:[%s17076_s8 + $0x15c0] ss:$16 sps:$4 sm:$0xff]  }
 0x17a   : > { %10442 = vmatpush2.bf16.msra.mxu1 %v14761_v61  ;;  %10400 = vmatprep.subr.bf16.mxu0 %v14766_v62  ;;  %v14857_v61 = vld [vmem:[%s17076_s8 + $0x17c0] ss:$16 sps:$4 sm:$0xff]   ;;  %v14862_v62 = vld [vmem:[%s17076_s8 + $0x15a4] ss:$16 sps:$4 sm:$0xff]  }
 0x17b   : > { %10443 = vmatprep.subr.bf16.mxu1 %v14769_v63  ;;  %v14865_v63 = vld [vmem:[%s17076_s8 + $0x17a4] ss:$16 sps:$4 sm:$0xff]  }
 0x17d   : > { %10401 = vmatpush2.bf16.msra.mxu0 %v14764_v0  ;;  %v14860_v0 = vld [vmem:[%s17076_s8 + $0x15a0] ss:$16 sps:$4 sm:$0xff]  }
 0x17e   : > { %10444 = vmatpush2.bf16.msra.mxu1 %v14767_v1  ;;  %10402 = vmatprep.subr.bf16.mxu0 %v14772_v2  ;;  %v14863_v1 = vld [vmem:[%s17076_s8 + $0x17a0] ss:$16 sps:$4 sm:$0xff]   ;;  %v14868_v2 = vld [vmem:[%s17076_s8 + $0x1584] ss:$16 sps:$4 sm:$0xff]  }
 0x17f   : > { %10445 = vmatprep.subr.bf16.mxu1 %v14775_v3  ;;  %v14871_v3 = vld [vmem:[%s17076_s8 + $0x1784] ss:$16 sps:$4 sm:$0xff]  }
 0x181   : > { %10403 = vmatpush2.bf16.msra.mxu0 %v14770_v4  ;;  %v14866_v4 = vld [vmem:[%s17076_s8 + $0x1580] ss:$16 sps:$4 sm:$0xff]  }
 0x182   : > { %10446 = vmatpush2.bf16.msra.mxu1 %v14773_v5  ;;  %10404 = vmatprep.subr.bf16.mxu0 %v14778_v6  ;;  %v14869_v5 = vld [vmem:[%s17076_s8 + $0x1780] ss:$16 sps:$4 sm:$0xff]   ;;  %v14874_v6 = vld [vmem:[%s17076_s8 + $0x1564] ss:$16 sps:$4 sm:$0xff]  }
 0x183   : > { %10447 = vmatprep.subr.bf16.mxu1 %v14781_v7  ;;  %v14877_v7 = vld [vmem:[%s17076_s8 + $0x1764] ss:$16 sps:$4 sm:$0xff]  }
 0x185   : > { %10405 = vmatpush2.bf16.msra.mxu0 %v14776_v8  ;;  %v14872_v8 = vld [vmem:[%s17076_s8 + $0x1560] ss:$16 sps:$4 sm:$0xff]  }
 0x186   : > { %10448 = vmatpush2.bf16.msra.mxu1 %v14779_v9  ;;  %10406 = vmatprep.subr.bf16.mxu0 %v14784_v10  ;;  %v14875_v9 = vld [vmem:[%s17076_s8 + $0x1760] ss:$16 sps:$4 sm:$0xff]   ;;  %v14880_v10 = vld [vmem:[%s17076_s8 + $0x1544] ss:$16 sps:$4 sm:$0xff]  }
 0x187   : > { %10449 = vmatprep.subr.bf16.mxu1 %v14787_v11  ;;  %v14883_v11 = vld [vmem:[%s17076_s8 + $0x1744] ss:$16 sps:$4 sm:$0xff]  }
 0x189   : > { %10407 = vmatpush2.bf16.msra.mxu0 %v14782_v12  ;;  %v14878_v12 = vld [vmem:[%s17076_s8 + $0x1540] ss:$16 sps:$4 sm:$0xff]  }
 0x18a   : > { %10450 = vmatpush2.bf16.msra.mxu1 %v14785_v13  ;;  %10408 = vmatprep.subr.bf16.mxu0 %v14790_v14  ;;  %v14881_v13 = vld [vmem:[%s17076_s8 + $0x1740] ss:$16 sps:$4 sm:$0xff]   ;;  %v14886_v14 = vld [vmem:[%s17076_s8 + $0x1524] ss:$16 sps:$4 sm:$0xff]  }
 0x18b   : > { %10451 = vmatprep.subr.bf16.mxu1 %v14793_v15  ;;  %v14889_v15 = vld [vmem:[%s17076_s8 + $0x1724] ss:$16 sps:$4 sm:$0xff]  }
 0x18d   : > { %10409 = vmatpush2.bf16.msra.mxu0 %v14788_v16  ;;  %v14884_v16 = vld [vmem:[%s17076_s8 + $0x1520] ss:$16 sps:$4 sm:$0xff]  }
 0x18e   : > { %10452 = vmatpush2.bf16.msra.mxu1 %v14791_v17  ;;  %10464 = vmatprep.subr.bf16.mxu0 %v14802_v20  ;;  %v14887_v17 = vld [vmem:[%s17076_s8 + $0x1720] ss:$16 sps:$4 sm:$0xff]  }
 0x18f   : > { %10507 = vmatprep.subr.bf16.mxu1 %v14805_v21  ;;  %v14890_v20 = vld [vmem:[%s17076_s8 + $0x1500] ss:$16 sps:$4 sm:$0xff]  }
 0x190   : > { %10411 = vmatmul.mubr.bf16.vlgmr.msra.gmra.mxu0 %v14794_v18  ;;  %v14892_v18 = vld [vmem:[%s17076_s8 + $0x1504] ss:$16 sps:$4 sm:$0xff]   ;;  %v14893_v21 = vld [vmem:[%s17076_s8 + $0x1700] ss:$16 sps:$4 sm:$0xff]  }
 0x191   : > { %10454 = vmatmul.mubr.bf16.vlgmr.msra.gmra.mxu1 %v14797_v19  ;;  %10465 = vmatpush1.bf16.msra.mxu0 %v14800_v22  ;;  %v14895_v19 = vld [vmem:[%s17076_s8 + $0x1704] ss:$16 sps:$4 sm:$0xff]  }
 0x192   : > { %10508 = vmatpush1.bf16.msra.mxu1 %v14803_v23  ;;  %10466 = vmatprep.subr.bf16.mxu0 %v14808_v24  ;;  %v14896_v22 = vld [vmem:[%s19529_s0 + $0x50] ss:$196 sps:$4 sm:$0xff]   ;;  %v14899_v23 = vld [vmem:[%s19529_s0 + $0x58] ss:$196 sps:$4 sm:$0xff]  }
 0x193   : > { %10509 = vmatprep.subr.bf16.mxu1 %v14811_v25  ;;  %10496 = vmatprep.mubr.bf16.mxu0 %v14898_v28  ;;  %v14904_v24 = vld [vmem:[%s17076_s8 + $0x18e4] ss:$16 sps:$4 sm:$0xff]  }
 0x194   : > { %10539 = vmatprep.mubr.bf16.mxu1 %v14901_v29  ;;  %v14907_v25 = vld [vmem:[%s17076_s8 + $0x1ae4] ss:$16 sps:$4 sm:$0xff]  }
 0x195   : > { %10467 = vmatpush1.bf16.msra.mxu0 %v14806_v26  ;;  %v14902_v26 = vld [vmem:[%s17076_s8 + $0x18e0] ss:$16 sps:$4 sm:$0xff]   ;;  %v14910_v28 = vld [vmem:[%s17076_s8 + $0x18c4] ss:$16 sps:$4 sm:$0xff]  }
 0x196   : > { %10510 = vmatpush1.bf16.msra.mxu1 %v14809_v27  ;;  %10468 = vmatprep.subr.bf16.mxu0 %v14814_v30  ;;  %v14905_v27 = vld [vmem:[%s17076_s8 + $0x1ae0] ss:$16 sps:$4 sm:$0xff]   ;;  %v14913_v29 = vld [vmem:[%s17076_s8 + $0x1ac4] ss:$16 sps:$4 sm:$0xff]  }
 0x197   : > { %10511 = vmatprep.subr.bf16.mxu1 %v14817_v31  ;;  %v14908_v30 = vld [vmem:[%s17076_s8 + $0x18c0] ss:$16 sps:$4 sm:$0xff]  }
 0x198   : > { %v14911_v31 = vld [vmem:[%s17076_s8 + $0x1ac0] ss:$16 sps:$4 sm:$0xff]  }
 0x199   : > { %10469 = vmatpush1.bf16.msra.mxu0 %v14812_v32  ;;  %v15000_v32 = vld [vmem:[%s19529_s0 + $0x64] ss:$196 sps:$4 sm:$0xff]  }
 0x19a   : > { %10512 = vmatpush1.bf16.msra.mxu1 %v14815_v33  ;;  %10470 = vmatprep.subr.bf16.mxu0 %v14820_v34  ;;  %v15003_v33 = vld [vmem:[%s19529_s0 + $0x6c] ss:$196 sps:$4 sm:$0xff]   ;;  %v14916_v34 = vld [vmem:[%s17076_s8 + $0x18a4] ss:$16 sps:$4 sm:$0xff]  }
 0x19b   : > { %10513 = vmatprep.subr.bf16.mxu1 %v14823_v35  ;;  %v14919_v35 = vld [vmem:[%s17076_s8 + $0x1aa4] ss:$16 sps:$4 sm:$0xff]  }
 0x19d   : > { %10471 = vmatpush1.bf16.msra.mxu0 %v14818_v36  ;;  %v14914_v36 = vld [vmem:[%s17076_s8 + $0x18a0] ss:$16 sps:$4 sm:$0xff]  }
 0x19e   : > { %10514 = vmatpush1.bf16.msra.mxu1 %v14821_v37  ;;  %10472 = vmatprep.subr.bf16.mxu0 %v14826_v38  ;;  %v14917_v37 = vld [vmem:[%s17076_s8 + $0x1aa0] ss:$16 sps:$4 sm:$0xff]   ;;  %v14922_v38 = vld [vmem:[%s17076_s8 + $0x1884] ss:$16 sps:$4 sm:$0xff]  }
 0x19f   : > { %10515 = vmatprep.subr.bf16.mxu1 %v14829_v39  ;;  %v14925_v39 = vld [vmem:[%s17076_s8 + $0x1a84] ss:$16 sps:$4 sm:$0xff]  }
 0x1a1   : > { %10473 = vmatpush1.bf16.msra.mxu0 %v14824_v40  ;;  %v14920_v40 = vld [vmem:[%s17076_s8 + $0x1880] ss:$16 sps:$4 sm:$0xff]  }
 0x1a2   : > { %10516 = vmatpush1.bf16.msra.mxu1 %v14827_v41  ;;  %10474 = vmatprep.subr.bf16.mxu0 %v14832_v42  ;;  %v14923_v41 = vld [vmem:[%s17076_s8 + $0x1a80] ss:$16 sps:$4 sm:$0xff]   ;;  %v14928_v42 = vld [vmem:[%s17076_s8 + $0x1864] ss:$16 sps:$4 sm:$0xff]  }
 0x1a3   : > { %10517 = vmatprep.subr.bf16.mxu1 %v14835_v43  ;;  %v14931_v43 = vld [vmem:[%s17076_s8 + $0x1a64] ss:$16 sps:$4 sm:$0xff]  }
 0x1a5   : > { %10475 = vmatpush1.bf16.msra.mxu0 %v14830_v44  ;;  %v14926_v44 = vld [vmem:[%s17076_s8 + $0x1860] ss:$16 sps:$4 sm:$0xff]  }
 0x1a6   : > { %10518 = vmatpush1.bf16.msra.mxu1 %v14833_v45  ;;  %10476 = vmatprep.subr.bf16.mxu0 %v14838_v46  ;;  %v14929_v45 = vld [vmem:[%s17076_s8 + $0x1a60] ss:$16 sps:$4 sm:$0xff]   ;;  %v14934_v46 = vld [vmem:[%s17076_s8 + $0x1844] ss:$16 sps:$4 sm:$0xff]  }
 0x1a7   : > { %10519 = vmatprep.subr.bf16.mxu1 %v14841_v47  ;;  %v14937_v47 = vld [vmem:[%s17076_s8 + $0x1a44] ss:$16 sps:$4 sm:$0xff]  }
 0x1a9   : > { %10477 = vmatpush1.bf16.msra.mxu0 %v14836_v48  ;;  %v14932_v48 = vld [vmem:[%s17076_s8 + $0x1840] ss:$16 sps:$4 sm:$0xff]  }
 0x1aa   : > { %10520 = vmatpush1.bf16.msra.mxu1 %v14839_v49  ;;  %10478 = vmatprep.subr.bf16.mxu0 %v14844_v50  ;;  %v14935_v49 = vld [vmem:[%s17076_s8 + $0x1a40] ss:$16 sps:$4 sm:$0xff]   ;;  %v14940_v50 = vld [vmem:[%s17076_s8 + $0x1824] ss:$16 sps:$4 sm:$0xff]  }
 0x1ab   : > { %10521 = vmatprep.subr.bf16.mxu1 %v14847_v51  ;;  %v14943_v51 = vld [vmem:[%s17076_s8 + $0x1a24] ss:$16 sps:$4 sm:$0xff]  }
 0x1ad   : > { %10479 = vmatpush1.bf16.msra.mxu0 %v14842_v52  ;;  %v14938_v52 = vld [vmem:[%s17076_s8 + $0x1820] ss:$16 sps:$4 sm:$0xff]  }
 0x1ae   : > { %10522 = vmatpush1.bf16.msra.mxu1 %v14845_v53  ;;  %10480 = vmatprep.subr.bf16.mxu0 %v14850_v54  ;;  %v14941_v53 = vld [vmem:[%s17076_s8 + $0x1a20] ss:$16 sps:$4 sm:$0xff]   ;;  %v14946_v54 = vld [vmem:[%s17076_s8 + $0x1804] ss:$16 sps:$4 sm:$0xff]  }
 0x1af   : > { %10523 = vmatprep.subr.bf16.mxu1 %v14853_v55  ;;  %v14949_v55 = vld [vmem:[%s17076_s8 + $0x1a04] ss:$16 sps:$4 sm:$0xff]  }
 0x1b1   : > { %10481 = vmatpush2.bf16.msra.mxu0 %v14848_v56  ;;  %v14944_v56 = vld [vmem:[%s17076_s8 + $0x1800] ss:$16 sps:$4 sm:$0xff]  }
 0x1b2   : > { %10524 = vmatpush2.bf16.msra.mxu1 %v14851_v57  ;;  %10482 = vmatprep.subr.bf16.mxu0 %v14856_v58  ;;  %v14947_v57 = vld [vmem:[%s17076_s8 + $0x1a00] ss:$16 sps:$4 sm:$0xff]   ;;  %v14952_v58 = vld [vmem:[%s17076_s8 + $0x19e4] ss:$16 sps:$4 sm:$0xff]  }
 0x1b3   : > { %10525 = vmatprep.subr.bf16.mxu1 %v14859_v59  ;;  %v14955_v59 = vld [vmem:[%s17076_s8 + $0x1be4] ss:$16 sps:$4 sm:$0xff]  }
 0x1b5   : > { %10483 = vmatpush2.bf16.msra.mxu0 %v14854_v60  ;;  %v14950_v60 = vld [vmem:[%s17076_s8 + $0x19e0] ss:$16 sps:$4 sm:$0xff]  }
 0x1b6   : > { %10526 = vmatpush2.bf16.msra.mxu1 %v14857_v61  ;;  %10484 = vmatprep.subr.bf16.mxu0 %v14862_v62  ;;  %v14953_v61 = vld [vmem:[%s17076_s8 + $0x1be0] ss:$16 sps:$4 sm:$0xff]   ;;  %v14958_v62 = vld [vmem:[%s17076_s8 + $0x19c4] ss:$16 sps:$4 sm:$0xff]  }
 0x1b7   : > { %10527 = vmatprep.subr.bf16.mxu1 %v14865_v63  ;;  %v14961_v63 = vld [vmem:[%s17076_s8 + $0x1bc4] ss:$16 sps:$4 sm:$0xff]  }
 0x1b9   : > { %10485 = vmatpush2.bf16.msra.mxu0 %v14860_v0  ;;  %v14956_v0 = vld [vmem:[%s17076_s8 + $0x19c0] ss:$16 sps:$4 sm:$0xff]  }
 0x1ba   : > { %10528 = vmatpush2.bf16.msra.mxu1 %v14863_v1  ;;  %10486 = vmatprep.subr.bf16.mxu0 %v14868_v2  ;;  %v14959_v1 = vld [vmem:[%s17076_s8 + $0x1bc0] ss:$16 sps:$4 sm:$0xff]   ;;  %v14964_v2 = vld [vmem:[%s17076_s8 + $0x19a4] ss:$16 sps:$4 sm:$0xff]  }
 0x1bb   : > { %10529 = vmatprep.subr.bf16.mxu1 %v14871_v3  ;;  %v14967_v3 = vld [vmem:[%s17076_s8 + $0x1ba4] ss:$16 sps:$4 sm:$0xff]  }
 0x1bd   : > { %10487 = vmatpush2.bf16.msra.mxu0 %v14866_v4  ;;  %v14962_v4 = vld [vmem:[%s17076_s8 + $0x19a0] ss:$16 sps:$4 sm:$0xff]  }
 0x1be   : > { %10530 = vmatpush2.bf16.msra.mxu1 %v14869_v5  ;;  %10488 = vmatprep.subr.bf16.mxu0 %v14874_v6  ;;  %v14965_v5 = vld [vmem:[%s17076_s8 + $0x1ba0] ss:$16 sps:$4 sm:$0xff]   ;;  %v14970_v6 = vld [vmem:[%s17076_s8 + $0x1984] ss:$16 sps:$4 sm:$0xff]  }
 0x1bf   : > { %10531 = vmatprep.subr.bf16.mxu1 %v14877_v7  ;;  %v14973_v7 = vld [vmem:[%s17076_s8 + $0x1b84] ss:$16 sps:$4 sm:$0xff]  }
 0x1c1   : > { %10489 = vmatpush2.bf16.msra.mxu0 %v14872_v8  ;;  %v14968_v8 = vld [vmem:[%s17076_s8 + $0x1980] ss:$16 sps:$4 sm:$0xff]  }
 0x1c2   : > { %10532 = vmatpush2.bf16.msra.mxu1 %v14875_v9  ;;  %10490 = vmatprep.subr.bf16.mxu0 %v14880_v10  ;;  %v14971_v9 = vld [vmem:[%s17076_s8 + $0x1b80] ss:$16 sps:$4 sm:$0xff]   ;;  %v14976_v10 = vld [vmem:[%s17076_s8 + $0x1964] ss:$16 sps:$4 sm:$0xff]  }
 0x1c3   : > { %10533 = vmatprep.subr.bf16.mxu1 %v14883_v11  ;;  %v14979_v11 = vld [vmem:[%s17076_s8 + $0x1b64] ss:$16 sps:$4 sm:$0xff]  }
 0x1c5   : > { %10491 = vmatpush2.bf16.msra.mxu0 %v14878_v12  ;;  %v14974_v12 = vld [vmem:[%s17076_s8 + $0x1960] ss:$16 sps:$4 sm:$0xff]  }
 0x1c6   : > { %10534 = vmatpush2.bf16.msra.mxu1 %v14881_v13  ;;  %10492 = vmatprep.subr.bf16.mxu0 %v14886_v14  ;;  %v14977_v13 = vld [vmem:[%s17076_s8 + $0x1b60] ss:$16 sps:$4 sm:$0xff]   ;;  %v14982_v14 = vld [vmem:[%s17076_s8 + $0x1944] ss:$16 sps:$4 sm:$0xff]  }
 0x1c7   : > { %10535 = vmatprep.subr.bf16.mxu1 %v14889_v15  ;;  %v14985_v15 = vld [vmem:[%s17076_s8 + $0x1b44] ss:$16 sps:$4 sm:$0xff]  }
 0x1c9   : > { %10493 = vmatpush2.bf16.msra.mxu0 %v14884_v16  ;;  %v14980_v16 = vld [vmem:[%s17076_s8 + $0x1940] ss:$16 sps:$4 sm:$0xff]  }
 0x1ca   : > { %10536 = vmatpush2.bf16.msra.mxu1 %v14887_v17  ;;  %10494 = vmatprep.subr.bf16.mxu0 %v14892_v18  ;;  %v14983_v17 = vld [vmem:[%s17076_s8 + $0x1b40] ss:$16 sps:$4 sm:$0xff]   ;;  %v14988_v18 = vld [vmem:[%s17076_s8 + $0x1924] ss:$16 sps:$4 sm:$0xff]  }
 0x1cb   : > { %10537 = vmatprep.subr.bf16.mxu1 %v14895_v19  ;;  %v14991_v19 = vld [vmem:[%s17076_s8 + $0x1b24] ss:$16 sps:$4 sm:$0xff]  }
 0x1cd   : > { %10495 = vmatpush2.bf16.msra.mxu0 %v14890_v20  ;;  %v14986_v20 = vld [vmem:[%s17076_s8 + $0x1920] ss:$16 sps:$4 sm:$0xff]  }
 0x1ce   : > { %10538 = vmatpush2.bf16.msra.mxu1 %v14893_v21  ;;  %10550 = vmatprep.subr.bf16.mxu0 %v14904_v24  ;;  %v14989_v21 = vld [vmem:[%s17076_s8 + $0x1b20] ss:$16 sps:$4 sm:$0xff]  }
 0x1cf   : > { %10593 = vmatprep.subr.bf16.mxu1 %v14907_v25  ;;  %v14992_v24 = vld [vmem:[%s17076_s8 + $0x1900] ss:$16 sps:$4 sm:$0xff]  }
 0x1d0   : > { %10497 = vmatmul.mubr.bf16.vlgmr.msra.gmra.mxu0 %v14896_v22  ;;  %v14994_v22 = vld [vmem:[%s17076_s8 + $0x1904] ss:$16 sps:$4 sm:$0xff]   ;;  %v14995_v25 = vld [vmem:[%s17076_s8 + $0x1b00] ss:$16 sps:$4 sm:$0xff]  }
 0x1d1   : > { %10540 = vmatmul.mubr.bf16.vlgmr.msra.gmra.mxu1 %v14899_v23  ;;  %10551 = vmatpush1.bf16.msra.mxu0 %v14902_v26  ;;  %v14997_v23 = vld [vmem:[%s17076_s8 + $0x1b04] ss:$16 sps:$4 sm:$0xff]  }
 0x1d2   : > { %10594 = vmatpush1.bf16.msra.mxu1 %v14905_v27  ;;  %10552 = vmatprep.subr.bf16.mxu0 %v14910_v28  ;;  %v14998_v26 = vld [vmem:[%s19529_s0 + $0x60] ss:$196 sps:$4 sm:$0xff]   ;;  %v15001_v27 = vld [vmem:[%s19529_s0 + $0x68] ss:$196 sps:$4 sm:$0xff]  }
 0x1d3   : > { %10595 = vmatprep.subr.bf16.mxu1 %v14913_v29  ;;  %10582 = vmatprep.mubr.bf16.mxu0 %v15000_v32  ;;  %v15006_v28 = vld [vmem:[%s17076_s8 + $0x1ce4] ss:$16 sps:$4 sm:$0xff]  }
 0x1d4   : > { %10625 = vmatprep.mubr.bf16.mxu1 %v15003_v33  ;;  %v15009_v29 = vld [vmem:[%s17076_s8 + $0x1ee4] ss:$16 sps:$4 sm:$0xff]  }
 0x1d5   : > { %10553 = vmatpush1.bf16.msra.mxu0 %v14908_v30  ;;  %v15004_v30 = vld [vmem:[%s17076_s8 + $0x1ce0] ss:$16 sps:$4 sm:$0xff]   ;;  %v15012_v32 = vld [vmem:[%s17076_s8 + $0x1cc4] ss:$16 sps:$4 sm:$0xff]  }
 0x1d6   : > { %10596 = vmatpush1.bf16.msra.mxu1 %v14911_v31  ;;  %10554 = vmatprep.subr.bf16.mxu0 %v14916_v34  ;;  %v15007_v31 = vld [vmem:[%s17076_s8 + $0x1ee0] ss:$16 sps:$4 sm:$0xff]   ;;  %v15015_v33 = vld [vmem:[%s17076_s8 + $0x1ec4] ss:$16 sps:$4 sm:$0xff]  }
 0x1d7   : > { %10597 = vmatprep.subr.bf16.mxu1 %v14919_v35  ;;  %v15010_v34 = vld [vmem:[%s17076_s8 + $0x1cc0] ss:$16 sps:$4 sm:$0xff]  }
 0x1d8   : > { %v15013_v35 = vld [vmem:[%s17076_s8 + $0x1ec0] ss:$16 sps:$4 sm:$0xff]  }
 0x1d9   : > { %10555 = vmatpush1.bf16.msra.mxu0 %v14914_v36  ;;  %v15102_v36 = vld [vmem:[%s19529_s0 + $0x74] ss:$196 sps:$4 sm:$0xff]  }
 0x1da   : > { %10598 = vmatpush1.bf16.msra.mxu1 %v14917_v37  ;;  %10556 = vmatprep.subr.bf16.mxu0 %v14922_v38  ;;  %v15105_v37 = vld [vmem:[%s19529_s0 + $0x7c] ss:$196 sps:$4 sm:$0xff]   ;;  %v15018_v38 = vld [vmem:[%s17076_s8 + $0x1ca4] ss:$16 sps:$4 sm:$0xff]  }
 0x1db   : > { %10599 = vmatprep.subr.bf16.mxu1 %v14925_v39  ;;  %v15021_v39 = vld [vmem:[%s17076_s8 + $0x1ea4] ss:$16 sps:$4 sm:$0xff]  }
 0x1dd   : > { %10557 = vmatpush1.bf16.msra.mxu0 %v14920_v40  ;;  %v15016_v40 = vld [vmem:[%s17076_s8 + $0x1ca0] ss:$16 sps:$4 sm:$0xff]  }
 0x1de   : > { %10600 = vmatpush1.bf16.msra.mxu1 %v14923_v41  ;;  %10558 = vmatprep.subr.bf16.mxu0 %v14928_v42  ;;  %v15019_v41 = vld [vmem:[%s17076_s8 + $0x1ea0] ss:$16 sps:$4 sm:$0xff]   ;;  %v15024_v42 = vld [vmem:[%s17076_s8 + $0x1c84] ss:$16 sps:$4 sm:$0xff]  }
 0x1df   : > { %10601 = vmatprep.subr.bf16.mxu1 %v14931_v43  ;;  %v15027_v43 = vld [vmem:[%s17076_s8 + $0x1e84] ss:$16 sps:$4 sm:$0xff]  }
 0x1e1   : > { %10559 = vmatpush1.bf16.msra.mxu0 %v14926_v44  ;;  %v15022_v44 = vld [vmem:[%s17076_s8 + $0x1c80] ss:$16 sps:$4 sm:$0xff]  }
 0x1e2   : > { %10602 = vmatpush1.bf16.msra.mxu1 %v14929_v45  ;;  %10560 = vmatprep.subr.bf16.mxu0 %v14934_v46  ;;  %v15025_v45 = vld [vmem:[%s17076_s8 + $0x1e80] ss:$16 sps:$4 sm:$0xff]   ;;  %v15030_v46 = vld [vmem:[%s17076_s8 + $0x1c64] ss:$16 sps:$4 sm:$0xff]  }
 0x1e3   : > { %10603 = vmatprep.subr.bf16.mxu1 %v14937_v47  ;;  %v15033_v47 = vld [vmem:[%s17076_s8 + $0x1e64] ss:$16 sps:$4 sm:$0xff]  }
 0x1e5   : > { %10561 = vmatpush1.bf16.msra.mxu0 %v14932_v48  ;;  %v15028_v48 = vld [vmem:[%s17076_s8 + $0x1c60] ss:$16 sps:$4 sm:$0xff]  }
 0x1e6   : > { %10604 = vmatpush1.bf16.msra.mxu1 %v14935_v49  ;;  %10562 = vmatprep.subr.bf16.mxu0 %v14940_v50  ;;  %v15031_v49 = vld [vmem:[%s17076_s8 + $0x1e60] ss:$16 sps:$4 sm:$0xff]   ;;  %v15036_v50 = vld [vmem:[%s17076_s8 + $0x1c44] ss:$16 sps:$4 sm:$0xff]  }
 0x1e7   : > { %10605 = vmatprep.subr.bf16.mxu1 %v14943_v51  ;;  %v15039_v51 = vld [vmem:[%s17076_s8 + $0x1e44] ss:$16 sps:$4 sm:$0xff]  }
 0x1e9   : > { %10563 = vmatpush1.bf16.msra.mxu0 %v14938_v52  ;;  %v15034_v52 = vld [vmem:[%s17076_s8 + $0x1c40] ss:$16 sps:$4 sm:$0xff]  }
 0x1ea   : > { %10606 = vmatpush1.bf16.msra.mxu1 %v14941_v53  ;;  %10564 = vmatprep.subr.bf16.mxu0 %v14946_v54  ;;  %v15037_v53 = vld [vmem:[%s17076_s8 + $0x1e40] ss:$16 sps:$4 sm:$0xff]   ;;  %v15042_v54 = vld [vmem:[%s17076_s8 + $0x1c24] ss:$16 sps:$4 sm:$0xff]  }
 0x1eb   : > { %10607 = vmatprep.subr.bf16.mxu1 %v14949_v55  ;;  %v15045_v55 = vld [vmem:[%s17076_s8 + $0x1e24] ss:$16 sps:$4 sm:$0xff]  }
 0x1ed   : > { %10565 = vmatpush1.bf16.msra.mxu0 %v14944_v56  ;;  %v15040_v56 = vld [vmem:[%s17076_s8 + $0x1c20] ss:$16 sps:$4 sm:$0xff]  }
 0x1ee   : > { %10608 = vmatpush1.bf16.msra.mxu1 %v14947_v57  ;;  %10566 = vmatprep.subr.bf16.mxu0 %v14952_v58  ;;  %v15043_v57 = vld [vmem:[%s17076_s8 + $0x1e20] ss:$16 sps:$4 sm:$0xff]   ;;  %v15048_v58 = vld [vmem:[%s17076_s8 + $0x1c04] ss:$16 sps:$4 sm:$0xff]  }
 0x1ef   : > { %10609 = vmatprep.subr.bf16.mxu1 %v14955_v59  ;;  %v15051_v59 = vld [vmem:[%s17076_s8 + $0x1e04] ss:$16 sps:$4 sm:$0xff]  }
 0x1f1   : > { %10567 = vmatpush2.bf16.msra.mxu0 %v14950_v60  ;;  %v15046_v60 = vld [vmem:[%s17076_s8 + $0x1c00] ss:$16 sps:$4 sm:$0xff]  }
 0x1f2   : > { %10610 = vmatpush2.bf16.msra.mxu1 %v14953_v61  ;;  %10568 = vmatprep.subr.bf16.mxu0 %v14958_v62  ;;  %v15049_v61 = vld [vmem:[%s17076_s8 + $0x1e00] ss:$16 sps:$4 sm:$0xff]   ;;  %v15054_v62 = vld [vmem:[%s17076_s8 + $0x1de4] ss:$16 sps:$4 sm:$0xff]  }
 0x1f3   : > { %10611 = vmatprep.subr.bf16.mxu1 %v14961_v63  ;;  %v15057_v63 = vld [vmem:[%s17076_s8 + $0x1fe4] ss:$16 sps:$4 sm:$0xff]  }
 0x1f5   : > { %10569 = vmatpush2.bf16.msra.mxu0 %v14956_v0  ;;  %v15052_v0 = vld [vmem:[%s17076_s8 + $0x1de0] ss:$16 sps:$4 sm:$0xff]  }
 0x1f6   : > { %10612 = vmatpush2.bf16.msra.mxu1 %v14959_v1  ;;  %10570 = vmatprep.subr.bf16.mxu0 %v14964_v2  ;;  %v15055_v1 = vld [vmem:[%s17076_s8 + $0x1fe0] ss:$16 sps:$4 sm:$0xff]   ;;  %v15060_v2 = vld [vmem:[%s17076_s8 + $0x1dc4] ss:$16 sps:$4 sm:$0xff]  }
 0x1f7   : > { %10613 = vmatprep.subr.bf16.mxu1 %v14967_v3  ;;  %v15063_v3 = vld [vmem:[%s17076_s8 + $0x1fc4] ss:$16 sps:$4 sm:$0xff]  }
 0x1f9   : > { %10571 = vmatpush2.bf16.msra.mxu0 %v14962_v4  ;;  %v15058_v4 = vld [vmem:[%s17076_s8 + $0x1dc0] ss:$16 sps:$4 sm:$0xff]  }
 0x1fa   : > { %10614 = vmatpush2.bf16.msra.mxu1 %v14965_v5  ;;  %10572 = vmatprep.subr.bf16.mxu0 %v14970_v6  ;;  %v15061_v5 = vld [vmem:[%s17076_s8 + $0x1fc0] ss:$16 sps:$4 sm:$0xff]   ;;  %v15066_v6 = vld [vmem:[%s17076_s8 + $0x1da4] ss:$16 sps:$4 sm:$0xff]  }
 0x1fb   : > { %10615 = vmatprep.subr.bf16.mxu1 %v14973_v7  ;;  %v15069_v7 = vld [vmem:[%s17076_s8 + $0x1fa4] ss:$16 sps:$4 sm:$0xff]  }
 0x1fd   : > { %10573 = vmatpush2.bf16.msra.mxu0 %v14968_v8  ;;  %v15064_v8 = vld [vmem:[%s17076_s8 + $0x1da0] ss:$16 sps:$4 sm:$0xff]  }
 0x1fe   : > { %10616 = vmatpush2.bf16.msra.mxu1 %v14971_v9  ;;  %10574 = vmatprep.subr.bf16.mxu0 %v14976_v10  ;;  %v15067_v9 = vld [vmem:[%s17076_s8 + $0x1fa0] ss:$16 sps:$4 sm:$0xff]   ;;  %v15072_v10 = vld [vmem:[%s17076_s8 + $0x1d84] ss:$16 sps:$4 sm:$0xff]  }
 0x1ff   : > { %10617 = vmatprep.subr.bf16.mxu1 %v14979_v11  ;;  %v15075_v11 = vld [vmem:[%s17076_s8 + $0x1f84] ss:$16 sps:$4 sm:$0xff]  }
 0x201   : > { %10575 = vmatpush2.bf16.msra.mxu0 %v14974_v12  ;;  %v15070_v12 = vld [vmem:[%s17076_s8 + $0x1d80] ss:$16 sps:$4 sm:$0xff]  }
 0x202   : > { %10618 = vmatpush2.bf16.msra.mxu1 %v14977_v13  ;;  %10576 = vmatprep.subr.bf16.mxu0 %v14982_v14  ;;  %v15073_v13 = vld [vmem:[%s17076_s8 + $0x1f80] ss:$16 sps:$4 sm:$0xff]   ;;  %v15078_v14 = vld [vmem:[%s17076_s8 + $0x1d64] ss:$16 sps:$4 sm:$0xff]  }
 0x203   : > { %10619 = vmatprep.subr.bf16.mxu1 %v14985_v15  ;;  %v15081_v15 = vld [vmem:[%s17076_s8 + $0x1f64] ss:$16 sps:$4 sm:$0xff]  }
 0x205   : > { %10577 = vmatpush2.bf16.msra.mxu0 %v14980_v16  ;;  %v15076_v16 = vld [vmem:[%s17076_s8 + $0x1d60] ss:$16 sps:$4 sm:$0xff]  }
 0x206   : > { %10620 = vmatpush2.bf16.msra.mxu1 %v14983_v17  ;;  %10578 = vmatprep.subr.bf16.mxu0 %v14988_v18  ;;  %v15079_v17 = vld [vmem:[%s17076_s8 + $0x1f60] ss:$16 sps:$4 sm:$0xff]   ;;  %v15084_v18 = vld [vmem:[%s17076_s8 + $0x1d44] ss:$16 sps:$4 sm:$0xff]  }
 0x207   : > { %10621 = vmatprep.subr.bf16.mxu1 %v14991_v19  ;;  %v15087_v19 = vld [vmem:[%s17076_s8 + $0x1f44] ss:$16 sps:$4 sm:$0xff]  }
 0x209   : > { %10579 = vmatpush2.bf16.msra.mxu0 %v14986_v20  ;;  %v15082_v20 = vld [vmem:[%s17076_s8 + $0x1d40] ss:$16 sps:$4 sm:$0xff]  }
 0x20a   : > { %10622 = vmatpush2.bf16.msra.mxu1 %v14989_v21  ;;  %10580 = vmatprep.subr.bf16.mxu0 %v14994_v22  ;;  %v15085_v21 = vld [vmem:[%s17076_s8 + $0x1f40] ss:$16 sps:$4 sm:$0xff]   ;;  %v15090_v22 = vld [vmem:[%s17076_s8 + $0x1d24] ss:$16 sps:$4 sm:$0xff]  }
 0x20b   : > { %10623 = vmatprep.subr.bf16.mxu1 %v14997_v23  ;;  %v15093_v23 = vld [vmem:[%s17076_s8 + $0x1f24] ss:$16 sps:$4 sm:$0xff]  }
 0x20d   : > { %10581 = vmatpush2.bf16.msra.mxu0 %v14992_v24  ;;  %v15088_v24 = vld [vmem:[%s17076_s8 + $0x1d20] ss:$16 sps:$4 sm:$0xff]  }
 0x20e   : > { %10624 = vmatpush2.bf16.msra.mxu1 %v14995_v25  ;;  %10636 = vmatprep.subr.bf16.mxu0 %v15006_v28  ;;  %v15091_v25 = vld [vmem:[%s17076_s8 + $0x1f20] ss:$16 sps:$4 sm:$0xff]  }
 0x20f   : > { %10679 = vmatprep.subr.bf16.mxu1 %v15009_v29  ;;  %v15094_v28 = vld [vmem:[%s17076_s8 + $0x1d00] ss:$16 sps:$4 sm:$0xff]  }
 0x210   : > { %10583 = vmatmul.mubr.bf16.vlgmr.msra.gmra.mxu0 %v14998_v26  ;;  %v15096_v26 = vld [vmem:[%s17076_s8 + $0x1d04] ss:$16 sps:$4 sm:$0xff]   ;;  %v15097_v29 = vld [vmem:[%s17076_s8 + $0x1f00] ss:$16 sps:$4 sm:$0xff]  }
 0x211   : > { %10626 = vmatmul.mubr.bf16.vlgmr.msra.gmra.mxu1 %v15001_v27  ;;  %10637 = vmatpush1.bf16.msra.mxu0 %v15004_v30  ;;  %v15099_v27 = vld [vmem:[%s17076_s8 + $0x1f04] ss:$16 sps:$4 sm:$0xff]  }
 0x212   : > { %10680 = vmatpush1.bf16.msra.mxu1 %v15007_v31  ;;  %10638 = vmatprep.subr.bf16.mxu0 %v15012_v32  ;;  %v15100_v30 = vld [vmem:[%s19529_s0 + $0x70] ss:$196 sps:$4 sm:$0xff]   ;;  %v15103_v31 = vld [vmem:[%s19529_s0 + $0x78] ss:$196 sps:$4 sm:$0xff]  }
 0x213   : > { %10681 = vmatprep.subr.bf16.mxu1 %v15015_v33  ;;  %10668 = vmatprep.mubr.bf16.mxu0 %v15102_v36  ;;  %v15108_v32 = vld [vmem:[%s17076_s8 + $0x20e4] ss:$16 sps:$4 sm:$0xff]  }
 0x214   : > { %10711 = vmatprep.mubr.bf16.mxu1 %v15105_v37  ;;  %v15111_v33 = vld [vmem:[%s17076_s8 + $0x22e4] ss:$16 sps:$4 sm:$0xff]  }
 0x215   : > { %10639 = vmatpush1.bf16.msra.mxu0 %v15010_v34  ;;  %v15106_v34 = vld [vmem:[%s17076_s8 + $0x20e0] ss:$16 sps:$4 sm:$0xff]   ;;  %v15114_v36 = vld [vmem:[%s17076_s8 + $0x20c4] ss:$16 sps:$4 sm:$0xff]  }
 0x216   : > { %10682 = vmatpush1.bf16.msra.mxu1 %v15013_v35  ;;  %10640 = vmatprep.subr.bf16.mxu0 %v15018_v38  ;;  %v15109_v35 = vld [vmem:[%s17076_s8 + $0x22e0] ss:$16 sps:$4 sm:$0xff]   ;;  %v15117_v37 = vld [vmem:[%s17076_s8 + $0x22c4] ss:$16 sps:$4 sm:$0xff]  }
 0x217   : > { %10683 = vmatprep.subr.bf16.mxu1 %v15021_v39  ;;  %v15112_v38 = vld [vmem:[%s17076_s8 + $0x20c0] ss:$16 sps:$4 sm:$0xff]  }
 0x218   : > { %v15115_v39 = vld [vmem:[%s17076_s8 + $0x22c0] ss:$16 sps:$4 sm:$0xff]  }
 0x219   : > { %10641 = vmatpush1.bf16.msra.mxu0 %v15016_v40  ;;  %v15204_v40 = vld [vmem:[%s19529_s0 + $0x84] ss:$196 sps:$4 sm:$0xff]  }
 0x21a   : > { %10684 = vmatpush1.bf16.msra.mxu1 %v15019_v41  ;;  %10642 = vmatprep.subr.bf16.mxu0 %v15024_v42  ;;  %v15207_v41 = vld [vmem:[%s19529_s0 + $0x8c] ss:$196 sps:$4 sm:$0xff]   ;;  %v15120_v42 = vld [vmem:[%s17076_s8 + $0x20a4] ss:$16 sps:$4 sm:$0xff]  }
 0x21b   : > { %10685 = vmatprep.subr.bf16.mxu1 %v15027_v43  ;;  %v15123_v43 = vld [vmem:[%s17076_s8 + $0x22a4] ss:$16 sps:$4 sm:$0xff]  }
 0x21d   : > { %10643 = vmatpush1.bf16.msra.mxu0 %v15022_v44  ;;  %v15118_v44 = vld [vmem:[%s17076_s8 + $0x20a0] ss:$16 sps:$4 sm:$0xff]  }
 0x21e   : > { %10686 = vmatpush1.bf16.msra.mxu1 %v15025_v45  ;;  %10644 = vmatprep.subr.bf16.mxu0 %v15030_v46  ;;  %v15121_v45 = vld [vmem:[%s17076_s8 + $0x22a0] ss:$16 sps:$4 sm:$0xff]   ;;  %v15126_v46 = vld [vmem:[%s17076_s8 + $0x2084] ss:$16 sps:$4 sm:$0xff]  }
 0x21f   : > { %10687 = vmatprep.subr.bf16.mxu1 %v15033_v47  ;;  %v15129_v47 = vld [vmem:[%s17076_s8 + $0x2284] ss:$16 sps:$4 sm:$0xff]  }
 0x221   : > { %10645 = vmatpush1.bf16.msra.mxu0 %v15028_v48  ;;  %v15124_v48 = vld [vmem:[%s17076_s8 + $0x2080] ss:$16 sps:$4 sm:$0xff]  }
 0x222   : > { %10688 = vmatpush1.bf16.msra.mxu1 %v15031_v49  ;;  %10646 = vmatprep.subr.bf16.mxu0 %v15036_v50  ;;  %v15127_v49 = vld [vmem:[%s17076_s8 + $0x2280] ss:$16 sps:$4 sm:$0xff]   ;;  %v15132_v50 = vld [vmem:[%s17076_s8 + $0x2064] ss:$16 sps:$4 sm:$0xff]  }
 0x223   : > { %10689 = vmatprep.subr.bf16.mxu1 %v15039_v51  ;;  %v15135_v51 = vld [vmem:[%s17076_s8 + $0x2264] ss:$16 sps:$4 sm:$0xff]  }
 0x225   : > { %10647 = vmatpush1.bf16.msra.mxu0 %v15034_v52  ;;  %v15130_v52 = vld [vmem:[%s17076_s8 + $0x2060] ss:$16 sps:$4 sm:$0xff]  }
 0x226   : > { %10690 = vmatpush1.bf16.msra.mxu1 %v15037_v53  ;;  %10648 = vmatprep.subr.bf16.mxu0 %v15042_v54  ;;  %v15133_v53 = vld [vmem:[%s17076_s8 + $0x2260] ss:$16 sps:$4 sm:$0xff]   ;;  %v15138_v54 = vld [vmem:[%s17076_s8 + $0x2044] ss:$16 sps:$4 sm:$0xff]  }
 0x227   : > { %10691 = vmatprep.subr.bf16.mxu1 %v15045_v55  ;;  %v15141_v55 = vld [vmem:[%s17076_s8 + $0x2244] ss:$16 sps:$4 sm:$0xff]  }
 0x229   : > { %10649 = vmatpush1.bf16.msra.mxu0 %v15040_v56  ;;  %v15136_v56 = vld [vmem:[%s17076_s8 + $0x2040] ss:$16 sps:$4 sm:$0xff]  }
 0x22a   : > { %10692 = vmatpush1.bf16.msra.mxu1 %v15043_v57  ;;  %10650 = vmatprep.subr.bf16.mxu0 %v15048_v58  ;;  %v15139_v57 = vld [vmem:[%s17076_s8 + $0x2240] ss:$16 sps:$4 sm:$0xff]   ;;  %v15144_v58 = vld [vmem:[%s17076_s8 + $0x2024] ss:$16 sps:$4 sm:$0xff]  }
 0x22b   : > { %10693 = vmatprep.subr.bf16.mxu1 %v15051_v59  ;;  %v15147_v59 = vld [vmem:[%s17076_s8 + $0x2224] ss:$16 sps:$4 sm:$0xff]  }
 0x22d   : > { %10651 = vmatpush1.bf16.msra.mxu0 %v15046_v60  ;;  %v15142_v60 = vld [vmem:[%s17076_s8 + $0x2020] ss:$16 sps:$4 sm:$0xff]  }
 0x22e   : > { %10694 = vmatpush1.bf16.msra.mxu1 %v15049_v61  ;;  %10652 = vmatprep.subr.bf16.mxu0 %v15054_v62  ;;  %v15145_v61 = vld [vmem:[%s17076_s8 + $0x2220] ss:$16 sps:$4 sm:$0xff]   ;;  %v15150_v62 = vld [vmem:[%s17076_s8 + $0x2004] ss:$16 sps:$4 sm:$0xff]  }
 0x22f   : > { %10695 = vmatprep.subr.bf16.mxu1 %v15057_v63  ;;  %v15153_v63 = vld [vmem:[%s17076_s8 + $0x2204] ss:$16 sps:$4 sm:$0xff]  }
 0x231   : > { %10653 = vmatpush2.bf16.msra.mxu0 %v15052_v0  ;;  %v15148_v0 = vld [vmem:[%s17076_s8 + $0x2000] ss:$16 sps:$4 sm:$0xff]  }
 0x232   : > { %10696 = vmatpush2.bf16.msra.mxu1 %v15055_v1  ;;  %10654 = vmatprep.subr.bf16.mxu0 %v15060_v2  ;;  %v15151_v1 = vld [vmem:[%s17076_s8 + $0x2200] ss:$16 sps:$4 sm:$0xff]   ;;  %v15156_v2 = vld [vmem:[%s17076_s8 + $0x21e4] ss:$16 sps:$4 sm:$0xff]  }
 0x233   : > { %10697 = vmatprep.subr.bf16.mxu1 %v15063_v3  ;;  %v15159_v3 = vld [vmem:[%s17076_s8 + $0x23e4] ss:$16 sps:$4 sm:$0xff]  }
 0x235   : > { %10655 = vmatpush2.bf16.msra.mxu0 %v15058_v4  ;;  %v15154_v4 = vld [vmem:[%s17076_s8 + $0x21e0] ss:$16 sps:$4 sm:$0xff]  }
 0x236   : > { %10698 = vmatpush2.bf16.msra.mxu1 %v15061_v5  ;;  %10656 = vmatprep.subr.bf16.mxu0 %v15066_v6  ;;  %v15157_v5 = vld [vmem:[%s17076_s8 + $0x23e0] ss:$16 sps:$4 sm:$0xff]   ;;  %v15162_v6 = vld [vmem:[%s17076_s8 + $0x21c4] ss:$16 sps:$4 sm:$0xff]  }
 0x237   : > { %10699 = vmatprep.subr.bf16.mxu1 %v15069_v7  ;;  %v15165_v7 = vld [vmem:[%s17076_s8 + $0x23c4] ss:$16 sps:$4 sm:$0xff]  }
 0x239   : > { %10657 = vmatpush2.bf16.msra.mxu0 %v15064_v8  ;;  %v15160_v8 = vld [vmem:[%s17076_s8 + $0x21c0] ss:$16 sps:$4 sm:$0xff]  }
 0x23a   : > { %10700 = vmatpush2.bf16.msra.mxu1 %v15067_v9  ;;  %10658 = vmatprep.subr.bf16.mxu0 %v15072_v10  ;;  %v15163_v9 = vld [vmem:[%s17076_s8 + $0x23c0] ss:$16 sps:$4 sm:$0xff]   ;;  %v15168_v10 = vld [vmem:[%s17076_s8 + $0x21a4] ss:$16 sps:$4 sm:$0xff]  }
 0x23b   : > { %10701 = vmatprep.subr.bf16.mxu1 %v15075_v11  ;;  %v15171_v11 = vld [vmem:[%s17076_s8 + $0x23a4] ss:$16 sps:$4 sm:$0xff]  }
 0x23d   : > { %10659 = vmatpush2.bf16.msra.mxu0 %v15070_v12  ;;  %v15166_v12 = vld [vmem:[%s17076_s8 + $0x21a0] ss:$16 sps:$4 sm:$0xff]  }
 0x23e   : > { %10702 = vmatpush2.bf16.msra.mxu1 %v15073_v13  ;;  %10660 = vmatprep.subr.bf16.mxu0 %v15078_v14  ;;  %v15169_v13 = vld [vmem:[%s17076_s8 + $0x23a0] ss:$16 sps:$4 sm:$0xff]   ;;  %v15174_v14 = vld [vmem:[%s17076_s8 + $0x2184] ss:$16 sps:$4 sm:$0xff]  }
 0x23f   : > { %10703 = vmatprep.subr.bf16.mxu1 %v15081_v15  ;;  %v15177_v15 = vld [vmem:[%s17076_s8 + $0x2384] ss:$16 sps:$4 sm:$0xff]  }
 0x241   : > { %10661 = vmatpush2.bf16.msra.mxu0 %v15076_v16  ;;  %v15172_v16 = vld [vmem:[%s17076_s8 + $0x2180] ss:$16 sps:$4 sm:$0xff]  }
 0x242   : > { %10704 = vmatpush2.bf16.msra.mxu1 %v15079_v17  ;;  %10662 = vmatprep.subr.bf16.mxu0 %v15084_v18  ;;  %v15175_v17 = vld [vmem:[%s17076_s8 + $0x2380] ss:$16 sps:$4 sm:$0xff]   ;;  %v15180_v18 = vld [vmem:[%s17076_s8 + $0x2164] ss:$16 sps:$4 sm:$0xff]  }
 0x243   : > { %10705 = vmatprep.subr.bf16.mxu1 %v15087_v19  ;;  %v15183_v19 = vld [vmem:[%s17076_s8 + $0x2364] ss:$16 sps:$4 sm:$0xff]  }
 0x245   : > { %10663 = vmatpush2.bf16.msra.mxu0 %v15082_v20  ;;  %v15178_v20 = vld [vmem:[%s17076_s8 + $0x2160] ss:$16 sps:$4 sm:$0xff]  }
 0x246   : > { %10706 = vmatpush2.bf16.msra.mxu1 %v15085_v21  ;;  %10664 = vmatprep.subr.bf16.mxu0 %v15090_v22  ;;  %v15181_v21 = vld [vmem:[%s17076_s8 + $0x2360] ss:$16 sps:$4 sm:$0xff]   ;;  %v15186_v22 = vld [vmem:[%s17076_s8 + $0x2144] ss:$16 sps:$4 sm:$0xff]  }
 0x247   : > { %10707 = vmatprep.subr.bf16.mxu1 %v15093_v23  ;;  %v15189_v23 = vld [vmem:[%s17076_s8 + $0x2344] ss:$16 sps:$4 sm:$0xff]  }
 0x249   : > { %10665 = vmatpush2.bf16.msra.mxu0 %v15088_v24  ;;  %v15184_v24 = vld [vmem:[%s17076_s8 + $0x2140] ss:$16 sps:$4 sm:$0xff]  }
 0x24a   : > { %10708 = vmatpush2.bf16.msra.mxu1 %v15091_v25  ;;  %10666 = vmatprep.subr.bf16.mxu0 %v15096_v26  ;;  %v15187_v25 = vld [vmem:[%s17076_s8 + $0x2340] ss:$16 sps:$4 sm:$0xff]   ;;  %v15192_v26 = vld [vmem:[%s17076_s8 + $0x2124] ss:$16 sps:$4 sm:$0xff]  }
 0x24b   : > { %10709 = vmatprep.subr.bf16.mxu1 %v15099_v27  ;;  %v15195_v27 = vld [vmem:[%s17076_s8 + $0x2324] ss:$16 sps:$4 sm:$0xff]  }
 0x24d   : > { %10667 = vmatpush2.bf16.msra.mxu0 %v15094_v28  ;;  %v15190_v28 = vld [vmem:[%s17076_s8 + $0x2120] ss:$16 sps:$4 sm:$0xff]  }
 0x24e   : > { %10710 = vmatpush2.bf16.msra.mxu1 %v15097_v29  ;;  %10722 = vmatprep.subr.bf16.mxu0 %v15108_v32  ;;  %v15193_v29 = vld [vmem:[%s17076_s8 + $0x2320] ss:$16 sps:$4 sm:$0xff]  }
 0x24f   : > { %10765 = vmatprep.subr.bf16.mxu1 %v15111_v33  ;;  %v15196_v32 = vld [vmem:[%s17076_s8 + $0x2100] ss:$16 sps:$4 sm:$0xff]  }
 0x250   : > { %10669 = vmatmul.mubr.bf16.vlgmr.msra.gmra.mxu0 %v15100_v30  ;;  %v15198_v30 = vld [vmem:[%s17076_s8 + $0x2104] ss:$16 sps:$4 sm:$0xff]   ;;  %v15199_v33 = vld [vmem:[%s17076_s8 + $0x2300] ss:$16 sps:$4 sm:$0xff]  }
 0x251   : > { %10712 = vmatmul.mubr.bf16.vlgmr.msra.gmra.mxu1 %v15103_v31  ;;  %10723 = vmatpush1.bf16.msra.mxu0 %v15106_v34  ;;  %v15201_v31 = vld [vmem:[%s17076_s8 + $0x2304] ss:$16 sps:$4 sm:$0xff]  }
 0x252   : > { %10766 = vmatpush1.bf16.msra.mxu1 %v15109_v35  ;;  %10724 = vmatprep.subr.bf16.mxu0 %v15114_v36  ;;  %v15202_v34 = vld [vmem:[%s19529_s0 + $0x80] ss:$196 sps:$4 sm:$0xff]   ;;  %v15205_v35 = vld [vmem:[%s19529_s0 + $0x88] ss:$196 sps:$4 sm:$0xff]  }
 0x253   : > { %10767 = vmatprep.subr.bf16.mxu1 %v15117_v37  ;;  %10754 = vmatprep.mubr.bf16.mxu0 %v15204_v40  ;;  %v15210_v36 = vld [vmem:[%s17076_s8 + $0x24e4] ss:$16 sps:$4 sm:$0xff]  }
 0x254   : > { %10797 = vmatprep.mubr.bf16.mxu1 %v15207_v41  ;;  %v15213_v37 = vld [vmem:[%s17076_s8 + $0x26e4] ss:$16 sps:$4 sm:$0xff]  }
 0x255   : > { %10725 = vmatpush1.bf16.msra.mxu0 %v15112_v38  ;;  %v15208_v38 = vld [vmem:[%s17076_s8 + $0x24e0] ss:$16 sps:$4 sm:$0xff]   ;;  %v15216_v40 = vld [vmem:[%s17076_s8 + $0x24c4] ss:$16 sps:$4 sm:$0xff]  }
 0x256   : > { %10768 = vmatpush1.bf16.msra.mxu1 %v15115_v39  ;;  %10726 = vmatprep.subr.bf16.mxu0 %v15120_v42  ;;  %v15211_v39 = vld [vmem:[%s17076_s8 + $0x26e0] ss:$16 sps:$4 sm:$0xff]   ;;  %v15219_v41 = vld [vmem:[%s17076_s8 + $0x26c4] ss:$16 sps:$4 sm:$0xff]  }
 0x257   : > { %10769 = vmatprep.subr.bf16.mxu1 %v15123_v43  ;;  %v15214_v42 = vld [vmem:[%s17076_s8 + $0x24c0] ss:$16 sps:$4 sm:$0xff]  }
 0x258   : > { %v15217_v43 = vld [vmem:[%s17076_s8 + $0x26c0] ss:$16 sps:$4 sm:$0xff]  }
 0x259   : > { %10727 = vmatpush1.bf16.msra.mxu0 %v15118_v44  ;;  %v15306_v44 = vld [vmem:[%s19529_s0 + $0x94] ss:$196 sps:$4 sm:$0xff]  }
 0x25a   : > { %10770 = vmatpush1.bf16.msra.mxu1 %v15121_v45  ;;  %10728 = vmatprep.subr.bf16.mxu0 %v15126_v46  ;;  %v15309_v45 = vld [vmem:[%s19529_s0 + $0x9c] ss:$196 sps:$4 sm:$0xff]   ;;  %v15222_v46 = vld [vmem:[%s17076_s8 + $0x24a4] ss:$16 sps:$4 sm:$0xff]  }
 0x25b   : > { %10771 = vmatprep.subr.bf16.mxu1 %v15129_v47  ;;  %v15225_v47 = vld [vmem:[%s17076_s8 + $0x26a4] ss:$16 sps:$4 sm:$0xff]  }
 0x25d   : > { %10729 = vmatpush1.bf16.msra.mxu0 %v15124_v48  ;;  %v15220_v48 = vld [vmem:[%s17076_s8 + $0x24a0] ss:$16 sps:$4 sm:$0xff]  }
 0x25e   : > { %10772 = vmatpush1.bf16.msra.mxu1 %v15127_v49  ;;  %10730 = vmatprep.subr.bf16.mxu0 %v15132_v50  ;;  %v15223_v49 = vld [vmem:[%s17076_s8 + $0x26a0] ss:$16 sps:$4 sm:$0xff]   ;;  %v15228_v50 = vld [vmem:[%s17076_s8 + $0x2484] ss:$16 sps:$4 sm:$0xff]  }
 0x25f   : > { %10773 = vmatprep.subr.bf16.mxu1 %v15135_v51  ;;  %v15231_v51 = vld [vmem:[%s17076_s8 + $0x2684] ss:$16 sps:$4 sm:$0xff]  }
 0x261   : > { %10731 = vmatpush1.bf16.msra.mxu0 %v15130_v52  ;;  %v15226_v52 = vld [vmem:[%s17076_s8 + $0x2480] ss:$16 sps:$4 sm:$0xff]  }
 0x262   : > { %10774 = vmatpush1.bf16.msra.mxu1 %v15133_v53  ;;  %10732 = vmatprep.subr.bf16.mxu0 %v15138_v54  ;;  %v15229_v53 = vld [vmem:[%s17076_s8 + $0x2680] ss:$16 sps:$4 sm:$0xff]   ;;  %v15234_v54 = vld [vmem:[%s17076_s8 + $0x2464] ss:$16 sps:$4 sm:$0xff]  }
 0x263   : > { %10775 = vmatprep.subr.bf16.mxu1 %v15141_v55  ;;  %v15237_v55 = vld [vmem:[%s17076_s8 + $0x2664] ss:$16 sps:$4 sm:$0xff]  }
 0x265   : > { %10733 = vmatpush1.bf16.msra.mxu0 %v15136_v56  ;;  %v15232_v56 = vld [vmem:[%s17076_s8 + $0x2460] ss:$16 sps:$4 sm:$0xff]  }
 0x266   : > { %10776 = vmatpush1.bf16.msra.mxu1 %v15139_v57  ;;  %10734 = vmatprep.subr.bf16.mxu0 %v15144_v58  ;;  %v15235_v57 = vld [vmem:[%s17076_s8 + $0x2660] ss:$16 sps:$4 sm:$0xff]   ;;  %v15240_v58 = vld [vmem:[%s17076_s8 + $0x2444] ss:$16 sps:$4 sm:$0xff]  }
 0x267   : > { %10777 = vmatprep.subr.bf16.mxu1 %v15147_v59  ;;  %v15243_v59 = vld [vmem:[%s17076_s8 + $0x2644] ss:$16 sps:$4 sm:$0xff]  }
 0x269   : > { %10735 = vmatpush1.bf16.msra.mxu0 %v15142_v60  ;;  %v15238_v60 = vld [vmem:[%s17076_s8 + $0x2440] ss:$16 sps:$4 sm:$0xff]  }
 0x26a   : > { %10778 = vmatpush1.bf16.msra.mxu1 %v15145_v61  ;;  %10736 = vmatprep.subr.bf16.mxu0 %v15150_v62  ;;  %v15241_v61 = vld [vmem:[%s17076_s8 + $0x2640] ss:$16 sps:$4 sm:$0xff]   ;;  %v15246_v62 = vld [vmem:[%s17076_s8 + $0x2424] ss:$16 sps:$4 sm:$0xff]  }
 0x26b   : > { %10779 = vmatprep.subr.bf16.mxu1 %v15153_v63  ;;  %v15249_v63 = vld [vmem:[%s17076_s8 + $0x2624] ss:$16 sps:$4 sm:$0xff]  }
 0x26d   : > { %10737 = vmatpush1.bf16.msra.mxu0 %v15148_v0  ;;  %v15244_v0 = vld [vmem:[%s17076_s8 + $0x2420] ss:$16 sps:$4 sm:$0xff]  }
 0x26e   : > { %10780 = vmatpush1.bf16.msra.mxu1 %v15151_v1  ;;  %10738 = vmatprep.subr.bf16.mxu0 %v15156_v2  ;;  %v15247_v1 = vld [vmem:[%s17076_s8 + $0x2620] ss:$16 sps:$4 sm:$0xff]   ;;  %v15252_v2 = vld [vmem:[%s17076_s8 + $0x2404] ss:$16 sps:$4 sm:$0xff]  }
 0x26f   : > { %10781 = vmatprep.subr.bf16.mxu1 %v15159_v3  ;;  %v15255_v3 = vld [vmem:[%s17076_s8 + $0x2604] ss:$16 sps:$4 sm:$0xff]  }
 0x271   : > { %10739 = vmatpush2.bf16.msra.mxu0 %v15154_v4  ;;  %v15250_v4 = vld [vmem:[%s17076_s8 + $0x2400] ss:$16 sps:$4 sm:$0xff]  }
 0x272   : > { %10782 = vmatpush2.bf16.msra.mxu1 %v15157_v5  ;;  %10740 = vmatprep.subr.bf16.mxu0 %v15162_v6  ;;  %v15253_v5 = vld [vmem:[%s17076_s8 + $0x2600] ss:$16 sps:$4 sm:$0xff]   ;;  %v15258_v6 = vld [vmem:[%s17076_s8 + $0x25e4] ss:$16 sps:$4 sm:$0xff]  }
 0x273   : > { %10783 = vmatprep.subr.bf16.mxu1 %v15165_v7  ;;  %v15261_v7 = vld [vmem:[%s17076_s8 + $0x27e4] ss:$16 sps:$4 sm:$0xff]  }
 0x275   : > { %10741 = vmatpush2.bf16.msra.mxu0 %v15160_v8  ;;  %v15256_v8 = vld [vmem:[%s17076_s8 + $0x25e0] ss:$16 sps:$4 sm:$0xff]  }
 0x276   : > { %10784 = vmatpush2.bf16.msra.mxu1 %v15163_v9  ;;  %10742 = vmatprep.subr.bf16.mxu0 %v15168_v10  ;;  %v15259_v9 = vld [vmem:[%s17076_s8 + $0x27e0] ss:$16 sps:$4 sm:$0xff]   ;;  %v15264_v10 = vld [vmem:[%s17076_s8 + $0x25c4] ss:$16 sps:$4 sm:$0xff]  }
 0x277   : > { %10785 = vmatprep.subr.bf16.mxu1 %v15171_v11  ;;  %v15267_v11 = vld [vmem:[%s17076_s8 + $0x27c4] ss:$16 sps:$4 sm:$0xff]  }
 0x279   : > { %10743 = vmatpush2.bf16.msra.mxu0 %v15166_v12  ;;  %v15262_v12 = vld [vmem:[%s17076_s8 + $0x25c0] ss:$16 sps:$4 sm:$0xff]  }
 0x27a   : > { %10786 = vmatpush2.bf16.msra.mxu1 %v15169_v13  ;;  %10744 = vmatprep.subr.bf16.mxu0 %v15174_v14  ;;  %v15265_v13 = vld [vmem:[%s17076_s8 + $0x27c0] ss:$16 sps:$4 sm:$0xff]   ;;  %v15270_v14 = vld [vmem:[%s17076_s8 + $0x25a4] ss:$16 sps:$4 sm:$0xff]  }
 0x27b   : > { %10787 = vmatprep.subr.bf16.mxu1 %v15177_v15  ;;  %v15273_v15 = vld [vmem:[%s17076_s8 + $0x27a4] ss:$16 sps:$4 sm:$0xff]  }
 0x27d   : > { %10745 = vmatpush2.bf16.msra.mxu0 %v15172_v16  ;;  %v15268_v16 = vld [vmem:[%s17076_s8 + $0x25a0] ss:$16 sps:$4 sm:$0xff]  }
 0x27e   : > { %10788 = vmatpush2.bf16.msra.mxu1 %v15175_v17  ;;  %10746 = vmatprep.subr.bf16.mxu0 %v15180_v18  ;;  %v15271_v17 = vld [vmem:[%s17076_s8 + $0x27a0] ss:$16 sps:$4 sm:$0xff]   ;;  %v15276_v18 = vld [vmem:[%s17076_s8 + $0x2584] ss:$16 sps:$4 sm:$0xff]  }
 0x27f   : > { %10789 = vmatprep.subr.bf16.mxu1 %v15183_v19  ;;  %v15279_v19 = vld [vmem:[%s17076_s8 + $0x2784] ss:$16 sps:$4 sm:$0xff]  }
 0x281   : > { %10747 = vmatpush2.bf16.msra.mxu0 %v15178_v20  ;;  %v15274_v20 = vld [vmem:[%s17076_s8 + $0x2580] ss:$16 sps:$4 sm:$0xff]  }
 0x282   : > { %10790 = vmatpush2.bf16.msra.mxu1 %v15181_v21  ;;  %10748 = vmatprep.subr.bf16.mxu0 %v15186_v22  ;;  %v15277_v21 = vld [vmem:[%s17076_s8 + $0x2780] ss:$16 sps:$4 sm:$0xff]   ;;  %v15282_v22 = vld [vmem:[%s17076_s8 + $0x2564] ss:$16 sps:$4 sm:$0xff]  }
 0x283   : > { %10791 = vmatprep.subr.bf16.mxu1 %v15189_v23  ;;  %v15285_v23 = vld [vmem:[%s17076_s8 + $0x2764] ss:$16 sps:$4 sm:$0xff]  }
 0x285   : > { %10749 = vmatpush2.bf16.msra.mxu0 %v15184_v24  ;;  %v15280_v24 = vld [vmem:[%s17076_s8 + $0x2560] ss:$16 sps:$4 sm:$0xff]  }
 0x286   : > { %10792 = vmatpush2.bf16.msra.mxu1 %v15187_v25  ;;  %10750 = vmatprep.subr.bf16.mxu0 %v15192_v26  ;;  %v15283_v25 = vld [vmem:[%s17076_s8 + $0x2760] ss:$16 sps:$4 sm:$0xff]   ;;  %v15288_v26 = vld [vmem:[%s17076_s8 + $0x2544] ss:$16 sps:$4 sm:$0xff]  }
 0x287   : > { %10793 = vmatprep.subr.bf16.mxu1 %v15195_v27  ;;  %v15291_v27 = vld [vmem:[%s17076_s8 + $0x2744] ss:$16 sps:$4 sm:$0xff]  }
 0x289   : > { %10751 = vmatpush2.bf16.msra.mxu0 %v15190_v28  ;;  %v15286_v28 = vld [vmem:[%s17076_s8 + $0x2540] ss:$16 sps:$4 sm:$0xff]  }
 0x28a   : > { %10794 = vmatpush2.bf16.msra.mxu1 %v15193_v29  ;;  %10752 = vmatprep.subr.bf16.mxu0 %v15198_v30  ;;  %v15289_v29 = vld [vmem:[%s17076_s8 + $0x2740] ss:$16 sps:$4 sm:$0xff]   ;;  %v15294_v30 = vld [vmem:[%s17076_s8 + $0x2524] ss:$16 sps:$4 sm:$0xff]  }
 0x28b   : > { %10795 = vmatprep.subr.bf16.mxu1 %v15201_v31  ;;  %v15297_v31 = vld [vmem:[%s17076_s8 + $0x2724] ss:$16 sps:$4 sm:$0xff]  }
 0x28d   : > { %10753 = vmatpush2.bf16.msra.mxu0 %v15196_v32  ;;  %v15292_v32 = vld [vmem:[%s17076_s8 + $0x2520] ss:$16 sps:$4 sm:$0xff]  }
 0x28e   : > { %10796 = vmatpush2.bf16.msra.mxu1 %v15199_v33  ;;  %10808 = vmatprep.subr.bf16.mxu0 %v15210_v36  ;;  %v15295_v33 = vld [vmem:[%s17076_s8 + $0x2720] ss:$16 sps:$4 sm:$0xff]  }
 0x28f   : > { %10851 = vmatprep.subr.bf16.mxu1 %v15213_v37  ;;  %v15298_v36 = vld [vmem:[%s17076_s8 + $0x2500] ss:$16 sps:$4 sm:$0xff]  }
 0x290   : > { %10755 = vmatmul.mubr.bf16.vlgmr.msra.gmra.mxu0 %v15202_v34  ;;  %v15300_v34 = vld [vmem:[%s17076_s8 + $0x2504] ss:$16 sps:$4 sm:$0xff]   ;;  %v15301_v37 = vld [vmem:[%s17076_s8 + $0x2700] ss:$16 sps:$4 sm:$0xff]  }
 0x291   : > { %10798 = vmatmul.mubr.bf16.vlgmr.msra.gmra.mxu1 %v15205_v35  ;;  %10809 = vmatpush1.bf16.msra.mxu0 %v15208_v38  ;;  %v15303_v35 = vld [vmem:[%s17076_s8 + $0x2704] ss:$16 sps:$4 sm:$0xff]  }
 0x292   : > { %10852 = vmatpush1.bf16.msra.mxu1 %v15211_v39  ;;  %10810 = vmatprep.subr.bf16.mxu0 %v15216_v40  ;;  %v15304_v38 = vld [vmem:[%s19529_s0 + $0x90] ss:$196 sps:$4 sm:$0xff]   ;;  %v15307_v39 = vld [vmem:[%s19529_s0 + $0x98] ss:$196 sps:$4 sm:$0xff]  }
 0x293   : > { %10853 = vmatprep.subr.bf16.mxu1 %v15219_v41  ;;  %10840 = vmatprep.mubr.bf16.mxu0 %v15306_v44  ;;  %v15312_v40 = vld [vmem:[%s17076_s8 + $0x28e4] ss:$16 sps:$4 sm:$0xff]  }
 0x294   : > { %10883 = vmatprep.mubr.bf16.mxu1 %v15309_v45  ;;  %v15315_v41 = vld [vmem:[%s17076_s8 + $0x2ae4] ss:$16 sps:$4 sm:$0xff]  }
 0x295   : > { %10811 = vmatpush1.bf16.msra.mxu0 %v15214_v42  ;;  %v15310_v42 = vld [vmem:[%s17076_s8 + $0x28e0] ss:$16 sps:$4 sm:$0xff]   ;;  %v15318_v44 = vld [vmem:[%s17076_s8 + $0x28c4] ss:$16 sps:$4 sm:$0xff]  }
 0x296   : > { %10854 = vmatpush1.bf16.msra.mxu1 %v15217_v43  ;;  %10812 = vmatprep.subr.bf16.mxu0 %v15222_v46  ;;  %v15313_v43 = vld [vmem:[%s17076_s8 + $0x2ae0] ss:$16 sps:$4 sm:$0xff]   ;;  %v15321_v45 = vld [vmem:[%s17076_s8 + $0x2ac4] ss:$16 sps:$4 sm:$0xff]  }
 0x297   : > { %10855 = vmatprep.subr.bf16.mxu1 %v15225_v47  ;;  %v15316_v46 = vld [vmem:[%s17076_s8 + $0x28c0] ss:$16 sps:$4 sm:$0xff]  }
 0x298   : > { %v15319_v47 = vld [vmem:[%s17076_s8 + $0x2ac0] ss:$16 sps:$4 sm:$0xff]  }
 0x299   : > { %10813 = vmatpush1.bf16.msra.mxu0 %v15220_v48  ;;  %v15408_v48 = vld [vmem:[%s19529_s0 + $0xa4] ss:$196 sps:$4 sm:$0xff]  }
 0x29a   : > { %10856 = vmatpush1.bf16.msra.mxu1 %v15223_v49  ;;  %10814 = vmatprep.subr.bf16.mxu0 %v15228_v50  ;;  %v15411_v49 = vld [vmem:[%s19529_s0 + $0xac] ss:$196 sps:$4 sm:$0xff]   ;;  %v15324_v50 = vld [vmem:[%s17076_s8 + $0x28a4] ss:$16 sps:$4 sm:$0xff]  }
 0x29b   : > { %10857 = vmatprep.subr.bf16.mxu1 %v15231_v51  ;;  %v15327_v51 = vld [vmem:[%s17076_s8 + $0x2aa4] ss:$16 sps:$4 sm:$0xff]  }
 0x29d   : > { %10815 = vmatpush1.bf16.msra.mxu0 %v15226_v52  ;;  %v15322_v52 = vld [vmem:[%s17076_s8 + $0x28a0] ss:$16 sps:$4 sm:$0xff]  }
 0x29e   : > { %10858 = vmatpush1.bf16.msra.mxu1 %v15229_v53  ;;  %10816 = vmatprep.subr.bf16.mxu0 %v15234_v54  ;;  %v15325_v53 = vld [vmem:[%s17076_s8 + $0x2aa0] ss:$16 sps:$4 sm:$0xff]   ;;  %v15330_v54 = vld [vmem:[%s17076_s8 + $0x2884] ss:$16 sps:$4 sm:$0xff]  }
 0x29f   : > { %10859 = vmatprep.subr.bf16.mxu1 %v15237_v55  ;;  %v15333_v55 = vld [vmem:[%s17076_s8 + $0x2a84] ss:$16 sps:$4 sm:$0xff]  }
 0x2a1   : > { %10817 = vmatpush1.bf16.msra.mxu0 %v15232_v56  ;;  %v15328_v56 = vld [vmem:[%s17076_s8 + $0x2880] ss:$16 sps:$4 sm:$0xff]  }
 0x2a2   : > { %10860 = vmatpush1.bf16.msra.mxu1 %v15235_v57  ;;  %10818 = vmatprep.subr.bf16.mxu0 %v15240_v58  ;;  %v15331_v57 = vld [vmem:[%s17076_s8 + $0x2a80] ss:$16 sps:$4 sm:$0xff]   ;;  %v15336_v58 = vld [vmem:[%s17076_s8 + $0x2864] ss:$16 sps:$4 sm:$0xff]  }
 0x2a3   : > { %10861 = vmatprep.subr.bf16.mxu1 %v15243_v59  ;;  %v15339_v59 = vld [vmem:[%s17076_s8 + $0x2a64] ss:$16 sps:$4 sm:$0xff]  }
 0x2a5   : > { %10819 = vmatpush1.bf16.msra.mxu0 %v15238_v60  ;;  %v15334_v60 = vld [vmem:[%s17076_s8 + $0x2860] ss:$16 sps:$4 sm:$0xff]  }
 0x2a6   : > { %10862 = vmatpush1.bf16.msra.mxu1 %v15241_v61  ;;  %10820 = vmatprep.subr.bf16.mxu0 %v15246_v62  ;;  %v15337_v61 = vld [vmem:[%s17076_s8 + $0x2a60] ss:$16 sps:$4 sm:$0xff]   ;;  %v15342_v62 = vld [vmem:[%s17076_s8 + $0x2844] ss:$16 sps:$4 sm:$0xff]  }
 0x2a7   : > { %10863 = vmatprep.subr.bf16.mxu1 %v15249_v63  ;;  %v15345_v63 = vld [vmem:[%s17076_s8 + $0x2a44] ss:$16 sps:$4 sm:$0xff]  }
 0x2a9   : > { %10821 = vmatpush1.bf16.msra.mxu0 %v15244_v0  ;;  %v15340_v0 = vld [vmem:[%s17076_s8 + $0x2840] ss:$16 sps:$4 sm:$0xff]  }
 0x2aa   : > { %10864 = vmatpush1.bf16.msra.mxu1 %v15247_v1  ;;  %10822 = vmatprep.subr.bf16.mxu0 %v15252_v2  ;;  %v15343_v1 = vld [vmem:[%s17076_s8 + $0x2a40] ss:$16 sps:$4 sm:$0xff]   ;;  %v15348_v2 = vld [vmem:[%s17076_s8 + $0x2824] ss:$16 sps:$4 sm:$0xff]  }
 0x2ab   : > { %10865 = vmatprep.subr.bf16.mxu1 %v15255_v3  ;;  %v15351_v3 = vld [vmem:[%s17076_s8 + $0x2a24] ss:$16 sps:$4 sm:$0xff]  }
 0x2ad   : > { %10823 = vmatpush1.bf16.msra.mxu0 %v15250_v4  ;;  %v15346_v4 = vld [vmem:[%s17076_s8 + $0x2820] ss:$16 sps:$4 sm:$0xff]  }
 0x2ae   : > { %10866 = vmatpush1.bf16.msra.mxu1 %v15253_v5  ;;  %10824 = vmatprep.subr.bf16.mxu0 %v15258_v6  ;;  %v15349_v5 = vld [vmem:[%s17076_s8 + $0x2a20] ss:$16 sps:$4 sm:$0xff]   ;;  %v15354_v6 = vld [vmem:[%s17076_s8 + $0x2804] ss:$16 sps:$4 sm:$0xff]  }
 0x2af   : > { %10867 = vmatprep.subr.bf16.mxu1 %v15261_v7  ;;  %v15357_v7 = vld [vmem:[%s17076_s8 + $0x2a04] ss:$16 sps:$4 sm:$0xff]  }
 0x2b1   : > { %10825 = vmatpush2.bf16.msra.mxu0 %v15256_v8  ;;  %v15352_v8 = vld [vmem:[%s17076_s8 + $0x2800] ss:$16 sps:$4 sm:$0xff]  }
 0x2b2   : > { %10868 = vmatpush2.bf16.msra.mxu1 %v15259_v9  ;;  %10826 = vmatprep.subr.bf16.mxu0 %v15264_v10  ;;  %v15355_v9 = vld [vmem:[%s17076_s8 + $0x2a00] ss:$16 sps:$4 sm:$0xff]   ;;  %v15360_v10 = vld [vmem:[%s17076_s8 + $0x29e4] ss:$16 sps:$4 sm:$0xff]  }
 0x2b3   : > { %10869 = vmatprep.subr.bf16.mxu1 %v15267_v11  ;;  %v15363_v11 = vld [vmem:[%s17076_s8 + $0x2be4] ss:$16 sps:$4 sm:$0xff]  }
 0x2b5   : > { %10827 = vmatpush2.bf16.msra.mxu0 %v15262_v12  ;;  %v15358_v12 = vld [vmem:[%s17076_s8 + $0x29e0] ss:$16 sps:$4 sm:$0xff]  }
 0x2b6   : > { %10870 = vmatpush2.bf16.msra.mxu1 %v15265_v13  ;;  %10828 = vmatprep.subr.bf16.mxu0 %v15270_v14  ;;  %v15361_v13 = vld [vmem:[%s17076_s8 + $0x2be0] ss:$16 sps:$4 sm:$0xff]   ;;  %v15366_v14 = vld [vmem:[%s17076_s8 + $0x29c4] ss:$16 sps:$4 sm:$0xff]  }
 0x2b7   : > { %10871 = vmatprep.subr.bf16.mxu1 %v15273_v15  ;;  %v15369_v15 = vld [vmem:[%s17076_s8 + $0x2bc4] ss:$16 sps:$4 sm:$0xff]  }
 0x2b9   : > { %10829 = vmatpush2.bf16.msra.mxu0 %v15268_v16  ;;  %v15364_v16 = vld [vmem:[%s17076_s8 + $0x29c0] ss:$16 sps:$4 sm:$0xff]  }
 0x2ba   : > { %10872 = vmatpush2.bf16.msra.mxu1 %v15271_v17  ;;  %10830 = vmatprep.subr.bf16.mxu0 %v15276_v18  ;;  %v15367_v17 = vld [vmem:[%s17076_s8 + $0x2bc0] ss:$16 sps:$4 sm:$0xff]   ;;  %v15372_v18 = vld [vmem:[%s17076_s8 + $0x29a4] ss:$16 sps:$4 sm:$0xff]  }
 0x2bb   : > { %10873 = vmatprep.subr.bf16.mxu1 %v15279_v19  ;;  %v15375_v19 = vld [vmem:[%s17076_s8 + $0x2ba4] ss:$16 sps:$4 sm:$0xff]  }
 0x2bd   : > { %10831 = vmatpush2.bf16.msra.mxu0 %v15274_v20  ;;  %v15370_v20 = vld [vmem:[%s17076_s8 + $0x29a0] ss:$16 sps:$4 sm:$0xff]  }
 0x2be   : > { %10874 = vmatpush2.bf16.msra.mxu1 %v15277_v21  ;;  %10832 = vmatprep.subr.bf16.mxu0 %v15282_v22  ;;  %v15373_v21 = vld [vmem:[%s17076_s8 + $0x2ba0] ss:$16 sps:$4 sm:$0xff]   ;;  %v15378_v22 = vld [vmem:[%s17076_s8 + $0x2984] ss:$16 sps:$4 sm:$0xff]  }
 0x2bf   : > { %10875 = vmatprep.subr.bf16.mxu1 %v15285_v23  ;;  %v15381_v23 = vld [vmem:[%s17076_s8 + $0x2b84] ss:$16 sps:$4 sm:$0xff]  }
 0x2c1   : > { %10833 = vmatpush2.bf16.msra.mxu0 %v15280_v24  ;;  %v15376_v24 = vld [vmem:[%s17076_s8 + $0x2980] ss:$16 sps:$4 sm:$0xff]  }
 0x2c2   : > { %10876 = vmatpush2.bf16.msra.mxu1 %v15283_v25  ;;  %10834 = vmatprep.subr.bf16.mxu0 %v15288_v26  ;;  %v15379_v25 = vld [vmem:[%s17076_s8 + $0x2b80] ss:$16 sps:$4 sm:$0xff]   ;;  %v15384_v26 = vld [vmem:[%s17076_s8 + $0x2964] ss:$16 sps:$4 sm:$0xff]  }
 0x2c3   : > { %10877 = vmatprep.subr.bf16.mxu1 %v15291_v27  ;;  %v15387_v27 = vld [vmem:[%s17076_s8 + $0x2b64] ss:$16 sps:$4 sm:$0xff]  }
 0x2c5   : > { %10835 = vmatpush2.bf16.msra.mxu0 %v15286_v28  ;;  %v15382_v28 = vld [vmem:[%s17076_s8 + $0x2960] ss:$16 sps:$4 sm:$0xff]  }
 0x2c6   : > { %10878 = vmatpush2.bf16.msra.mxu1 %v15289_v29  ;;  %10836 = vmatprep.subr.bf16.mxu0 %v15294_v30  ;;  %v15385_v29 = vld [vmem:[%s17076_s8 + $0x2b60] ss:$16 sps:$4 sm:$0xff]   ;;  %v15390_v30 = vld [vmem:[%s17076_s8 + $0x2944] ss:$16 sps:$4 sm:$0xff]  }
 0x2c7   : > { %10879 = vmatprep.subr.bf16.mxu1 %v15297_v31  ;;  %v15393_v31 = vld [vmem:[%s17076_s8 + $0x2b44] ss:$16 sps:$4 sm:$0xff]  }
 0x2c9   : > { %10837 = vmatpush2.bf16.msra.mxu0 %v15292_v32  ;;  %v15388_v32 = vld [vmem:[%s17076_s8 + $0x2940] ss:$16 sps:$4 sm:$0xff]  }
 0x2ca   : > { %10880 = vmatpush2.bf16.msra.mxu1 %v15295_v33  ;;  %10838 = vmatprep.subr.bf16.mxu0 %v15300_v34  ;;  %v15391_v33 = vld [vmem:[%s17076_s8 + $0x2b40] ss:$16 sps:$4 sm:$0xff]   ;;  %v15396_v34 = vld [vmem:[%s17076_s8 + $0x2924] ss:$16 sps:$4 sm:$0xff]  }
 0x2cb   : > { %10881 = vmatprep.subr.bf16.mxu1 %v15303_v35  ;;  %v15399_v35 = vld [vmem:[%s17076_s8 + $0x2b24] ss:$16 sps:$4 sm:$0xff]  }
 0x2cd   : > { %10839 = vmatpush2.bf16.msra.mxu0 %v15298_v36  ;;  %v15394_v36 = vld [vmem:[%s17076_s8 + $0x2920] ss:$16 sps:$4 sm:$0xff]  }
 0x2ce   : > { %10882 = vmatpush2.bf16.msra.mxu1 %v15301_v37  ;;  %10894 = vmatprep.subr.bf16.mxu0 %v15312_v40  ;;  %v15397_v37 = vld [vmem:[%s17076_s8 + $0x2b20] ss:$16 sps:$4 sm:$0xff]  }
 0x2cf   : > { %10937 = vmatprep.subr.bf16.mxu1 %v15315_v41  ;;  %v15400_v40 = vld [vmem:[%s17076_s8 + $0x2900] ss:$16 sps:$4 sm:$0xff]  }
 0x2d0   : > { %10841 = vmatmul.mubr.bf16.vlgmr.msra.gmra.mxu0 %v15304_v38  ;;  %v15402_v38 = vld [vmem:[%s17076_s8 + $0x2904] ss:$16 sps:$4 sm:$0xff]   ;;  %v15403_v41 = vld [vmem:[%s17076_s8 + $0x2b00] ss:$16 sps:$4 sm:$0xff]  }
 0x2d1   : > { %10884 = vmatmul.mubr.bf16.vlgmr.msra.gmra.mxu1 %v15307_v39  ;;  %10895 = vmatpush1.bf16.msra.mxu0 %v15310_v42  ;;  %v15405_v39 = vld [vmem:[%s17076_s8 + $0x2b04] ss:$16 sps:$4 sm:$0xff]  }
 0x2d2   : > { %10938 = vmatpush1.bf16.msra.mxu1 %v15313_v43  ;;  %10896 = vmatprep.subr.bf16.mxu0 %v15318_v44  ;;  %v15406_v42 = vld [vmem:[%s19529_s0 + $0xa0] ss:$196 sps:$4 sm:$0xff]   ;;  %v15409_v43 = vld [vmem:[%s19529_s0 + $0xa8] ss:$196 sps:$4 sm:$0xff]  }
 0x2d3   : > { %10939 = vmatprep.subr.bf16.mxu1 %v15321_v45  ;;  %10926 = vmatprep.mubr.bf16.mxu0 %v15408_v48  ;;  %v15414_v44 = vld [vmem:[%s17076_s8 + $0x2ce4] ss:$16 sps:$4 sm:$0xff]  }
 0x2d4   : > { %10969 = vmatprep.mubr.bf16.mxu1 %v15411_v49  ;;  %v15417_v45 = vld [vmem:[%s17076_s8 + $0x2ee4] ss:$16 sps:$4 sm:$0xff]  }
 0x2d5   : > { %10897 = vmatpush1.bf16.msra.mxu0 %v15316_v46  ;;  %v15412_v46 = vld [vmem:[%s17076_s8 + $0x2ce0] ss:$16 sps:$4 sm:$0xff]   ;;  %v15420_v48 = vld [vmem:[%s17076_s8 + $0x2cc4] ss:$16 sps:$4 sm:$0xff]  }
 0x2d6   : > { %10940 = vmatpush1.bf16.msra.mxu1 %v15319_v47  ;;  %10898 = vmatprep.subr.bf16.mxu0 %v15324_v50  ;;  %v15415_v47 = vld [vmem:[%s17076_s8 + $0x2ee0] ss:$16 sps:$4 sm:$0xff]   ;;  %v15423_v49 = vld [vmem:[%s17076_s8 + $0x2ec4] ss:$16 sps:$4 sm:$0xff]  }
 0x2d7   : > { %10941 = vmatprep.subr.bf16.mxu1 %v15327_v51  ;;  %v15418_v50 = vld [vmem:[%s17076_s8 + $0x2cc0] ss:$16 sps:$4 sm:$0xff]  }
 0x2d8   : > { %v15421_v51 = vld [vmem:[%s17076_s8 + $0x2ec0] ss:$16 sps:$4 sm:$0xff]  }
 0x2d9   : > { %10899 = vmatpush1.bf16.msra.mxu0 %v15322_v52  ;;  %v15510_v52 = vld [vmem:[%s19529_s0 + $0xb4] ss:$196 sps:$4 sm:$0xff]  }
 0x2da   : > { %10942 = vmatpush1.bf16.msra.mxu1 %v15325_v53  ;;  %10900 = vmatprep.subr.bf16.mxu0 %v15330_v54  ;;  %v15513_v53 = vld [vmem:[%s19529_s0 + $0xbc] ss:$196 sps:$4 sm:$0xff]   ;;  %v15426_v54 = vld [vmem:[%s17076_s8 + $0x2ca4] ss:$16 sps:$4 sm:$0xff]  }
 0x2db   : > { %10943 = vmatprep.subr.bf16.mxu1 %v15333_v55  ;;  %v15429_v55 = vld [vmem:[%s17076_s8 + $0x2ea4] ss:$16 sps:$4 sm:$0xff]  }
 0x2dd   : > { %10901 = vmatpush1.bf16.msra.mxu0 %v15328_v56  ;;  %v15424_v56 = vld [vmem:[%s17076_s8 + $0x2ca0] ss:$16 sps:$4 sm:$0xff]  }
 0x2de   : > { %10944 = vmatpush1.bf16.msra.mxu1 %v15331_v57  ;;  %10902 = vmatprep.subr.bf16.mxu0 %v15336_v58  ;;  %v15427_v57 = vld [vmem:[%s17076_s8 + $0x2ea0] ss:$16 sps:$4 sm:$0xff]   ;;  %v15432_v58 = vld [vmem:[%s17076_s8 + $0x2c84] ss:$16 sps:$4 sm:$0xff]  }
 0x2df   : > { %10945 = vmatprep.subr.bf16.mxu1 %v15339_v59  ;;  %v15435_v59 = vld [vmem:[%s17076_s8 + $0x2e84] ss:$16 sps:$4 sm:$0xff]  }
 0x2e1   : > { %10903 = vmatpush1.bf16.msra.mxu0 %v15334_v60  ;;  %v15430_v60 = vld [vmem:[%s17076_s8 + $0x2c80] ss:$16 sps:$4 sm:$0xff]  }
 0x2e2   : > { %10946 = vmatpush1.bf16.msra.mxu1 %v15337_v61  ;;  %10904 = vmatprep.subr.bf16.mxu0 %v15342_v62  ;;  %v15433_v61 = vld [vmem:[%s17076_s8 + $0x2e80] ss:$16 sps:$4 sm:$0xff]   ;;  %v15438_v62 = vld [vmem:[%s17076_s8 + $0x2c64] ss:$16 sps:$4 sm:$0xff]  }
 0x2e3   : > { %10947 = vmatprep.subr.bf16.mxu1 %v15345_v63  ;;  %v15441_v63 = vld [vmem:[%s17076_s8 + $0x2e64] ss:$16 sps:$4 sm:$0xff]  }
 0x2e5   : > { %10905 = vmatpush1.bf16.msra.mxu0 %v15340_v0  ;;  %v15436_v0 = vld [vmem:[%s17076_s8 + $0x2c60] ss:$16 sps:$4 sm:$0xff]  }
 0x2e6   : > { %10948 = vmatpush1.bf16.msra.mxu1 %v15343_v1  ;;  %10906 = vmatprep.subr.bf16.mxu0 %v15348_v2  ;;  %v15439_v1 = vld [vmem:[%s17076_s8 + $0x2e60] ss:$16 sps:$4 sm:$0xff]   ;;  %v15444_v2 = vld [vmem:[%s17076_s8 + $0x2c44] ss:$16 sps:$4 sm:$0xff]  }
 0x2e7   : > { %10949 = vmatprep.subr.bf16.mxu1 %v15351_v3  ;;  %v15447_v3 = vld [vmem:[%s17076_s8 + $0x2e44] ss:$16 sps:$4 sm:$0xff]  }
 0x2e9   : > { %10907 = vmatpush1.bf16.msra.mxu0 %v15346_v4  ;;  %v15442_v4 = vld [vmem:[%s17076_s8 + $0x2c40] ss:$16 sps:$4 sm:$0xff]  }
 0x2ea   : > { %10950 = vmatpush1.bf16.msra.mxu1 %v15349_v5  ;;  %10908 = vmatprep.subr.bf16.mxu0 %v15354_v6  ;;  %v15445_v5 = vld [vmem:[%s17076_s8 + $0x2e40] ss:$16 sps:$4 sm:$0xff]   ;;  %v15450_v6 = vld [vmem:[%s17076_s8 + $0x2c24] ss:$16 sps:$4 sm:$0xff]  }
 0x2eb   : > { %10951 = vmatprep.subr.bf16.mxu1 %v15357_v7  ;;  %v15453_v7 = vld [vmem:[%s17076_s8 + $0x2e24] ss:$16 sps:$4 sm:$0xff]  }
 0x2ed   : > { %10909 = vmatpush1.bf16.msra.mxu0 %v15352_v8  ;;  %v15448_v8 = vld [vmem:[%s17076_s8 + $0x2c20] ss:$16 sps:$4 sm:$0xff]  }
 0x2ee   : > { %10952 = vmatpush1.bf16.msra.mxu1 %v15355_v9  ;;  %10910 = vmatprep.subr.bf16.mxu0 %v15360_v10  ;;  %v15451_v9 = vld [vmem:[%s17076_s8 + $0x2e20] ss:$16 sps:$4 sm:$0xff]   ;;  %v15456_v10 = vld [vmem:[%s17076_s8 + $0x2c04] ss:$16 sps:$4 sm:$0xff]  }
 0x2ef   : > { %10953 = vmatprep.subr.bf16.mxu1 %v15363_v11  ;;  %v15459_v11 = vld [vmem:[%s17076_s8 + $0x2e04] ss:$16 sps:$4 sm:$0xff]  }
 0x2f1   : > { %10911 = vmatpush2.bf16.msra.mxu0 %v15358_v12  ;;  %v15454_v12 = vld [vmem:[%s17076_s8 + $0x2c00] ss:$16 sps:$4 sm:$0xff]  }
 0x2f2   : > { %10954 = vmatpush2.bf16.msra.mxu1 %v15361_v13  ;;  %10912 = vmatprep.subr.bf16.mxu0 %v15366_v14  ;;  %v15457_v13 = vld [vmem:[%s17076_s8 + $0x2e00] ss:$16 sps:$4 sm:$0xff]   ;;  %v15462_v14 = vld [vmem:[%s17076_s8 + $0x2de4] ss:$16 sps:$4 sm:$0xff]  }
 0x2f3   : > { %10955 = vmatprep.subr.bf16.mxu1 %v15369_v15  ;;  %v15465_v15 = vld [vmem:[%s17076_s8 + $0x2fe4] ss:$16 sps:$4 sm:$0xff]  }
 0x2f5   : > { %10913 = vmatpush2.bf16.msra.mxu0 %v15364_v16  ;;  %v15460_v16 = vld [vmem:[%s17076_s8 + $0x2de0] ss:$16 sps:$4 sm:$0xff]  }
 0x2f6   : > { %10956 = vmatpush2.bf16.msra.mxu1 %v15367_v17  ;;  %10914 = vmatprep.subr.bf16.mxu0 %v15372_v18  ;;  %v15463_v17 = vld [vmem:[%s17076_s8 + $0x2fe0] ss:$16 sps:$4 sm:$0xff]   ;;  %v15468_v18 = vld [vmem:[%s17076_s8 + $0x2dc4] ss:$16 sps:$4 sm:$0xff]  }
 0x2f7   : > { %10957 = vmatprep.subr.bf16.mxu1 %v15375_v19  ;;  %v15471_v19 = vld [vmem:[%s17076_s8 + $0x2fc4] ss:$16 sps:$4 sm:$0xff]  }
 0x2f9   : > { %10915 = vmatpush2.bf16.msra.mxu0 %v15370_v20  ;;  %v15466_v20 = vld [vmem:[%s17076_s8 + $0x2dc0] ss:$16 sps:$4 sm:$0xff]  }
 0x2fa   : > { %10958 = vmatpush2.bf16.msra.mxu1 %v15373_v21  ;;  %10916 = vmatprep.subr.bf16.mxu0 %v15378_v22  ;;  %v15469_v21 = vld [vmem:[%s17076_s8 + $0x2fc0] ss:$16 sps:$4 sm:$0xff]   ;;  %v15474_v22 = vld [vmem:[%s17076_s8 + $0x2da4] ss:$16 sps:$4 sm:$0xff]  }
 0x2fb   : > { %10959 = vmatprep.subr.bf16.mxu1 %v15381_v23  ;;  %v15477_v23 = vld [vmem:[%s17076_s8 + $0x2fa4] ss:$16 sps:$4 sm:$0xff]  }
 0x2fd   : > { %10917 = vmatpush2.bf16.msra.mxu0 %v15376_v24  ;;  %v15472_v24 = vld [vmem:[%s17076_s8 + $0x2da0] ss:$16 sps:$4 sm:$0xff]  }
 0x2fe   : > { %10960 = vmatpush2.bf16.msra.mxu1 %v15379_v25  ;;  %10918 = vmatprep.subr.bf16.mxu0 %v15384_v26  ;;  %v15475_v25 = vld [vmem:[%s17076_s8 + $0x2fa0] ss:$16 sps:$4 sm:$0xff]   ;;  %v15480_v26 = vld [vmem:[%s17076_s8 + $0x2d84] ss:$16 sps:$4 sm:$0xff]  }
 0x2ff   : > { %10961 = vmatprep.subr.bf16.mxu1 %v15387_v27  ;;  %v15483_v27 = vld [vmem:[%s17076_s8 + $0x2f84] ss:$16 sps:$4 sm:$0xff]  }
 0x301   : > { %10919 = vmatpush2.bf16.msra.mxu0 %v15382_v28  ;;  %v15478_v28 = vld [vmem:[%s17076_s8 + $0x2d80] ss:$16 sps:$4 sm:$0xff]  }
 0x302   : > { %10962 = vmatpush2.bf16.msra.mxu1 %v15385_v29  ;;  %10920 = vmatprep.subr.bf16.mxu0 %v15390_v30  ;;  %v15481_v29 = vld [vmem:[%s17076_s8 + $0x2f80] ss:$16 sps:$4 sm:$0xff]   ;;  %v15486_v30 = vld [vmem:[%s17076_s8 + $0x2d64] ss:$16 sps:$4 sm:$0xff]  }
 0x303   : > { %10963 = vmatprep.subr.bf16.mxu1 %v15393_v31  ;;  %v15489_v31 = vld [vmem:[%s17076_s8 + $0x2f64] ss:$16 sps:$4 sm:$0xff]  }
 0x305   : > { %10921 = vmatpush2.bf16.msra.mxu0 %v15388_v32  ;;  %v15484_v32 = vld [vmem:[%s17076_s8 + $0x2d60] ss:$16 sps:$4 sm:$0xff]  }
 0x306   : > { %10964 = vmatpush2.bf16.msra.mxu1 %v15391_v33  ;;  %10922 = vmatprep.subr.bf16.mxu0 %v15396_v34  ;;  %v15487_v33 = vld [vmem:[%s17076_s8 + $0x2f60] ss:$16 sps:$4 sm:$0xff]   ;;  %v15492_v34 = vld [vmem:[%s17076_s8 + $0x2d44] ss:$16 sps:$4 sm:$0xff]  }
 0x307   : > { %10965 = vmatprep.subr.bf16.mxu1 %v15399_v35  ;;  %v15495_v35 = vld [vmem:[%s17076_s8 + $0x2f44] ss:$16 sps:$4 sm:$0xff]  }
 0x309   : > { %10923 = vmatpush2.bf16.msra.mxu0 %v15394_v36  ;;  %v15490_v36 = vld [vmem:[%s17076_s8 + $0x2d40] ss:$16 sps:$4 sm:$0xff]  }
 0x30a   : > { %10966 = vmatpush2.bf16.msra.mxu1 %v15397_v37  ;;  %10924 = vmatprep.subr.bf16.mxu0 %v15402_v38  ;;  %v15493_v37 = vld [vmem:[%s17076_s8 + $0x2f40] ss:$16 sps:$4 sm:$0xff]   ;;  %v15498_v38 = vld [vmem:[%s17076_s8 + $0x2d24] ss:$16 sps:$4 sm:$0xff]  }
 0x30b   : > { %10967 = vmatprep.subr.bf16.mxu1 %v15405_v39  ;;  %v15501_v39 = vld [vmem:[%s17076_s8 + $0x2f24] ss:$16 sps:$4 sm:$0xff]  }
 0x30d   : > { %10925 = vmatpush2.bf16.msra.mxu0 %v15400_v40  ;;  %v15496_v40 = vld [vmem:[%s17076_s8 + $0x2d20] ss:$16 sps:$4 sm:$0xff]  }
 0x30e   : > { %10968 = vmatpush2.bf16.msra.mxu1 %v15403_v41  ;;  %10980 = vmatprep.subr.bf16.mxu0 %v15414_v44  ;;  %v15499_v41 = vld [vmem:[%s17076_s8 + $0x2f20] ss:$16 sps:$4 sm:$0xff]  }
 0x30f   : > { %11023 = vmatprep.subr.bf16.mxu1 %v15417_v45  ;;  %v15502_v44 = vld [vmem:[%s17076_s8 + $0x2d00] ss:$16 sps:$4 sm:$0xff]  }
 0x310   : > { %10927 = vmatmul.mubr.bf16.vlgmr.msra.gmra.mxu0 %v15406_v42  ;;  %v15504_v42 = vld [vmem:[%s17076_s8 + $0x2d04] ss:$16 sps:$4 sm:$0xff]   ;;  %v15505_v45 = vld [vmem:[%s17076_s8 + $0x2f00] ss:$16 sps:$4 sm:$0xff]  }
 0x311   : > { %10970 = vmatmul.mubr.bf16.vlgmr.msra.gmra.mxu1 %v15409_v43  ;;  %10981 = vmatpush1.bf16.msra.mxu0 %v15412_v46  ;;  %v15507_v43 = vld [vmem:[%s17076_s8 + $0x2f04] ss:$16 sps:$4 sm:$0xff]  }
 0x312   : > { %11024 = vmatpush1.bf16.msra.mxu1 %v15415_v47  ;;  %10982 = vmatprep.subr.bf16.mxu0 %v15420_v48  ;;  %v15508_v46 = vld [vmem:[%s19529_s0 + $0xb0] ss:$196 sps:$4 sm:$0xff]   ;;  %v15511_v47 = vld [vmem:[%s19529_s0 + $0xb8] ss:$196 sps:$4 sm:$0xff]  }
 0x313   : > { %11025 = vmatprep.subr.bf16.mxu1 %v15423_v49  ;;  %11012 = vmatprep.mubr.bf16.mxu0 %v15510_v52  ;;  %v15516_v48 = vld [vmem:[%s17076_s8 + $0x30e4] ss:$16 sps:$4 sm:$0xff]   ;;  %v15519_v49 = vld [vmem:[%s17076_s8 + $0xec] ss:$16 sps:$4 sm:$0xff]  }
 0x314   : > { %11055 = vmatprep.mubr.bf16.mxu1 %v15513_v53  ;;  %v15522_v52 = vld [vmem:[%s17076_s8 + $0x30c4] ss:$16 sps:$4 sm:$0xff]   ;;  %v15525_v53 = vld [vmem:[%s17076_s8 + $0xcc] ss:$16 sps:$4 sm:$0xff]  }
 0x315   : > { %10983 = vmatpush1.bf16.msra.mxu0 %v15418_v50  ;;  %v15514_v50 = vld [vmem:[%s17076_s8 + $0x30e0] ss:$16 sps:$4 sm:$0xff]  }
 0x316   : > { %11026 = vmatpush1.bf16.msra.mxu1 %v15421_v51  ;;  %10984 = vmatprep.subr.bf16.mxu0 %v15426_v54  ;;  %v15517_v51 = vld [vmem:[%s17076_s8 + $0xe8] ss:$16 sps:$4 sm:$0xff]   ;;  %v15520_v54 = vld [vmem:[%s17076_s8 + $0x30c0] ss:$16 sps:$4 sm:$0xff]  }
 0x317   : > { %11027 = vmatprep.subr.bf16.mxu1 %v15429_v55  ;;  %v15523_v55 = vld [vmem:[%s17076_s8 + $0xc8] ss:$16 sps:$4 sm:$0xff]  }
 0x319   : > { %10985 = vmatpush1.bf16.msra.mxu0 %v15424_v56  ;;  %v15528_v56 = vld [vmem:[%s17076_s8 + $0x30a4] ss:$16 sps:$4 sm:$0xff]  }
 0x31a   : > { %11028 = vmatpush1.bf16.msra.mxu1 %v15427_v57  ;;  %10986 = vmatprep.subr.bf16.mxu0 %v15432_v58  ;;  %v15531_v57 = vld [vmem:[%s17076_s8 + $0xac] ss:$16 sps:$4 sm:$0xff]   ;;  %v15526_v58 = vld [vmem:[%s17076_s8 + $0x30a0] ss:$16 sps:$4 sm:$0xff]  }
 0x31b   : > { %11029 = vmatprep.subr.bf16.mxu1 %v15435_v59  ;;  %v15529_v59 = vld [vmem:[%s17076_s8 + $0xa8] ss:$16 sps:$4 sm:$0xff]  }
 0x31d   : > { %10987 = vmatpush1.bf16.msra.mxu0 %v15430_v60  ;;  %v19535_v60 = vmov 0  }
 0x31e   : > { %11030 = vmatpush1.bf16.msra.mxu1 %v15433_v61  ;;  %10988 = vmatprep.subr.bf16.mxu0 %v15438_v62  ;;  %v16723_v61 = vld [vmem:[%s19529_s0 + $0x4] ss:$196 sps:$4 sm:$0xff]  }
 0x31f   : > { %11031 = vmatprep.subr.bf16.mxu1 %v15441_v63  ;;  %v15534_v62 = vld [vmem:[%s17076_s8 + $0x3084] ss:$16 sps:$4 sm:$0xff]   ;;  %v15537_v63 = vld [vmem:[%s17076_s8 + $0x8c] ss:$16 sps:$4 sm:$0xff]  }
 0x321   : > { %10989 = vmatpush1.bf16.msra.mxu0 %v15436_v0  ;;  %v15532_v0 = vld [vmem:[%s17076_s8 + $0x3080] ss:$16 sps:$4 sm:$0xff]  }
 0x322   : > { %11032 = vmatpush1.bf16.msra.mxu1 %v15439_v1  ;;  %10990 = vmatprep.subr.bf16.mxu0 %v15444_v2  ;;  %v15535_v1 = vld [vmem:[%s17076_s8 + $0x88] ss:$16 sps:$4 sm:$0xff]   ;;  %v15540_v2 = vld [vmem:[%s17076_s8 + $0x3064] ss:$16 sps:$4 sm:$0xff]  }
 0x323   : > { %11033 = vmatprep.subr.bf16.mxu1 %v15447_v3  ;;  %v15543_v3 = vld [vmem:[%s17076_s8 + $0x6c] ss:$16 sps:$4 sm:$0xff]  }
 0x325   : > { %10991 = vmatpush1.bf16.msra.mxu0 %v15442_v4  ;;  %v15538_v4 = vld [vmem:[%s17076_s8 + $0x3060] ss:$16 sps:$4 sm:$0xff]  }
 0x326   : > { %11034 = vmatpush1.bf16.msra.mxu1 %v15445_v5  ;;  %10992 = vmatprep.subr.bf16.mxu0 %v15450_v6  ;;  %v15541_v5 = vld [vmem:[%s17076_s8 + $0x68] ss:$16 sps:$4 sm:$0xff]   ;;  %v15546_v6 = vld [vmem:[%s17076_s8 + $0x3044] ss:$16 sps:$4 sm:$0xff]  }
 0x327   : > { %11035 = vmatprep.subr.bf16.mxu1 %v15453_v7  ;;  %v15549_v7 = vld [vmem:[%s17076_s8 + $0x4c] ss:$16 sps:$4 sm:$0xff]  }
 0x329   : > { %10993 = vmatpush1.bf16.msra.mxu0 %v15448_v8  ;;  %v15544_v8 = vld [vmem:[%s17076_s8 + $0x3040] ss:$16 sps:$4 sm:$0xff]  }
 0x32a   : > { %11036 = vmatpush1.bf16.msra.mxu1 %v15451_v9  ;;  %10994 = vmatprep.subr.bf16.mxu0 %v15456_v10  ;;  %v15547_v9 = vld [vmem:[%s17076_s8 + $0x48] ss:$16 sps:$4 sm:$0xff]   ;;  %v15552_v10 = vld [vmem:[%s17076_s8 + $0x3024] ss:$16 sps:$4 sm:$0xff]  }
 0x32b   : > { %11037 = vmatprep.subr.bf16.mxu1 %v15459_v11  ;;  %v15555_v11 = vld [vmem:[%s17076_s8 + $0x2c] ss:$16 sps:$4 sm:$0xff]  }
 0x32d   : > { %10995 = vmatpush1.bf16.msra.mxu0 %v15454_v12  ;;  %v15550_v12 = vld [vmem:[%s17076_s8 + $0x3020] ss:$16 sps:$4 sm:$0xff]  }
 0x32e   : > { %11038 = vmatpush1.bf16.msra.mxu1 %v15457_v13  ;;  %10996 = vmatprep.subr.bf16.mxu0 %v15462_v14  ;;  %v15553_v13 = vld [vmem:[%s17076_s8 + $0x28] ss:$16 sps:$4 sm:$0xff]   ;;  %v15558_v14 = vld [vmem:[%s17076_s8 + $0x3004] ss:$16 sps:$4 sm:$0xff]  }
 0x32f   : > { %11039 = vmatprep.subr.bf16.mxu1 %v15465_v15  ;;  %v15561_v15 = vld [vmem:[%s17076_s8 + $0xc] ss:$16 sps:$4 sm:$0xff]  }
 0x331   : > { %10997 = vmatpush2.bf16.msra.mxu0 %v15460_v16  ;;  %v15556_v16 = vld [vmem:[%s17076_s8 + $0x3000] ss:$16 sps:$4 sm:$0xff]  }
 0x332   : > { %11040 = vmatpush2.bf16.msra.mxu1 %v15463_v17  ;;  %10998 = vmatprep.subr.bf16.mxu0 %v15468_v18  ;;  %v15559_v17 = vld [vmem:[%s17076_s8 + $0x8] ss:$16 sps:$4 sm:$0xff]   ;;  %v15562_v18 = vld [vmem:[%s19529_s0 + $0xc0] ss:$196 sps:$4 sm:$0xff]  }
 0x333   : > { %11041 = vmatprep.subr.bf16.mxu1 %v15471_v19  ;;  %v15565_v19 = vld [vmem:[%s17076_s8 + $0x1ec] ss:$16 sps:$4 sm:$0xff]  }
 0x335   : > { %10999 = vmatpush2.bf16.msra.mxu0 %v15466_v20  ;;  %v15568_v20 = vld [vmem:[%s17076_s8 + $0x2ec] ss:$16 sps:$4 sm:$0xff]  }
 0x336   : > { %11042 = vmatpush2.bf16.msra.mxu1 %v15469_v21  ;;  %11000 = vmatprep.subr.bf16.mxu0 %v15474_v22  ;;  %v15563_v21 = vld [vmem:[%s17076_s8 + $0x1e8] ss:$16 sps:$4 sm:$0xff]  }
 0x337   : > { %11043 = vmatprep.subr.bf16.mxu1 %v15477_v23  ;;  %v15566_v22 = vld [vmem:[%s17076_s8 + $0x2e8] ss:$16 sps:$4 sm:$0xff]   ;;  %v15571_v23 = vld [vmem:[%s17076_s8 + $0x1cc] ss:$16 sps:$4 sm:$0xff]  }
 0x339   : > { %11001 = vmatpush2.bf16.msra.mxu0 %v15472_v24  ;;  %v15574_v24 = vld [vmem:[%s17076_s8 + $0x2cc] ss:$16 sps:$4 sm:$0xff]  }
 0x33a   : > { %11044 = vmatpush2.bf16.msra.mxu1 %v15475_v25  ;;  %11002 = vmatprep.subr.bf16.mxu0 %v15480_v26  ;;  %v15569_v25 = vld [vmem:[%s17076_s8 + $0x1c8] ss:$16 sps:$4 sm:$0xff]  }
 0x33b   : > { %11045 = vmatprep.subr.bf16.mxu1 %v15483_v27  ;;  %v15572_v26 = vld [vmem:[%s17076_s8 + $0x2c8] ss:$16 sps:$4 sm:$0xff]   ;;  %v15577_v27 = vld [vmem:[%s17076_s8 + $0x1ac] ss:$16 sps:$4 sm:$0xff]  }
 0x33d   : > { %11003 = vmatpush2.bf16.msra.mxu0 %v15478_v28  ;;  %v15580_v28 = vld [vmem:[%s17076_s8 + $0x2ac] ss:$16 sps:$4 sm:$0xff]  }
 0x33e   : > { %11046 = vmatpush2.bf16.msra.mxu1 %v15481_v29  ;;  %11004 = vmatprep.subr.bf16.mxu0 %v15486_v30  ;;  %v16724_v29 = vld [vmem:[%s19529_s0 + $0xc] ss:$196 sps:$4 sm:$0xff]   ;;  %v15575_v30 = vld [vmem:[%s17076_s8 + $0x1a8] ss:$16 sps:$4 sm:$0xff]  }
 0x33f   : > { %11047 = vmatprep.subr.bf16.mxu1 %v15489_v31  ;;  %v15578_v31 = vld [vmem:[%s17076_s8 + $0x2a8] ss:$16 sps:$4 sm:$0xff]  }
 0x341   : > { %11005 = vmatpush2.bf16.msra.mxu0 %v15484_v32  ;;  %v15583_v32 = vld [vmem:[%s17076_s8 + $0x18c] ss:$16 sps:$4 sm:$0xff]  }
 0x342   : > { %11048 = vmatpush2.bf16.msra.mxu1 %v15487_v33  ;;  %11006 = vmatprep.subr.bf16.mxu0 %v15492_v34  ;;  %v15586_v33 = vld [vmem:[%s17076_s8 + $0x28c] ss:$16 sps:$4 sm:$0xff]   ;;  %v15581_v34 = vld [vmem:[%s17076_s8 + $0x188] ss:$16 sps:$4 sm:$0xff]  }
 0x343   : > { %11049 = vmatprep.subr.bf16.mxu1 %v15495_v35  ;;  %v15584_v35 = vld [vmem:[%s17076_s8 + $0x288] ss:$16 sps:$4 sm:$0xff]  }
 0x345   : > { %11007 = vmatpush2.bf16.msra.mxu0 %v15490_v36  ;;  %v15589_v36 = vld [vmem:[%s17076_s8 + $0x16c] ss:$16 sps:$4 sm:$0xff]  }
 0x346   : > { %11050 = vmatpush2.bf16.msra.mxu1 %v15493_v37  ;;  %11008 = vmatprep.subr.bf16.mxu0 %v15498_v38  ;;  %v15592_v37 = vld [vmem:[%s17076_s8 + $0x26c] ss:$16 sps:$4 sm:$0xff]   ;;  %v15587_v38 = vld [vmem:[%s17076_s8 + $0x168] ss:$16 sps:$4 sm:$0xff]  }
 0x347   : > { %11051 = vmatprep.subr.bf16.mxu1 %v15501_v39  ;;  %v15590_v39 = vld [vmem:[%s17076_s8 + $0x268] ss:$16 sps:$4 sm:$0xff]  }
 0x349   : > { %11009 = vmatpush2.bf16.msra.mxu0 %v15496_v40  ;;  %v15595_v40 = vld [vmem:[%s17076_s8 + $0x14c] ss:$16 sps:$4 sm:$0xff]  }
 0x34a   : > { %11052 = vmatpush2.bf16.msra.mxu1 %v15499_v41  ;;  %11010 = vmatprep.subr.bf16.mxu0 %v15504_v42  ;;  %v15598_v41 = vld [vmem:[%s17076_s8 + $0x24c] ss:$16 sps:$4 sm:$0xff]   ;;  %v15593_v42 = vld [vmem:[%s17076_s8 + $0x148] ss:$16 sps:$4 sm:$0xff]  }
 0x34b   : > { %11053 = vmatprep.subr.bf16.mxu1 %v15507_v43  ;;  %v15596_v43 = vld [vmem:[%s17076_s8 + $0x248] ss:$16 sps:$4 sm:$0xff]  }
 0x34d   : > { %11011 = vmatpush2.bf16.msra.mxu0 %v15502_v44  ;;  %v15601_v44 = vld [vmem:[%s17076_s8 + $0x12c] ss:$16 sps:$4 sm:$0xff]  }
 0x34e   : > { %11054 = vmatpush2.bf16.msra.mxu1 %v15505_v45  ;;  %11066 = vmatprep.subr.bf16.mxu0 %v15516_v48  ;;  %v15604_v45 = vld [vmem:[%s17076_s8 + $0x22c] ss:$16 sps:$4 sm:$0xff]  }
 0x34f   : > { %11109 = vmatprep.subr.bf16.mxu1 %v15519_v49  ;;  %v15607_v48 = vld [vmem:[%s17076_s8 + $0x10c] ss:$16 sps:$4 sm:$0xff]  }
 0x350   : > { %11013 = vmatmul.mubr.bf16.vlgmr.msra.gmra.mxu0 %v15508_v46  ;;  %v15599_v46 = vld [vmem:[%s17076_s8 + $0x128] ss:$16 sps:$4 sm:$0xff]   ;;  %v15610_v49 = vld [vmem:[%s17076_s8 + $0x20c] ss:$16 sps:$4 sm:$0xff]  }
 0x351   : > { %11056 = vmatmul.mubr.bf16.vlgmr.msra.gmra.mxu1 %v15511_v47  ;;  %11067 = vmatpush1.bf16.msra.mxu0 %v15514_v50  ;;  %v15602_v47 = vld [vmem:[%s17076_s8 + $0x228] ss:$16 sps:$4 sm:$0xff]   ;;  %v18076_v50 = vpop.f32.mrf.mxu0 }
 0x352   : > { %11110 = vmatpush1.bf16.msra.mxu1 %v15517_v51  ;;  %11068 = vmatprep.subr.bf16.mxu0 %v15522_v52  ;;  %v15605_v51 = vld [vmem:[%s17076_s8 + $0x108] ss:$16 sps:$4 sm:$0xff]  }
 0x353   : > { %11111 = vmatprep.subr.bf16.mxu1 %v15525_v53  ;;  %11098 = vmatprep.mubr.bf16.mxu0 %v19535_v60  ;;  %v15608_v52 = vld [vmem:[%s17076_s8 + $0x208] ss:$16 sps:$4 sm:$0xff]   ;;  %v15613_v53 = vld [vmem:[%s17076_s8 + $0x3ec] ss:$16 sps:$4 sm:$0xff]  }
 0x354   : > { %11141 = vmatprep.mubr.bf16.mxu1 %v16723_v61  ;;  %v15622_v61 = vld [vmem:[%s17076_s8 + $0x4cc] ss:$16 sps:$4 sm:$0xff]  }
 0x355   : > { %11069 = vmatpush1.bf16.msra.mxu0 %v15520_v54  ;;  %v15616_v54 = vld [vmem:[%s17076_s8 + $0x4ec] ss:$16 sps:$4 sm:$0xff]  }
 0x356   : > { %11112 = vmatpush1.bf16.msra.mxu1 %v15523_v55  ;;  %11070 = vmatprep.subr.bf16.mxu0 %v15528_v56  ;;  %v15611_v55 = vld [vmem:[%s17076_s8 + $0x3e8] ss:$16 sps:$4 sm:$0xff]  }
 0x357   : > { %11113 = vmatprep.subr.bf16.mxu1 %v15531_v57  ;;  %v15614_v56 = vld [vmem:[%s17076_s8 + $0x4e8] ss:$16 sps:$4 sm:$0xff]   ;;  %v18084_v57 = vpop.f32.mrf.mxu0 }
 0x359   : > { %11071 = vmatpush1.bf16.msra.mxu0 %v15526_v58  ;;  %v18086_v58 = vpop.f32.mrf.mxu1 }
 0x35a   : > { %11114 = vmatpush1.bf16.msra.mxu1 %v15529_v59  ;;  %11072 = vmatprep.subr.bf16.mxu0 %v15534_v62  ;;  %v15619_v59 = vld [vmem:[%s17076_s8 + $0x3cc] ss:$16 sps:$4 sm:$0xff]   ;;  %v15617_v62 = vld [vmem:[%s17076_s8 + $0x3c8] ss:$16 sps:$4 sm:$0xff]  }
 0x35b   : > { %11115 = vmatprep.subr.bf16.mxu1 %v15537_v63  ;;  %v15620_v63 = vld [vmem:[%s17076_s8 + $0x4c8] ss:$16 sps:$4 sm:$0xff]  }
 0x35d   : > { %11073 = vmatpush1.bf16.msra.mxu0 %v15532_v0  ;;  %v18092_v0 = vpop.f32.mrf.mxu0 }
 0x35e   : > { %11116 = vmatpush1.bf16.msra.mxu1 %v15535_v1  ;;  %11074 = vmatprep.subr.bf16.mxu0 %v15540_v2  ;;  %v16725_v1 = vld [vmem:[%s19529_s0] ss:$196 sps:$4 sm:$0xff]   ;;  %v18097_v2 = vpop.f32.mrf.mxu1 }
 0x35f   : > { %11117 = vmatprep.subr.bf16.mxu1 %v15543_v3  ;;  %v15625_v3 = vld [vmem:[%s17076_s8 + $0x3ac] ss:$16 sps:$4 sm:$0xff]  }
 0x361   : > { %11075 = vmatpush1.bf16.msra.mxu0 %v15538_v4  ;;  %v15628_v4 = vld [vmem:[%s17076_s8 + $0x4ac] ss:$16 sps:$4 sm:$0xff]  }
 0x362   : > { %11118 = vmatpush1.bf16.msra.mxu1 %v15541_v5  ;;  %11076 = vmatprep.subr.bf16.mxu0 %v15546_v6  ;;  %v15623_v5 = vld [vmem:[%s17076_s8 + $0x3a8] ss:$16 sps:$4 sm:$0xff]  }
 0x363   : > { %11119 = vmatprep.subr.bf16.mxu1 %v15549_v7  ;;  %v15626_v6 = vld [vmem:[%s17076_s8 + $0x4a8] ss:$16 sps:$4 sm:$0xff]  }
 0x364   : > { %v16726_v7 = vld [vmem:[%s19529_s0 + $0x14] ss:$196 sps:$4 sm:$0xff]  }
 0x365   : > { %11077 = vmatpush1.bf16.msra.mxu0 %v15544_v8  ;;  %v18106_v8 = vpop.f32.mrf.mxu0 }
 0x366   : > { %11120 = vmatpush1.bf16.msra.mxu1 %v15547_v9  ;;  %11078 = vmatprep.subr.bf16.mxu0 %v15552_v10  ;;  %v18108_v9 = vpop.f32.mrf.mxu1 }
 0x367   : > { %11121 = vmatprep.subr.bf16.mxu1 %v15555_v11  ;;  %v18110_v10 = vpop.f32.mrf.mxu0  ;;  %v15631_v11 = vld [vmem:[%s17076_s8 + $0x38c] ss:$16 sps:$4 sm:$0xff]  }
 0x369   : > { %11079 = vmatpush1.bf16.msra.mxu0 %v15550_v12  ;;  %v15634_v12 = vld [vmem:[%s17076_s8 + $0x48c] ss:$16 sps:$4 sm:$0xff]  }
 0x36a   : > { %11122 = vmatpush1.bf16.msra.mxu1 %v15553_v13  ;;  %11080 = vmatprep.subr.bf16.mxu0 %v15558_v14  ;;  %v15629_v13 = vld [vmem:[%s17076_s8 + $0x388] ss:$16 sps:$4 sm:$0xff]  }
 0x36b   : > { %11123 = vmatprep.subr.bf16.mxu1 %v15561_v15  ;;  %v15632_v14 = vld [vmem:[%s17076_s8 + $0x488] ss:$16 sps:$4 sm:$0xff]   ;;  %v18116_v15 = vpop.f32.mrf.mxu1 }
 0x36d   : > { %11081 = vmatpush1.bf16.msra.mxu0 %v15556_v16  ;;  %v18118_v16 = vpop.f32.mrf.mxu0 }
 0x36e   : > { %11124 = vmatpush1.bf16.msra.mxu1 %v15559_v17  ;;  %11152 = vmatprep.subr.bf16.mxu0 %v15568_v20  ;;  %v15637_v17 = vld [vmem:[%s17076_s8 + $0x36c] ss:$16 sps:$4 sm:$0xff]   ;;  %v15635_v20 = vld [vmem:[%s17076_s8 + $0x368] ss:$16 sps:$4 sm:$0xff]  }
 0x36f   : > { %11125 = vmatprep.subr.bf16.mxu1 %v15565_v19  ;;  %v18122_v19 = vpop.f32.mrf.mxu1 }
 0x370   : > { %11099 = vmatmul.mubr.bf16.vlgmr.msra.gmra.mxu0 %v15562_v18  ;;  %v15640_v18 = vld [vmem:[%s17076_s8 + $0x46c] ss:$16 sps:$4 sm:$0xff]  }
 0x371   : > { %11153 = vmatpush1.bf16.msra.mxu0 %v15566_v22  ;;  %11184 = vmatprep.mubr.bf16.mxu0 %v16724_v29  ;;  %v18126_v22 = vpop.f32.mrf.mxu0  ;;  %v15649_v29 = vld [vmem:[%s17076_s8 + $0x32c] ss:$16 sps:$4 sm:$0xff]  }
 0x372   : > { %11126 = vmatpush2.bf16.msra.mxu1 %v15563_v21  ;;  %11154 = vmatprep.subr.bf16.mxu0 %v15574_v24  ;;  %v15638_v21 = vld [vmem:[%s17076_s8 + $0x468] ss:$16 sps:$4 sm:$0xff]   ;;  %v15646_v24 = vld [vmem:[%s17076_s8 + $0x44c] ss:$16 sps:$4 sm:$0xff]  }
 0x373   : > { %11127 = vmatprep.subr.bf16.mxu1 %v15571_v23  ;;  %v15643_v23 = vld [vmem:[%s17076_s8 + $0x34c] ss:$16 sps:$4 sm:$0xff]  }
 0x375   : > { %11155 = vmatpush1.bf16.msra.mxu0 %v15572_v26  ;;  %v15641_v26 = vld [vmem:[%s17076_s8 + $0x348] ss:$16 sps:$4 sm:$0xff]  }
 0x376   : > { %11128 = vmatpush2.bf16.msra.mxu1 %v15569_v25  ;;  %11156 = vmatprep.subr.bf16.mxu0 %v15580_v28  ;;  %v18130_v25 = vpop.f32.mrf.mxu1  ;;  %v18134_v28 = vpop.f32.mrf.mxu0 }
 0x377   : > { %11129 = vmatprep.subr.bf16.mxu1 %v15577_v27  ;;  %v15644_v27 = vld [vmem:[%s17076_s8 + $0x448] ss:$16 sps:$4 sm:$0xff]  }
 0x379   : > { %11157 = vmatpush1.bf16.msra.mxu0 %v15578_v31  ;;  %v18138_v31 = vpop.f32.mrf.mxu1 }
 0x37a   : > { %11130 = vmatpush2.bf16.msra.mxu1 %v15575_v30  ;;  %11158 = vmatprep.subr.bf16.mxu0 %v15586_v33  ;;  %v15652_v30 = vld [vmem:[%s17076_s8 + $0x42c] ss:$16 sps:$4 sm:$0xff]   ;;  %v15647_v33 = vld [vmem:[%s17076_s8 + $0x328] ss:$16 sps:$4 sm:$0xff]  }
 0x37b   : > { %11131 = vmatprep.subr.bf16.mxu1 %v15583_v32  ;;  %v18140_v32 = vpop.f32.mrf.mxu0 }
 0x37d   : > { %11159 = vmatpush1.bf16.msra.mxu0 %v15584_v35  ;;  %v15655_v35 = vld [vmem:[%s17076_s8 + $0x30c] ss:$16 sps:$4 sm:$0xff]  }
 0x37e   : > { %11132 = vmatpush2.bf16.msra.mxu1 %v15581_v34  ;;  %11160 = vmatprep.subr.bf16.mxu0 %v15592_v37  ;;  %v15650_v34 = vld [vmem:[%s17076_s8 + $0x428] ss:$16 sps:$4 sm:$0xff]   ;;  %v18146_v37 = vpop.f32.mrf.mxu1 }
 0x37f   : > { %11133 = vmatprep.subr.bf16.mxu1 %v15589_v36  ;;  %v15658_v36 = vld [vmem:[%s17076_s8 + $0x40c] ss:$16 sps:$4 sm:$0xff]  }
 0x381   : > { %11161 = vmatpush1.bf16.msra.mxu0 %v15590_v39  ;;  %v15653_v39 = vld [vmem:[%s17076_s8 + $0x308] ss:$16 sps:$4 sm:$0xff]  }
 0x382   : > { %11134 = vmatpush2.bf16.msra.mxu1 %v15587_v38  ;;  %11162 = vmatprep.subr.bf16.mxu0 %v15598_v41  ;;  %v18148_v38 = vpop.f32.mrf.mxu0  ;;  %v18152_v41 = vpop.f32.mrf.mxu1 }
 0x383   : > { %11135 = vmatprep.subr.bf16.mxu1 %v15595_v40  ;;  %v15656_v40 = vld [vmem:[%s17076_s8 + $0x408] ss:$16 sps:$4 sm:$0xff]  }
 0x385   : > { %11163 = vmatpush1.bf16.msra.mxu0 %v15596_v43  ;;  %v15664_v43 = vld [vmem:[%s17076_s8 + $0x6ec] ss:$16 sps:$4 sm:$0xff]  }
 0x386   : > { %11136 = vmatpush2.bf16.msra.mxu1 %v15593_v42  ;;  %11164 = vmatprep.subr.bf16.mxu0 %v15604_v45  ;;  %v15661_v42 = vld [vmem:[%s17076_s8 + $0x5ec] ss:$16 sps:$4 sm:$0xff]   ;;  %v15662_v45 = vld [vmem:[%s17076_s8 + $0x6e8] ss:$16 sps:$4 sm:$0xff]  }
 0x387   : > { %11137 = vmatprep.subr.bf16.mxu1 %v15601_v44  ;;  %v15659_v44 = vld [vmem:[%s17076_s8 + $0x5e8] ss:$16 sps:$4 sm:$0xff]  }
 0x389   : > { %11165 = vmatpush1.bf16.msra.mxu0 %v15602_v47  ;;  %v18160_v47 = vpop.f32.mrf.mxu1 }
 0x38a   : > { %11138 = vmatpush2.bf16.msra.mxu1 %v15599_v46  ;;  %11166 = vmatprep.subr.bf16.mxu0 %v15610_v49  ;;  %v18158_v46 = vpop.f32.mrf.mxu0  ;;  %v15670_v49 = vld [vmem:[%s17076_s8 + $0x6cc] ss:$16 sps:$4 sm:$0xff]  }
 0x38b   : > { %11139 = vmatprep.subr.bf16.mxu1 %v15607_v48  ;;  %v15667_v48 = vld [vmem:[%s17076_s8 + $0x5cc] ss:$16 sps:$4 sm:$0xff]  }
 0x38d   : > { %11167 = vmatpush1.bf16.msra.mxu0 %v15608_v52  ;;  %v15668_v52 = vld [vmem:[%s17076_s8 + $0x6c8] ss:$16 sps:$4 sm:$0xff]  }
 0x38e   : > { %11140 = vmatpush2.bf16.msra.mxu1 %v15605_v51  ;;  %11168 = vmatprep.subr.bf16.mxu0 %v15613_v53  ;;  %v15665_v51 = vld [vmem:[%s17076_s8 + $0x5c8] ss:$16 sps:$4 sm:$0xff]   ;;  %v18166_v53 = vpop.f32.mrf.mxu0 }
 0x38f   : > { %11195 = vmatprep.subr.bf16.mxu1 %v15616_v54  ;;  %v16727_v54 = vld [vmem:[%s19529_s0 + $0x8] ss:$196 sps:$4 sm:$0xff]  }
 0x391   : > { %11142 = vmatmul.mubr.bf16.vlgmr.msra.gmra.mxu1 %v16725_v1  ;;  %11169 = vmatpush2.bf16.msra.mxu0 %v15611_v55  ;;  %v18171_v55 = vpop.f32.mrf.mxu1  ;;  %v16728_v1 = vld [vmem:[%s19529_s0 + $0x1c] ss:$196 sps:$4 sm:$0xff]  }
 0x392   : > { %11196 = vmatpush1.bf16.msra.mxu1 %v15614_v56  ;;  %11170 = vmatprep.subr.bf16.mxu0 %v15619_v59  ;;  %v18173_v56 = vpop.f32.mrf.mxu0  ;;  %v15673_v59 = vld [vmem:[%s17076_s8 + $0x5ac] ss:$16 sps:$4 sm:$0xff]  }
 0x393   : > { %11197 = vmatprep.subr.bf16.mxu1 %v15622_v61  ;;  %11227 = vmatprep.mubr.bf16.mxu1 %v16726_v7  ;;  %v15676_v61 = vld [vmem:[%s17076_s8 + $0x6ac] ss:$16 sps:$4 sm:$0xff]   ;;  %v15677_v7 = vld [vmem:[%s17076_s8 + $0x588] ss:$16 sps:$4 sm:$0xff]  }
 0x395   : > { %11171 = vmatpush2.bf16.msra.mxu0 %v15617_v62  ;;  %v15671_v62 = vld [vmem:[%s17076_s8 + $0x5a8] ss:$16 sps:$4 sm:$0xff]  }
 0x396   : > { %11198 = vmatpush1.bf16.msra.mxu1 %v15620_v63  ;;  %11172 = vmatprep.subr.bf16.mxu0 %v15625_v3  ;;  %v15674_v63 = vld [vmem:[%s17076_s8 + $0x6a8] ss:$16 sps:$4 sm:$0xff]   ;;  %v15679_v3 = vld [vmem:[%s17076_s8 + $0x58c] ss:$16 sps:$4 sm:$0xff]  }
 0x397   : > { %11199 = vmatprep.subr.bf16.mxu1 %v15628_v4  ;;  %v15682_v4 = vld [vmem:[%s17076_s8 + $0x68c] ss:$16 sps:$4 sm:$0xff]  }
 0x399   : > { %11173 = vmatpush2.bf16.msra.mxu0 %v15623_v5  ;;  %v18184_v5 = vpop.f32.mrf.mxu1 }
 0x39a   : > { %11200 = vmatpush1.bf16.msra.mxu1 %v15626_v6  ;;  %11174 = vmatprep.subr.bf16.mxu0 %v15631_v11  ;;  %v18186_v6 = vpop.f32.mrf.mxu0  ;;  %v15680_v11 = vld [vmem:[%s17076_s8 + $0x688] ss:$16 sps:$4 sm:$0xff]  }
 0x39b   : > { %11201 = vmatprep.subr.bf16.mxu1 %v15634_v12  ;;  %v18190_v12 = vpop.f32.mrf.mxu1 }
 0x39d   : > { %11175 = vmatpush2.bf16.msra.mxu0 %v15629_v13  ;;  %v15685_v13 = vld [vmem:[%s17076_s8 + $0x56c] ss:$16 sps:$4 sm:$0xff]  }
 0x39e   : > { %11202 = vmatpush1.bf16.msra.mxu1 %v15632_v14  ;;  %11176 = vmatprep.subr.bf16.mxu0 %v15637_v17  ;;  %v15688_v14 = vld [vmem:[%s17076_s8 + $0x66c] ss:$16 sps:$4 sm:$0xff]   ;;  %v18194_v17 = vpop.f32.mrf.mxu0 }
 0x39f   : > { %11203 = vmatprep.subr.bf16.mxu1 %v15640_v18  ;;  %v15683_v18 = vld [vmem:[%s17076_s8 + $0x568] ss:$16 sps:$4 sm:$0xff]  }
 0x3a1   : > { %11177 = vmatpush2.bf16.msra.mxu0 %v15635_v20  ;;  %v15686_v20 = vld [vmem:[%s17076_s8 + $0x668] ss:$16 sps:$4 sm:$0xff]  }
 0x3a2   : > { %11204 = vmatpush1.bf16.msra.mxu1 %v15638_v21  ;;  %11178 = vmatprep.subr.bf16.mxu0 %v15643_v23  ;;  %v18198_v21 = vpop.f32.mrf.mxu1  ;;  %v15691_v23 = vld [vmem:[%s17076_s8 + $0x54c] ss:$16 sps:$4 sm:$0xff]  }
 0x3a3   : > { %11205 = vmatprep.subr.bf16.mxu1 %v15646_v24  ;;  %v15694_v24 = vld [vmem:[%s17076_s8 + $0x64c] ss:$16 sps:$4 sm:$0xff]  }
 0x3a5   : > { %11179 = vmatpush2.bf16.msra.mxu0 %v15641_v26  ;;  %v18202_v26 = vpop.f32.mrf.mxu0 }
 0x3a6   : > { %11206 = vmatpush1.bf16.msra.mxu1 %v15644_v27  ;;  %11180 = vmatprep.subr.bf16.mxu0 %v15649_v29  ;;  %v15689_v27 = vld [vmem:[%s17076_s8 + $0x548] ss:$16 sps:$4 sm:$0xff]  }
 0x3a7   : > { %11207 = vmatprep.subr.bf16.mxu1 %v15652_v30  ;;  %v15692_v29 = vld [vmem:[%s17076_s8 + $0x648] ss:$16 sps:$4 sm:$0xff]   ;;  %v18206_v30 = vpop.f32.mrf.mxu1 }
 0x3a9   : > { %11181 = vmatpush2.bf16.msra.mxu0 %v15647_v33  ;;  %v18208_v33 = vpop.f32.mrf.mxu0 }
 0x3aa   : > { %11208 = vmatpush1.bf16.msra.mxu1 %v15650_v34  ;;  %11182 = vmatprep.subr.bf16.mxu0 %v15655_v35  ;;  %v15697_v34 = vld [vmem:[%s17076_s8 + $0x52c] ss:$16 sps:$4 sm:$0xff]  }
 0x3ab   : > { %11209 = vmatprep.subr.bf16.mxu1 %v15658_v36  ;;  %v15700_v35 = vld [vmem:[%s17076_s8 + $0x62c] ss:$16 sps:$4 sm:$0xff]   ;;  %v15695_v36 = vld [vmem:[%s17076_s8 + $0x528] ss:$16 sps:$4 sm:$0xff]  }
 0x3ad   : > { %11183 = vmatpush2.bf16.msra.mxu0 %v15653_v39  ;;  %v15698_v39 = vld [vmem:[%s17076_s8 + $0x628] ss:$16 sps:$4 sm:$0xff]  }
 0x3ae   : > { %11210 = vmatpush1.bf16.msra.mxu1 %v15656_v40  ;;  %11238 = vmatprep.subr.bf16.mxu0 %v15664_v43  ;;  %v18214_v40 = vpop.f32.mrf.mxu1  ;;  %v15703_v43 = vld [vmem:[%s17076_s8 + $0x50c] ss:$16 sps:$4 sm:$0xff]  }
 0x3af   : > { %11211 = vmatprep.subr.bf16.mxu1 %v15661_v42  ;;  %v18216_v42 = vpop.f32.mrf.mxu0 }
 0x3b0   : > { %11185 = vmatmul.mubr.bf16.vlgmr.msra.gmra.mxu0 %v16727_v54  ;;  %v15712_v54 = vld [vmem:[%s17076_s8 + $0x8ec] ss:$16 sps:$4 sm:$0xff]  }
 0x3b1   : > { %11239 = vmatpush1.bf16.msra.mxu0 %v15662_v45  ;;  %11270 = vmatprep.mubr.bf16.mxu0 %v16728_v1  ;;  %v18220_v45 = vpop.f32.mrf.mxu1 }
 0x3b2   : > { %11212 = vmatpush2.bf16.msra.mxu1 %v15659_v44  ;;  %11240 = vmatprep.subr.bf16.mxu0 %v15670_v49  ;;  %v15706_v44 = vld [vmem:[%s17076_s8 + $0x60c] ss:$16 sps:$4 sm:$0xff]   ;;  %v15704_v49 = vld [vmem:[%s17076_s8 + $0x608] ss:$16 sps:$4 sm:$0xff]  }
 0x3b3   : > { %11213 = vmatprep.subr.bf16.mxu1 %v15667_v48  ;;  %v15701_v48 = vld [vmem:[%s17076_s8 + $0x508] ss:$16 sps:$4 sm:$0xff]  }
 0x3b5   : > { %11241 = vmatpush1.bf16.msra.mxu0 %v15668_v52  ;;  %v15709_v52 = vld [vmem:[%s17076_s8 + $0x7ec] ss:$16 sps:$4 sm:$0xff]  }
 0x3b6   : > { %11214 = vmatpush2.bf16.msra.mxu1 %v15665_v51  ;;  %11242 = vmatprep.subr.bf16.mxu0 %v15676_v61  ;;  %v18224_v51 = vpop.f32.mrf.mxu0 }
 0x3b7   : > { %11215 = vmatprep.subr.bf16.mxu1 %v15673_v59  ;;  %v18228_v59 = vpop.f32.mrf.mxu1 }
 0x3b8   : > { %v18230_v61 = vpop.f32.mrf.mxu0 }
 0x3b9   : > { %11243 = vmatpush1.bf16.msra.mxu0 %v15674_v63  ;;  %v15710_v63 = vld [vmem:[%s17076_s8 + $0x8e8] ss:$16 sps:$4 sm:$0xff]   ;;  %v18234_v1 = vpop.f32.mrf.mxu1 }
 0x3ba   : > { %11216 = vmatpush2.bf16.msra.mxu1 %v15671_v62  ;;  %11244 = vmatprep.subr.bf16.mxu0 %v15682_v4  ;;  %v15707_v62 = vld [vmem:[%s17076_s8 + $0x7e8] ss:$16 sps:$4 sm:$0xff]   ;;  %v15715_v4 = vld [vmem:[%s17076_s8 + $0x7cc] ss:$16 sps:$4 sm:$0xff]  }
 0x3bb   : > { %11217 = vmatprep.subr.bf16.mxu1 %v15679_v3  ;;  %v18236_v3 = vpop.f32.mrf.mxu0 }
 0x3bd   : > { %11245 = vmatpush1.bf16.msra.mxu0 %v15680_v11  ;;  %v16729_v11 = vld [vmem:[%s19529_s0 + $0x10] ss:$196 sps:$4 sm:$0xff]  }
 0x3be   : > { %11218 = vmatpush2.bf16.msra.mxu1 %v15677_v7  ;;  %11246 = vmatprep.subr.bf16.mxu0 %v15688_v14  ;;  %v15718_v7 = vld [vmem:[%s17076_s8 + $0x8cc] ss:$16 sps:$4 sm:$0xff]   ;;  %v15716_v14 = vld [vmem:[%s17076_s8 + $0x8c8] ss:$16 sps:$4 sm:$0xff]  }
 0x3bf   : > { %11219 = vmatprep.subr.bf16.mxu1 %v15685_v13  ;;  %v15713_v13 = vld [vmem:[%s17076_s8 + $0x7c8] ss:$16 sps:$4 sm:$0xff]  }
 0x3c1   : > { %11247 = vmatpush1.bf16.msra.mxu0 %v15686_v20  ;;  %v18247_v20 = vpop.f32.mrf.mxu0 }
 0x3c2   : > { %11220 = vmatpush2.bf16.msra.mxu1 %v15683_v18  ;;  %11248 = vmatprep.subr.bf16.mxu0 %v15694_v24  ;;  %v18245_v18 = vpop.f32.mrf.mxu1  ;;  %v15724_v24 = vld [vmem:[%s17076_s8 + $0x8ac] ss:$16 sps:$4 sm:$0xff]  }
 0x3c3   : > { %11221 = vmatprep.subr.bf16.mxu1 %v15691_v23  ;;  %v15721_v23 = vld [vmem:[%s17076_s8 + $0x7ac] ss:$16 sps:$4 sm:$0xff]  }
 0x3c5   : > { %11249 = vmatpush1.bf16.msra.mxu0 %v15692_v29  ;;  %v18254_v29 = vpop.f32.mrf.mxu1 }
 0x3c6   : > { %11222 = vmatpush2.bf16.msra.mxu1 %v15689_v27  ;;  %11250 = vmatprep.subr.bf16.mxu0 %v15700_v35  ;;  %v16730_v27 = vld [vmem:[%s19529_s0 + $0x24] ss:$196 sps:$4 sm:$0xff]  }
 0x3c7   : > { %11223 = vmatprep.subr.bf16.mxu1 %v15697_v34  ;;  %v15719_v34 = vld [vmem:[%s17076_s8 + $0x7a8] ss:$16 sps:$4 sm:$0xff]  }
 0x3c8   : > { %v15722_v35 = vld [vmem:[%s17076_s8 + $0x8a8] ss:$16 sps:$4 sm:$0xff]  }
 0x3c9   : > { %11251 = vmatpush1.bf16.msra.mxu0 %v15698_v39  ;;  %v15727_v39 = vld [vmem:[%s17076_s8 + $0x78c] ss:$16 sps:$4 sm:$0xff]  }
 0x3ca   : > { %11224 = vmatpush2.bf16.msra.mxu1 %v15695_v36  ;;  %11252 = vmatprep.subr.bf16.mxu0 %v15706_v44  ;;  %v18258_v36 = vpop.f32.mrf.mxu0  ;;  %v18262_v44 = vpop.f32.mrf.mxu1 }
 0x3cb   : > { %11225 = vmatprep.subr.bf16.mxu1 %v15703_v43  ;;  %v15730_v43 = vld [vmem:[%s17076_s8 + $0x88c] ss:$16 sps:$4 sm:$0xff]  }
 0x3cd   : > { %11253 = vmatpush1.bf16.msra.mxu0 %v15704_v49  ;;  %v15728_v49 = vld [vmem:[%s17076_s8 + $0x888] ss:$16 sps:$4 sm:$0xff]  }
 0x3ce   : > { %11226 = vmatpush2.bf16.msra.mxu1 %v15701_v48  ;;  %11254 = vmatprep.subr.bf16.mxu0 %v15709_v52  ;;  %v15725_v48 = vld [vmem:[%s17076_s8 + $0x788] ss:$16 sps:$4 sm:$0xff]   ;;  %v18266_v52 = vpop.f32.mrf.mxu0 }
 0x3cf   : > { %11281 = vmatprep.subr.bf16.mxu1 %v15712_v54  ;;  %v15733_v54 = vld [vmem:[%s17076_s8 + $0x76c] ss:$16 sps:$4 sm:$0xff]  }
 0x3d1   : > { %11228 = vmatmul.mubr.bf16.vlgmr.msra.gmra.mxu1 %v16729_v11  ;;  %11255 = vmatpush2.bf16.msra.mxu0 %v15707_v62  ;;  %v15736_v62 = vld [vmem:[%s17076_s8 + $0x86c] ss:$16 sps:$4 sm:$0xff]   ;;  %v15734_v11 = vld [vmem:[%s17076_s8 + $0x868] ss:$16 sps:$4 sm:$0xff]  }
 0x3d2   : > { %11282 = vmatpush1.bf16.msra.mxu1 %v15710_v63  ;;  %11256 = vmatprep.subr.bf16.mxu0 %v15715_v4  ;;  %v18270_v63 = vpop.f32.mrf.mxu1  ;;  %v18272_v4 = vpop.f32.mrf.mxu0 }
 0x3d3   : > { %11283 = vmatprep.subr.bf16.mxu1 %v15718_v7  ;;  %11313 = vmatprep.mubr.bf16.mxu1 %v16730_v27  ;;  %v15731_v7 = vld [vmem:[%s17076_s8 + $0x768] ss:$16 sps:$4 sm:$0xff]  }
 0x3d4   : > { %v15737_v27 = vld [vmem:[%s17076_s8 + $0x748] ss:$16 sps:$4 sm:$0xff]  }
 0x3d5   : > { %11257 = vmatpush2.bf16.msra.mxu0 %v15713_v13  ;;  %v15739_v13 = vld [vmem:[%s17076_s8 + $0x74c] ss:$16 sps:$4 sm:$0xff]  }
 0x3d6   : > { %11284 = vmatpush1.bf16.msra.mxu1 %v15716_v14  ;;  %11258 = vmatprep.subr.bf16.mxu0 %v15721_v23  ;;  %v15742_v14 = vld [vmem:[%s17076_s8 + $0x84c] ss:$16 sps:$4 sm:$0xff]   ;;  %v18278_v23 = vpop.f32.mrf.mxu1 }
 0x3d7   : > { %11285 = vmatprep.subr.bf16.mxu1 %v15724_v24  ;;  %v18280_v24 = vpop.f32.mrf.mxu0 }
 0x3d9   : > { %11259 = vmatpush2.bf16.msra.mxu0 %v15719_v34  ;;  %v15740_v34 = vld [vmem:[%s17076_s8 + $0x848] ss:$16 sps:$4 sm:$0xff]  }
 0x3da   : > { %11286 = vmatpush1.bf16.msra.mxu1 %v15722_v35  ;;  %11260 = vmatprep.subr.bf16.mxu0 %v15727_v39  ;;  %v18284_v35 = vpop.f32.mrf.mxu1  ;;  %v15745_v39 = vld [vmem:[%s17076_s8 + $0x72c] ss:$16 sps:$4 sm:$0xff]  }
 0x3db   : > { %11287 = vmatprep.subr.bf16.mxu1 %v15730_v43  ;;  %19548 = vst [vmem:[#allocation10_spill] sm:$0xff] %v18284_v35  ;;  %v15748_v43 = vld [vmem:[%s17076_s8 + $0x82c] ss:$16 sps:$4 sm:$0xff]   ;;  %v15758_v35 = vld [vmem:[%s17076_s8 + $0xae8] ss:$16 sps:$4 sm:$0xff]  }
 0x3dd   : > { %11261 = vmatpush2.bf16.msra.mxu0 %v15725_v48  ;;  %v18288_v48 = vpop.f32.mrf.mxu0 }
 0x3de   : > { %11288 = vmatpush1.bf16.msra.mxu1 %v15728_v49  ;;  %11262 = vmatprep.subr.bf16.mxu0 %v15733_v54  ;;  %v15743_v49 = vld [vmem:[%s17076_s8 + $0x728] ss:$16 sps:$4 sm:$0xff]  }
 0x3df   : > { %11289 = vmatprep.subr.bf16.mxu1 %v15736_v62  ;;  %v15746_v54 = vld [vmem:[%s17076_s8 + $0x828] ss:$16 sps:$4 sm:$0xff]   ;;  %v18292_v62 = vpop.f32.mrf.mxu1 }
 0x3e0   : > { %19549 = vst [vmem:[#allocation11_spill] sm:$0xff] %v18292_v62  ;;  %v15755_v62 = vld [vmem:[%s17076_s8 + $0x9e8] ss:$16 sps:$4 sm:$0xff]  }
 0x3e1   : > { %11263 = vmatpush2.bf16.msra.mxu0 %v15731_v7  ;;  %v15751_v7 = vld [vmem:[%s17076_s8 + $0x70c] ss:$16 sps:$4 sm:$0xff]  }
 0x3e2   : > { %11290 = vmatpush1.bf16.msra.mxu1 %v15734_v11  ;;  %11264 = vmatprep.subr.bf16.mxu0 %v15739_v13  ;;  %v15754_v11 = vld [vmem:[%s17076_s8 + $0x80c] ss:$16 sps:$4 sm:$0xff]   ;;  %v18296_v13 = vpop.f32.mrf.mxu0 }
 0x3e3   : > { %11291 = vmatprep.subr.bf16.mxu1 %v15742_v14  ;;  %19550 = vst [vmem:[#allocation12_spill] sm:$0xff] %v18296_v13  ;;  %v15749_v14 = vld [vmem:[%s17076_s8 + $0x708] ss:$16 sps:$4 sm:$0xff]  }
 0x3e4   : > { %v18302_v60 = vpop.f32.mrf.mxu0 }
 0x3e5   : > { %11265 = vmatpush2.bf16.msra.mxu0 %v15737_v27  ;;  %v15752_v27 = vld [vmem:[%s17076_s8 + $0x808] ss:$16 sps:$4 sm:$0xff]  }
 0x3e6   : > { %11292 = vmatpush1.bf16.msra.mxu1 %v15740_v34  ;;  %11266 = vmatprep.subr.bf16.mxu0 %v15745_v39  ;;  %v18300_v34 = vpop.f32.mrf.mxu1  ;;  %v15757_v39 = vld [vmem:[%s17076_s8 + $0x9ec] ss:$16 sps:$4 sm:$0xff]  }
 0x3e7   : > { %11293 = vmatprep.subr.bf16.mxu1 %v15748_v43  ;;  %19551 = vst [vmem:[#allocation13_spill] sm:$0xff] %v18300_v34  ;;  %v15760_v43 = vld [vmem:[%s17076_s8 + $0xaec] ss:$16 sps:$4 sm:$0xff]  }
 0x3e8   : > { %v18308_v13 = vpop.f32.mrf.mxu1  ;;  %v15766_v34 = vld [vmem:[%s17076_s8 + $0xacc] ss:$16 sps:$4 sm:$0xff]  }
 0x3e9   : > { %11267 = vmatpush2.bf16.msra.mxu0 %v15743_v49  ;;  %19552 = vst [vmem:[#allocation14_spill] sm:$0xff] %v18308_v13  ;;  %v18310_v49 = vpop.f32.mrf.mxu0  ;;  %v15761_v13 = vld [vmem:[%s17076_s8 + $0x9c8] ss:$16 sps:$4 sm:$0xff]  }
 0x3ea   : > { %11294 = vmatpush1.bf16.msra.mxu1 %v15746_v54  ;;  %11268 = vmatprep.subr.bf16.mxu0 %v15751_v7  ;;  %v15763_v54 = vld [vmem:[%s17076_s8 + $0x9cc] ss:$16 sps:$4 sm:$0xff]   ;;  %v10112_v7 = vadd.f32 %v18086_v58, %v18076_v50  ;;  %v15764_v50 = vld [vmem:[%s17076_s8 + $0xac8] ss:$16 sps:$4 sm:$0xff]  }
 0x3eb   : > { %11295 = vmatprep.subr.bf16.mxu1 %v15754_v11  ;;  %v10114_v11 = vadd.f32 %v18097_v2, %v18084_v57  ;;  %v18329_v57 = vpop.f32.mrf.mxu0  ;;  %v15769_v2 = vld [vmem:[%s17076_s8 + $0x9ac] ss:$16 sps:$4 sm:$0xff]  }
 0x3ed   : > { %11269 = vmatpush2.bf16.msra.mxu0 %v15749_v14  ;;  %v18318_v14 = vpop.f32.mrf.mxu1  ;;  %v10157_v58 = vadd.f32 %v18118_v16, %v10114_v11 }
 0x3ee   : > { %11296 = vmatpush1.bf16.msra.mxu1 %v15752_v27  ;;  %11324 = vmatprep.subr.bf16.mxu0 %v15760_v43  ;;  %19553 = vst [vmem:[#allocation15_spill] sm:$0xff] %v18318_v14  ;;  %v16731_v27 = vld [vmem:[%s19529_s0 + $0x18] ss:$196 sps:$4 sm:$0xff]   ;;  %v10155_v43 = vadd.f32 %v18110_v10, %v10112_v7  ;;  %v16732_v10 = vld [vmem:[%s19529_s0 + $0x2c] ss:$196 sps:$4 sm:$0xff]  }
 0x3ef   : > { %11297 = vmatprep.subr.bf16.mxu1 %v15757_v39  ;;  %v10116_v39 = vadd.f32 %v18108_v9, %v18092_v0  ;;  %v15772_v14 = vld [vmem:[%s17076_s8 + $0xaac] ss:$16 sps:$4 sm:$0xff]   ;;  %v10118_v0 = vadd.f32 %v18116_v15, %v18106_v8  ;;  %v18339_v16 = vpop.f32.mrf.mxu1  ;;  %v10200_v8 = vadd.f32 %v18130_v25, %v10157_v58  ;;  %v18346_v15 = vpop.f32.mrf.mxu0 }
 0x3f0   : > { %11271 = vmatmul.mubr.bf16.vlgmr.msra.gmra.mxu0 %v16731_v27  ;;  %v15778_v7 = vld [vmem:[%s17076_s8 + $0xa8c] ss:$16 sps:$4 sm:$0xff]  }
 0x3f1   : > { %11325 = vmatpush1.bf16.msra.mxu0 %v15758_v35  ;;  %v10159_v9 = vadd.f32 %v18126_v22, %v10116_v39  ;;  %11356 = vmatprep.mubr.bf16.mxu0 %v16732_v10  ;;  %v10198_v35 = vadd.f32 %v18122_v19, %v10155_v43  ;;  %v15775_v22 = vld [vmem:[%s17076_s8 + $0x98c] ss:$16 sps:$4 sm:$0xff]   ;;  %v18353_v11 = vpop.f32.mrf.mxu1  ;;  %v18355_v27 = vpop.f32.mrf.mxu0  ;;  %v15776_v43 = vld [vmem:[%s17076_s8 + $0xa88] ss:$16 sps:$4 sm:$0xff]  }
 0x3f2   : > { %11298 = vmatpush2.bf16.msra.mxu1 %v15755_v62  ;;  %11326 = vmatprep.subr.bf16.mxu0 %v15766_v34  ;;  %v10161_v62 = vadd.f32 %v18134_v28, %v10118_v0  ;;  %v15767_v34 = vld [vmem:[%s17076_s8 + $0x9a8] ss:$16 sps:$4 sm:$0xff]  }
 0x3f3   : > { %11299 = vmatprep.subr.bf16.mxu1 %v15763_v54  ;;  %v15770_v54 = vld [vmem:[%s17076_s8 + $0xaa8] ss:$16 sps:$4 sm:$0xff]   ;;  %v10202_v19 = vadd.f32 %v18138_v31, %v10159_v9  ;;  %v10241_v28 = vadd.f32 %v18140_v32, %v10198_v35  ;;  %v15781_v31 = vld [vmem:[%s17076_s8 + $0x96c] ss:$16 sps:$4 sm:$0xff]   ;;  %v18366_v58 = vpop.f32.mrf.mxu1 }
 0x3f4   : > { %v10204_v25 = vadd.f32 %v18146_v37, %v10161_v62  ;;  %v15784_v32 = vld [vmem:[%s17076_s8 + $0xa6c] ss:$16 sps:$4 sm:$0xff]   ;;  %v15779_v9 = vld [vmem:[%s17076_s8 + $0x968] ss:$16 sps:$4 sm:$0xff]  }
 0x3f5   : > { %11327 = vmatpush1.bf16.msra.mxu0 %v15764_v50  ;;  %v10245_v39 = vadd.f32 %v18158_v46, %v10202_v19  ;;  %v18368_v46 = vpop.f32.mrf.mxu0  ;;  %v15782_v10 = vld [vmem:[%s17076_s8 + $0xa68] ss:$16 sps:$4 sm:$0xff]   ;;  %v18375_v35 = vpop.f32.mrf.mxu1 }
 0x3f6   : > { %11300 = vmatpush2.bf16.msra.mxu1 %v15761_v13  ;;  %11328 = vmatprep.subr.bf16.mxu0 %v15772_v14  ;;  %v10243_v13 = vadd.f32 %v18148_v38, %v10200_v8  ;;  %v15773_v14 = vld [vmem:[%s17076_s8 + $0x988] ss:$16 sps:$4 sm:$0xff]   ;;  %v10284_v38 = vadd.f32 %v18152_v41, %v10241_v28  ;;  %v10247_v50 = vadd.f32 %v18166_v53, %v10204_v25  ;;  %v15790_v53 = vld [vmem:[%s17076_s8 + $0xa4c] ss:$16 sps:$4 sm:$0xff]  }
 0x3f7   : > { %11301 = vmatprep.subr.bf16.mxu1 %v15769_v2  ;;  %v10288_v2 = vadd.f32 %v18171_v55, %v10245_v39  ;;  %v18381_v62 = vpop.f32.mrf.mxu0  ;;  %v15788_v8 = vld [vmem:[%s17076_s8 + $0xa48] ss:$16 sps:$4 sm:$0xff]  }
 0x3f8   : > { %v10286_v37 = vadd.f32 %v18160_v47, %v10243_v13  ;;  %v10327_v0 = vadd.f32 %v18173_v56, %v10284_v38  ;;  %v15787_v47 = vld [vmem:[%s17076_s8 + $0x94c] ss:$16 sps:$4 sm:$0xff]   ;;  %v10290_v55 = vadd.f32 %v18184_v5, %v10247_v50  ;;  %v15791_v25 = vld [vmem:[%s17076_s8 + $0x928] ss:$16 sps:$4 sm:$0xff]  }
 0x3f9   : > { %11329 = vmatpush1.bf16.msra.mxu0 %v15770_v54  ;;  %v10331_v56 = vadd.f32 %v18194_v17, %v10288_v2  ;;  %v15793_v5 = vld [vmem:[%s17076_s8 + $0x92c] ss:$16 sps:$4 sm:$0xff]   ;;  %v18395_v28 = vpop.f32.mrf.mxu0  ;;  %v15794_v39 = vld [vmem:[%s17076_s8 + $0xa28] ss:$16 sps:$4 sm:$0xff]  }
 0x3fa   : > { %11302 = vmatpush2.bf16.msra.mxu1 %v15767_v34  ;;  %11330 = vmatprep.subr.bf16.mxu0 %v15778_v7  ;;  %v10329_v41 = vadd.f32 %v18186_v6, %v10286_v37  ;;  %v10370_v34 = vadd.f32 %v18190_v12, %v10327_v0  ;;  %v10333_v54 = vadd.f32 %v18202_v26, %v10290_v55  ;;  %v15785_v6 = vld [vmem:[%s17076_s8 + $0x948] ss:$16 sps:$4 sm:$0xff]   ;;  %v18388_v7 = vpop.f32.mrf.mxu1  ;;  %v15796_v17 = vld [vmem:[%s17076_s8 + $0xa2c] ss:$16 sps:$4 sm:$0xff]  }
 0x3fb   : > { %11303 = vmatprep.subr.bf16.mxu1 %v15775_v22  ;;  %v10374_v12 = vadd.f32 %v18206_v30, %v10331_v56  ;;  %v15799_v30 = vld [vmem:[%s17076_s8 + $0x90c] ss:$16 sps:$4 sm:$0xff]   ;;  %v15797_v38 = vld [vmem:[%s17076_s8 + $0x908] ss:$16 sps:$4 sm:$0xff]  }
 0x3fc   : > { %v10372_v22 = vadd.f32 %v18198_v21, %v10329_v41  ;;  %v10413_v26 = vadd.f32 %v18208_v33, %v10370_v34  ;;  %v10376_v13 = vadd.f32 %v18214_v40, %v10333_v54  ;;  %v15802_v33 = vld [vmem:[%s17076_s8 + $0xa0c] ss:$16 sps:$4 sm:$0xff]   ;;  %v15800_v50 = vld [vmem:[%s17076_s8 + $0xa08] ss:$16 sps:$4 sm:$0xff]  }
 0x3fd   : > { %11331 = vmatpush1.bf16.msra.mxu0 %v15776_v43  ;;  %v10417_v21 = vadd.f32 %v18224_v51, %v10374_v12  ;;  %v18403_v43 = vpop.f32.mrf.mxu0  ;;  %v15806_v41 = vld [vmem:[%s17076_s8 + $0xce8] ss:$16 sps:$4 sm:$0xff]  }
 0x3fe   : > { %11304 = vmatpush2.bf16.msra.mxu1 %v15773_v14  ;;  %11332 = vmatprep.subr.bf16.mxu0 %v15784_v32  ;;  %v10415_v19 = vadd.f32 %v18216_v42, %v10372_v22  ;;  %v18401_v14 = vpop.f32.mrf.mxu1  ;;  %v10456_v40 = vadd.f32 %v18220_v45, %v10413_v26  ;;  %v10419_v42 = vadd.f32 %v18230_v61, %v10376_v13  ;;  %v15805_v45 = vld [vmem:[%s17076_s8 + $0xbec] ss:$16 sps:$4 sm:$0xff]   ;;  %v19554_v22 = vld [vmem:[#allocation10_spill] sm:$0xff] }
 0x3ff   : > { %11305 = vmatprep.subr.bf16.mxu1 %v15781_v31  ;;  %v10460_v31 = vadd.f32 %v18234_v1, %v10417_v21  ;;  %v18417_v0 = vpop.f32.mrf.mxu0  ;;  %v19557_v21 = vld [vmem:[#allocation13_spill] sm:$0xff] }
 0x400   : > { %v10458_v51 = vadd.f32 %v18228_v59, %v10415_v19  ;;  %v10499_v32 = vadd.f32 %v18236_v3, %v10456_v40  ;;  %v18415_v2 = vpop.f32.mrf.mxu1  ;;  %v15808_v59 = vld [vmem:[%s17076_s8 + $0xcec] ss:$16 sps:$4 sm:$0xff]   ;;  %v10462_v61 = vadd.f32 %v18245_v18, %v10419_v42 }
 0x401   : > { %11333 = vmatpush1.bf16.msra.mxu0 %v15782_v10  ;;  %v10503_v1 = vadd.f32 %v18258_v36, %v10460_v31  ;;  %v15803_v10 = vld [vmem:[%s17076_s8 + $0xbe8] ss:$16 sps:$4 sm:$0xff]   ;;  %v15811_v18 = vld [vmem:[%s17076_s8 + $0xbcc] ss:$16 sps:$4 sm:$0xff]   ;;  %v19558_v31 = vld [vmem:[#allocation14_spill] sm:$0xff] }
 0x402   : > { %11306 = vmatpush2.bf16.msra.mxu1 %v15779_v9  ;;  %11334 = vmatprep.subr.bf16.mxu0 %v15790_v53  ;;  %v10501_v37 = vadd.f32 %v18247_v20, %v10458_v51  ;;  %v18423_v3 = vpop.f32.mrf.mxu1  ;;  %v10542_v9 = vadd.f32 %v18254_v29, %v10499_v32  ;;  %v10505_v20 = vadd.f32 %v18266_v52, %v10462_v61  ;;  %v18430_v53 = vpop.f32.mrf.mxu0  ;;  %v15814_v36 = vld [vmem:[%s17076_s8 + $0xccc] ss:$16 sps:$4 sm:$0xff]   ;;  %v15824_v61 = vld [vmem:[%s17076_s8 + $0xc88] ss:$16 sps:$4 sm:$0xff]  }
 0x403   : > { %11307 = vmatprep.subr.bf16.mxu1 %v15787_v47  ;;  %v10546_v55 = vadd.f32 %v18270_v63, %v10503_v1  ;;  %v15812_v63 = vld [vmem:[%s17076_s8 + $0xcc8] ss:$16 sps:$4 sm:$0xff]   ;;  %v15823_v42 = vld [vmem:[%s17076_s8 + $0xb8c] ss:$16 sps:$4 sm:$0xff]  }
 0x404   : > { %v10544_v47 = vadd.f32 %v18262_v44, %v10501_v37  ;;  %v10585_v29 = vadd.f32 %v18272_v4, %v10542_v9  ;;  %v18437_v56 = vpop.f32.mrf.mxu1  ;;  %v16733_v44 = vld [vmem:[%s19529_s0 + $0x20] ss:$196 sps:$4 sm:$0xff]   ;;  %v10548_v34 = vadd.f32 %v18278_v23, %v10505_v20  ;;  %v15817_v4 = vld [vmem:[%s17076_s8 + $0xbac] ss:$16 sps:$4 sm:$0xff]   ;;  %v16734_v23 = vld [vmem:[%s19529_s0 + $0x34] ss:$196 sps:$4 sm:$0xff]  }
 0x405   : > { %11335 = vmatpush1.bf16.msra.mxu0 %v15788_v8  ;;  %v10589_v54 = vadd.f32 %v18288_v48, %v10546_v55  ;;  %v18446_v8 = vpop.f32.mrf.mxu0  ;;  %v19556_v48 = vld [vmem:[#allocation11_spill] sm:$0xff] }
 0x406   : > { %11308 = vmatpush2.bf16.msra.mxu1 %v15785_v6  ;;  %11336 = vmatprep.subr.bf16.mxu0 %v15796_v17  ;;  %v10587_v52 = vadd.f32 %v18280_v24, %v10544_v47  ;;  %v15809_v6 = vld [vmem:[%s17076_s8 + $0xbc8] ss:$16 sps:$4 sm:$0xff]   ;;  %v15820_v24 = vld [vmem:[%s17076_s8 + $0xcac] ss:$16 sps:$4 sm:$0xff]   ;;  %v19555_v17 = vld [vmem:[#allocation12_spill] sm:$0xff]  ;;  %v18456_v19 = vpop.f32.mrf.mxu1 }
 0x407   : > { %11309 = vmatprep.subr.bf16.mxu1 %v15793_v5  ;;  %v10628_v5 = vadd.f32 %v19554_v22, %v10585_v29  ;;  %v10591_v12 = vadd.f32 %v19555_v17, %v10548_v34  ;;  %v18458_v13 = vpop.f32.mrf.mxu0  ;;  %v15826_v51 = vld [vmem:[%s17076_s8 + $0xc8c] ss:$16 sps:$4 sm:$0xff]   ;;  %v15830_v55 = vld [vmem:[%s17076_s8 + $0xc68] ss:$16 sps:$4 sm:$0xff]  }
 0x408   : > { %v10630_v26 = vadd.f32 %v19556_v48, %v10587_v52  ;;  %v19559_v37 = vld [vmem:[#allocation15_spill] sm:$0xff] }
 0x409   : > { %11337 = vmatpush1.bf16.msra.mxu0 %v15794_v39  ;;  %v10671_v39 = vadd.f32 %v18302_v60, %v10628_v5  ;;  %v10634_v32 = vadd.f32 %v19558_v31, %v10591_v12  ;;  %v10930_v60 = vpop.f32.mrf.mxu0  ;;  %v15832_v20 = vld [vmem:[%s17076_s8 + $0xc6c] ss:$16 sps:$4 sm:$0xff]   ;;  %v15839_v5 = vld [vmem:[%s17076_s8 + $0xb28] ss:$16 sps:$4 sm:$0xff]  }
 0x40a   : > { %11310 = vmatpush2.bf16.msra.mxu1 %v15791_v25  ;;  %11338 = vmatprep.subr.bf16.mxu0 %v15802_v33  ;;  %v10632_v25 = vadd.f32 %v19557_v21, %v10589_v54  ;;  %v15818_v33 = vld [vmem:[%s17076_s8 + $0xca8] ss:$16 sps:$4 sm:$0xff]   ;;  %v10673_v40 = vadd.f32 %v18310_v49, %v10630_v26  ;;  %v15835_v52 = vld [vmem:[%s17076_s8 + $0xb4c] ss:$16 sps:$4 sm:$0xff]  }
 0x40b   : > { %11311 = vmatprep.subr.bf16.mxu1 %v15799_v30  ;;  %v15815_v30 = vld [vmem:[%s17076_s8 + $0xba8] ss:$16 sps:$4 sm:$0xff]   ;;  %v10932_v47 = vpop.f32.mrf.mxu0 }
 0x40c   : > { %v15821_v49 = vld [vmem:[%s17076_s8 + $0xb88] ss:$16 sps:$4 sm:$0xff]   ;;  %v10716_v1 = vadd.f32 %v18339_v16, %v10673_v40  ;;  %v15856_v40 = vld [vmem:[%s17076_s8 + $0xeec] ss:$16 sps:$4 sm:$0xff]  }
 0x40d   : > { %11339 = vmatpush1.bf16.msra.mxu0 %v15800_v50  ;;  %v18469_v50 = vpop.f32.mrf.mxu1  ;;  %v15827_v16 = vld [vmem:[%s17076_s8 + $0xb68] ss:$16 sps:$4 sm:$0xff]  }
 0x40e   : > { %11312 = vmatpush2.bf16.msra.mxu1 %v15797_v38  ;;  %11340 = vmatprep.subr.bf16.mxu0 %v15805_v45  ;;  %v10675_v38 = vadd.f32 %v18329_v57, %v10632_v25  ;;  %v10714_v45 = vadd.f32 %v19559_v37, %v10671_v39  ;;  %v15829_v57 = vld [vmem:[%s17076_s8 + $0xb6c] ss:$16 sps:$4 sm:$0xff]   ;;  %v15833_v54 = vld [vmem:[%s17076_s8 + $0xb48] ss:$16 sps:$4 sm:$0xff]  }
 0x40f   : > { %11367 = vmatprep.subr.bf16.mxu1 %v15808_v59  ;;  %v10677_v59 = vadd.f32 %v18346_v15, %v10634_v32  ;;  %v18476_v9 = vpop.f32.mrf.mxu1  ;;  %v15848_v39 = vld [vmem:[%s17076_s8 + $0xc08] ss:$16 sps:$4 sm:$0xff]  }
 0x410   : > { %v10757_v15 = vadd.f32 %v18355_v27, %v10714_v45  ;;  %v15859_v45 = vld [vmem:[%s17076_s8 + $0xdcc] ss:$16 sps:$4 sm:$0xff]  }
 0x411   : > { %11314 = vmatmul.mubr.bf16.vlgmr.msra.gmra.mxu1 %v16733_v44  ;;  %11341 = vmatpush2.bf16.msra.mxu0 %v15803_v10  ;;  %v10718_v10 = vadd.f32 %v18353_v11, %v10675_v38  ;;  %v10973_v29 = vpop.f32.mrf.mxu1  ;;  %v15838_v11 = vld [vmem:[%s17076_s8 + $0xc4c] ss:$16 sps:$4 sm:$0xff]   ;;  %v15851_v38 = vld [vmem:[%s17076_s8 + $0xde8] ss:$16 sps:$4 sm:$0xff]  }
 0x412   : > { %11368 = vmatpush1.bf16.msra.mxu1 %v15806_v41  ;;  %11342 = vmatprep.subr.bf16.mxu0 %v15811_v18  ;;  %v10759_v41 = vadd.f32 %v18368_v46, %v10716_v1  ;;  %v10720_v18 = vadd.f32 %v18366_v58, %v10677_v59  ;;  %v10800_v27 = vadd.f32 %v18375_v35, %v10757_v15  ;;  %v15862_v59 = vld [vmem:[%s17076_s8 + $0xecc] ss:$16 sps:$4 sm:$0xff]   ;;  %v15857_v15 = vld [vmem:[%s17076_s8 + $0xdc8] ss:$16 sps:$4 sm:$0xff]  }
 0x413   : > { %11369 = vmatprep.subr.bf16.mxu1 %v15814_v36  ;;  %11399 = vmatprep.mubr.bf16.mxu1 %v16734_v23  ;;  %v10761_v36 = vadd.f32 %v18381_v62, %v10718_v10  ;;  %v10934_v62 = vpop.f32.mrf.mxu0 }
 0x414   : > { %v10763_v46 = vadd.f32 %v18395_v28, %v10720_v18  ;;  %v10802_v58 = vadd.f32 %v18388_v7, %v10759_v41  ;;  %v10843_v34 = vadd.f32 %v18403_v43, %v10800_v27  ;;  %v15841_v28 = vld [vmem:[%s17076_s8 + $0xb2c] ss:$16 sps:$4 sm:$0xff]   ;;  %v15860_v41 = vld [vmem:[%s17076_s8 + $0xec8] ss:$16 sps:$4 sm:$0xff]  }
 0x415   : > { %11343 = vmatpush2.bf16.msra.mxu0 %v15809_v6  ;;  %v10804_v44 = vadd.f32 %v18401_v14, %v10761_v36  ;;  %v15836_v6 = vld [vmem:[%s17076_s8 + $0xc48] ss:$16 sps:$4 sm:$0xff]   ;;  %v11014_v35 = vpop.f32.mrf.mxu0  ;;  %v15844_v7 = vld [vmem:[%s17076_s8 + $0xc2c] ss:$16 sps:$4 sm:$0xff]  }
 0x416   : > { %11370 = vmatpush1.bf16.msra.mxu1 %v15812_v63  ;;  %11344 = vmatprep.subr.bf16.mxu0 %v15817_v4  ;;  %v10845_v63 = vadd.f32 %v18417_v0, %v10802_v58  ;;  %v10975_v4 = vpop.f32.mrf.mxu1  ;;  %v10806_v14 = vadd.f32 %v18415_v2, %v10763_v46  ;;  %v15842_v0 = vld [vmem:[%s17076_s8 + $0xc28] ss:$16 sps:$4 sm:$0xff]   ;;  %v15847_v2 = vld [vmem:[%s17076_s8 + $0xb0c] ss:$16 sps:$4 sm:$0xff]  }
 0x417   : > { %11371 = vmatprep.subr.bf16.mxu1 %v15820_v24  ;;  %v10847_v43 = vadd.f32 %v18430_v53, %v10804_v44  ;;  %v10886_v24 = vadd.f32 %v18423_v3, %v10843_v34  ;;  %v11016_v23 = vpop.f32.mrf.mxu0  ;;  %v15850_v53 = vld [vmem:[%s17076_s8 + $0xc0c] ss:$16 sps:$4 sm:$0xff]   ;;  %v15863_v44 = vld [vmem:[%s17076_s8 + $0xda8] ss:$16 sps:$4 sm:$0xff]  }
 0x418   : > { %v10849_v22 = vadd.f32 %v18446_v8, %v10806_v14  ;;  %v10888_v17 = vadd.f32 %v18437_v56, %v10845_v63  ;;  %v10977_v12 = vpop.f32.mrf.mxu1  ;;  %v15845_v56 = vld [vmem:[%s17076_s8 + $0xb08] ss:$16 sps:$4 sm:$0xff]   ;;  %v15865_v36 = vld [vmem:[%s17076_s8 + $0xdac] ss:$16 sps:$4 sm:$0xff]  }
 0x419   : > { %11345 = vmatpush2.bf16.msra.mxu0 %v15815_v30  ;;  %v10890_v3 = vadd.f32 %v18456_v19, %v10847_v43  ;;  %v10929_v8 = vadd.f32 %v18458_v13, %v10886_v24  ;;  %v11018_v30 = vpop.f32.mrf.mxu0  ;;  %v15866_v34 = vld [vmem:[%s17076_s8 + $0xea8] ss:$16 sps:$4 sm:$0xff]   ;;  %v15874_v63 = vld [vmem:[%s17076_s8 + $0xe8c] ss:$16 sps:$4 sm:$0xff]  }
 0x41a   : > { %11372 = vmatpush1.bf16.msra.mxu1 %v15818_v33  ;;  %11346 = vmatprep.subr.bf16.mxu0 %v15823_v42  ;;  %v10931_v48 = vadd.f32 %v10930_v60, %v10888_v17  ;;  %v11057_v26 = vpop.f32.mrf.mxu1  ;;  %v10892_v21 = vadd.f32 %v18469_v50, %v10849_v22  ;;  %v15853_v33 = vld [vmem:[%s17076_s8 + $0xdec] ss:$16 sps:$4 sm:$0xff]   ;;  %v15854_v50 = vld [vmem:[%s17076_s8 + $0xee8] ss:$16 sps:$4 sm:$0xff]  }
 0x41b   : > { %11373 = vmatprep.subr.bf16.mxu1 %v15826_v51  ;;  %v10933_v25 = vadd.f32 %v10932_v47, %v10890_v3  ;;  %v10972_v19 = vadd.f32 %v18476_v9, %v10929_v8  ;;  %v11020_v37 = vpop.f32.mrf.mxu0  ;;  %v15872_v17 = vld [vmem:[%s17076_s8 + $0xe88] ss:$16 sps:$4 sm:$0xff]  }
 0x41c   : > { %v10935_v13 = vadd.f32 %v10934_v62, %v10892_v21  ;;  %v10974_v42 = vadd.f32 %v10973_v29, %v10931_v48  ;;  %v11059_v51 = vpop.f32.mrf.mxu1 }
 0x41d   : > { %11347 = vmatpush2.bf16.msra.mxu0 %v15821_v49  ;;  %v10976_v31 = vadd.f32 %v10975_v4, %v10933_v25  ;;  %v11015_v32 = vadd.f32 %v11014_v35, %v10972_v19 }
 0x41e   : > { %11374 = vmatpush1.bf16.msra.mxu1 %v15824_v61  ;;  %11348 = vmatprep.subr.bf16.mxu0 %v15829_v57  ;;  %v11017_v60 = vadd.f32 %v11016_v23, %v10974_v42  ;;  %v10978_v49 = vadd.f32 %v10977_v12, %v10935_v13  ;;  %v11061_v1 = vpop.f32.mrf.mxu1  ;;  %v16735_v57 = vld [vmem:[%s19529_s0 + $0x28] ss:$196 sps:$4 sm:$0xff]  }
 0x41f   : > { %11375 = vmatprep.subr.bf16.mxu1 %v15832_v20  ;;  %v11019_v61 = vadd.f32 %v11018_v30, %v10976_v31  ;;  %v11058_v20 = vadd.f32 %v11057_v26, %v11015_v32  ;;  %v15877_v12 = vld [vmem:[%s17076_s8 + $0xd6c] ss:$16 sps:$4 sm:$0xff]  }
 0x420   : > { %v11021_v10 = vadd.f32 %v11020_v37, %v10978_v49  ;;  %v11060_v47 = vadd.f32 %v11059_v51, %v11017_v60  ;;  %v15880_v23 = vld [vmem:[%s17076_s8 + $0xe6c] ss:$16 sps:$4 sm:$0xff]   ;;  %v15884_v60 = vld [vmem:[%s17076_s8 + $0xe48] ss:$16 sps:$4 sm:$0xff]  }
 0x421   : > { %11349 = vmatpush2.bf16.msra.mxu0 %v15827_v16  ;;  %v15868_v16 = vld [vmem:[%s17076_s8 + $0xeac] ss:$16 sps:$4 sm:$0xff]  }
 0x422   : > { %11376 = vmatpush1.bf16.msra.mxu1 %v15830_v55  ;;  %11350 = vmatprep.subr.bf16.mxu0 %v15835_v52  ;;  %v11062_v55 = vadd.f32 %v11061_v1, %v11019_v61  ;;  %v16736_v52 = vld [vmem:[%s19529_s0 + $0x3c] ss:$196 sps:$4 sm:$0xff]  }
 0x423   : > { %11377 = vmatprep.subr.bf16.mxu1 %v15838_v11  ;;  %v11063_v11 = vpop.f32.mrf.mxu1  ;;  %v15883_v30 = vld [vmem:[%s17076_s8 + $0xd4c] ss:$16 sps:$4 sm:$0xff]  }
 0x424   : > { %v11064_v58 = vadd.f32 %v11063_v11, %v11021_v10  ;;  %v15889_v37 = vld [vmem:[%s17076_s8 + $0xd2c] ss:$16 sps:$4 sm:$0xff]  }
 0x425   : > { %11351 = vmatpush2.bf16.msra.mxu0 %v15833_v54 }
 0x426   : > { %11378 = vmatpush1.bf16.msra.mxu1 %v15836_v6  ;;  %11352 = vmatprep.subr.bf16.mxu0 %v15841_v28  ;;  %v15871_v6 = vld [vmem:[%s17076_s8 + $0xd8c] ss:$16 sps:$4 sm:$0xff]  }
 0x427   : > { %11379 = vmatprep.subr.bf16.mxu1 %v15844_v7 }
 0x429   : > { %11353 = vmatpush2.bf16.msra.mxu0 %v15839_v5 }
 0x42a   : > { %11380 = vmatpush1.bf16.msra.mxu1 %v15842_v0  ;;  %11354 = vmatprep.subr.bf16.mxu0 %v15847_v2  ;;  %v15869_v0 = vld [vmem:[%s17076_s8 + $0xd88] ss:$16 sps:$4 sm:$0xff]  }
 0x42b   : > { %11381 = vmatprep.subr.bf16.mxu1 %v15850_v53 }
 0x42d   : > { %11355 = vmatpush2.bf16.msra.mxu0 %v15845_v56  ;;  %v15875_v56 = vld [vmem:[%s17076_s8 + $0xd68] ss:$16 sps:$4 sm:$0xff]  }
 0x42e   : > { %11382 = vmatpush1.bf16.msra.mxu1 %v15848_v39  ;;  %11410 = vmatprep.subr.bf16.mxu0 %v15856_v40  ;;  %v15878_v39 = vld [vmem:[%s17076_s8 + $0xe68] ss:$16 sps:$4 sm:$0xff]  }
 0x42f   : > { %11383 = vmatprep.subr.bf16.mxu1 %v15853_v33  ;;  %v15886_v33 = vld [vmem:[%s17076_s8 + $0xe4c] ss:$16 sps:$4 sm:$0xff]  }
 0x430   : > { %v11100_v9 = vpop.f32.mrf.mxu0  ;;  %11357 = vmatmul.mubr.bf16.vlgmr.msra.gmra.mxu0 %v16735_v57 }
 0x431   : > { %11411 = vmatpush1.bf16.msra.mxu0 %v15854_v50  ;;  %v18527_v29 = vadd.f32 %v11100_v9, %v11058_v20  ;;  %11442 = vmatprep.mubr.bf16.mxu0 %v16736_v52  ;;  %v15881_v50 = vld [vmem:[%s17076_s8 + $0xd48] ss:$16 sps:$4 sm:$0xff]  }
 0x432   : > { %11384 = vmatpush2.bf16.msra.mxu1 %v15851_v38  ;;  %v11102_v18 = vpop.f32.mrf.mxu0  ;;  %11412 = vmatprep.subr.bf16.mxu0 %v15862_v59 }
 0x433   : > { %11385 = vmatprep.subr.bf16.mxu1 %v15859_v45  ;;  %v18532_v27 = vadd.f32 %v11102_v18, %v11060_v47  ;;  %v12216_v4 = vmul.f32 %v18527_v29, %v18527_v29  ;;  %v15892_v45 = vld [vmem:[%s17076_s8 + $0xe2c] ss:$16 sps:$4 sm:$0xff]  }
 0x434   : > { %v11104_v46 = vpop.f32.mrf.mxu0  ;;  %v15895_v47 = vld [vmem:[%s17076_s8 + $0xd0c] ss:$16 sps:$4 sm:$0xff]  }
 0x435   : > { %v18534_v62 = vadd.f32 %v11104_v46, %v11062_v55  ;;  %11413 = vmatpush1.bf16.msra.mxu0 %v15860_v41  ;;  %v12217_v14 = vmul.f32 %v18532_v27, %v18532_v27  ;;  %v15890_v41 = vld [vmem:[%s17076_s8 + $0xe28] ss:$16 sps:$4 sm:$0xff]   ;;  %v15898_v18 = vld [vmem:[%s17076_s8 + $0xe0c] ss:$16 sps:$4 sm:$0xff]  }
 0x436   : > { %11386 = vmatpush2.bf16.msra.mxu1 %v15857_v15  ;;  %v11106_v54 = vpop.f32.mrf.mxu0  ;;  %11414 = vmatprep.subr.bf16.mxu0 %v15868_v16  ;;  %v15887_v15 = vld [vmem:[%s17076_s8 + $0xd28] ss:$16 sps:$4 sm:$0xff]  }
 0x437   : > { %11387 = vmatprep.subr.bf16.mxu1 %v15865_v36  ;;  %v12184_v35 = vadd.f32 %v18534_v62, %v18527_v29  ;;  %v12220_v28 = vmul.f32 %v18534_v62, %v18534_v62  ;;  %v18546_v7 = vadd.f32 %v11106_v54, %v11064_v58  ;;  %v15893_v46 = vld [vmem:[%s17076_s8 + $0xd08] ss:$16 sps:$4 sm:$0xff]   ;;  %v15901_v54 = vld [vmem:[%s17076_s8 + $0xfec] ss:$16 sps:$4 sm:$0xff]  }
 0x438   : > { %v15896_v58 = vld [vmem:[%s17076_s8 + $0xe08] ss:$16 sps:$4 sm:$0xff]  }
 0x439   : > { %v12185_v43 = vrot.slane %v12184_v35, 4  ;;  %v12224_v24 = vadd.f32 %v12220_v28, %v12216_v4  ;;  %v12191_v22 = vadd.f32 %v18546_v7, %v18532_v27  ;;  %v12221_v5 = vmul.f32 %v18546_v7, %v18546_v7  ;;  %11415 = vmatpush1.bf16.msra.mxu0 %v15866_v34  ;;  %v15899_v28 = vld [vmem:[%s17076_s8 + $0xfe8] ss:$16 sps:$4 sm:$0xff]  }
 0x43a   : > { %11388 = vmatpush2.bf16.msra.mxu1 %v15863_v44  ;;  %11416 = vmatprep.subr.bf16.mxu0 %v15874_v63 }
 0x43b   : > { %11389 = vmatprep.subr.bf16.mxu1 %v15871_v6  ;;  %v12186_v2 = vadd.f32 %v12185_v43, %v12184_v35  ;;  %v12225_v53 = vrot.slane %v12224_v24, 4  ;;  %v12192_v3 = vrot.slane %v12191_v22, 4  ;;  %v12231_v8 = vadd.f32 %v12221_v5, %v12217_v14  ;;  %v15904_v6 = vld [vmem:[%s17076_s8 + $0x10ec] ss:$16 sps:$4 sm:$0xff]   ;;  %v15902_v14 = vld [vmem:[%s17076_s8 + $0x10e8] ss:$16 sps:$4 sm:$0xff]  }
 0x43c   : > { %v12294_v5 = vlaneseq }
 0x43d   : > { %v12187_v48 = vrot.slane %v12186_v2, 2  ;;  %v12226_v26 = vadd.f32 %v12225_v53, %v12224_v24  ;;  %v12193_v21 = vadd.f32 %v12192_v3, %v12191_v22  ;;  %v12232_v25 = vrot.slane %v12231_v8, 4  ;;  %11417 = vmatpush1.bf16.msra.mxu0 %v15872_v17  ;;  %v15907_v24 = vld [vmem:[%s17076_s8 + $0xfcc] ss:$16 sps:$4 sm:$0xff]   ;;  %v16737_v17 = vld [vmem:[%s19529_s0 + $0x30] ss:$196 sps:$4 sm:$0xff]  }
 0x43e   : > { %11390 = vmatpush2.bf16.msra.mxu1 %v15869_v0  ;;  %11418 = vmatprep.subr.bf16.mxu0 %v15880_v23  ;;  %v15910_v22 = vld [vmem:[%s17076_s8 + $0x10cc] ss:$16 sps:$4 sm:$0xff]   ;;  %v15908_v23 = vld [vmem:[%s17076_s8 + $0x10c8] ss:$16 sps:$4 sm:$0xff]   ;;  %v18593_v3 = vshrl.u32 %v12294_v5, 7 }
 0x43f   : > { %11391 = vmatprep.subr.bf16.mxu1 %v15877_v12  ;;  %v12188_v40 = vadd.f32 %v12187_v48, %v12186_v2  ;;  %v12227_v19 = vrot.slane %v12226_v26, 2  ;;  %v12194_v13 = vrot.slane %v12193_v21, 2  ;;  %v12233_v42 = vadd.f32 %v12232_v25, %v12231_v8  ;;  %v15905_v12 = vld [vmem:[%s17076_s8 + $0xfc8] ss:$16 sps:$4 sm:$0xff]   ;;  %v15913_v2 = vld [vmem:[%s17076_s8 + $0xfac] ss:$16 sps:$4 sm:$0xff]  }
 0x440   : > { %v15916_v53 = vld [vmem:[%s17076_s8 + $0x10ac] ss:$16 sps:$4 sm:$0xff]   ;;  %19560 = vst [vmem:[#allocation10_spill] sm:$0xff] %v18593_v3  ;;  %v16738_v8 = vld [vmem:[%s19529_s0 + $0x44] ss:$196 sps:$4 sm:$0xff]  }
 0x441   : > { %v12189_v51 = vrot.slane %v12188_v40, 1  ;;  %v12228_v31 = vadd.f32 %v12227_v19, %v12226_v26  ;;  %v12195_v32 = vadd.f32 %v12194_v13, %v12193_v21  ;;  %v12234_v38 = vrot.slane %v12233_v42, 2  ;;  %11419 = vmatpush1.bf16.msra.mxu0 %v15878_v39  ;;  %v15911_v48 = vld [vmem:[%s17076_s8 + $0xfa8] ss:$16 sps:$4 sm:$0xff]   ;;  %v15919_v21 = vld [vmem:[%s17076_s8 + $0xf8c] ss:$16 sps:$4 sm:$0xff]  }
 0x442   : > { %11392 = vmatpush2.bf16.msra.mxu1 %v15875_v56  ;;  %11420 = vmatprep.subr.bf16.mxu0 %v15886_v33  ;;  %v15914_v26 = vld [vmem:[%s17076_s8 + $0x10a8] ss:$16 sps:$4 sm:$0xff]   ;;  %v15922_v25 = vld [vmem:[%s17076_s8 + $0x108c] ss:$16 sps:$4 sm:$0xff]   ;;  %v12296_v56 = vsub.s32 0, %v18593_v3  ;;  %v12300_v19 = vsub.s32 1, %v18593_v3 }
 0x443   : > { %11393 = vmatprep.subr.bf16.mxu1 %v15883_v30  ;;  %v12190_v59 = vadd.f32 %v12189_v51, %v12188_v40  ;;  %v12229_v49 = vrot.slane %v12228_v31, 1  ;;  %v12196_v61 = vrot.slane %v12195_v32, 1  ;;  %v12235_v1 = vadd.f32 %v12234_v38, %v12233_v42  ;;  %v12292_v39 = vld [vmem:[%s17086_s13] sm:$0xf]  ;;  %v12322_v30 = vld [vmem:[%s18606_s24] sm:$0xf] }
 0x444   : > { %v15917_v33 = vld [vmem:[%s17076_s8 + $0xf88] ss:$16 sps:$4 sm:$0xff]   ;;  %v15925_v13 = vld [vmem:[%s17076_s8 + $0xf6c] ss:$16 sps:$4 sm:$0xff]  }
 0x445   : > { %v18566_v9 = vmul.f32 0.5, %v12190_v59  ;;  %v12230_v57 = vadd.f32 %v12229_v49, %v12228_v31  ;;  %v12197_v20 = vadd.f32 %v12196_v61, %v12195_v32  ;;  %v12236_v10 = vrot.slane %v12235_v1, 1  ;;  %11421 = vmatpush1.bf16.msra.mxu0 %v15884_v60  ;;  %v15920_v40 = vld [vmem:[%s17076_s8 + $0x1088] ss:$16 sps:$4 sm:$0xff]   ;;  %v15928_v42 = vld [vmem:[%s17076_s8 + $0x106c] ss:$16 sps:$4 sm:$0xff]  }
 0x446   : > { %11394 = vmatpush2.bf16.msra.mxu1 %v15881_v50  ;;  %11422 = vmatprep.subr.bf16.mxu0 %v15892_v45  ;;  %v12297_v32 = vrot.slane %v12292_v39, %v12296_v56  ;;  %v15923_v45 = vld [vmem:[%s17076_s8 + $0xf68] ss:$16 sps:$4 sm:$0xff]   ;;  %v12301_v61 = vrot.slane %v12292_v39, %v12300_v19  ;;  %v15964_v39 = vld [vmem:[%s17076_s8 + $0x12ac] ss:$16 sps:$4 sm:$0xff]  }
 0x447   : > { %11395 = vmatprep.subr.bf16.mxu1 %v15889_v37  ;;  %v12252_v36 = vmul.f32 0.5, %v12230_v57  ;;  %v12256_v16 = vmul.f32 %v18566_v9, %v18566_v9  ;;  %v18574_v55 = vmul.f32 0.5, %v12197_v20  ;;  %v12237_v52 = vadd.f32 %v12236_v10, %v12235_v1  ;;  %v15926_v59 = vld [vmem:[%s17076_s8 + $0x1068] ss:$16 sps:$4 sm:$0xff]   ;;  %v15934_v1 = vld [vmem:[%s17076_s8 + $0x104c] ss:$16 sps:$4 sm:$0xff]  }
 0x448   : > { %v12268_v51 = vsub.f32 %v18527_v29, %v18566_v9  ;;  %v12272_v31 = vsub.f32 %v18534_v62, %v18566_v9  ;;  %v12327_v37 = vrot.slane %v12322_v30, %v12296_v56  ;;  %v15931_v62 = vld [vmem:[%s17076_s8 + $0xf4c] ss:$16 sps:$4 sm:$0xff]  }
 0x449   : > { %v12260_v11 = vsub.f32 %v12252_v36, %v12256_v16  ;;  %11423 = vmatpush1.bf16.msra.mxu0 %v15890_v41  ;;  %v12253_v44 = vmul.f32 0.5, %v12237_v52  ;;  %v12257_v34 = vmul.f32 %v18574_v55, %v18574_v55  ;;  %v12269_v49 = vsub.f32 %v18532_v27, %v18574_v55  ;;  %v15940_v52 = vld [vmem:[%s17076_s8 + $0x102c] ss:$16 sps:$4 sm:$0xff]  }
 0x44a   : > { %11396 = vmatpush2.bf16.msra.mxu1 %v15887_v15  ;;  %11424 = vmatprep.subr.bf16.mxu0 %v15898_v18  ;;  %v12273_v29 = vsub.f32 %v18546_v7, %v18574_v55  ;;  %v12331_v27 = vrot.slane %v12322_v30, %v12300_v19  ;;  %v15929_v7 = vld [vmem:[%s17076_s8 + $0xf48] ss:$16 sps:$4 sm:$0xff]   ;;  %v15937_v55 = vld [vmem:[%s17076_s8 + $0xf2c] ss:$16 sps:$4 sm:$0xff]  }
 0x44b   : > { %11397 = vmatprep.subr.bf16.mxu1 %v15895_v47  ;;  %v12264_v63 = vmax.f32 %v12260_v11, 0.0  ;;  %v12261_v4 = vsub.f32 %v12253_v44, %v12257_v34  ;;  %v15932_v18 = vld [vmem:[%s17076_s8 + $0x1048] ss:$16 sps:$4 sm:$0xff]   ;;  %v15961_v56 = vld [vmem:[%s17076_s8 + $0x11ac] ss:$16 sps:$4 sm:$0xff]  }
 0x44c   : > { %v15935_v11 = vld [vmem:[%s17076_s8 + $0xf28] ss:$16 sps:$4 sm:$0xff]   ;;  %v16740_v30 = vld [vmem:[%s19529_s0 + $0x4c] ss:$196 sps:$4 sm:$0xff]  }
 0x44d   : > { %v12276_v35 = vadd.f32 1e-05, %v12264_v63  ;;  %11425 = vmatpush1.bf16.msra.mxu0 %v15896_v58  ;;  %v12265_v43 = vmax.f32 %v12261_v4, 0.0  ;;  %v15946_v63 = vld [vmem:[%s17076_s8 + $0x100c] ss:$16 sps:$4 sm:$0xff]  }
 0x44e   : > { %11398 = vmatpush2.bf16.msra.mxu1 %v15893_v46  ;;  %11426 = vmatprep.subr.bf16.mxu0 %v15901_v54  ;;  %v15938_v54 = vld [vmem:[%s17076_s8 + $0x1028] ss:$16 sps:$4 sm:$0xff]   ;;  %v15967_v19 = vld [vmem:[%s17076_s8 + $0x118c] ss:$16 sps:$4 sm:$0xff]  }
 0x44f   : > { %11453 = vmatprep.subr.bf16.mxu1 %v15904_v6  ;;  %16715 = vrsqrt.f32 %v12276_v35  ;;  %v12277_v0 = vadd.f32 1e-05, %v12265_v43  ;;  %v15943_v6 = vld [vmem:[%s17076_s8 + $0xf0c] ss:$16 sps:$4 sm:$0xff]  }
 0x451   : > { %11400 = vmatmul.mubr.bf16.vlgmr.msra.gmra.mxu1 %v16737_v17  ;;  %11427 = vmatpush2.bf16.msra.mxu0 %v15899_v28  ;;  %16717 = vrsqrt.f32 %v12277_v0  ;;  %v15941_v0 = vld [vmem:[%s17076_s8 + $0xf08] ss:$16 sps:$4 sm:$0xff]  }
 0x452   : > { %11454 = vmatpush1.bf16.msra.mxu1 %v15902_v14  ;;  %11428 = vmatprep.subr.bf16.mxu0 %v15907_v24  ;;  %v15944_v17 = vld [vmem:[%s17076_s8 + $0x1008] ss:$16 sps:$4 sm:$0xff]  }
 0x453   : > { %11455 = vmatprep.subr.bf16.mxu1 %v15910_v22  ;;  %11485 = vmatprep.mubr.bf16.mxu1 %v16738_v8  ;;  %v15955_v8 = vld [vmem:[%s17076_s8 + $0x11cc] ss:$16 sps:$4 sm:$0xff]  }
 0x455   : > { %11429 = vmatpush2.bf16.msra.mxu0 %v15905_v12  ;;  %v15949_v12 = vld [vmem:[%s17076_s8 + $0x11ec] ss:$16 sps:$4 sm:$0xff]  }
 0x456   : > { %11456 = vmatpush1.bf16.msra.mxu1 %v15908_v23  ;;  %11430 = vmatprep.subr.bf16.mxu0 %v15913_v2  ;;  %v15952_v23 = vld [vmem:[%s17076_s8 + $0x12ec] ss:$16 sps:$4 sm:$0xff]   ;;  %v15947_v2 = vld [vmem:[%s17076_s8 + $0x11e8] ss:$16 sps:$4 sm:$0xff]  }
 0x457   : > { %11457 = vmatprep.subr.bf16.mxu1 %v15916_v53  ;;  %v15950_v53 = vld [vmem:[%s17076_s8 + $0x12e8] ss:$16 sps:$4 sm:$0xff]  }
 0x459   : > { %11431 = vmatpush2.bf16.msra.mxu0 %v15911_v48  ;;  %v15958_v48 = vld [vmem:[%s17076_s8 + $0x12cc] ss:$16 sps:$4 sm:$0xff]  }
 0x45a   : > { %11458 = vmatpush1.bf16.msra.mxu1 %v15914_v26  ;;  %11432 = vmatprep.subr.bf16.mxu0 %v15919_v21  ;;  %v16739_v26 = vld [vmem:[%s19529_s0 + $0x38] ss:$196 sps:$4 sm:$0xff]  }
 0x45b   : > { %11459 = vmatprep.subr.bf16.mxu1 %v15922_v25  ;;  %v15953_v21 = vld [vmem:[%s17076_s8 + $0x11c8] ss:$16 sps:$4 sm:$0xff]  }
 0x45c   : > { %v16716_v38 = vpop.eup %16715  ;;  %v15956_v25 = vld [vmem:[%s17076_s8 + $0x12c8] ss:$16 sps:$4 sm:$0xff]  }
 0x45d   : > { %v12284_v50 = vmul.f32 %v16716_v38, %v12268_v51  ;;  %v12288_v60 = vmul.f32 %v16716_v38, %v12272_v31  ;;  %11433 = vmatpush2.bf16.msra.mxu0 %v15917_v33  ;;  %v15959_v33 = vld [vmem:[%s17076_s8 + $0x11a8] ss:$16 sps:$4 sm:$0xff]   ;;  %v15973_v31 = vld [vmem:[%s17076_s8 + $0x116c] ss:$16 sps:$4 sm:$0xff]  }
 0x45e   : > { %11460 = vmatpush1.bf16.msra.mxu1 %v15920_v40  ;;  %11434 = vmatprep.subr.bf16.mxu0 %v15925_v13  ;;  %v16718_v9 = vpop.eup %16717  ;;  %v15962_v40 = vld [vmem:[%s17076_s8 + $0x12a8] ss:$16 sps:$4 sm:$0xff]   ;;  %v15970_v13 = vld [vmem:[%s17076_s8 + $0x128c] ss:$16 sps:$4 sm:$0xff]  }
 0x45f   : > { %11461 = vmatprep.subr.bf16.mxu1 %v15928_v42  ;;  %v12314_v57 = vmul.f32 %v12297_v32, %v12284_v50  ;;  %v12318_v20 = vmul.f32 %v12297_v32, %v12288_v60  ;;  %v12285_v10 = vmul.f32 %v16718_v9, %v12269_v49  ;;  %v12289_v15 = vmul.f32 %v16718_v9, %v12273_v29  ;;  %v15965_v42 = vld [vmem:[%s17076_s8 + $0x1188] ss:$16 sps:$4 sm:$0xff]   ;;  %v15976_v32 = vld [vmem:[%s17076_s8 + $0x126c] ss:$16 sps:$4 sm:$0xff]  }
 0x460   : > { %v15968_v51 = vld [vmem:[%s17076_s8 + $0x1288] ss:$16 sps:$4 sm:$0xff]   ;;  %v15979_v60 = vld [vmem:[%s17076_s8 + $0x114c] ss:$16 sps:$4 sm:$0xff]  }
 0x461   : > { %v12344_v41 = vadd.f32 %v12327_v37, %v12314_v57  ;;  %v12348_v47 = vadd.f32 %v12327_v37, %v12318_v20  ;;  %11435 = vmatpush2.bf16.msra.mxu0 %v15923_v45  ;;  %v12315_v36 = vmul.f32 %v12301_v61, %v12285_v10  ;;  %v12319_v16 = vmul.f32 %v12301_v61, %v12289_v15  ;;  %v15971_v38 = vld [vmem:[%s17076_s8 + $0x1168] ss:$16 sps:$4 sm:$0xff]   ;;  %v15982_v37 = vld [vmem:[%s17076_s8 + $0x124c] ss:$16 sps:$4 sm:$0xff]  }
 0x462   : > { %11462 = vmatpush1.bf16.msra.mxu1 %v15926_v59  ;;  %11436 = vmatprep.subr.bf16.mxu0 %v15931_v62  ;;  %v15974_v50 = vld [vmem:[%s17076_s8 + $0x1268] ss:$16 sps:$4 sm:$0xff]   ;;  %v15985_v49 = vld [vmem:[%s17076_s8 + $0x112c] ss:$16 sps:$4 sm:$0xff]  }
 0x463   : > { %11463 = vmatprep.subr.bf16.mxu1 %v15934_v1  ;;  %v12360_v46 = vmul.f32 0.2, %v12344_v41  ;;  %v12364_v58 = vmul.f32 0.2, %v12348_v47  ;;  %v12345_v44 = vadd.f32 %v12331_v27, %v12315_v36  ;;  %v12349_v34 = vadd.f32 %v12331_v27, %v12319_v16  ;;  %v15977_v45 = vld [vmem:[%s17076_s8 + $0x1148] ss:$16 sps:$4 sm:$0xff]  }
 0x464   : > { %vm12352_vm0 = vcmp.gt.f32.partialorder %v12344_v41, 0.0  ;;  %vm12356_vm1 = vcmp.gt.f32.partialorder %v12348_v47, 0.0  ;;  %v15980_v59 = vld [vmem:[%s17076_s8 + $0x1248] ss:$16 sps:$4 sm:$0xff]   ;;  %v15988_v29 = vld [vmem:[%s17076_s8 + $0x122c] ss:$16 sps:$4 sm:$0xff]  }
 0x465   : > { %11437 = vmatpush2.bf16.msra.mxu0 %v15929_v7  ;;  %vm12353_vm2 = vcmp.gt.f32.partialorder %v12345_v44, 0.0  ;;  %vm12357_vm3 = vcmp.gt.f32.partialorder %v12349_v34, 0.0  ;;  %v12361_v4 = vmul.f32 0.2, %v12345_v44  ;;  %v12365_v35 = vmul.f32 0.2, %v12349_v34 }
 0x466   : > { %11464 = vmatpush1.bf16.msra.mxu1 %v15932_v18  ;;  %11438 = vmatprep.subr.bf16.mxu0 %v15937_v55  ;;  %v12368_v28 = vsel %vm12352_vm0, %v12344_v41, %v12360_v46  ;;  %v12372_v14 = vsel %vm12356_vm1, %v12348_v47, %v12364_v58  ;;  %v15983_v61 = vld [vmem:[%s17076_s8 + $0x1128] ss:$16 sps:$4 sm:$0xff]   ;;  %v15991_v1 = vld [vmem:[%s17076_s8 + $0x110c] ss:$16 sps:$4 sm:$0xff]   ;;  %v16741_v18 = vld [vmem:[%s19529_s0 + $0x40] ss:$196 sps:$4 sm:$0xff]  }
 0x467   : > { %11465 = vmatprep.subr.bf16.mxu1 %v15940_v52  ;;  %v12369_v43 = vsel %vm12353_vm2, %v12345_v44, %v12361_v4  ;;  %v12373_v24 = vsel %vm12357_vm3, %v12349_v34, %v12365_v35  ;;  %v15986_v62 = vld [vmem:[%s17076_s8 + $0x1228] ss:$16 sps:$4 sm:$0xff]   ;;  %v15994_v9 = vld [vmem:[%s17076_s8 + $0x120c] ss:$16 sps:$4 sm:$0xff]  }
 0x468   : > { %v14214_v22 = vpack.c.bf16 %v12369_v43, %v12368_v28  ;;  %v14216_v5 = vpack.c.bf16 %v12373_v24, %v12372_v14  ;;  %v15989_v57 = vld [vmem:[%s17076_s8 + $0x1108] ss:$16 sps:$4 sm:$0xff]   ;;  %v15997_v10 = vld [vmem:[%s17076_s8 + $0x13ec] ss:$16 sps:$4 sm:$0xff]  }
 0x469   : > { %11439 = vmatpush2.bf16.msra.mxu0 %v15935_v11  ;;  %v15992_v20 = vld [vmem:[%s17076_s8 + $0x1208] ss:$16 sps:$4 sm:$0xff]   ;;  %v16000_v15 = vld [vmem:[%s17076_s8 + $0x14ec] ss:$16 sps:$4 sm:$0xff]  }
 0x46a   : > { %11466 = vmatpush1.bf16.msra.mxu1 %v15938_v54  ;;  %11440 = vmatprep.subr.bf16.mxu0 %v15943_v6  ;;  %12400 = vst [vmem:[%s18641_s30] sm:$0xff] %v14214_v22  ;;  %12402 = vst [vmem:[%s18641_s30 + $0x10] sm:$0xff] %v14216_v5  ;;  %v15995_v27 = vld [vmem:[%s17076_s8 + $0x13e8] ss:$16 sps:$4 sm:$0xff]   ;;  %v16003_v47 = vld [vmem:[%s17076_s8 + $0x13cc] ss:$16 sps:$4 sm:$0xff]  }
 0x46b   : > { %11467 = vmatprep.subr.bf16.mxu1 %v15946_v63  ;;  %v15998_v41 = vld [vmem:[%s17076_s8 + $0x14e8] ss:$16 sps:$4 sm:$0xff]   ;;  %v16006_v7 = vld [vmem:[%s17076_s8 + $0x14cc] ss:$16 sps:$4 sm:$0xff]  }
 0x46c   : > { %v16001_v36 = vld [vmem:[%s17076_s8 + $0x13c8] ss:$16 sps:$4 sm:$0xff]   ;;  %v16009_v55 = vld [vmem:[%s17076_s8 + $0x13ac] ss:$16 sps:$4 sm:$0xff]  }
 0x46d   : > { %11441 = vmatpush2.bf16.msra.mxu0 %v15941_v0  ;;  %v16004_v16 = vld [vmem:[%s17076_s8 + $0x14c8] ss:$16 sps:$4 sm:$0xff]   ;;  %v16012_v52 = vld [vmem:[%s17076_s8 + $0x14ac] ss:$16 sps:$4 sm:$0xff]  }
 0x46e   : > { %11468 = vmatpush1.bf16.msra.mxu1 %v15944_v17  ;;  %11496 = vmatprep.subr.bf16.mxu0 %v15952_v23  ;;  %v16742_v11 = vld [vmem:[%s19529_s0 + $0x54] ss:$196 sps:$4 sm:$0xff]   ;;  %v16015_v44 = vld [vmem:[%s17076_s8 + $0x138c] ss:$16 sps:$4 sm:$0xff]  }
 0x46f   : > { %11469 = vmatprep.subr.bf16.mxu1 %v15949_v12  ;;  %v16007_v46 = vld [vmem:[%s17076_s8 + $0x13a8] ss:$16 sps:$4 sm:$0xff]   ;;  %v16018_v34 = vld [vmem:[%s17076_s8 + $0x148c] ss:$16 sps:$4 sm:$0xff]  }
 0x470   : > { %11443 = vmatmul.mubr.bf16.vlgmr.msra.gmra.mxu0 %v16739_v26  ;;  %v16010_v58 = vld [vmem:[%s17076_s8 + $0x14a8] ss:$16 sps:$4 sm:$0xff]   ;;  %v16021_v63 = vld [vmem:[%s17076_s8 + $0x136c] ss:$16 sps:$4 sm:$0xff]  }
 0x471   : > { %11497 = vmatpush1.bf16.msra.mxu0 %v15950_v53  ;;  %11528 = vmatprep.mubr.bf16.mxu0 %v16740_v30  ;;  %v16013_v54 = vld [vmem:[%s17076_s8 + $0x1388] ss:$16 sps:$4 sm:$0xff]   ;;  %v16024_v4 = vld [vmem:[%s17076_s8 + $0x146c] ss:$16 sps:$4 sm:$0xff]  }
 0x472   : > { %11470 = vmatpush2.bf16.msra.mxu1 %v15947_v2  ;;  %11498 = vmatprep.subr.bf16.mxu0 %v15958_v48  ;;  %v16016_v6 = vld [vmem:[%s17076_s8 + $0x1488] ss:$16 sps:$4 sm:$0xff]   ;;  %v16027_v14 = vld [vmem:[%s17076_s8 + $0x134c] ss:$16 sps:$4 sm:$0xff]  }
 0x473   : > { %11471 = vmatprep.subr.bf16.mxu1 %v15955_v8  ;;  %v16019_v35 = vld [vmem:[%s17076_s8 + $0x1368] ss:$16 sps:$4 sm:$0xff]   ;;  %v16030_v43 = vld [vmem:[%s17076_s8 + $0x144c] ss:$16 sps:$4 sm:$0xff]  }
 0x474   : > { %v16022_v28 = vld [vmem:[%s17076_s8 + $0x1468] ss:$16 sps:$4 sm:$0xff]   ;;  %v16033_v5 = vld [vmem:[%s17076_s8 + $0x132c] ss:$16 sps:$4 sm:$0xff]  }
 0x475   : > { %11499 = vmatpush1.bf16.msra.mxu0 %v15956_v25  ;;  %v16025_v24 = vld [vmem:[%s17076_s8 + $0x1348] ss:$16 sps:$4 sm:$0xff]   ;;  %v16036_v0 = vld [vmem:[%s17076_s8 + $0x142c] ss:$16 sps:$4 sm:$0xff]  }
 0x476   : > { %11472 = vmatpush2.bf16.msra.mxu1 %v15953_v21  ;;  %11500 = vmatprep.subr.bf16.mxu0 %v15964_v39  ;;  %v16028_v22 = vld [vmem:[%s17076_s8 + $0x1448] ss:$16 sps:$4 sm:$0xff]   ;;  %v16039_v23 = vld [vmem:[%s17076_s8 + $0x130c] ss:$16 sps:$4 sm:$0xff]  }
 0x477   : > { %11473 = vmatprep.subr.bf16.mxu1 %v15961_v56  ;;  %v16031_v17 = vld [vmem:[%s17076_s8 + $0x1328] ss:$16 sps:$4 sm:$0xff]   ;;  %v16042_v2 = vld [vmem:[%s17076_s8 + $0x140c] ss:$16 sps:$4 sm:$0xff]  }
 0x478   : > { %v16034_v12 = vld [vmem:[%s17076_s8 + $0x1428] ss:$16 sps:$4 sm:$0xff]   ;;  %v16045_v48 = vld [vmem:[%s17076_s8 + $0x15ec] ss:$16 sps:$4 sm:$0xff]  }
 0x479   : > { %11501 = vmatpush1.bf16.msra.mxu0 %v15962_v40  ;;  %v16037_v53 = vld [vmem:[%s17076_s8 + $0x1308] ss:$16 sps:$4 sm:$0xff]   ;;  %v16048_v26 = vld [vmem:[%s17076_s8 + $0x16ec] ss:$16 sps:$4 sm:$0xff]  }
 0x47a   : > { %11474 = vmatpush2.bf16.msra.mxu1 %v15959_v33  ;;  %11502 = vmatprep.subr.bf16.mxu0 %v15970_v13  ;;  %v16040_v8 = vld [vmem:[%s17076_s8 + $0x1408] ss:$16 sps:$4 sm:$0xff]   ;;  %v16051_v56 = vld [vmem:[%s17076_s8 + $0x15cc] ss:$16 sps:$4 sm:$0xff]  }
 0x47b   : > { %11475 = vmatprep.subr.bf16.mxu1 %v15967_v19  ;;  %v16043_v21 = vld [vmem:[%s17076_s8 + $0x15e8] ss:$16 sps:$4 sm:$0xff]   ;;  %v16054_v39 = vld [vmem:[%s17076_s8 + $0x16cc] ss:$16 sps:$4 sm:$0xff]  }
 0x47c   : > { %v16046_v25 = vld [vmem:[%s17076_s8 + $0x16e8] ss:$16 sps:$4 sm:$0xff]   ;;  %v16057_v19 = vld [vmem:[%s17076_s8 + $0x15ac] ss:$16 sps:$4 sm:$0xff]  }
 0x47d   : > { %11503 = vmatpush1.bf16.msra.mxu0 %v15968_v51  ;;  %v16743_v30 = vld [vmem:[%s19529_s0 + $0x48] ss:$196 sps:$4 sm:$0xff]  }
 0x47e   : > { %11476 = vmatpush2.bf16.msra.mxu1 %v15965_v42  ;;  %11504 = vmatprep.subr.bf16.mxu0 %v15976_v32  ;;  %v16049_v33 = vld [vmem:[%s17076_s8 + $0x15c8] ss:$16 sps:$4 sm:$0xff]   ;;  %v16060_v13 = vld [vmem:[%s17076_s8 + $0x16ac] ss:$16 sps:$4 sm:$0xff]  }
 0x47f   : > { %11477 = vmatprep.subr.bf16.mxu1 %v15973_v31  ;;  %v16052_v40 = vld [vmem:[%s17076_s8 + $0x16c8] ss:$16 sps:$4 sm:$0xff]   ;;  %v16744_v42 = vld [vmem:[%s19529_s0 + $0x5c] ss:$196 sps:$4 sm:$0xff]  }
 0x480   : > { %v16055_v51 = vld [vmem:[%s17076_s8 + $0x15a8] ss:$16 sps:$4 sm:$0xff]   ;;  %v16063_v32 = vld [vmem:[%s17076_s8 + $0x158c] ss:$16 sps:$4 sm:$0xff]  }
 0x481   : > { %11505 = vmatpush1.bf16.msra.mxu0 %v15974_v50  ;;  %v16058_v31 = vld [vmem:[%s17076_s8 + $0x16a8] ss:$16 sps:$4 sm:$0xff]  }
 0x482   : > { %11478 = vmatpush2.bf16.msra.mxu1 %v15971_v38  ;;  %11506 = vmatprep.subr.bf16.mxu0 %v15982_v37  ;;  %v16066_v38 = vld [vmem:[%s17076_s8 + $0x168c] ss:$16 sps:$4 sm:$0xff]   ;;  %v16061_v50 = vld [vmem:[%s17076_s8 + $0x1588] ss:$16 sps:$4 sm:$0xff]  }
 0x483   : > { %11479 = vmatprep.subr.bf16.mxu1 %v15979_v60  ;;  %v16064_v60 = vld [vmem:[%s17076_s8 + $0x1688] ss:$16 sps:$4 sm:$0xff]   ;;  %v16069_v37 = vld [vmem:[%s17076_s8 + $0x156c] ss:$16 sps:$4 sm:$0xff]  }
 0x485   : > { %11507 = vmatpush1.bf16.msra.mxu0 %v15980_v59  ;;  %v16067_v59 = vld [vmem:[%s17076_s8 + $0x1568] ss:$16 sps:$4 sm:$0xff]  }
 0x486   : > { %11480 = vmatpush2.bf16.msra.mxu1 %v15977_v45  ;;  %11508 = vmatprep.subr.bf16.mxu0 %v15988_v29  ;;  %v16072_v45 = vld [vmem:[%s17076_s8 + $0x166c] ss:$16 sps:$4 sm:$0xff]  }
 0x487   : > { %11481 = vmatprep.subr.bf16.mxu1 %v15985_v49  ;;  %v16070_v49 = vld [vmem:[%s17076_s8 + $0x1668] ss:$16 sps:$4 sm:$0xff]   ;;  %v16075_v29 = vld [vmem:[%s17076_s8 + $0x154c] ss:$16 sps:$4 sm:$0xff]  }
 0x489   : > { %11509 = vmatpush1.bf16.msra.mxu0 %v15986_v62  ;;  %v16073_v62 = vld [vmem:[%s17076_s8 + $0x1548] ss:$16 sps:$4 sm:$0xff]  }
 0x48a   : > { %11482 = vmatpush2.bf16.msra.mxu1 %v15983_v61  ;;  %11510 = vmatprep.subr.bf16.mxu0 %v15994_v9  ;;  %v16078_v61 = vld [vmem:[%s17076_s8 + $0x164c] ss:$16 sps:$4 sm:$0xff]  }
 0x48b   : > { %11483 = vmatprep.subr.bf16.mxu1 %v15991_v1  ;;  %v16076_v1 = vld [vmem:[%s17076_s8 + $0x1648] ss:$16 sps:$4 sm:$0xff]   ;;  %v16081_v9 = vld [vmem:[%s17076_s8 + $0x152c] ss:$16 sps:$4 sm:$0xff]  }
 0x48d   : > { %11511 = vmatpush1.bf16.msra.mxu0 %v15992_v20  ;;  %v16079_v20 = vld [vmem:[%s17076_s8 + $0x1528] ss:$16 sps:$4 sm:$0xff]  }
 0x48e   : > { %11484 = vmatpush2.bf16.msra.mxu1 %v15989_v57  ;;  %11512 = vmatprep.subr.bf16.mxu0 %v15997_v10  ;;  %v16084_v57 = vld [vmem:[%s17076_s8 + $0x162c] ss:$16 sps:$4 sm:$0xff]   ;;  %v16082_v10 = vld [vmem:[%s17076_s8 + $0x1628] ss:$16 sps:$4 sm:$0xff]  }
 0x48f   : > { %11539 = vmatprep.subr.bf16.mxu1 %v16000_v15  ;;  %v16087_v15 = vld [vmem:[%s17076_s8 + $0x150c] ss:$16 sps:$4 sm:$0xff]  }
 0x491   : > { %11486 = vmatmul.mubr.bf16.vlgmr.msra.gmra.mxu1 %v16741_v18  ;;  %11513 = vmatpush2.bf16.msra.mxu0 %v15995_v27  ;;  %v16090_v27 = vld [vmem:[%s17076_s8 + $0x160c] ss:$16 sps:$4 sm:$0xff]  }
 0x492   : > { %11540 = vmatpush1.bf16.msra.mxu1 %v15998_v41  ;;  %11514 = vmatprep.subr.bf16.mxu0 %v16003_v47  ;;  %v16085_v41 = vld [vmem:[%s17076_s8 + $0x1508] ss:$16 sps:$4 sm:$0xff]   ;;  %v16096_v18 = vld [vmem:[%s17076_s8 + $0x18ec] ss:$16 sps:$4 sm:$0xff]  }
 0x493   : > { %11541 = vmatprep.subr.bf16.mxu1 %v16006_v7  ;;  %11571 = vmatprep.mubr.bf16.mxu1 %v16742_v11  ;;  %v16088_v47 = vld [vmem:[%s17076_s8 + $0x1608] ss:$16 sps:$4 sm:$0xff]   ;;  %v16093_v7 = vld [vmem:[%s17076_s8 + $0x17ec] ss:$16 sps:$4 sm:$0xff]   ;;  %v16745_v11 = vld [vmem:[%s19529_s0 + $0x50] ss:$196 sps:$4 sm:$0xff]  }
 0x495   : > { %11515 = vmatpush2.bf16.msra.mxu0 %v16001_v36  ;;  %v16091_v36 = vld [vmem:[%s17076_s8 + $0x17e8] ss:$16 sps:$4 sm:$0xff]  }
 0x496   : > { %11542 = vmatpush1.bf16.msra.mxu1 %v16004_v16  ;;  %11516 = vmatprep.subr.bf16.mxu0 %v16009_v55  ;;  %v16094_v16 = vld [vmem:[%s17076_s8 + $0x18e8] ss:$16 sps:$4 sm:$0xff]   ;;  %v16099_v55 = vld [vmem:[%s17076_s8 + $0x17cc] ss:$16 sps:$4 sm:$0xff]  }
 0x497   : > { %11543 = vmatprep.subr.bf16.mxu1 %v16012_v52  ;;  %v16102_v52 = vld [vmem:[%s17076_s8 + $0x18cc] ss:$16 sps:$4 sm:$0xff]  }
 0x499   : > { %11517 = vmatpush2.bf16.msra.mxu0 %v16007_v46  ;;  %v16097_v46 = vld [vmem:[%s17076_s8 + $0x17c8] ss:$16 sps:$4 sm:$0xff]  }
 0x49a   : > { %11544 = vmatpush1.bf16.msra.mxu1 %v16010_v58  ;;  %11518 = vmatprep.subr.bf16.mxu0 %v16015_v44  ;;  %v16100_v58 = vld [vmem:[%s17076_s8 + $0x18c8] ss:$16 sps:$4 sm:$0xff]   ;;  %v16105_v44 = vld [vmem:[%s17076_s8 + $0x17ac] ss:$16 sps:$4 sm:$0xff]  }
 0x49b   : > { %11545 = vmatprep.subr.bf16.mxu1 %v16018_v34  ;;  %v16108_v34 = vld [vmem:[%s17076_s8 + $0x18ac] ss:$16 sps:$4 sm:$0xff]  }
 0x49d   : > { %11519 = vmatpush2.bf16.msra.mxu0 %v16013_v54  ;;  %v16746_v54 = vld [vmem:[%s19529_s0 + $0x64] ss:$196 sps:$4 sm:$0xff]  }
 0x49e   : > { %11546 = vmatpush1.bf16.msra.mxu1 %v16016_v6  ;;  %11520 = vmatprep.subr.bf16.mxu0 %v16021_v63  ;;  %v16103_v6 = vld [vmem:[%s17076_s8 + $0x17a8] ss:$16 sps:$4 sm:$0xff]  }
 0x49f   : > { %11547 = vmatprep.subr.bf16.mxu1 %v16024_v4  ;;  %v16106_v63 = vld [vmem:[%s17076_s8 + $0x18a8] ss:$16 sps:$4 sm:$0xff]   ;;  %v16111_v4 = vld [vmem:[%s17076_s8 + $0x178c] ss:$16 sps:$4 sm:$0xff]  }
 0x4a1   : > { %11521 = vmatpush2.bf16.msra.mxu0 %v16019_v35  ;;  %v16114_v35 = vld [vmem:[%s17076_s8 + $0x188c] ss:$16 sps:$4 sm:$0xff]  }
 0x4a2   : > { %11548 = vmatpush1.bf16.msra.mxu1 %v16022_v28  ;;  %11522 = vmatprep.subr.bf16.mxu0 %v16027_v14  ;;  %v16109_v28 = vld [vmem:[%s17076_s8 + $0x1788] ss:$16 sps:$4 sm:$0xff]  }
 0x4a3   : > { %11549 = vmatprep.subr.bf16.mxu1 %v16030_v43  ;;  %v16112_v14 = vld [vmem:[%s17076_s8 + $0x1888] ss:$16 sps:$4 sm:$0xff]   ;;  %v16117_v43 = vld [vmem:[%s17076_s8 + $0x176c] ss:$16 sps:$4 sm:$0xff]  }
 0x4a5   : > { %11523 = vmatpush2.bf16.msra.mxu0 %v16025_v24  ;;  %v16120_v24 = vld [vmem:[%s17076_s8 + $0x186c] ss:$16 sps:$4 sm:$0xff]  }
 0x4a6   : > { %11550 = vmatpush1.bf16.msra.mxu1 %v16028_v22  ;;  %11524 = vmatprep.subr.bf16.mxu0 %v16033_v5  ;;  %v16115_v22 = vld [vmem:[%s17076_s8 + $0x1768] ss:$16 sps:$4 sm:$0xff]  }
 0x4a7   : > { %11551 = vmatprep.subr.bf16.mxu1 %v16036_v0  ;;  %v16118_v5 = vld [vmem:[%s17076_s8 + $0x1868] ss:$16 sps:$4 sm:$0xff]   ;;  %v16123_v0 = vld [vmem:[%s17076_s8 + $0x174c] ss:$16 sps:$4 sm:$0xff]  }
 0x4a9   : > { %11525 = vmatpush2.bf16.msra.mxu0 %v16031_v17  ;;  %v16126_v17 = vld [vmem:[%s17076_s8 + $0x184c] ss:$16 sps:$4 sm:$0xff]  }
 0x4aa   : > { %11552 = vmatpush1.bf16.msra.mxu1 %v16034_v12  ;;  %11526 = vmatprep.subr.bf16.mxu0 %v16039_v23  ;;  %v16121_v12 = vld [vmem:[%s17076_s8 + $0x1748] ss:$16 sps:$4 sm:$0xff]  }
 0x4ab   : > { %11553 = vmatprep.subr.bf16.mxu1 %v16042_v2  ;;  %v16124_v23 = vld [vmem:[%s17076_s8 + $0x1848] ss:$16 sps:$4 sm:$0xff]   ;;  %v16129_v2 = vld [vmem:[%s17076_s8 + $0x172c] ss:$16 sps:$4 sm:$0xff]  }
 0x4ad   : > { %11527 = vmatpush2.bf16.msra.mxu0 %v16037_v53  ;;  %v16132_v53 = vld [vmem:[%s17076_s8 + $0x182c] ss:$16 sps:$4 sm:$0xff]  }
 0x4ae   : > { %11554 = vmatpush1.bf16.msra.mxu1 %v16040_v8  ;;  %11582 = vmatprep.subr.bf16.mxu0 %v16048_v26  ;;  %v16127_v8 = vld [vmem:[%s17076_s8 + $0x1728] ss:$16 sps:$4 sm:$0xff]   ;;  %v16135_v26 = vld [vmem:[%s17076_s8 + $0x170c] ss:$16 sps:$4 sm:$0xff]  }
 0x4af   : > { %11555 = vmatprep.subr.bf16.mxu1 %v16045_v48  ;;  %v16130_v48 = vld [vmem:[%s17076_s8 + $0x1828] ss:$16 sps:$4 sm:$0xff]  }
 0x4b0   : > { %11529 = vmatmul.mubr.bf16.vlgmr.msra.gmra.mxu0 %v16743_v30  ;;  %v16144_v30 = vld [vmem:[%s17076_s8 + $0x1aec] ss:$16 sps:$4 sm:$0xff]  }
 0x4b1   : > { %11583 = vmatpush1.bf16.msra.mxu0 %v16046_v25  ;;  %11614 = vmatprep.mubr.bf16.mxu0 %v16744_v42  ;;  %v16133_v25 = vld [vmem:[%s17076_s8 + $0x1708] ss:$16 sps:$4 sm:$0xff]  }
 0x4b2   : > { %11556 = vmatpush2.bf16.msra.mxu1 %v16043_v21  ;;  %11584 = vmatprep.subr.bf16.mxu0 %v16054_v39  ;;  %v16138_v21 = vld [vmem:[%s17076_s8 + $0x180c] ss:$16 sps:$4 sm:$0xff]  }
 0x4b3   : > { %11557 = vmatprep.subr.bf16.mxu1 %v16051_v56  ;;  %v16136_v56 = vld [vmem:[%s17076_s8 + $0x1808] ss:$16 sps:$4 sm:$0xff]   ;;  %v16141_v39 = vld [vmem:[%s17076_s8 + $0x19ec] ss:$16 sps:$4 sm:$0xff]  }
 0x4b4   : > { %v16747_v42 = vld [vmem:[%s19529_s0 + $0x58] ss:$196 sps:$4 sm:$0xff]  }
 0x4b5   : > { %11585 = vmatpush1.bf16.msra.mxu0 %v16052_v40  ;;  %v16142_v40 = vld [vmem:[%s17076_s8 + $0x1ae8] ss:$16 sps:$4 sm:$0xff]  }
 0x4b6   : > { %11558 = vmatpush2.bf16.msra.mxu1 %v16049_v33  ;;  %11586 = vmatprep.subr.bf16.mxu0 %v16060_v13  ;;  %v16139_v33 = vld [vmem:[%s17076_s8 + $0x19e8] ss:$16 sps:$4 sm:$0xff]   ;;  %v16150_v13 = vld [vmem:[%s17076_s8 + $0x1acc] ss:$16 sps:$4 sm:$0xff]  }
 0x4b7   : > { %11559 = vmatprep.subr.bf16.mxu1 %v16057_v19  ;;  %v16147_v19 = vld [vmem:[%s17076_s8 + $0x19cc] ss:$16 sps:$4 sm:$0xff]  }
 0x4b9   : > { %11587 = vmatpush1.bf16.msra.mxu0 %v16058_v31  ;;  %v16148_v31 = vld [vmem:[%s17076_s8 + $0x1ac8] ss:$16 sps:$4 sm:$0xff]  }
 0x4ba   : > { %11560 = vmatpush2.bf16.msra.mxu1 %v16055_v51  ;;  %11588 = vmatprep.subr.bf16.mxu0 %v16066_v38  ;;  %v16145_v51 = vld [vmem:[%s17076_s8 + $0x19c8] ss:$16 sps:$4 sm:$0xff]   ;;  %v16156_v38 = vld [vmem:[%s17076_s8 + $0x1aac] ss:$16 sps:$4 sm:$0xff]  }
 0x4bb   : > { %11561 = vmatprep.subr.bf16.mxu1 %v16063_v32  ;;  %v16153_v32 = vld [vmem:[%s17076_s8 + $0x19ac] ss:$16 sps:$4 sm:$0xff]  }
 0x4bd   : > { %11589 = vmatpush1.bf16.msra.mxu0 %v16064_v60  ;;  %v16151_v60 = vld [vmem:[%s17076_s8 + $0x19a8] ss:$16 sps:$4 sm:$0xff]  }
 0x4be   : > { %11562 = vmatpush2.bf16.msra.mxu1 %v16061_v50  ;;  %11590 = vmatprep.subr.bf16.mxu0 %v16072_v45  ;;  %v16748_v50 = vld [vmem:[%s19529_s0 + $0x6c] ss:$196 sps:$4 sm:$0xff]  }
 0x4bf   : > { %11563 = vmatprep.subr.bf16.mxu1 %v16069_v37  ;;  %v16154_v37 = vld [vmem:[%s17076_s8 + $0x1aa8] ss:$16 sps:$4 sm:$0xff]   ;;  %v16159_v45 = vld [vmem:[%s17076_s8 + $0x198c] ss:$16 sps:$4 sm:$0xff]  }
 0x4c1   : > { %11591 = vmatpush1.bf16.msra.mxu0 %v16070_v49  ;;  %v16157_v49 = vld [vmem:[%s17076_s8 + $0x1988] ss:$16 sps:$4 sm:$0xff]  }
 0x4c2   : > { %11564 = vmatpush2.bf16.msra.mxu1 %v16067_v59  ;;  %11592 = vmatprep.subr.bf16.mxu0 %v16078_v61  ;;  %v16162_v59 = vld [vmem:[%s17076_s8 + $0x1a8c] ss:$16 sps:$4 sm:$0xff]  }
 0x4c3   : > { %11565 = vmatprep.subr.bf16.mxu1 %v16075_v29  ;;  %v16160_v29 = vld [vmem:[%s17076_s8 + $0x1a88] ss:$16 sps:$4 sm:$0xff]   ;;  %v16165_v61 = vld [vmem:[%s17076_s8 + $0x196c] ss:$16 sps:$4 sm:$0xff]  }
 0x4c5   : > { %11593 = vmatpush1.bf16.msra.mxu0 %v16076_v1  ;;  %v16163_v1 = vld [vmem:[%s17076_s8 + $0x1968] ss:$16 sps:$4 sm:$0xff]  }
 0x4c6   : > { %11566 = vmatpush2.bf16.msra.mxu1 %v16073_v62  ;;  %11594 = vmatprep.subr.bf16.mxu0 %v16084_v57  ;;  %v16168_v62 = vld [vmem:[%s17076_s8 + $0x1a6c] ss:$16 sps:$4 sm:$0xff]  }
 0x4c7   : > { %11567 = vmatprep.subr.bf16.mxu1 %v16081_v9  ;;  %v16166_v9 = vld [vmem:[%s17076_s8 + $0x1a68] ss:$16 sps:$4 sm:$0xff]   ;;  %v16171_v57 = vld [vmem:[%s17076_s8 + $0x194c] ss:$16 sps:$4 sm:$0xff]  }
 0x4c9   : > { %11595 = vmatpush1.bf16.msra.mxu0 %v16082_v10  ;;  %v16169_v10 = vld [vmem:[%s17076_s8 + $0x1948] ss:$16 sps:$4 sm:$0xff]  }
 0x4ca   : > { %11568 = vmatpush2.bf16.msra.mxu1 %v16079_v20  ;;  %11596 = vmatprep.subr.bf16.mxu0 %v16090_v27  ;;  %v16174_v20 = vld [vmem:[%s17076_s8 + $0x1a4c] ss:$16 sps:$4 sm:$0xff]  }
 0x4cb   : > { %11569 = vmatprep.subr.bf16.mxu1 %v16087_v15  ;;  %v16172_v15 = vld [vmem:[%s17076_s8 + $0x1a48] ss:$16 sps:$4 sm:$0xff]   ;;  %v16177_v27 = vld [vmem:[%s17076_s8 + $0x192c] ss:$16 sps:$4 sm:$0xff]  }
 0x4cd   : > { %11597 = vmatpush1.bf16.msra.mxu0 %v16088_v47  ;;  %v16175_v47 = vld [vmem:[%s17076_s8 + $0x1928] ss:$16 sps:$4 sm:$0xff]  }
 0x4ce   : > { %11570 = vmatpush2.bf16.msra.mxu1 %v16085_v41  ;;  %11598 = vmatprep.subr.bf16.mxu0 %v16093_v7  ;;  %v16180_v41 = vld [vmem:[%s17076_s8 + $0x1a2c] ss:$16 sps:$4 sm:$0xff]   ;;  %v16178_v7 = vld [vmem:[%s17076_s8 + $0x1a28] ss:$16 sps:$4 sm:$0xff]  }
 0x4cf   : > { %11625 = vmatprep.subr.bf16.mxu1 %v16096_v18  ;;  %v16183_v18 = vld [vmem:[%s17076_s8 + $0x190c] ss:$16 sps:$4 sm:$0xff]  }
 0x4d1   : > { %11572 = vmatmul.mubr.bf16.vlgmr.msra.gmra.mxu1 %v16745_v11  ;;  %11599 = vmatpush2.bf16.msra.mxu0 %v16091_v36  ;;  %v16186_v36 = vld [vmem:[%s17076_s8 + $0x1a0c] ss:$16 sps:$4 sm:$0xff]  }
 0x4d2   : > { %11626 = vmatpush1.bf16.msra.mxu1 %v16094_v16  ;;  %11600 = vmatprep.subr.bf16.mxu0 %v16099_v55  ;;  %v16181_v16 = vld [vmem:[%s17076_s8 + $0x1908] ss:$16 sps:$4 sm:$0xff]   ;;  %v16192_v11 = vld [vmem:[%s17076_s8 + $0x1cec] ss:$16 sps:$4 sm:$0xff]  }
 0x4d3   : > { %11627 = vmatprep.subr.bf16.mxu1 %v16102_v52  ;;  %11657 = vmatprep.mubr.bf16.mxu1 %v16746_v54  ;;  %v16184_v55 = vld [vmem:[%s17076_s8 + $0x1a08] ss:$16 sps:$4 sm:$0xff]   ;;  %v16189_v52 = vld [vmem:[%s17076_s8 + $0x1bec] ss:$16 sps:$4 sm:$0xff]   ;;  %v16749_v54 = vld [vmem:[%s19529_s0 + $0x60] ss:$196 sps:$4 sm:$0xff]  }
 0x4d5   : > { %11601 = vmatpush2.bf16.msra.mxu0 %v16097_v46  ;;  %v16187_v46 = vld [vmem:[%s17076_s8 + $0x1be8] ss:$16 sps:$4 sm:$0xff]  }
 0x4d6   : > { %11628 = vmatpush1.bf16.msra.mxu1 %v16100_v58  ;;  %11602 = vmatprep.subr.bf16.mxu0 %v16105_v44  ;;  %v16190_v58 = vld [vmem:[%s17076_s8 + $0x1ce8] ss:$16 sps:$4 sm:$0xff]   ;;  %v16195_v44 = vld [vmem:[%s17076_s8 + $0x1bcc] ss:$16 sps:$4 sm:$0xff]  }
 0x4d7   : > { %11629 = vmatprep.subr.bf16.mxu1 %v16108_v34  ;;  %v16198_v34 = vld [vmem:[%s17076_s8 + $0x1ccc] ss:$16 sps:$4 sm:$0xff]  }
 0x4d9   : > { %11603 = vmatpush2.bf16.msra.mxu0 %v16103_v6  ;;  %v16193_v6 = vld [vmem:[%s17076_s8 + $0x1bc8] ss:$16 sps:$4 sm:$0xff]  }
 0x4da   : > { %11630 = vmatpush1.bf16.msra.mxu1 %v16106_v63  ;;  %11604 = vmatprep.subr.bf16.mxu0 %v16111_v4  ;;  %v16196_v63 = vld [vmem:[%s17076_s8 + $0x1cc8] ss:$16 sps:$4 sm:$0xff]   ;;  %v16201_v4 = vld [vmem:[%s17076_s8 + $0x1bac] ss:$16 sps:$4 sm:$0xff]  }
 0x4db   : > { %11631 = vmatprep.subr.bf16.mxu1 %v16114_v35  ;;  %v16204_v35 = vld [vmem:[%s17076_s8 + $0x1cac] ss:$16 sps:$4 sm:$0xff]  }
 0x4dd   : > { %11605 = vmatpush2.bf16.msra.mxu0 %v16109_v28  ;;  %v16750_v28 = vld [vmem:[%s19529_s0 + $0x74] ss:$196 sps:$4 sm:$0xff]  }
 0x4de   : > { %11632 = vmatpush1.bf16.msra.mxu1 %v16112_v14  ;;  %11606 = vmatprep.subr.bf16.mxu0 %v16117_v43  ;;  %v16199_v14 = vld [vmem:[%s17076_s8 + $0x1ba8] ss:$16 sps:$4 sm:$0xff]  }
 0x4df   : > { %11633 = vmatprep.subr.bf16.mxu1 %v16120_v24  ;;  %v16202_v43 = vld [vmem:[%s17076_s8 + $0x1ca8] ss:$16 sps:$4 sm:$0xff]   ;;  %v16207_v24 = vld [vmem:[%s17076_s8 + $0x1b8c] ss:$16 sps:$4 sm:$0xff]  }
 0x4e1   : > { %11607 = vmatpush2.bf16.msra.mxu0 %v16115_v22  ;;  %v16210_v22 = vld [vmem:[%s17076_s8 + $0x1c8c] ss:$16 sps:$4 sm:$0xff]  }
 0x4e2   : > { %11634 = vmatpush1.bf16.msra.mxu1 %v16118_v5  ;;  %11608 = vmatprep.subr.bf16.mxu0 %v16123_v0  ;;  %v16205_v5 = vld [vmem:[%s17076_s8 + $0x1b88] ss:$16 sps:$4 sm:$0xff]  }
 0x4e3   : > { %11635 = vmatprep.subr.bf16.mxu1 %v16126_v17  ;;  %v16208_v0 = vld [vmem:[%s17076_s8 + $0x1c88] ss:$16 sps:$4 sm:$0xff]   ;;  %v16213_v17 = vld [vmem:[%s17076_s8 + $0x1b6c] ss:$16 sps:$4 sm:$0xff]  }
 0x4e5   : > { %11609 = vmatpush2.bf16.msra.mxu0 %v16121_v12  ;;  %v16216_v12 = vld [vmem:[%s17076_s8 + $0x1c6c] ss:$16 sps:$4 sm:$0xff]  }
 0x4e6   : > { %11636 = vmatpush1.bf16.msra.mxu1 %v16124_v23  ;;  %11610 = vmatprep.subr.bf16.mxu0 %v16129_v2  ;;  %v16211_v23 = vld [vmem:[%s17076_s8 + $0x1b68] ss:$16 sps:$4 sm:$0xff]  }
 0x4e7   : > { %11637 = vmatprep.subr.bf16.mxu1 %v16132_v53  ;;  %v16214_v2 = vld [vmem:[%s17076_s8 + $0x1c68] ss:$16 sps:$4 sm:$0xff]   ;;  %v16219_v53 = vld [vmem:[%s17076_s8 + $0x1b4c] ss:$16 sps:$4 sm:$0xff]  }
 0x4e9   : > { %11611 = vmatpush2.bf16.msra.mxu0 %v16127_v8  ;;  %v16222_v8 = vld [vmem:[%s17076_s8 + $0x1c4c] ss:$16 sps:$4 sm:$0xff]  }
 0x4ea   : > { %11638 = vmatpush1.bf16.msra.mxu1 %v16130_v48  ;;  %11612 = vmatprep.subr.bf16.mxu0 %v16135_v26  ;;  %v16217_v48 = vld [vmem:[%s17076_s8 + $0x1b48] ss:$16 sps:$4 sm:$0xff]  }
 0x4eb   : > { %11639 = vmatprep.subr.bf16.mxu1 %v16138_v21  ;;  %v16220_v26 = vld [vmem:[%s17076_s8 + $0x1c48] ss:$16 sps:$4 sm:$0xff]   ;;  %v16225_v21 = vld [vmem:[%s17076_s8 + $0x1b2c] ss:$16 sps:$4 sm:$0xff]  }
 0x4ed   : > { %11613 = vmatpush2.bf16.msra.mxu0 %v16133_v25  ;;  %v16228_v25 = vld [vmem:[%s17076_s8 + $0x1c2c] ss:$16 sps:$4 sm:$0xff]  }
 0x4ee   : > { %11640 = vmatpush1.bf16.msra.mxu1 %v16136_v56  ;;  %11668 = vmatprep.subr.bf16.mxu0 %v16144_v30  ;;  %v16223_v56 = vld [vmem:[%s17076_s8 + $0x1b28] ss:$16 sps:$4 sm:$0xff]   ;;  %v16231_v30 = vld [vmem:[%s17076_s8 + $0x1b0c] ss:$16 sps:$4 sm:$0xff]  }
 0x4ef   : > { %11641 = vmatprep.subr.bf16.mxu1 %v16141_v39  ;;  %v16226_v39 = vld [vmem:[%s17076_s8 + $0x1c28] ss:$16 sps:$4 sm:$0xff]  }
 0x4f0   : > { %11615 = vmatmul.mubr.bf16.vlgmr.msra.gmra.mxu0 %v16747_v42  ;;  %v16240_v42 = vld [vmem:[%s17076_s8 + $0x1eec] ss:$16 sps:$4 sm:$0xff]  }
 0x4f1   : > { %11669 = vmatpush1.bf16.msra.mxu0 %v16142_v40  ;;  %11700 = vmatprep.mubr.bf16.mxu0 %v16748_v50  ;;  %v16229_v40 = vld [vmem:[%s17076_s8 + $0x1b08] ss:$16 sps:$4 sm:$0xff]  }
 0x4f2   : > { %11642 = vmatpush2.bf16.msra.mxu1 %v16139_v33  ;;  %11670 = vmatprep.subr.bf16.mxu0 %v16150_v13  ;;  %v16234_v33 = vld [vmem:[%s17076_s8 + $0x1c0c] ss:$16 sps:$4 sm:$0xff]  }
 0x4f3   : > { %11643 = vmatprep.subr.bf16.mxu1 %v16147_v19  ;;  %v16232_v19 = vld [vmem:[%s17076_s8 + $0x1c08] ss:$16 sps:$4 sm:$0xff]   ;;  %v16237_v13 = vld [vmem:[%s17076_s8 + $0x1dec] ss:$16 sps:$4 sm:$0xff]  }
 0x4f4   : > { %v16751_v50 = vld [vmem:[%s19529_s0 + $0x68] ss:$196 sps:$4 sm:$0xff]  }
 0x4f5   : > { %11671 = vmatpush1.bf16.msra.mxu0 %v16148_v31  ;;  %v16238_v31 = vld [vmem:[%s17076_s8 + $0x1ee8] ss:$16 sps:$4 sm:$0xff]  }
 0x4f6   : > { %11644 = vmatpush2.bf16.msra.mxu1 %v16145_v51  ;;  %11672 = vmatprep.subr.bf16.mxu0 %v16156_v38  ;;  %v16235_v51 = vld [vmem:[%s17076_s8 + $0x1de8] ss:$16 sps:$4 sm:$0xff]   ;;  %v16246_v38 = vld [vmem:[%s17076_s8 + $0x1ecc] ss:$16 sps:$4 sm:$0xff]  }
 0x4f7   : > { %11645 = vmatprep.subr.bf16.mxu1 %v16153_v32  ;;  %v16243_v32 = vld [vmem:[%s17076_s8 + $0x1dcc] ss:$16 sps:$4 sm:$0xff]  }
 0x4f9   : > { %11673 = vmatpush1.bf16.msra.mxu0 %v16154_v37  ;;  %v16244_v37 = vld [vmem:[%s17076_s8 + $0x1ec8] ss:$16 sps:$4 sm:$0xff]  }
 0x4fa   : > { %11646 = vmatpush2.bf16.msra.mxu1 %v16151_v60  ;;  %11674 = vmatprep.subr.bf16.mxu0 %v16162_v59  ;;  %v16241_v60 = vld [vmem:[%s17076_s8 + $0x1dc8] ss:$16 sps:$4 sm:$0xff]   ;;  %v16252_v59 = vld [vmem:[%s17076_s8 + $0x1eac] ss:$16 sps:$4 sm:$0xff]  }
 0x4fb   : > { %11647 = vmatprep.subr.bf16.mxu1 %v16159_v45  ;;  %v16249_v45 = vld [vmem:[%s17076_s8 + $0x1dac] ss:$16 sps:$4 sm:$0xff]  }
 0x4fd   : > { %11675 = vmatpush1.bf16.msra.mxu0 %v16160_v29  ;;  %v16247_v29 = vld [vmem:[%s17076_s8 + $0x1da8] ss:$16 sps:$4 sm:$0xff]  }
 0x4fe   : > { %11648 = vmatpush2.bf16.msra.mxu1 %v16157_v49  ;;  %11676 = vmatprep.subr.bf16.mxu0 %v16168_v62  ;;  %v16752_v49 = vld [vmem:[%s19529_s0 + $0x7c] ss:$196 sps:$4 sm:$0xff]  }
 0x4ff   : > { %11649 = vmatprep.subr.bf16.mxu1 %v16165_v61  ;;  %v16250_v61 = vld [vmem:[%s17076_s8 + $0x1ea8] ss:$16 sps:$4 sm:$0xff]   ;;  %v16255_v62 = vld [vmem:[%s17076_s8 + $0x1d8c] ss:$16 sps:$4 sm:$0xff]  }
 0x501   : > { %11677 = vmatpush1.bf16.msra.mxu0 %v16166_v9  ;;  %v16253_v9 = vld [vmem:[%s17076_s8 + $0x1d88] ss:$16 sps:$4 sm:$0xff]  }
 0x502   : > { %11650 = vmatpush2.bf16.msra.mxu1 %v16163_v1  ;;  %11678 = vmatprep.subr.bf16.mxu0 %v16174_v20  ;;  %v16258_v1 = vld [vmem:[%s17076_s8 + $0x1e8c] ss:$16 sps:$4 sm:$0xff]  }
 0x503   : > { %11651 = vmatprep.subr.bf16.mxu1 %v16171_v57  ;;  %v16256_v57 = vld [vmem:[%s17076_s8 + $0x1e88] ss:$16 sps:$4 sm:$0xff]   ;;  %v16261_v20 = vld [vmem:[%s17076_s8 + $0x1d6c] ss:$16 sps:$4 sm:$0xff]  }
 0x505   : > { %11679 = vmatpush1.bf16.msra.mxu0 %v16172_v15  ;;  %v16259_v15 = vld [vmem:[%s17076_s8 + $0x1d68] ss:$16 sps:$4 sm:$0xff]  }
 0x506   : > { %11652 = vmatpush2.bf16.msra.mxu1 %v16169_v10  ;;  %11680 = vmatprep.subr.bf16.mxu0 %v16180_v41  ;;  %v16264_v10 = vld [vmem:[%s17076_s8 + $0x1e6c] ss:$16 sps:$4 sm:$0xff]  }
 0x507   : > { %11653 = vmatprep.subr.bf16.mxu1 %v16177_v27  ;;  %v16262_v27 = vld [vmem:[%s17076_s8 + $0x1e68] ss:$16 sps:$4 sm:$0xff]   ;;  %v16267_v41 = vld [vmem:[%s17076_s8 + $0x1d4c] ss:$16 sps:$4 sm:$0xff]  }
 0x509   : > { %11681 = vmatpush1.bf16.msra.mxu0 %v16178_v7  ;;  %v16265_v7 = vld [vmem:[%s17076_s8 + $0x1d48] ss:$16 sps:$4 sm:$0xff]  }
 0x50a   : > { %11654 = vmatpush2.bf16.msra.mxu1 %v16175_v47  ;;  %11682 = vmatprep.subr.bf16.mxu0 %v16186_v36  ;;  %v16270_v47 = vld [vmem:[%s17076_s8 + $0x1e4c] ss:$16 sps:$4 sm:$0xff]  }
 0x50b   : > { %11655 = vmatprep.subr.bf16.mxu1 %v16183_v18  ;;  %v16268_v18 = vld [vmem:[%s17076_s8 + $0x1e48] ss:$16 sps:$4 sm:$0xff]   ;;  %v16273_v36 = vld [vmem:[%s17076_s8 + $0x1d2c] ss:$16 sps:$4 sm:$0xff]  }
 0x50d   : > { %11683 = vmatpush1.bf16.msra.mxu0 %v16184_v55  ;;  %v16271_v55 = vld [vmem:[%s17076_s8 + $0x1d28] ss:$16 sps:$4 sm:$0xff]  }
 0x50e   : > { %11656 = vmatpush2.bf16.msra.mxu1 %v16181_v16  ;;  %11684 = vmatprep.subr.bf16.mxu0 %v16189_v52  ;;  %v16276_v16 = vld [vmem:[%s17076_s8 + $0x1e2c] ss:$16 sps:$4 sm:$0xff]   ;;  %v16274_v52 = vld [vmem:[%s17076_s8 + $0x1e28] ss:$16 sps:$4 sm:$0xff]  }
 0x50f   : > { %11711 = vmatprep.subr.bf16.mxu1 %v16192_v11  ;;  %v16279_v11 = vld [vmem:[%s17076_s8 + $0x1d0c] ss:$16 sps:$4 sm:$0xff]  }
 0x511   : > { %11658 = vmatmul.mubr.bf16.vlgmr.msra.gmra.mxu1 %v16749_v54  ;;  %11685 = vmatpush2.bf16.msra.mxu0 %v16187_v46  ;;  %v16282_v46 = vld [vmem:[%s17076_s8 + $0x1e0c] ss:$16 sps:$4 sm:$0xff]  }
 0x512   : > { %11712 = vmatpush1.bf16.msra.mxu1 %v16190_v58  ;;  %11686 = vmatprep.subr.bf16.mxu0 %v16195_v44  ;;  %v16277_v58 = vld [vmem:[%s17076_s8 + $0x1d08] ss:$16 sps:$4 sm:$0xff]   ;;  %v16288_v54 = vld [vmem:[%s17076_s8 + $0x20ec] ss:$16 sps:$4 sm:$0xff]  }
 0x513   : > { %11713 = vmatprep.subr.bf16.mxu1 %v16198_v34  ;;  %11743 = vmatprep.mubr.bf16.mxu1 %v16750_v28  ;;  %v16280_v44 = vld [vmem:[%s17076_s8 + $0x1e08] ss:$16 sps:$4 sm:$0xff]   ;;  %v16285_v34 = vld [vmem:[%s17076_s8 + $0x1fec] ss:$16 sps:$4 sm:$0xff]   ;;  %v16753_v28 = vld [vmem:[%s19529_s0 + $0x70] ss:$196 sps:$4 sm:$0xff]  }
 0x515   : > { %11687 = vmatpush2.bf16.msra.mxu0 %v16193_v6  ;;  %v16283_v6 = vld [vmem:[%s17076_s8 + $0x1fe8] ss:$16 sps:$4 sm:$0xff]  }
 0x516   : > { %11714 = vmatpush1.bf16.msra.mxu1 %v16196_v63  ;;  %11688 = vmatprep.subr.bf16.mxu0 %v16201_v4  ;;  %v16286_v63 = vld [vmem:[%s17076_s8 + $0x20e8] ss:$16 sps:$4 sm:$0xff]   ;;  %v16291_v4 = vld [vmem:[%s17076_s8 + $0x1fcc] ss:$16 sps:$4 sm:$0xff]  }
 0x517   : > { %11715 = vmatprep.subr.bf16.mxu1 %v16204_v35  ;;  %v16294_v35 = vld [vmem:[%s17076_s8 + $0x20cc] ss:$16 sps:$4 sm:$0xff]  }
 0x519   : > { %11689 = vmatpush2.bf16.msra.mxu0 %v16199_v14  ;;  %v16289_v14 = vld [vmem:[%s17076_s8 + $0x1fc8] ss:$16 sps:$4 sm:$0xff]  }
 0x51a   : > { %11716 = vmatpush1.bf16.msra.mxu1 %v16202_v43  ;;  %11690 = vmatprep.subr.bf16.mxu0 %v16207_v24  ;;  %v16292_v43 = vld [vmem:[%s17076_s8 + $0x20c8] ss:$16 sps:$4 sm:$0xff]   ;;  %v16297_v24 = vld [vmem:[%s17076_s8 + $0x1fac] ss:$16 sps:$4 sm:$0xff]  }
 0x51b   : > { %11717 = vmatprep.subr.bf16.mxu1 %v16210_v22  ;;  %v16300_v22 = vld [vmem:[%s17076_s8 + $0x20ac] ss:$16 sps:$4 sm:$0xff]  }
 0x51d   : > { %11691 = vmatpush2.bf16.msra.mxu0 %v16205_v5  ;;  %v16754_v5 = vld [vmem:[%s19529_s0 + $0x84] ss:$196 sps:$4 sm:$0xff]  }
 0x51e   : > { %11718 = vmatpush1.bf16.msra.mxu1 %v16208_v0  ;;  %11692 = vmatprep.subr.bf16.mxu0 %v16213_v17  ;;  %v16295_v0 = vld [vmem:[%s17076_s8 + $0x1fa8] ss:$16 sps:$4 sm:$0xff]  }
 0x51f   : > { %11719 = vmatprep.subr.bf16.mxu1 %v16216_v12  ;;  %v16298_v17 = vld [vmem:[%s17076_s8 + $0x20a8] ss:$16 sps:$4 sm:$0xff]   ;;  %v16303_v12 = vld [vmem:[%s17076_s8 + $0x1f8c] ss:$16 sps:$4 sm:$0xff]  }
 0x521   : > { %11693 = vmatpush2.bf16.msra.mxu0 %v16211_v23  ;;  %v16306_v23 = vld [vmem:[%s17076_s8 + $0x208c] ss:$16 sps:$4 sm:$0xff]  }
 0x522   : > { %11720 = vmatpush1.bf16.msra.mxu1 %v16214_v2  ;;  %11694 = vmatprep.subr.bf16.mxu0 %v16219_v53  ;;  %v16301_v2 = vld [vmem:[%s17076_s8 + $0x1f88] ss:$16 sps:$4 sm:$0xff]  }
 0x523   : > { %11721 = vmatprep.subr.bf16.mxu1 %v16222_v8  ;;  %v16304_v53 = vld [vmem:[%s17076_s8 + $0x2088] ss:$16 sps:$4 sm:$0xff]   ;;  %v16309_v8 = vld [vmem:[%s17076_s8 + $0x1f6c] ss:$16 sps:$4 sm:$0xff]  }
 0x525   : > { %11695 = vmatpush2.bf16.msra.mxu0 %v16217_v48  ;;  %v16312_v48 = vld [vmem:[%s17076_s8 + $0x206c] ss:$16 sps:$4 sm:$0xff]  }
 0x526   : > { %11722 = vmatpush1.bf16.msra.mxu1 %v16220_v26  ;;  %11696 = vmatprep.subr.bf16.mxu0 %v16225_v21  ;;  %v16307_v26 = vld [vmem:[%s17076_s8 + $0x1f68] ss:$16 sps:$4 sm:$0xff]  }
 0x527   : > { %11723 = vmatprep.subr.bf16.mxu1 %v16228_v25  ;;  %v16310_v21 = vld [vmem:[%s17076_s8 + $0x2068] ss:$16 sps:$4 sm:$0xff]   ;;  %v16315_v25 = vld [vmem:[%s17076_s8 + $0x1f4c] ss:$16 sps:$4 sm:$0xff]  }
 0x529   : > { %11697 = vmatpush2.bf16.msra.mxu0 %v16223_v56  ;;  %v16318_v56 = vld [vmem:[%s17076_s8 + $0x204c] ss:$16 sps:$4 sm:$0xff]  }
 0x52a   : > { %11724 = vmatpush1.bf16.msra.mxu1 %v16226_v39  ;;  %11698 = vmatprep.subr.bf16.mxu0 %v16231_v30  ;;  %v16313_v39 = vld [vmem:[%s17076_s8 + $0x1f48] ss:$16 sps:$4 sm:$0xff]  }
 0x52b   : > { %11725 = vmatprep.subr.bf16.mxu1 %v16234_v33  ;;  %v16316_v30 = vld [vmem:[%s17076_s8 + $0x2048] ss:$16 sps:$4 sm:$0xff]   ;;  %v16321_v33 = vld [vmem:[%s17076_s8 + $0x1f2c] ss:$16 sps:$4 sm:$0xff]  }
 0x52d   : > { %11699 = vmatpush2.bf16.msra.mxu0 %v16229_v40  ;;  %v16324_v40 = vld [vmem:[%s17076_s8 + $0x202c] ss:$16 sps:$4 sm:$0xff]  }
 0x52e   : > { %11726 = vmatpush1.bf16.msra.mxu1 %v16232_v19  ;;  %11754 = vmatprep.subr.bf16.mxu0 %v16240_v42  ;;  %v16319_v19 = vld [vmem:[%s17076_s8 + $0x1f28] ss:$16 sps:$4 sm:$0xff]   ;;  %v16327_v42 = vld [vmem:[%s17076_s8 + $0x1f0c] ss:$16 sps:$4 sm:$0xff]  }
 0x52f   : > { %11727 = vmatprep.subr.bf16.mxu1 %v16237_v13  ;;  %v16322_v13 = vld [vmem:[%s17076_s8 + $0x2028] ss:$16 sps:$4 sm:$0xff]  }
 0x530   : > { %11701 = vmatmul.mubr.bf16.vlgmr.msra.gmra.mxu0 %v16751_v50  ;;  %v16336_v50 = vld [vmem:[%s17076_s8 + $0x22ec] ss:$16 sps:$4 sm:$0xff]  }
 0x531   : > { %11755 = vmatpush1.bf16.msra.mxu0 %v16238_v31  ;;  %11786 = vmatprep.mubr.bf16.mxu0 %v16752_v49  ;;  %v16325_v31 = vld [vmem:[%s17076_s8 + $0x1f08] ss:$16 sps:$4 sm:$0xff]  }
 0x532   : > { %11728 = vmatpush2.bf16.msra.mxu1 %v16235_v51  ;;  %11756 = vmatprep.subr.bf16.mxu0 %v16246_v38  ;;  %v16330_v51 = vld [vmem:[%s17076_s8 + $0x200c] ss:$16 sps:$4 sm:$0xff]  }
 0x533   : > { %11729 = vmatprep.subr.bf16.mxu1 %v16243_v32  ;;  %v16328_v32 = vld [vmem:[%s17076_s8 + $0x2008] ss:$16 sps:$4 sm:$0xff]   ;;  %v16333_v38 = vld [vmem:[%s17076_s8 + $0x21ec] ss:$16 sps:$4 sm:$0xff]  }
 0x534   : > { %v16755_v49 = vld [vmem:[%s19529_s0 + $0x78] ss:$196 sps:$4 sm:$0xff]  }
 0x535   : > { %11757 = vmatpush1.bf16.msra.mxu0 %v16244_v37  ;;  %v16334_v37 = vld [vmem:[%s17076_s8 + $0x22e8] ss:$16 sps:$4 sm:$0xff]  }
 0x536   : > { %11730 = vmatpush2.bf16.msra.mxu1 %v16241_v60  ;;  %11758 = vmatprep.subr.bf16.mxu0 %v16252_v59  ;;  %v16331_v60 = vld [vmem:[%s17076_s8 + $0x21e8] ss:$16 sps:$4 sm:$0xff]   ;;  %v16342_v59 = vld [vmem:[%s17076_s8 + $0x22cc] ss:$16 sps:$4 sm:$0xff]  }
 0x537   : > { %11731 = vmatprep.subr.bf16.mxu1 %v16249_v45  ;;  %v16339_v45 = vld [vmem:[%s17076_s8 + $0x21cc] ss:$16 sps:$4 sm:$0xff]  }
 0x539   : > { %11759 = vmatpush1.bf16.msra.mxu0 %v16250_v61  ;;  %v16340_v61 = vld [vmem:[%s17076_s8 + $0x22c8] ss:$16 sps:$4 sm:$0xff]  }
 0x53a   : > { %11732 = vmatpush2.bf16.msra.mxu1 %v16247_v29  ;;  %11760 = vmatprep.subr.bf16.mxu0 %v16258_v1  ;;  %v16337_v29 = vld [vmem:[%s17076_s8 + $0x21c8] ss:$16 sps:$4 sm:$0xff]   ;;  %v16348_v1 = vld [vmem:[%s17076_s8 + $0x22ac] ss:$16 sps:$4 sm:$0xff]  }
 0x53b   : > { %11733 = vmatprep.subr.bf16.mxu1 %v16255_v62  ;;  %v16345_v62 = vld [vmem:[%s17076_s8 + $0x21ac] ss:$16 sps:$4 sm:$0xff]  }
 0x53d   : > { %11761 = vmatpush1.bf16.msra.mxu0 %v16256_v57  ;;  %v16343_v57 = vld [vmem:[%s17076_s8 + $0x21a8] ss:$16 sps:$4 sm:$0xff]  }
 0x53e   : > { %11734 = vmatpush2.bf16.msra.mxu1 %v16253_v9  ;;  %11762 = vmatprep.subr.bf16.mxu0 %v16264_v10  ;;  %v16756_v9 = vld [vmem:[%s19529_s0 + $0x8c] ss:$196 sps:$4 sm:$0xff]  }
 0x53f   : > { %11735 = vmatprep.subr.bf16.mxu1 %v16261_v20  ;;  %v16346_v20 = vld [vmem:[%s17076_s8 + $0x22a8] ss:$16 sps:$4 sm:$0xff]   ;;  %v16351_v10 = vld [vmem:[%s17076_s8 + $0x218c] ss:$16 sps:$4 sm:$0xff]  }
 0x541   : > { %11763 = vmatpush1.bf16.msra.mxu0 %v16262_v27  ;;  %v16349_v27 = vld [vmem:[%s17076_s8 + $0x2188] ss:$16 sps:$4 sm:$0xff]  }
 0x542   : > { %11736 = vmatpush2.bf16.msra.mxu1 %v16259_v15  ;;  %11764 = vmatprep.subr.bf16.mxu0 %v16270_v47  ;;  %v16354_v15 = vld [vmem:[%s17076_s8 + $0x228c] ss:$16 sps:$4 sm:$0xff]  }
 0x543   : > { %11737 = vmatprep.subr.bf16.mxu1 %v16267_v41  ;;  %v16352_v41 = vld [vmem:[%s17076_s8 + $0x2288] ss:$16 sps:$4 sm:$0xff]   ;;  %v16357_v47 = vld [vmem:[%s17076_s8 + $0x216c] ss:$16 sps:$4 sm:$0xff]  }
 0x545   : > { %11765 = vmatpush1.bf16.msra.mxu0 %v16268_v18  ;;  %v16355_v18 = vld [vmem:[%s17076_s8 + $0x2168] ss:$16 sps:$4 sm:$0xff]  }
 0x546   : > { %11738 = vmatpush2.bf16.msra.mxu1 %v16265_v7  ;;  %11766 = vmatprep.subr.bf16.mxu0 %v16276_v16  ;;  %v16360_v7 = vld [vmem:[%s17076_s8 + $0x226c] ss:$16 sps:$4 sm:$0xff]  }
 0x547   : > { %11739 = vmatprep.subr.bf16.mxu1 %v16273_v36  ;;  %v16358_v36 = vld [vmem:[%s17076_s8 + $0x2268] ss:$16 sps:$4 sm:$0xff]   ;;  %v16363_v16 = vld [vmem:[%s17076_s8 + $0x214c] ss:$16 sps:$4 sm:$0xff]  }
 0x549   : > { %11767 = vmatpush1.bf16.msra.mxu0 %v16274_v52  ;;  %v16361_v52 = vld [vmem:[%s17076_s8 + $0x2148] ss:$16 sps:$4 sm:$0xff]  }
 0x54a   : > { %11740 = vmatpush2.bf16.msra.mxu1 %v16271_v55  ;;  %11768 = vmatprep.subr.bf16.mxu0 %v16282_v46  ;;  %v16366_v55 = vld [vmem:[%s17076_s8 + $0x224c] ss:$16 sps:$4 sm:$0xff]  }
 0x54b   : > { %11741 = vmatprep.subr.bf16.mxu1 %v16279_v11  ;;  %v16364_v11 = vld [vmem:[%s17076_s8 + $0x2248] ss:$16 sps:$4 sm:$0xff]   ;;  %v16369_v46 = vld [vmem:[%s17076_s8 + $0x212c] ss:$16 sps:$4 sm:$0xff]  }
 0x54d   : > { %11769 = vmatpush1.bf16.msra.mxu0 %v16280_v44  ;;  %v16367_v44 = vld [vmem:[%s17076_s8 + $0x2128] ss:$16 sps:$4 sm:$0xff]  }
 0x54e   : > { %11742 = vmatpush2.bf16.msra.mxu1 %v16277_v58  ;;  %11770 = vmatprep.subr.bf16.mxu0 %v16285_v34  ;;  %v16372_v58 = vld [vmem:[%s17076_s8 + $0x222c] ss:$16 sps:$4 sm:$0xff]   ;;  %v16370_v34 = vld [vmem:[%s17076_s8 + $0x2228] ss:$16 sps:$4 sm:$0xff]  }
 0x54f   : > { %11797 = vmatprep.subr.bf16.mxu1 %v16288_v54  ;;  %v16375_v54 = vld [vmem:[%s17076_s8 + $0x210c] ss:$16 sps:$4 sm:$0xff]  }
 0x551   : > { %11744 = vmatmul.mubr.bf16.vlgmr.msra.gmra.mxu1 %v16753_v28  ;;  %11771 = vmatpush2.bf16.msra.mxu0 %v16283_v6  ;;  %v16378_v6 = vld [vmem:[%s17076_s8 + $0x220c] ss:$16 sps:$4 sm:$0xff]  }
 0x552   : > { %11798 = vmatpush1.bf16.msra.mxu1 %v16286_v63  ;;  %11772 = vmatprep.subr.bf16.mxu0 %v16291_v4  ;;  %v16373_v63 = vld [vmem:[%s17076_s8 + $0x2108] ss:$16 sps:$4 sm:$0xff]   ;;  %v16384_v28 = vld [vmem:[%s17076_s8 + $0x24ec] ss:$16 sps:$4 sm:$0xff]  }
 0x553   : > { %11799 = vmatprep.subr.bf16.mxu1 %v16294_v35  ;;  %11829 = vmatprep.mubr.bf16.mxu1 %v16754_v5  ;;  %v16376_v4 = vld [vmem:[%s17076_s8 + $0x2208] ss:$16 sps:$4 sm:$0xff]   ;;  %v16381_v35 = vld [vmem:[%s17076_s8 + $0x23ec] ss:$16 sps:$4 sm:$0xff]   ;;  %v16757_v5 = vld [vmem:[%s19529_s0 + $0x80] ss:$196 sps:$4 sm:$0xff]  }
 0x555   : > { %11773 = vmatpush2.bf16.msra.mxu0 %v16289_v14  ;;  %v16379_v14 = vld [vmem:[%s17076_s8 + $0x23e8] ss:$16 sps:$4 sm:$0xff]  }
 0x556   : > { %11800 = vmatpush1.bf16.msra.mxu1 %v16292_v43  ;;  %11774 = vmatprep.subr.bf16.mxu0 %v16297_v24  ;;  %v16382_v43 = vld [vmem:[%s17076_s8 + $0x24e8] ss:$16 sps:$4 sm:$0xff]   ;;  %v16387_v24 = vld [vmem:[%s17076_s8 + $0x23cc] ss:$16 sps:$4 sm:$0xff]  }
 0x557   : > { %11801 = vmatprep.subr.bf16.mxu1 %v16300_v22  ;;  %v16390_v22 = vld [vmem:[%s17076_s8 + $0x24cc] ss:$16 sps:$4 sm:$0xff]  }
 0x559   : > { %11775 = vmatpush2.bf16.msra.mxu0 %v16295_v0  ;;  %v16385_v0 = vld [vmem:[%s17076_s8 + $0x23c8] ss:$16 sps:$4 sm:$0xff]  }
 0x55a   : > { %11802 = vmatpush1.bf16.msra.mxu1 %v16298_v17  ;;  %11776 = vmatprep.subr.bf16.mxu0 %v16303_v12  ;;  %v16388_v17 = vld [vmem:[%s17076_s8 + $0x24c8] ss:$16 sps:$4 sm:$0xff]   ;;  %v16393_v12 = vld [vmem:[%s17076_s8 + $0x23ac] ss:$16 sps:$4 sm:$0xff]  }
 0x55b   : > { %11803 = vmatprep.subr.bf16.mxu1 %v16306_v23  ;;  %v16396_v23 = vld [vmem:[%s17076_s8 + $0x24ac] ss:$16 sps:$4 sm:$0xff]  }
 0x55d   : > { %11777 = vmatpush2.bf16.msra.mxu0 %v16301_v2  ;;  %v16758_v2 = vld [vmem:[%s19529_s0 + $0x94] ss:$196 sps:$4 sm:$0xff]  }
 0x55e   : > { %11804 = vmatpush1.bf16.msra.mxu1 %v16304_v53  ;;  %11778 = vmatprep.subr.bf16.mxu0 %v16309_v8  ;;  %v16391_v53 = vld [vmem:[%s17076_s8 + $0x23a8] ss:$16 sps:$4 sm:$0xff]  }
 0x55f   : > { %11805 = vmatprep.subr.bf16.mxu1 %v16312_v48  ;;  %v16394_v8 = vld [vmem:[%s17076_s8 + $0x24a8] ss:$16 sps:$4 sm:$0xff]   ;;  %v16399_v48 = vld [vmem:[%s17076_s8 + $0x238c] ss:$16 sps:$4 sm:$0xff]  }
 0x561   : > { %11779 = vmatpush2.bf16.msra.mxu0 %v16307_v26  ;;  %v16402_v26 = vld [vmem:[%s17076_s8 + $0x248c] ss:$16 sps:$4 sm:$0xff]  }
 0x562   : > { %11806 = vmatpush1.bf16.msra.mxu1 %v16310_v21  ;;  %11780 = vmatprep.subr.bf16.mxu0 %v16315_v25  ;;  %v16397_v21 = vld [vmem:[%s17076_s8 + $0x2388] ss:$16 sps:$4 sm:$0xff]  }
 0x563   : > { %11807 = vmatprep.subr.bf16.mxu1 %v16318_v56  ;;  %v16400_v25 = vld [vmem:[%s17076_s8 + $0x2488] ss:$16 sps:$4 sm:$0xff]   ;;  %v16405_v56 = vld [vmem:[%s17076_s8 + $0x236c] ss:$16 sps:$4 sm:$0xff]  }
 0x565   : > { %11781 = vmatpush2.bf16.msra.mxu0 %v16313_v39  ;;  %v16408_v39 = vld [vmem:[%s17076_s8 + $0x246c] ss:$16 sps:$4 sm:$0xff]  }
 0x566   : > { %11808 = vmatpush1.bf16.msra.mxu1 %v16316_v30  ;;  %11782 = vmatprep.subr.bf16.mxu0 %v16321_v33  ;;  %v16403_v30 = vld [vmem:[%s17076_s8 + $0x2368] ss:$16 sps:$4 sm:$0xff]  }
 0x567   : > { %11809 = vmatprep.subr.bf16.mxu1 %v16324_v40  ;;  %v16406_v33 = vld [vmem:[%s17076_s8 + $0x2468] ss:$16 sps:$4 sm:$0xff]   ;;  %v16411_v40 = vld [vmem:[%s17076_s8 + $0x234c] ss:$16 sps:$4 sm:$0xff]  }
 0x569   : > { %11783 = vmatpush2.bf16.msra.mxu0 %v16319_v19  ;;  %v16414_v19 = vld [vmem:[%s17076_s8 + $0x244c] ss:$16 sps:$4 sm:$0xff]  }
 0x56a   : > { %11810 = vmatpush1.bf16.msra.mxu1 %v16322_v13  ;;  %11784 = vmatprep.subr.bf16.mxu0 %v16327_v42  ;;  %v16409_v13 = vld [vmem:[%s17076_s8 + $0x2348] ss:$16 sps:$4 sm:$0xff]  }
 0x56b   : > { %11811 = vmatprep.subr.bf16.mxu1 %v16330_v51  ;;  %v16412_v42 = vld [vmem:[%s17076_s8 + $0x2448] ss:$16 sps:$4 sm:$0xff]   ;;  %v16417_v51 = vld [vmem:[%s17076_s8 + $0x232c] ss:$16 sps:$4 sm:$0xff]  }
 0x56d   : > { %11785 = vmatpush2.bf16.msra.mxu0 %v16325_v31  ;;  %v16420_v31 = vld [vmem:[%s17076_s8 + $0x242c] ss:$16 sps:$4 sm:$0xff]  }
 0x56e   : > { %11812 = vmatpush1.bf16.msra.mxu1 %v16328_v32  ;;  %11840 = vmatprep.subr.bf16.mxu0 %v16336_v50  ;;  %v16415_v32 = vld [vmem:[%s17076_s8 + $0x2328] ss:$16 sps:$4 sm:$0xff]   ;;  %v16423_v50 = vld [vmem:[%s17076_s8 + $0x230c] ss:$16 sps:$4 sm:$0xff]  }
 0x56f   : > { %11813 = vmatprep.subr.bf16.mxu1 %v16333_v38  ;;  %v16418_v38 = vld [vmem:[%s17076_s8 + $0x2428] ss:$16 sps:$4 sm:$0xff]  }
 0x570   : > { %11787 = vmatmul.mubr.bf16.vlgmr.msra.gmra.mxu0 %v16755_v49  ;;  %v16432_v49 = vld [vmem:[%s17076_s8 + $0x26ec] ss:$16 sps:$4 sm:$0xff]  }
 0x571   : > { %11841 = vmatpush1.bf16.msra.mxu0 %v16334_v37  ;;  %11872 = vmatprep.mubr.bf16.mxu0 %v16756_v9  ;;  %v16421_v37 = vld [vmem:[%s17076_s8 + $0x2308] ss:$16 sps:$4 sm:$0xff]  }
 0x572   : > { %11814 = vmatpush2.bf16.msra.mxu1 %v16331_v60  ;;  %11842 = vmatprep.subr.bf16.mxu0 %v16342_v59  ;;  %v16426_v60 = vld [vmem:[%s17076_s8 + $0x240c] ss:$16 sps:$4 sm:$0xff]  }
 0x573   : > { %11815 = vmatprep.subr.bf16.mxu1 %v16339_v45  ;;  %v16424_v45 = vld [vmem:[%s17076_s8 + $0x2408] ss:$16 sps:$4 sm:$0xff]   ;;  %v16429_v59 = vld [vmem:[%s17076_s8 + $0x25ec] ss:$16 sps:$4 sm:$0xff]  }
 0x574   : > { %v16759_v9 = vld [vmem:[%s19529_s0 + $0x88] ss:$196 sps:$4 sm:$0xff]  }
 0x575   : > { %11843 = vmatpush1.bf16.msra.mxu0 %v16340_v61  ;;  %v16430_v61 = vld [vmem:[%s17076_s8 + $0x26e8] ss:$16 sps:$4 sm:$0xff]  }
 0x576   : > { %11816 = vmatpush2.bf16.msra.mxu1 %v16337_v29  ;;  %11844 = vmatprep.subr.bf16.mxu0 %v16348_v1  ;;  %v16427_v29 = vld [vmem:[%s17076_s8 + $0x25e8] ss:$16 sps:$4 sm:$0xff]   ;;  %v16438_v1 = vld [vmem:[%s17076_s8 + $0x26cc] ss:$16 sps:$4 sm:$0xff]  }
 0x577   : > { %11817 = vmatprep.subr.bf16.mxu1 %v16345_v62  ;;  %v16435_v62 = vld [vmem:[%s17076_s8 + $0x25cc] ss:$16 sps:$4 sm:$0xff]  }
 0x579   : > { %11845 = vmatpush1.bf16.msra.mxu0 %v16346_v20  ;;  %v16436_v20 = vld [vmem:[%s17076_s8 + $0x26c8] ss:$16 sps:$4 sm:$0xff]  }
 0x57a   : > { %11818 = vmatpush2.bf16.msra.mxu1 %v16343_v57  ;;  %11846 = vmatprep.subr.bf16.mxu0 %v16354_v15  ;;  %v16433_v57 = vld [vmem:[%s17076_s8 + $0x25c8] ss:$16 sps:$4 sm:$0xff]   ;;  %v16444_v15 = vld [vmem:[%s17076_s8 + $0x26ac] ss:$16 sps:$4 sm:$0xff]  }
 0x57b   : > { %11819 = vmatprep.subr.bf16.mxu1 %v16351_v10  ;;  %v16441_v10 = vld [vmem:[%s17076_s8 + $0x25ac] ss:$16 sps:$4 sm:$0xff]  }
 0x57d   : > { %11847 = vmatpush1.bf16.msra.mxu0 %v16352_v41  ;;  %v16439_v41 = vld [vmem:[%s17076_s8 + $0x25a8] ss:$16 sps:$4 sm:$0xff]  }
 0x57e   : > { %11820 = vmatpush2.bf16.msra.mxu1 %v16349_v27  ;;  %11848 = vmatprep.subr.bf16.mxu0 %v16360_v7  ;;  %v16760_v27 = vld [vmem:[%s19529_s0 + $0x9c] ss:$196 sps:$4 sm:$0xff]  }
 0x57f   : > { %11821 = vmatprep.subr.bf16.mxu1 %v16357_v47  ;;  %v16442_v47 = vld [vmem:[%s17076_s8 + $0x26a8] ss:$16 sps:$4 sm:$0xff]   ;;  %v16447_v7 = vld [vmem:[%s17076_s8 + $0x258c] ss:$16 sps:$4 sm:$0xff]  }
 0x581   : > { %11849 = vmatpush1.bf16.msra.mxu0 %v16358_v36  ;;  %v16445_v36 = vld [vmem:[%s17076_s8 + $0x2588] ss:$16 sps:$4 sm:$0xff]  }
 0x582   : > { %11822 = vmatpush2.bf16.msra.mxu1 %v16355_v18  ;;  %11850 = vmatprep.subr.bf16.mxu0 %v16366_v55  ;;  %v16450_v18 = vld [vmem:[%s17076_s8 + $0x268c] ss:$16 sps:$4 sm:$0xff]  }
 0x583   : > { %11823 = vmatprep.subr.bf16.mxu1 %v16363_v16  ;;  %v16448_v16 = vld [vmem:[%s17076_s8 + $0x2688] ss:$16 sps:$4 sm:$0xff]   ;;  %v16453_v55 = vld [vmem:[%s17076_s8 + $0x256c] ss:$16 sps:$4 sm:$0xff]  }
 0x585   : > { %11851 = vmatpush1.bf16.msra.mxu0 %v16364_v11  ;;  %v16451_v11 = vld [vmem:[%s17076_s8 + $0x2568] ss:$16 sps:$4 sm:$0xff]  }
 0x586   : > { %11824 = vmatpush2.bf16.msra.mxu1 %v16361_v52  ;;  %11852 = vmatprep.subr.bf16.mxu0 %v16372_v58  ;;  %v16456_v52 = vld [vmem:[%s17076_s8 + $0x266c] ss:$16 sps:$4 sm:$0xff]  }
 0x587   : > { %11825 = vmatprep.subr.bf16.mxu1 %v16369_v46  ;;  %v16454_v46 = vld [vmem:[%s17076_s8 + $0x2668] ss:$16 sps:$4 sm:$0xff]   ;;  %v16459_v58 = vld [vmem:[%s17076_s8 + $0x254c] ss:$16 sps:$4 sm:$0xff]  }
 0x589   : > { %11853 = vmatpush1.bf16.msra.mxu0 %v16370_v34  ;;  %v16457_v34 = vld [vmem:[%s17076_s8 + $0x2548] ss:$16 sps:$4 sm:$0xff]  }
 0x58a   : > { %11826 = vmatpush2.bf16.msra.mxu1 %v16367_v44  ;;  %11854 = vmatprep.subr.bf16.mxu0 %v16378_v6  ;;  %v16462_v44 = vld [vmem:[%s17076_s8 + $0x264c] ss:$16 sps:$4 sm:$0xff]  }
 0x58b   : > { %11827 = vmatprep.subr.bf16.mxu1 %v16375_v54  ;;  %v16460_v54 = vld [vmem:[%s17076_s8 + $0x2648] ss:$16 sps:$4 sm:$0xff]   ;;  %v16465_v6 = vld [vmem:[%s17076_s8 + $0x252c] ss:$16 sps:$4 sm:$0xff]  }
 0x58d   : > { %11855 = vmatpush1.bf16.msra.mxu0 %v16376_v4  ;;  %v16463_v4 = vld [vmem:[%s17076_s8 + $0x2528] ss:$16 sps:$4 sm:$0xff]  }
 0x58e   : > { %11828 = vmatpush2.bf16.msra.mxu1 %v16373_v63  ;;  %11856 = vmatprep.subr.bf16.mxu0 %v16381_v35  ;;  %v16468_v63 = vld [vmem:[%s17076_s8 + $0x262c] ss:$16 sps:$4 sm:$0xff]   ;;  %v16466_v35 = vld [vmem:[%s17076_s8 + $0x2628] ss:$16 sps:$4 sm:$0xff]  }
 0x58f   : > { %11883 = vmatprep.subr.bf16.mxu1 %v16384_v28  ;;  %v16471_v28 = vld [vmem:[%s17076_s8 + $0x250c] ss:$16 sps:$4 sm:$0xff]  }
 0x591   : > { %11830 = vmatmul.mubr.bf16.vlgmr.msra.gmra.mxu1 %v16757_v5  ;;  %11857 = vmatpush2.bf16.msra.mxu0 %v16379_v14  ;;  %v16474_v14 = vld [vmem:[%s17076_s8 + $0x260c] ss:$16 sps:$4 sm:$0xff]  }
 0x592   : > { %11884 = vmatpush1.bf16.msra.mxu1 %v16382_v43  ;;  %11858 = vmatprep.subr.bf16.mxu0 %v16387_v24  ;;  %v16469_v43 = vld [vmem:[%s17076_s8 + $0x2508] ss:$16 sps:$4 sm:$0xff]   ;;  %v16480_v5 = vld [vmem:[%s17076_s8 + $0x28ec] ss:$16 sps:$4 sm:$0xff]  }
 0x593   : > { %11885 = vmatprep.subr.bf16.mxu1 %v16390_v22  ;;  %11915 = vmatprep.mubr.bf16.mxu1 %v16758_v2  ;;  %v16472_v24 = vld [vmem:[%s17076_s8 + $0x2608] ss:$16 sps:$4 sm:$0xff]   ;;  %v16477_v22 = vld [vmem:[%s17076_s8 + $0x27ec] ss:$16 sps:$4 sm:$0xff]   ;;  %v16761_v2 = vld [vmem:[%s19529_s0 + $0x90] ss:$196 sps:$4 sm:$0xff]  }
 0x595   : > { %11859 = vmatpush2.bf16.msra.mxu0 %v16385_v0  ;;  %v16475_v0 = vld [vmem:[%s17076_s8 + $0x27e8] ss:$16 sps:$4 sm:$0xff]  }
 0x596   : > { %11886 = vmatpush1.bf16.msra.mxu1 %v16388_v17  ;;  %11860 = vmatprep.subr.bf16.mxu0 %v16393_v12  ;;  %v16478_v17 = vld [vmem:[%s17076_s8 + $0x28e8] ss:$16 sps:$4 sm:$0xff]   ;;  %v16483_v12 = vld [vmem:[%s17076_s8 + $0x27cc] ss:$16 sps:$4 sm:$0xff]  }
 0x597   : > { %11887 = vmatprep.subr.bf16.mxu1 %v16396_v23  ;;  %v16486_v23 = vld [vmem:[%s17076_s8 + $0x28cc] ss:$16 sps:$4 sm:$0xff]  }
 0x599   : > { %11861 = vmatpush2.bf16.msra.mxu0 %v16391_v53  ;;  %v16481_v53 = vld [vmem:[%s17076_s8 + $0x27c8] ss:$16 sps:$4 sm:$0xff]  }
 0x59a   : > { %11888 = vmatpush1.bf16.msra.mxu1 %v16394_v8  ;;  %11862 = vmatprep.subr.bf16.mxu0 %v16399_v48  ;;  %v16484_v8 = vld [vmem:[%s17076_s8 + $0x28c8] ss:$16 sps:$4 sm:$0xff]   ;;  %v16489_v48 = vld [vmem:[%s17076_s8 + $0x27ac] ss:$16 sps:$4 sm:$0xff]  }
 0x59b   : > { %11889 = vmatprep.subr.bf16.mxu1 %v16402_v26  ;;  %v16492_v26 = vld [vmem:[%s17076_s8 + $0x28ac] ss:$16 sps:$4 sm:$0xff]  }
 0x59d   : > { %11863 = vmatpush2.bf16.msra.mxu0 %v16397_v21  ;;  %v16762_v21 = vld [vmem:[%s19529_s0 + $0xa4] ss:$196 sps:$4 sm:$0xff]  }
 0x59e   : > { %11890 = vmatpush1.bf16.msra.mxu1 %v16400_v25  ;;  %11864 = vmatprep.subr.bf16.mxu0 %v16405_v56  ;;  %v16487_v25 = vld [vmem:[%s17076_s8 + $0x27a8] ss:$16 sps:$4 sm:$0xff]  }
 0x59f   : > { %11891 = vmatprep.subr.bf16.mxu1 %v16408_v39  ;;  %v16490_v56 = vld [vmem:[%s17076_s8 + $0x28a8] ss:$16 sps:$4 sm:$0xff]   ;;  %v16495_v39 = vld [vmem:[%s17076_s8 + $0x278c] ss:$16 sps:$4 sm:$0xff]  }
 0x5a1   : > { %11865 = vmatpush2.bf16.msra.mxu0 %v16403_v30  ;;  %v16498_v30 = vld [vmem:[%s17076_s8 + $0x288c] ss:$16 sps:$4 sm:$0xff]  }
 0x5a2   : > { %11892 = vmatpush1.bf16.msra.mxu1 %v16406_v33  ;;  %11866 = vmatprep.subr.bf16.mxu0 %v16411_v40  ;;  %v16493_v33 = vld [vmem:[%s17076_s8 + $0x2788] ss:$16 sps:$4 sm:$0xff]  }
 0x5a3   : > { %11893 = vmatprep.subr.bf16.mxu1 %v16414_v19  ;;  %v16496_v40 = vld [vmem:[%s17076_s8 + $0x2888] ss:$16 sps:$4 sm:$0xff]   ;;  %v16501_v19 = vld [vmem:[%s17076_s8 + $0x276c] ss:$16 sps:$4 sm:$0xff]  }
 0x5a5   : > { %11867 = vmatpush2.bf16.msra.mxu0 %v16409_v13  ;;  %v16504_v13 = vld [vmem:[%s17076_s8 + $0x286c] ss:$16 sps:$4 sm:$0xff]  }
 0x5a6   : > { %11894 = vmatpush1.bf16.msra.mxu1 %v16412_v42  ;;  %11868 = vmatprep.subr.bf16.mxu0 %v16417_v51  ;;  %v16499_v42 = vld [vmem:[%s17076_s8 + $0x2768] ss:$16 sps:$4 sm:$0xff]  }
 0x5a7   : > { %11895 = vmatprep.subr.bf16.mxu1 %v16420_v31  ;;  %v16502_v51 = vld [vmem:[%s17076_s8 + $0x2868] ss:$16 sps:$4 sm:$0xff]   ;;  %v16507_v31 = vld [vmem:[%s17076_s8 + $0x274c] ss:$16 sps:$4 sm:$0xff]  }
 0x5a9   : > { %11869 = vmatpush2.bf16.msra.mxu0 %v16415_v32  ;;  %v16510_v32 = vld [vmem:[%s17076_s8 + $0x284c] ss:$16 sps:$4 sm:$0xff]  }
 0x5aa   : > { %11896 = vmatpush1.bf16.msra.mxu1 %v16418_v38  ;;  %11870 = vmatprep.subr.bf16.mxu0 %v16423_v50  ;;  %v16505_v38 = vld [vmem:[%s17076_s8 + $0x2748] ss:$16 sps:$4 sm:$0xff]  }
 0x5ab   : > { %11897 = vmatprep.subr.bf16.mxu1 %v16426_v60  ;;  %v16508_v50 = vld [vmem:[%s17076_s8 + $0x2848] ss:$16 sps:$4 sm:$0xff]   ;;  %v16513_v60 = vld [vmem:[%s17076_s8 + $0x272c] ss:$16 sps:$4 sm:$0xff]  }
 0x5ad   : > { %11871 = vmatpush2.bf16.msra.mxu0 %v16421_v37  ;;  %v16516_v37 = vld [vmem:[%s17076_s8 + $0x282c] ss:$16 sps:$4 sm:$0xff]  }
 0x5ae   : > { %11898 = vmatpush1.bf16.msra.mxu1 %v16424_v45  ;;  %11926 = vmatprep.subr.bf16.mxu0 %v16432_v49  ;;  %v16511_v45 = vld [vmem:[%s17076_s8 + $0x2728] ss:$16 sps:$4 sm:$0xff]   ;;  %v16519_v49 = vld [vmem:[%s17076_s8 + $0x270c] ss:$16 sps:$4 sm:$0xff]  }
 0x5af   : > { %11899 = vmatprep.subr.bf16.mxu1 %v16429_v59  ;;  %v16514_v59 = vld [vmem:[%s17076_s8 + $0x2828] ss:$16 sps:$4 sm:$0xff]  }
 0x5b0   : > { %11873 = vmatmul.mubr.bf16.vlgmr.msra.gmra.mxu0 %v16759_v9  ;;  %v16528_v9 = vld [vmem:[%s17076_s8 + $0x2aec] ss:$16 sps:$4 sm:$0xff]  }
 0x5b1   : > { %11927 = vmatpush1.bf16.msra.mxu0 %v16430_v61  ;;  %11958 = vmatprep.mubr.bf16.mxu0 %v16760_v27  ;;  %v16517_v61 = vld [vmem:[%s17076_s8 + $0x2708] ss:$16 sps:$4 sm:$0xff]  }
 0x5b2   : > { %11900 = vmatpush2.bf16.msra.mxu1 %v16427_v29  ;;  %11928 = vmatprep.subr.bf16.mxu0 %v16438_v1  ;;  %v16522_v29 = vld [vmem:[%s17076_s8 + $0x280c] ss:$16 sps:$4 sm:$0xff]  }
 0x5b3   : > { %11901 = vmatprep.subr.bf16.mxu1 %v16435_v62  ;;  %v16520_v62 = vld [vmem:[%s17076_s8 + $0x2808] ss:$16 sps:$4 sm:$0xff]   ;;  %v16525_v1 = vld [vmem:[%s17076_s8 + $0x29ec] ss:$16 sps:$4 sm:$0xff]  }
 0x5b4   : > { %v16763_v27 = vld [vmem:[%s19529_s0 + $0x98] ss:$196 sps:$4 sm:$0xff]  }
 0x5b5   : > { %11929 = vmatpush1.bf16.msra.mxu0 %v16436_v20  ;;  %v16526_v20 = vld [vmem:[%s17076_s8 + $0x2ae8] ss:$16 sps:$4 sm:$0xff]  }
 0x5b6   : > { %11902 = vmatpush2.bf16.msra.mxu1 %v16433_v57  ;;  %11930 = vmatprep.subr.bf16.mxu0 %v16444_v15  ;;  %v16523_v57 = vld [vmem:[%s17076_s8 + $0x29e8] ss:$16 sps:$4 sm:$0xff]   ;;  %v16534_v15 = vld [vmem:[%s17076_s8 + $0x2acc] ss:$16 sps:$4 sm:$0xff]  }
 0x5b7   : > { %11903 = vmatprep.subr.bf16.mxu1 %v16441_v10  ;;  %v16531_v10 = vld [vmem:[%s17076_s8 + $0x29cc] ss:$16 sps:$4 sm:$0xff]  }
 0x5b9   : > { %11931 = vmatpush1.bf16.msra.mxu0 %v16442_v47  ;;  %v16532_v47 = vld [vmem:[%s17076_s8 + $0x2ac8] ss:$16 sps:$4 sm:$0xff]  }
 0x5ba   : > { %11904 = vmatpush2.bf16.msra.mxu1 %v16439_v41  ;;  %11932 = vmatprep.subr.bf16.mxu0 %v16450_v18  ;;  %v16529_v41 = vld [vmem:[%s17076_s8 + $0x29c8] ss:$16 sps:$4 sm:$0xff]   ;;  %v16540_v18 = vld [vmem:[%s17076_s8 + $0x2aac] ss:$16 sps:$4 sm:$0xff]  }
 0x5bb   : > { %11905 = vmatprep.subr.bf16.mxu1 %v16447_v7  ;;  %v16537_v7 = vld [vmem:[%s17076_s8 + $0x29ac] ss:$16 sps:$4 sm:$0xff]  }
 0x5bd   : > { %11933 = vmatpush1.bf16.msra.mxu0 %v16448_v16  ;;  %v16535_v16 = vld [vmem:[%s17076_s8 + $0x29a8] ss:$16 sps:$4 sm:$0xff]  }
 0x5be   : > { %11906 = vmatpush2.bf16.msra.mxu1 %v16445_v36  ;;  %11934 = vmatprep.subr.bf16.mxu0 %v16456_v52  ;;  %v16764_v36 = vld [vmem:[%s19529_s0 + $0xac] ss:$196 sps:$4 sm:$0xff]  }
 0x5bf   : > { %11907 = vmatprep.subr.bf16.mxu1 %v16453_v55  ;;  %v16538_v55 = vld [vmem:[%s17076_s8 + $0x2aa8] ss:$16 sps:$4 sm:$0xff]   ;;  %v16543_v52 = vld [vmem:[%s17076_s8 + $0x298c] ss:$16 sps:$4 sm:$0xff]  }
 0x5c1   : > { %11935 = vmatpush1.bf16.msra.mxu0 %v16454_v46  ;;  %v16541_v46 = vld [vmem:[%s17076_s8 + $0x2988] ss:$16 sps:$4 sm:$0xff]  }
 0x5c2   : > { %11908 = vmatpush2.bf16.msra.mxu1 %v16451_v11  ;;  %11936 = vmatprep.subr.bf16.mxu0 %v16462_v44  ;;  %v16546_v11 = vld [vmem:[%s17076_s8 + $0x2a8c] ss:$16 sps:$4 sm:$0xff]  }
 0x5c3   : > { %11909 = vmatprep.subr.bf16.mxu1 %v16459_v58  ;;  %v16544_v58 = vld [vmem:[%s17076_s8 + $0x2a88] ss:$16 sps:$4 sm:$0xff]   ;;  %v16549_v44 = vld [vmem:[%s17076_s8 + $0x296c] ss:$16 sps:$4 sm:$0xff]  }
 0x5c5   : > { %11937 = vmatpush1.bf16.msra.mxu0 %v16460_v54  ;;  %v16547_v54 = vld [vmem:[%s17076_s8 + $0x2968] ss:$16 sps:$4 sm:$0xff]  }
 0x5c6   : > { %11910 = vmatpush2.bf16.msra.mxu1 %v16457_v34  ;;  %11938 = vmatprep.subr.bf16.mxu0 %v16468_v63  ;;  %v16552_v34 = vld [vmem:[%s17076_s8 + $0x2a6c] ss:$16 sps:$4 sm:$0xff]  }
 0x5c7   : > { %11911 = vmatprep.subr.bf16.mxu1 %v16465_v6  ;;  %v16550_v6 = vld [vmem:[%s17076_s8 + $0x2a68] ss:$16 sps:$4 sm:$0xff]   ;;  %v16555_v63 = vld [vmem:[%s17076_s8 + $0x294c] ss:$16 sps:$4 sm:$0xff]  }
 0x5c9   : > { %11939 = vmatpush1.bf16.msra.mxu0 %v16466_v35  ;;  %v16553_v35 = vld [vmem:[%s17076_s8 + $0x2948] ss:$16 sps:$4 sm:$0xff]  }
 0x5ca   : > { %11912 = vmatpush2.bf16.msra.mxu1 %v16463_v4  ;;  %11940 = vmatprep.subr.bf16.mxu0 %v16474_v14  ;;  %v16558_v4 = vld [vmem:[%s17076_s8 + $0x2a4c] ss:$16 sps:$4 sm:$0xff]  }
 0x5cb   : > { %11913 = vmatprep.subr.bf16.mxu1 %v16471_v28  ;;  %v16556_v28 = vld [vmem:[%s17076_s8 + $0x2a48] ss:$16 sps:$4 sm:$0xff]   ;;  %v16561_v14 = vld [vmem:[%s17076_s8 + $0x292c] ss:$16 sps:$4 sm:$0xff]  }
 0x5cd   : > { %11941 = vmatpush1.bf16.msra.mxu0 %v16472_v24  ;;  %v16559_v24 = vld [vmem:[%s17076_s8 + $0x2928] ss:$16 sps:$4 sm:$0xff]  }
 0x5ce   : > { %11914 = vmatpush2.bf16.msra.mxu1 %v16469_v43  ;;  %11942 = vmatprep.subr.bf16.mxu0 %v16477_v22  ;;  %v16564_v43 = vld [vmem:[%s17076_s8 + $0x2a2c] ss:$16 sps:$4 sm:$0xff]   ;;  %v16562_v22 = vld [vmem:[%s17076_s8 + $0x2a28] ss:$16 sps:$4 sm:$0xff]  }
 0x5cf   : > { %11969 = vmatprep.subr.bf16.mxu1 %v16480_v5  ;;  %v16567_v5 = vld [vmem:[%s17076_s8 + $0x290c] ss:$16 sps:$4 sm:$0xff]  }
 0x5d1   : > { %11916 = vmatmul.mubr.bf16.vlgmr.msra.gmra.mxu1 %v16761_v2  ;;  %11943 = vmatpush2.bf16.msra.mxu0 %v16475_v0  ;;  %v16570_v0 = vld [vmem:[%s17076_s8 + $0x2a0c] ss:$16 sps:$4 sm:$0xff]  }
 0x5d2   : > { %11970 = vmatpush1.bf16.msra.mxu1 %v16478_v17  ;;  %11944 = vmatprep.subr.bf16.mxu0 %v16483_v12  ;;  %v16565_v17 = vld [vmem:[%s17076_s8 + $0x2908] ss:$16 sps:$4 sm:$0xff]   ;;  %v16576_v2 = vld [vmem:[%s17076_s8 + $0x2cec] ss:$16 sps:$4 sm:$0xff]  }
 0x5d3   : > { %11971 = vmatprep.subr.bf16.mxu1 %v16486_v23  ;;  %12001 = vmatprep.mubr.bf16.mxu1 %v16762_v21  ;;  %v16568_v12 = vld [vmem:[%s17076_s8 + $0x2a08] ss:$16 sps:$4 sm:$0xff]   ;;  %v16573_v23 = vld [vmem:[%s17076_s8 + $0x2bec] ss:$16 sps:$4 sm:$0xff]   ;;  %v16765_v21 = vld [vmem:[%s19529_s0 + $0xa0] ss:$196 sps:$4 sm:$0xff]  }
 0x5d5   : > { %11945 = vmatpush2.bf16.msra.mxu0 %v16481_v53  ;;  %v16571_v53 = vld [vmem:[%s17076_s8 + $0x2be8] ss:$16 sps:$4 sm:$0xff]  }
 0x5d6   : > { %11972 = vmatpush1.bf16.msra.mxu1 %v16484_v8  ;;  %11946 = vmatprep.subr.bf16.mxu0 %v16489_v48  ;;  %v16574_v8 = vld [vmem:[%s17076_s8 + $0x2ce8] ss:$16 sps:$4 sm:$0xff]   ;;  %v16579_v48 = vld [vmem:[%s17076_s8 + $0x2bcc] ss:$16 sps:$4 sm:$0xff]  }
 0x5d7   : > { %11973 = vmatprep.subr.bf16.mxu1 %v16492_v26  ;;  %v16582_v26 = vld [vmem:[%s17076_s8 + $0x2ccc] ss:$16 sps:$4 sm:$0xff]  }
 0x5d9   : > { %11947 = vmatpush2.bf16.msra.mxu0 %v16487_v25  ;;  %v16577_v25 = vld [vmem:[%s17076_s8 + $0x2bc8] ss:$16 sps:$4 sm:$0xff]  }
 0x5da   : > { %11974 = vmatpush1.bf16.msra.mxu1 %v16490_v56  ;;  %11948 = vmatprep.subr.bf16.mxu0 %v16495_v39  ;;  %v16580_v56 = vld [vmem:[%s17076_s8 + $0x2cc8] ss:$16 sps:$4 sm:$0xff]   ;;  %v16585_v39 = vld [vmem:[%s17076_s8 + $0x2bac] ss:$16 sps:$4 sm:$0xff]  }
 0x5db   : > { %11975 = vmatprep.subr.bf16.mxu1 %v16498_v30  ;;  %v16588_v30 = vld [vmem:[%s17076_s8 + $0x2cac] ss:$16 sps:$4 sm:$0xff]  }
 0x5dd   : > { %11949 = vmatpush2.bf16.msra.mxu0 %v16493_v33  ;;  %v16766_v33 = vld [vmem:[%s19529_s0 + $0xb4] ss:$196 sps:$4 sm:$0xff]  }
 0x5de   : > { %11976 = vmatpush1.bf16.msra.mxu1 %v16496_v40  ;;  %11950 = vmatprep.subr.bf16.mxu0 %v16501_v19  ;;  %v16583_v40 = vld [vmem:[%s17076_s8 + $0x2ba8] ss:$16 sps:$4 sm:$0xff]  }
 0x5df   : > { %11977 = vmatprep.subr.bf16.mxu1 %v16504_v13  ;;  %v16586_v19 = vld [vmem:[%s17076_s8 + $0x2ca8] ss:$16 sps:$4 sm:$0xff]   ;;  %v16591_v13 = vld [vmem:[%s17076_s8 + $0x2b8c] ss:$16 sps:$4 sm:$0xff]  }
 0x5e1   : > { %11951 = vmatpush2.bf16.msra.mxu0 %v16499_v42  ;;  %v16594_v42 = vld [vmem:[%s17076_s8 + $0x2c8c] ss:$16 sps:$4 sm:$0xff]  }
 0x5e2   : > { %11978 = vmatpush1.bf16.msra.mxu1 %v16502_v51  ;;  %11952 = vmatprep.subr.bf16.mxu0 %v16507_v31  ;;  %v16589_v51 = vld [vmem:[%s17076_s8 + $0x2b88] ss:$16 sps:$4 sm:$0xff]  }
 0x5e3   : > { %11979 = vmatprep.subr.bf16.mxu1 %v16510_v32  ;;  %v16592_v31 = vld [vmem:[%s17076_s8 + $0x2c88] ss:$16 sps:$4 sm:$0xff]   ;;  %v16597_v32 = vld [vmem:[%s17076_s8 + $0x2b6c] ss:$16 sps:$4 sm:$0xff]  }
 0x5e5   : > { %11953 = vmatpush2.bf16.msra.mxu0 %v16505_v38  ;;  %v16600_v38 = vld [vmem:[%s17076_s8 + $0x2c6c] ss:$16 sps:$4 sm:$0xff]  }
 0x5e6   : > { %11980 = vmatpush1.bf16.msra.mxu1 %v16508_v50  ;;  %11954 = vmatprep.subr.bf16.mxu0 %v16513_v60  ;;  %v16595_v50 = vld [vmem:[%s17076_s8 + $0x2b68] ss:$16 sps:$4 sm:$0xff]  }
 0x5e7   : > { %11981 = vmatprep.subr.bf16.mxu1 %v16516_v37  ;;  %v16598_v60 = vld [vmem:[%s17076_s8 + $0x2c68] ss:$16 sps:$4 sm:$0xff]   ;;  %v16603_v37 = vld [vmem:[%s17076_s8 + $0x2b4c] ss:$16 sps:$4 sm:$0xff]  }
 0x5e9   : > { %11955 = vmatpush2.bf16.msra.mxu0 %v16511_v45  ;;  %v16606_v45 = vld [vmem:[%s17076_s8 + $0x2c4c] ss:$16 sps:$4 sm:$0xff]  }
 0x5ea   : > { %11982 = vmatpush1.bf16.msra.mxu1 %v16514_v59  ;;  %11956 = vmatprep.subr.bf16.mxu0 %v16519_v49  ;;  %v16601_v59 = vld [vmem:[%s17076_s8 + $0x2b48] ss:$16 sps:$4 sm:$0xff]  }
 0x5eb   : > { %11983 = vmatprep.subr.bf16.mxu1 %v16522_v29  ;;  %v16604_v49 = vld [vmem:[%s17076_s8 + $0x2c48] ss:$16 sps:$4 sm:$0xff]   ;;  %v16609_v29 = vld [vmem:[%s17076_s8 + $0x2b2c] ss:$16 sps:$4 sm:$0xff]  }
 0x5ed   : > { %11957 = vmatpush2.bf16.msra.mxu0 %v16517_v61  ;;  %v16612_v61 = vld [vmem:[%s17076_s8 + $0x2c2c] ss:$16 sps:$4 sm:$0xff]  }
 0x5ee   : > { %11984 = vmatpush1.bf16.msra.mxu1 %v16520_v62  ;;  %12012 = vmatprep.subr.bf16.mxu0 %v16528_v9  ;;  %v16607_v62 = vld [vmem:[%s17076_s8 + $0x2b28] ss:$16 sps:$4 sm:$0xff]   ;;  %v16615_v9 = vld [vmem:[%s17076_s8 + $0x2b0c] ss:$16 sps:$4 sm:$0xff]  }
 0x5ef   : > { %11985 = vmatprep.subr.bf16.mxu1 %v16525_v1  ;;  %v16610_v1 = vld [vmem:[%s17076_s8 + $0x2c28] ss:$16 sps:$4 sm:$0xff]  }
 0x5f0   : > { %11959 = vmatmul.mubr.bf16.vlgmr.msra.gmra.mxu0 %v16763_v27  ;;  %v16624_v27 = vld [vmem:[%s17076_s8 + $0x2eec] ss:$16 sps:$4 sm:$0xff]  }
 0x5f1   : > { %12013 = vmatpush1.bf16.msra.mxu0 %v16526_v20  ;;  %12044 = vmatprep.mubr.bf16.mxu0 %v16764_v36  ;;  %v16613_v20 = vld [vmem:[%s17076_s8 + $0x2b08] ss:$16 sps:$4 sm:$0xff]  }
 0x5f2   : > { %11986 = vmatpush2.bf16.msra.mxu1 %v16523_v57  ;;  %12014 = vmatprep.subr.bf16.mxu0 %v16534_v15  ;;  %v16618_v57 = vld [vmem:[%s17076_s8 + $0x2c0c] ss:$16 sps:$4 sm:$0xff]  }
 0x5f3   : > { %11987 = vmatprep.subr.bf16.mxu1 %v16531_v10  ;;  %v16616_v10 = vld [vmem:[%s17076_s8 + $0x2c08] ss:$16 sps:$4 sm:$0xff]   ;;  %v16621_v15 = vld [vmem:[%s17076_s8 + $0x2dec] ss:$16 sps:$4 sm:$0xff]  }
 0x5f4   : > { %v16767_v36 = vld [vmem:[%s19529_s0 + $0xa8] ss:$196 sps:$4 sm:$0xff]  }
 0x5f5   : > { %12015 = vmatpush1.bf16.msra.mxu0 %v16532_v47  ;;  %v16622_v47 = vld [vmem:[%s17076_s8 + $0x2ee8] ss:$16 sps:$4 sm:$0xff]  }
 0x5f6   : > { %11988 = vmatpush2.bf16.msra.mxu1 %v16529_v41  ;;  %12016 = vmatprep.subr.bf16.mxu0 %v16540_v18  ;;  %v16619_v41 = vld [vmem:[%s17076_s8 + $0x2de8] ss:$16 sps:$4 sm:$0xff]   ;;  %v16630_v18 = vld [vmem:[%s17076_s8 + $0x2ecc] ss:$16 sps:$4 sm:$0xff]  }
 0x5f7   : > { %11989 = vmatprep.subr.bf16.mxu1 %v16537_v7  ;;  %v16627_v7 = vld [vmem:[%s17076_s8 + $0x2dcc] ss:$16 sps:$4 sm:$0xff]  }
 0x5f9   : > { %12017 = vmatpush1.bf16.msra.mxu0 %v16538_v55  ;;  %v16628_v55 = vld [vmem:[%s17076_s8 + $0x2ec8] ss:$16 sps:$4 sm:$0xff]  }
 0x5fa   : > { %11990 = vmatpush2.bf16.msra.mxu1 %v16535_v16  ;;  %12018 = vmatprep.subr.bf16.mxu0 %v16546_v11  ;;  %v16625_v16 = vld [vmem:[%s17076_s8 + $0x2dc8] ss:$16 sps:$4 sm:$0xff]   ;;  %v16636_v11 = vld [vmem:[%s17076_s8 + $0x2eac] ss:$16 sps:$4 sm:$0xff]  }
 0x5fb   : > { %11991 = vmatprep.subr.bf16.mxu1 %v16543_v52  ;;  %v16633_v52 = vld [vmem:[%s17076_s8 + $0x2dac] ss:$16 sps:$4 sm:$0xff]  }
 0x5fd   : > { %12019 = vmatpush1.bf16.msra.mxu0 %v16544_v58  ;;  %v16631_v58 = vld [vmem:[%s17076_s8 + $0x2da8] ss:$16 sps:$4 sm:$0xff]  }
 0x5fe   : > { %11992 = vmatpush2.bf16.msra.mxu1 %v16541_v46  ;;  %12020 = vmatprep.subr.bf16.mxu0 %v16552_v34  ;;  %v16768_v46 = vld [vmem:[%s19529_s0 + $0xbc] ss:$196 sps:$4 sm:$0xff]  }
 0x5ff   : > { %11993 = vmatprep.subr.bf16.mxu1 %v16549_v44  ;;  %v16634_v44 = vld [vmem:[%s17076_s8 + $0x2ea8] ss:$16 sps:$4 sm:$0xff]   ;;  %v16639_v34 = vld [vmem:[%s17076_s8 + $0x2d8c] ss:$16 sps:$4 sm:$0xff]  }
 0x601   : > { %12021 = vmatpush1.bf16.msra.mxu0 %v16550_v6  ;;  %v16637_v6 = vld [vmem:[%s17076_s8 + $0x2d88] ss:$16 sps:$4 sm:$0xff]  }
 0x602   : > { %11994 = vmatpush2.bf16.msra.mxu1 %v16547_v54  ;;  %12022 = vmatprep.subr.bf16.mxu0 %v16558_v4  ;;  %v16642_v54 = vld [vmem:[%s17076_s8 + $0x2e8c] ss:$16 sps:$4 sm:$0xff]  }
 0x603   : > { %11995 = vmatprep.subr.bf16.mxu1 %v16555_v63  ;;  %v16640_v63 = vld [vmem:[%s17076_s8 + $0x2e88] ss:$16 sps:$4 sm:$0xff]   ;;  %v16645_v4 = vld [vmem:[%s17076_s8 + $0x2d6c] ss:$16 sps:$4 sm:$0xff]  }
 0x605   : > { %12023 = vmatpush1.bf16.msra.mxu0 %v16556_v28  ;;  %v16643_v28 = vld [vmem:[%s17076_s8 + $0x2d68] ss:$16 sps:$4 sm:$0xff]  }
 0x606   : > { %11996 = vmatpush2.bf16.msra.mxu1 %v16553_v35  ;;  %12024 = vmatprep.subr.bf16.mxu0 %v16564_v43  ;;  %v16648_v35 = vld [vmem:[%s17076_s8 + $0x2e6c] ss:$16 sps:$4 sm:$0xff]  }
 0x607   : > { %11997 = vmatprep.subr.bf16.mxu1 %v16561_v14  ;;  %v16646_v14 = vld [vmem:[%s17076_s8 + $0x2e68] ss:$16 sps:$4 sm:$0xff]   ;;  %v16651_v43 = vld [vmem:[%s17076_s8 + $0x2d4c] ss:$16 sps:$4 sm:$0xff]  }
 0x609   : > { %12025 = vmatpush1.bf16.msra.mxu0 %v16562_v22  ;;  %v16649_v22 = vld [vmem:[%s17076_s8 + $0x2d48] ss:$16 sps:$4 sm:$0xff]  }
 0x60a   : > { %11998 = vmatpush2.bf16.msra.mxu1 %v16559_v24  ;;  %12026 = vmatprep.subr.bf16.mxu0 %v16570_v0  ;;  %v16654_v24 = vld [vmem:[%s17076_s8 + $0x2e4c] ss:$16 sps:$4 sm:$0xff]  }
 0x60b   : > { %11999 = vmatprep.subr.bf16.mxu1 %v16567_v5  ;;  %v16652_v5 = vld [vmem:[%s17076_s8 + $0x2e48] ss:$16 sps:$4 sm:$0xff]   ;;  %v16657_v0 = vld [vmem:[%s17076_s8 + $0x2d2c] ss:$16 sps:$4 sm:$0xff]  }
 0x60d   : > { %12027 = vmatpush1.bf16.msra.mxu0 %v16568_v12  ;;  %v16655_v12 = vld [vmem:[%s17076_s8 + $0x2d28] ss:$16 sps:$4 sm:$0xff]  }
 0x60e   : > { %12000 = vmatpush2.bf16.msra.mxu1 %v16565_v17  ;;  %12028 = vmatprep.subr.bf16.mxu0 %v16573_v23  ;;  %v16660_v17 = vld [vmem:[%s17076_s8 + $0x2e2c] ss:$16 sps:$4 sm:$0xff]   ;;  %v16658_v23 = vld [vmem:[%s17076_s8 + $0x2e28] ss:$16 sps:$4 sm:$0xff]  }
 0x60f   : > { %12055 = vmatprep.subr.bf16.mxu1 %v16576_v2  ;;  %v16663_v2 = vld [vmem:[%s17076_s8 + $0x2d0c] ss:$16 sps:$4 sm:$0xff]  }
 0x611   : > { %12002 = vmatmul.mubr.bf16.vlgmr.msra.gmra.mxu1 %v16765_v21  ;;  %12029 = vmatpush2.bf16.msra.mxu0 %v16571_v53  ;;  %v16666_v53 = vld [vmem:[%s17076_s8 + $0x2e0c] ss:$16 sps:$4 sm:$0xff]  }
 0x612   : > { %12056 = vmatpush1.bf16.msra.mxu1 %v16574_v8  ;;  %12030 = vmatprep.subr.bf16.mxu0 %v16579_v48  ;;  %v16661_v8 = vld [vmem:[%s17076_s8 + $0x2d08] ss:$16 sps:$4 sm:$0xff]   ;;  %v16672_v21 = vld [vmem:[%s17076_s8 + $0x30ec] ss:$16 sps:$4 sm:$0xff]  }
 0x613   : > { %12057 = vmatprep.subr.bf16.mxu1 %v16582_v26  ;;  %12087 = vmatprep.mubr.bf16.mxu1 %v16766_v33  ;;  %v16664_v48 = vld [vmem:[%s17076_s8 + $0x2e08] ss:$16 sps:$4 sm:$0xff]   ;;  %v16669_v26 = vld [vmem:[%s17076_s8 + $0x2fec] ss:$16 sps:$4 sm:$0xff]   ;;  %v16769_v33 = vld [vmem:[%s19529_s0 + $0xb0] ss:$196 sps:$4 sm:$0xff]  }
 0x615   : > { %12031 = vmatpush2.bf16.msra.mxu0 %v16577_v25  ;;  %v16667_v25 = vld [vmem:[%s17076_s8 + $0x2fe8] ss:$16 sps:$4 sm:$0xff]  }
 0x616   : > { %12058 = vmatpush1.bf16.msra.mxu1 %v16580_v56  ;;  %12032 = vmatprep.subr.bf16.mxu0 %v16585_v39  ;;  %v16670_v56 = vld [vmem:[%s17076_s8 + $0x30e8] ss:$16 sps:$4 sm:$0xff]   ;;  %v16675_v39 = vld [vmem:[%s17076_s8 + $0x2fcc] ss:$16 sps:$4 sm:$0xff]  }
 0x617   : > { %12059 = vmatprep.subr.bf16.mxu1 %v16588_v30  ;;  %v16678_v30 = vld [vmem:[%s17076_s8 + $0x30cc] ss:$16 sps:$4 sm:$0xff]  }
 0x619   : > { %12033 = vmatpush2.bf16.msra.mxu0 %v16583_v40  ;;  %v16673_v40 = vld [vmem:[%s17076_s8 + $0x2fc8] ss:$16 sps:$4 sm:$0xff]  }
 0x61a   : > { %12060 = vmatpush1.bf16.msra.mxu1 %v16586_v19  ;;  %12034 = vmatprep.subr.bf16.mxu0 %v16591_v13  ;;  %v16676_v19 = vld [vmem:[%s17076_s8 + $0x30c8] ss:$16 sps:$4 sm:$0xff]   ;;  %v16681_v13 = vld [vmem:[%s17076_s8 + $0x2fac] ss:$16 sps:$4 sm:$0xff]  }
 0x61b   : > { %12061 = vmatprep.subr.bf16.mxu1 %v16594_v42  ;;  %v16684_v42 = vld [vmem:[%s17076_s8 + $0x30ac] ss:$16 sps:$4 sm:$0xff]  }
 0x61d   : > { %12035 = vmatpush2.bf16.msra.mxu0 %v16589_v51  ;;  %v19561_v51 = vmov 0  }
 0x61e   : > { %12062 = vmatpush1.bf16.msra.mxu1 %v16592_v31  ;;  %12036 = vmatprep.subr.bf16.mxu0 %v16597_v32  ;;  %v16679_v31 = vld [vmem:[%s17076_s8 + $0x2fa8] ss:$16 sps:$4 sm:$0xff]  }
 0x61f   : > { %12063 = vmatprep.subr.bf16.mxu1 %v16600_v38  ;;  %v16682_v32 = vld [vmem:[%s17076_s8 + $0x30a8] ss:$16 sps:$4 sm:$0xff]   ;;  %v16687_v38 = vld [vmem:[%s17076_s8 + $0x2f8c] ss:$16 sps:$4 sm:$0xff]  }
 0x621   : > { %12037 = vmatpush2.bf16.msra.mxu0 %v16595_v50  ;;  %v16690_v50 = vld [vmem:[%s17076_s8 + $0x308c] ss:$16 sps:$4 sm:$0xff]  }
 0x622   : > { %12064 = vmatpush1.bf16.msra.mxu1 %v16598_v60  ;;  %12038 = vmatprep.subr.bf16.mxu0 %v16603_v37  ;;  %v16685_v60 = vld [vmem:[%s17076_s8 + $0x2f88] ss:$16 sps:$4 sm:$0xff]  }
 0x623   : > { %12065 = vmatprep.subr.bf16.mxu1 %v16606_v45  ;;  %v16688_v37 = vld [vmem:[%s17076_s8 + $0x3088] ss:$16 sps:$4 sm:$0xff]   ;;  %v16693_v45 = vld [vmem:[%s17076_s8 + $0x2f6c] ss:$16 sps:$4 sm:$0xff]  }
 0x625   : > { %12039 = vmatpush2.bf16.msra.mxu0 %v16601_v59  ;;  %v16696_v59 = vld [vmem:[%s17076_s8 + $0x306c] ss:$16 sps:$4 sm:$0xff]  }
 0x626   : > { %12066 = vmatpush1.bf16.msra.mxu1 %v16604_v49  ;;  %12040 = vmatprep.subr.bf16.mxu0 %v16609_v29  ;;  %v16691_v49 = vld [vmem:[%s17076_s8 + $0x2f68] ss:$16 sps:$4 sm:$0xff]  }
 0x627   : > { %12067 = vmatprep.subr.bf16.mxu1 %v16612_v61  ;;  %v16694_v29 = vld [vmem:[%s17076_s8 + $0x3068] ss:$16 sps:$4 sm:$0xff]   ;;  %v16699_v61 = vld [vmem:[%s17076_s8 + $0x2f4c] ss:$16 sps:$4 sm:$0xff]  }
 0x629   : > { %12041 = vmatpush2.bf16.msra.mxu0 %v16607_v62  ;;  %v16702_v62 = vld [vmem:[%s17076_s8 + $0x304c] ss:$16 sps:$4 sm:$0xff]  }
 0x62a   : > { %12068 = vmatpush1.bf16.msra.mxu1 %v16610_v1  ;;  %12042 = vmatprep.subr.bf16.mxu0 %v16615_v9  ;;  %v16697_v1 = vld [vmem:[%s17076_s8 + $0x2f48] ss:$16 sps:$4 sm:$0xff]  }
 0x62b   : > { %12069 = vmatprep.subr.bf16.mxu1 %v16618_v57  ;;  %v16700_v9 = vld [vmem:[%s17076_s8 + $0x3048] ss:$16 sps:$4 sm:$0xff]   ;;  %v16705_v57 = vld [vmem:[%s17076_s8 + $0x2f2c] ss:$16 sps:$4 sm:$0xff]  }
 0x62d   : > { %12043 = vmatpush2.bf16.msra.mxu0 %v16613_v20  ;;  %v16708_v20 = vld [vmem:[%s17076_s8 + $0x302c] ss:$16 sps:$4 sm:$0xff]  }
 0x62e   : > { %12070 = vmatpush1.bf16.msra.mxu1 %v16616_v10  ;;  %12098 = vmatprep.subr.bf16.mxu0 %v16624_v27  ;;  %v16703_v10 = vld [vmem:[%s17076_s8 + $0x2f28] ss:$16 sps:$4 sm:$0xff]   ;;  %v16711_v27 = vld [vmem:[%s17076_s8 + $0x2f0c] ss:$16 sps:$4 sm:$0xff]  }
 0x62f   : > { %12071 = vmatprep.subr.bf16.mxu1 %v16621_v15  ;;  %v16706_v15 = vld [vmem:[%s17076_s8 + $0x3028] ss:$16 sps:$4 sm:$0xff]  }
 0x630   : > { %12045 = vmatmul.mubr.bf16.vlgmr.msra.gmra.mxu0 %v16767_v36  ;;  %v16771_v36 = vld [vmem:[%s19529_s0 + $0xc0] ss:$196 sps:$4 sm:$0xff]  }
 0x631   : > { %12099 = vmatpush1.bf16.msra.mxu0 %v16622_v47  ;;  %12130 = vmatprep.mubr.bf16.mxu0 %v16768_v46  ;;  %v16709_v47 = vld [vmem:[%s17076_s8 + $0x2f08] ss:$16 sps:$4 sm:$0xff]   ;;  %v19263_v46 = vpop.f32.mrf.mxu0 }
 0x632   : > { %12072 = vmatpush2.bf16.msra.mxu1 %v16619_v41  ;;  %12100 = vmatprep.subr.bf16.mxu0 %v16630_v18  ;;  %v16714_v41 = vld [vmem:[%s17076_s8 + $0x300c] ss:$16 sps:$4 sm:$0xff]  }
 0x633   : > { %12073 = vmatprep.subr.bf16.mxu1 %v16627_v7  ;;  %v16712_v7 = vld [vmem:[%s17076_s8 + $0x3008] ss:$16 sps:$4 sm:$0xff]   ;;  %s14218_s8 = sshll.u32 (%p17000_p9), %s16904_s18, 4 }
 0x634   : > { %v16770_v18 = vld [vmem:[%s19529_s0 + $0xb8] ss:$196 sps:$4 sm:$0xff]   ;;  %s12413_s14 = scalar_lea.vmem (%p17000_p9), %s19533_s4, %s14218_s8 }
 0x635   : > { %12101 = vmatpush1.bf16.msra.mxu0 %v16628_v55 }
 0x636   : > { %12074 = vmatpush2.bf16.msra.mxu1 %v16625_v16  ;;  %12102 = vmatprep.subr.bf16.mxu0 %v16636_v11  ;;  %v19255_v16 = vpop.f32.mrf.mxu1 }
 0x637   : > { %12075 = vmatprep.subr.bf16.mxu1 %v16633_v52 }
 0x638   : > { %v19257_v55 = vpop.f32.mrf.mxu1 }
 0x639   : > { %12103 = vmatpush1.bf16.msra.mxu0 %v16634_v44  ;;  %v19267_v44 = vpop.f32.mrf.mxu0 }
 0x63a   : > { %12076 = vmatpush2.bf16.msra.mxu1 %v16631_v58  ;;  %12104 = vmatprep.subr.bf16.mxu0 %v16642_v54  ;;  %v19259_v52 = vpop.f32.mrf.mxu1 }
 0x63b   : > { %12077 = vmatprep.subr.bf16.mxu1 %v16639_v34  ;;  %v19271_v54 = vpop.f32.mrf.mxu0 }
 0x63c   : > { %v19261_v11 = vpop.f32.mrf.mxu1 }
 0x63d   : > { %12105 = vmatpush1.bf16.msra.mxu0 %v16640_v63  ;;  %v19275_v63 = vpop.f32.mrf.mxu0 }
 0x63e   : > { %12078 = vmatpush2.bf16.msra.mxu1 %v16637_v6  ;;  %12106 = vmatprep.subr.bf16.mxu0 %v16648_v35  ;;  %v19265_v58 = vpop.f32.mrf.mxu1 }
 0x63f   : > { %12079 = vmatprep.subr.bf16.mxu1 %v16645_v4  ;;  %v19279_v35 = vpop.f32.mrf.mxu0 }
 0x640   : > { %v19269_v34 = vpop.f32.mrf.mxu1 }
 0x641   : > { %12107 = vmatpush1.bf16.msra.mxu0 %v16646_v14  ;;  %v19283_v14 = vpop.f32.mrf.mxu0 }
 0x642   : > { %12080 = vmatpush2.bf16.msra.mxu1 %v16643_v28  ;;  %12108 = vmatprep.subr.bf16.mxu0 %v16654_v24  ;;  %v19273_v6 = vpop.f32.mrf.mxu1 }
 0x643   : > { %12081 = vmatprep.subr.bf16.mxu1 %v16651_v43  ;;  %v19287_v24 = vpop.f32.mrf.mxu0 }
 0x644   : > { %v19277_v4 = vpop.f32.mrf.mxu1 }
 0x645   : > { %12109 = vmatpush1.bf16.msra.mxu0 %v16652_v5  ;;  %v19291_v5 = vpop.f32.mrf.mxu0 }
 0x646   : > { %12082 = vmatpush2.bf16.msra.mxu1 %v16649_v22  ;;  %12110 = vmatprep.subr.bf16.mxu0 %v16660_v17  ;;  %v19281_v28 = vpop.f32.mrf.mxu1 }
 0x647   : > { %12083 = vmatprep.subr.bf16.mxu1 %v16657_v0  ;;  %v19295_v17 = vpop.f32.mrf.mxu0 }
 0x648   : > { %v19285_v43 = vpop.f32.mrf.mxu1 }
 0x649   : > { %12111 = vmatpush1.bf16.msra.mxu0 %v16658_v23  ;;  %v19299_v23 = vpop.f32.mrf.mxu0 }
 0x64a   : > { %12084 = vmatpush2.bf16.msra.mxu1 %v16655_v12  ;;  %12112 = vmatprep.subr.bf16.mxu0 %v16666_v53  ;;  %v19289_v22 = vpop.f32.mrf.mxu1 }
 0x64b   : > { %12085 = vmatprep.subr.bf16.mxu1 %v16663_v2  ;;  %v19303_v53 = vpop.f32.mrf.mxu0 }
 0x64c   : > { %v19293_v0 = vpop.f32.mrf.mxu1 }
 0x64d   : > { %12113 = vmatpush1.bf16.msra.mxu0 %v16664_v48  ;;  %v19307_v48 = vpop.f32.mrf.mxu0 }
 0x64e   : > { %12086 = vmatpush2.bf16.msra.mxu1 %v16661_v8  ;;  %12114 = vmatprep.subr.bf16.mxu0 %v16669_v26  ;;  %v19297_v12 = vpop.f32.mrf.mxu1 }
 0x64f   : > { %12141 = vmatprep.subr.bf16.mxu1 %v16672_v21  ;;  %v19311_v21 = vpop.f32.mrf.mxu0 }
 0x650   : > { %v19301_v2 = vpop.f32.mrf.mxu1 }
 0x651   : > { %12088 = vmatmul.mubr.bf16.vlgmr.msra.gmra.mxu1 %v16769_v33  ;;  %12115 = vmatpush2.bf16.msra.mxu0 %v16667_v25 }
 0x652   : > { %12142 = vmatpush1.bf16.msra.mxu1 %v16670_v56  ;;  %12116 = vmatprep.subr.bf16.mxu0 %v16675_v39  ;;  %v19305_v8 = vpop.f32.mrf.mxu1  ;;  %v19315_v56 = vpop.f32.mrf.mxu0 }
 0x653   : > { %12143 = vmatprep.subr.bf16.mxu1 %v16678_v30  ;;  %12173 = vmatprep.mubr.bf16.mxu1 %v19561_v51 }
 0x654   : > { %v19309_v26 = vpop.f32.mrf.mxu1  ;;  %v19319_v30 = vpop.f32.mrf.mxu0 }
 0x655   : > { %12117 = vmatpush2.bf16.msra.mxu0 %v16673_v40 }
 0x656   : > { %12144 = vmatpush1.bf16.msra.mxu1 %v16676_v19  ;;  %12118 = vmatprep.subr.bf16.mxu0 %v16681_v13  ;;  %v19313_v25 = vpop.f32.mrf.mxu1  ;;  %v19323_v40 = vpop.f32.mrf.mxu0 }
 0x657   : > { %12145 = vmatprep.subr.bf16.mxu1 %v16684_v42 }
 0x658   : > { %v19317_v39 = vpop.f32.mrf.mxu1  ;;  %v19327_v13 = vpop.f32.mrf.mxu0 }
 0x659   : > { %12119 = vmatpush2.bf16.msra.mxu0 %v16679_v31 }
 0x65a   : > { %12146 = vmatpush1.bf16.msra.mxu1 %v16682_v32  ;;  %12120 = vmatprep.subr.bf16.mxu0 %v16687_v38  ;;  %v19321_v33 = vpop.f32.mrf.mxu1  ;;  %v19331_v51 = vpop.f32.mrf.mxu0 }
 0x65b   : > { %12147 = vmatprep.subr.bf16.mxu1 %v16690_v50 }
 0x65c   : > { %v19325_v19 = vpop.f32.mrf.mxu1  ;;  %v19335_v32 = vpop.f32.mrf.mxu0 }
 0x65d   : > { %12121 = vmatpush2.bf16.msra.mxu0 %v16685_v60 }
 0x65e   : > { %12148 = vmatpush1.bf16.msra.mxu1 %v16688_v37  ;;  %12122 = vmatprep.subr.bf16.mxu0 %v16693_v45  ;;  %v19329_v42 = vpop.f32.mrf.mxu1  ;;  %v19339_v50 = vpop.f32.mrf.mxu0 }
 0x65f   : > { %12149 = vmatprep.subr.bf16.mxu1 %v16696_v59 }
 0x660   : > { %v19333_v31 = vpop.f32.mrf.mxu1  ;;  %v19343_v37 = vpop.f32.mrf.mxu0 }
 0x661   : > { %12123 = vmatpush2.bf16.msra.mxu0 %v16691_v49 }
 0x662   : > { %12150 = vmatpush1.bf16.msra.mxu1 %v16694_v29  ;;  %12124 = vmatprep.subr.bf16.mxu0 %v16699_v61  ;;  %v19337_v38 = vpop.f32.mrf.mxu1  ;;  %v19347_v59 = vpop.f32.mrf.mxu0 }
 0x663   : > { %12151 = vmatprep.subr.bf16.mxu1 %v16702_v62 }
 0x664   : > { %v19341_v60 = vpop.f32.mrf.mxu1  ;;  %v19351_v29 = vpop.f32.mrf.mxu0 }
 0x665   : > { %12125 = vmatpush2.bf16.msra.mxu0 %v16697_v1 }
 0x666   : > { %12152 = vmatpush1.bf16.msra.mxu1 %v16700_v9  ;;  %12126 = vmatprep.subr.bf16.mxu0 %v16705_v57  ;;  %v19345_v45 = vpop.f32.mrf.mxu1  ;;  %v19355_v62 = vpop.f32.mrf.mxu0 }
 0x667   : > { %12153 = vmatprep.subr.bf16.mxu1 %v16708_v20 }
 0x668   : > { %v19349_v49 = vpop.f32.mrf.mxu1  ;;  %v19359_v9 = vpop.f32.mrf.mxu0 }
 0x669   : > { %12127 = vmatpush2.bf16.msra.mxu0 %v16703_v10 }
 0x66a   : > { %12154 = vmatpush1.bf16.msra.mxu1 %v16706_v15  ;;  %12128 = vmatprep.subr.bf16.mxu0 %v16711_v27  ;;  %v19353_v61 = vpop.f32.mrf.mxu1  ;;  %v19363_v20 = vpop.f32.mrf.mxu0 }
 0x66b   : > { %12155 = vmatprep.subr.bf16.mxu1 %v16714_v41 }
 0x66c   : > { %v19357_v1 = vpop.f32.mrf.mxu1  ;;  %v19367_v15 = vpop.f32.mrf.mxu0 }
 0x66d   : > { %12129 = vmatpush2.bf16.msra.mxu0 %v16709_v47  ;;  %19562 = vst [vmem:[#allocation12_spill] sm:$0xff] %v19357_v1  ;;  %19565 = vst [vmem:[#allocation14_spill] sm:$0xff] %v19367_v15 }
 0x66e   : > { %12156 = vmatpush1.bf16.msra.mxu1 %v16712_v7  ;;  %v19361_v57 = vpop.f32.mrf.mxu1  ;;  %v19371_v41 = vpop.f32.mrf.mxu0 }
 0x66f   : > { %19563 = vst [vmem:[#allocation11_spill] sm:$0xff] %v19361_v57  ;;  %19567 = vst [vmem:[#allocation16_spill] sm:$0xff] %v19371_v41 }
 0x670   : > { %12131 = vmatmul.mubr.bf16.vlgmr.msra.gmra.mxu0 %v16770_v18  ;;  %v19365_v10 = vpop.f32.mrf.mxu1  ;;  %v19375_v7 = vpop.f32.mrf.mxu0 }
 0x671   : > { %12174 = vmatmul.mubr.bf16.vlgmr.msra.gmra.mxu1 %v16771_v36  ;;  %19564 = vst [vmem:[#allocation13_spill] sm:$0xff] %v19365_v10 }
 0x672   : > { %v19369_v27 = vpop.f32.mrf.mxu1  ;;  %v19379_v36 = vpop.f32.mrf.mxu0 }
 0x673   : > { %19566 = vst [vmem:[#allocation15_spill] sm:$0xff] %v19369_v27  ;;  %19570 = vst [vmem:[#allocation19_spill] sm:$0xff] %v19379_v36  ;;  %v11187_v27 = vadd.f32 %v19263_v46, %v19255_v16  ;;  %v11193_v16 = vadd.f32 %v19275_v63, %v19261_v11 }
 0x674   : > { %v19373_v47 = vpop.f32.mrf.mxu1  ;;  %v19383_v1 = vpop.f32.mrf.mxu0 }
 0x675   : > { %19568 = vst [vmem:[#allocation17_spill] sm:$0xff] %v19373_v47  ;;  %19572 = vst [vmem:[#allocation21_spill] sm:$0xff] %v19383_v1  ;;  %v11191_v1 = vadd.f32 %v19271_v54, %v19259_v52 }
 0x676   : > { %v19377_v18 = vpop.f32.mrf.mxu1  ;;  %v19387_v10 = vpop.f32.mrf.mxu0 }
 0x677   : > { %19569 = vst [vmem:[#allocation18_spill] sm:$0xff] %v19377_v18  ;;  %19574 = vst [vmem:[#allocation23_spill] sm:$0xff] %v19387_v10  ;;  %v11189_v18 = vadd.f32 %v19267_v44, %v19257_v55  ;;  %v11234_v46 = vadd.f32 %v19273_v6, %v11191_v1  ;;  %v11236_v44 = vadd.f32 %v19277_v4, %v11193_v16 }
 0x678   : > { %v19381_v3 = vpop.f32.mrf.mxu1  ;;  %v19393_v47 = vpop.f32.mrf.mxu0 }
 0x679   : > { %19571 = vst [vmem:[#allocation20_spill] sm:$0xff] %v19381_v3  ;;  %v11230_v3 = vadd.f32 %v19265_v58, %v11187_v27  ;;  %v11277_v52 = vadd.f32 %v19287_v24, %v11234_v46  ;;  %v11279_v11 = vadd.f32 %v19291_v5, %v11236_v44 }
 0x67a   : > { %v19385_v57 = vpop.f32.mrf.mxu1 }
 0x67b   : > { %19573 = vst [vmem:[#allocation22_spill] sm:$0xff] %v19385_v57  ;;  %v11232_v57 = vadd.f32 %v19269_v34, %v11189_v18  ;;  %v11273_v10 = vadd.f32 %v19279_v35, %v11230_v3  ;;  %v11320_v6 = vadd.f32 %v19289_v22, %v11277_v52  ;;  %v11322_v4 = vadd.f32 %v19293_v0, %v11279_v11  ;;  %v19577_v52 = vld [vmem:[#allocation12_spill] sm:$0xff]  ;;  %v19579_v11 = vld [vmem:[#allocation13_spill] sm:$0xff] }
 0x67c   : > { %v19389_v15 = vpop.f32.mrf.mxu1 }
 0x67d   : > { %19575 = vst [vmem:[#allocation24_spill] sm:$0xff] %v19389_v15  ;;  %v19404_v15 = vpop.f32.mrf.mxu0  ;;  %v11275_v55 = vadd.f32 %v19283_v14, %v11232_v57  ;;  %v11316_v58 = vadd.f32 %v19281_v28, %v11273_v10  ;;  %v11363_v14 = vadd.f32 %v19303_v53, %v11320_v6  ;;  %v11365_v5 = vadd.f32 %v19307_v48, %v11322_v4  ;;  %v19582_v4 = vld [vmem:[#allocation19_spill] sm:$0xff] }
 0x67f   : > { %v11318_v34 = vadd.f32 %v19285_v43, %v11275_v55  ;;  %v11359_v3 = vadd.f32 %v19295_v17, %v11316_v58  ;;  %v19417_v54 = vpop.f32.mrf.mxu0  ;;  %v11406_v22 = vadd.f32 %v19305_v8, %v11363_v14  ;;  %v11408_v53 = vadd.f32 %v19309_v26, %v11365_v5  ;;  %v19576_v58 = vld [vmem:[#allocation11_spill] sm:$0xff]  ;;  %v19583_v14 = vld [vmem:[#allocation18_spill] sm:$0xff] }
 0x681   : > { %v11361_v63 = vadd.f32 %v19299_v23, %v11318_v34  ;;  %v11402_v28 = vadd.f32 %v19297_v12, %v11359_v3  ;;  %v19429_v17 = vpop.f32.mrf.mxu0  ;;  %v11451_v27 = vadd.f32 %v19323_v40, %v11408_v53  ;;  %v19578_v3 = vld [vmem:[#allocation14_spill] sm:$0xff] }
 0x683   : > { %v11404_v43 = vadd.f32 %v19301_v2, %v11361_v63  ;;  %v11445_v24 = vadd.f32 %v19311_v21, %v11402_v28  ;;  %v11449_v2 = vadd.f32 %v19319_v30, %v11406_v22  ;;  %v11494_v16 = vadd.f32 %v19325_v19, %v11451_v27  ;;  %v19580_v63 = vld [vmem:[#allocation16_spill] sm:$0xff]  ;;  %v19581_v28 = vld [vmem:[#allocation15_spill] sm:$0xff]  ;;  %v19585_v22 = vld [vmem:[#allocation21_spill] sm:$0xff] }
 0x685   : > { %v11447_v23 = vadd.f32 %v19315_v56, %v11404_v43  ;;  %v11488_v12 = vadd.f32 %v19313_v25, %v11445_v24  ;;  %v11492_v48 = vadd.f32 %v19321_v33, %v11449_v2  ;;  %v19584_v24 = vld [vmem:[#allocation17_spill] sm:$0xff] }
 0x687   : > { %v11490_v21 = vadd.f32 %v19317_v39, %v11447_v23  ;;  %v11531_v10 = vadd.f32 %v19327_v13, %v11488_v12  ;;  %v11535_v26 = vadd.f32 %v19335_v32, %v11492_v48  ;;  %v11537_v13 = vadd.f32 %v19339_v50, %v11494_v16  ;;  %v19586_v12 = vld [vmem:[#allocation20_spill] sm:$0xff]  ;;  %v19588_v48 = vld [vmem:[#allocation22_spill] sm:$0xff] }
 0x689   : > { %v11533_v8 = vadd.f32 %v19331_v51, %v11490_v21  ;;  %v11574_v56 = vadd.f32 %v19329_v42, %v11531_v10  ;;  %v11578_v40 = vadd.f32 %v19337_v38, %v11535_v26  ;;  %v11580_v55 = vadd.f32 %v19341_v60, %v11537_v13  ;;  %v19587_v10 = vld [vmem:[#allocation23_spill] sm:$0xff]  ;;  %v19589_v26 = vld [vmem:[#allocation24_spill] sm:$0xff] }
 0x68b   : > { %v11576_v30 = vadd.f32 %v19333_v31, %v11533_v8  ;;  %v11617_v39 = vadd.f32 %v19343_v37, %v11574_v56  ;;  %v11621_v19 = vadd.f32 %v19351_v29, %v11578_v40  ;;  %v11623_v37 = vadd.f32 %v19355_v62, %v11580_v55 }
 0x68d   : > { %v11619_v33 = vadd.f32 %v19347_v59, %v11576_v30  ;;  %v11660_v51 = vadd.f32 %v19345_v45, %v11617_v39  ;;  %v11664_v50 = vadd.f32 %v19353_v61, %v11621_v19  ;;  %v11666_v34 = vadd.f32 %v19577_v52, %v11623_v37 }
 0x68f   : > { %v11662_v32 = vadd.f32 %v19349_v49, %v11619_v33  ;;  %v11703_v31 = vadd.f32 %v19359_v9, %v11660_v51  ;;  %v11707_v60 = vadd.f32 %v19578_v3, %v11664_v50  ;;  %v11709_v62 = vadd.f32 %v19580_v63, %v11666_v34 }
 0x691   : > { %v19395_v41 = vpop.f32.mrf.mxu1  ;;  %v11705_v38 = vadd.f32 %v19363_v20, %v11662_v32  ;;  %v11746_v59 = vadd.f32 %v19576_v58, %v11703_v31  ;;  %v11750_v61 = vadd.f32 %v19581_v28, %v11707_v60  ;;  %v11752_v5 = vadd.f32 %v19584_v24, %v11709_v62 }
 0x693   : > { %v19406_v36 = vpop.f32.mrf.mxu1  ;;  %v11748_v29 = vadd.f32 %v19579_v11, %v11705_v38  ;;  %v11789_v49 = vadd.f32 %v19375_v7, %v11746_v59  ;;  %v11793_v23 = vadd.f32 %v19585_v22, %v11750_v61  ;;  %v11795_v27 = vadd.f32 %v19587_v10, %v11752_v5 }
 0x695   : > { %v19419_v35 = vpop.f32.mrf.mxu1  ;;  %v11791_v20 = vadd.f32 %v19582_v4, %v11748_v29  ;;  %v11832_v43 = vadd.f32 %v19583_v14, %v11789_v49  ;;  %v11836_v8 = vadd.f32 %v19588_v48, %v11793_v23  ;;  %v11838_v30 = vadd.f32 %v19589_v26, %v11795_v27 }
 0x697   : > { %v19431_v1 = vpop.f32.mrf.mxu1  ;;  %v11834_v53 = vadd.f32 %v19586_v12, %v11791_v20  ;;  %v11875_v2 = vadd.f32 %v19393_v47, %v11832_v43  ;;  %v11879_v39 = vadd.f32 %v19417_v54, %v11836_v8  ;;  %v11881_v47 = vadd.f32 %v19429_v17, %v11838_v30 }
 0x699   : > { %v11877_v56 = vadd.f32 %v19404_v15, %v11834_v53  ;;  %v11918_v16 = vadd.f32 %v19395_v41, %v11875_v2  ;;  %v11922_v55 = vadd.f32 %v19419_v35, %v11879_v39  ;;  %v11924_v31 = vadd.f32 %v19431_v1, %v11881_v47 }
 0x69b   : > { %v11920_v13 = vadd.f32 %v19406_v36, %v11877_v56 }
 0x6b0   : > { %v11960_v57 = vpop.f32.mrf.mxu0 }
 0x6b1   : > { %v11961_v40 = vadd.f32 %v11960_v57, %v11918_v16 }
 0x6b2   : > { %v11962_v18 = vpop.f32.mrf.mxu0 }
 0x6b3   : > { %v11963_v19 = vadd.f32 %v11962_v18, %v11920_v13 }
 0x6b4   : > { %v11964_v46 = vpop.f32.mrf.mxu0 }
 0x6b5   : > { %v11965_v15 = vadd.f32 %v11964_v46, %v11922_v55 }
 0x6b6   : > { %v11966_v44 = vpop.f32.mrf.mxu0 }
 0x6b7   : > { %v11967_v58 = vadd.f32 %v11966_v44, %v11924_v31 }
 0x6d1   : > { %v12003_v0 = vpop.f32.mrf.mxu1 }
 0x6d2   : > { %v12004_v32 = vadd.f32 %v12003_v0, %v11961_v40 }
 0x6d3   : > { %v12005_v25 = vpop.f32.mrf.mxu1 }
 0x6d4   : > { %v12006_v37 = vadd.f32 %v12005_v25, %v11963_v19 }
 0x6d5   : > { %v12007_v42 = vpop.f32.mrf.mxu1 }
 0x6d6   : > { %v12008_v54 = vadd.f32 %v12007_v42, %v11965_v15 }
 0x6d7   : > { %v12009_v45 = vpop.f32.mrf.mxu1 }
 0x6d8   : > { %v12010_v34 = vadd.f32 %v12009_v45, %v11967_v58 }
 0x6f0   : > { %v12046_v6 = vpop.f32.mrf.mxu0 }
 0x6f1   : > { %v12047_v41 = vadd.f32 %v12046_v6, %v12004_v32 }
 0x6f2   : > { %v12048_v21 = vpop.f32.mrf.mxu0 }
 0x6f3   : > { %v12049_v59 = vadd.f32 %v12048_v21, %v12006_v37 }
 0x6f4   : > { %v12050_v33 = vpop.f32.mrf.mxu0 }
 0x6f5   : > { %v12051_v3 = vadd.f32 %v12050_v33, %v12008_v54 }
 0x6f6   : > { %v12052_v50 = vpop.f32.mrf.mxu0 }
 0x6f7   : > { %v12053_v0 = vadd.f32 %v12052_v50, %v12010_v34  ;;  %v19590_v34 = vld [vmem:[#allocation10_spill] sm:$0xff] }
 0x711   : > { %v12089_v9 = vpop.f32.mrf.mxu1 }
 0x712   : > { %v12090_v36 = vadd.f32 %v12089_v9, %v12047_v41 }
 0x713   : > { %v12091_v7 = vpop.f32.mrf.mxu1 }
 0x714   : > { %v12092_v17 = vadd.f32 %v12091_v7, %v12049_v59 }
 0x715   : > { %v12093_v51 = vpop.f32.mrf.mxu1 }
 0x716   : > { %v12094_v11 = vadd.f32 %v12093_v51, %v12051_v3  ;;  %v12304_v3 = vsub.s32 2, %v19590_v34 }
 0x717   : > { %v12095_v38 = vpop.f32.mrf.mxu1 }
 0x718   : > { %v12096_v29 = vadd.f32 %v12095_v38, %v12053_v0 }
 0x730   : > { %v12132_v57 = vpop.f32.mrf.mxu0 }
 0x731   : > { %v12175_v52 = vpop.f32.mrf.mxu1  ;;  %v12133_v60 = vadd.f32 %v12132_v57, %v12090_v36 }
 0x732   : > { %v12134_v35 = vpop.f32.mrf.mxu0 }
 0x733   : > { %v12177_v18 = vpop.f32.mrf.mxu1  ;;  %v12135_v1 = vadd.f32 %v12134_v35, %v12092_v17  ;;  %v12176_v49 = vadd.f32 %v12175_v52, %v12133_v60  ;;  %v12308_v17 = vsub.s32 3, %v19590_v34 }
 0x734   : > { %v12136_v46 = vpop.f32.mrf.mxu0 }
 0x735   : > { %v12179_v25 = vpop.f32.mrf.mxu1  ;;  %v12137_v6 = vadd.f32 %v12136_v46, %v12094_v11  ;;  %v19483_v44 = vadd.f32 %v12177_v18, %v12135_v1  ;;  %v12218_v45 = vmul.f32 %v12176_v49, %v12176_v49  ;;  %v16772_v18 = vld [vmem:[%s17086_s13] sm:$0xf] }
 0x736   : > { %v12138_v42 = vpop.f32.mrf.mxu0  ;;  %v12305_v0 = vrot.slane %v16772_v18, %v12304_v3 }
 0x737   : > { %v12180_v9 = vadd.f32 %v12179_v25, %v12137_v6  ;;  %v12139_v63 = vadd.f32 %v12138_v42, %v12096_v29  ;;  %v12181_v62 = vpop.f32.mrf.mxu1  ;;  %v12219_v20 = vmul.f32 %v19483_v44, %v19483_v44  ;;  %v16773_v25 = vld [vmem:[%s18606_s24] sm:$0xf] }
 0x738   : > { %v12335_v29 = vrot.slane %v16773_v25, %v12304_v3 }
 0x739   : > { %v12198_v28 = vadd.f32 %v12180_v9, %v12176_v49  ;;  %v12222_v61 = vmul.f32 %v12180_v9, %v12180_v9  ;;  %v19485_v4 = vadd.f32 %v12181_v62, %v12139_v63  ;;  %v12309_v63 = vrot.slane %v16772_v18, %v12308_v17 }
 0x73b   : > { %v12199_v14 = vrot.slane %v12198_v28, 4  ;;  %v12238_v43 = vadd.f32 %v12222_v61, %v12218_v45  ;;  %v12205_v24 = vadd.f32 %v19485_v4, %v19483_v44  ;;  %v12223_v5 = vmul.f32 %v19485_v4, %v19485_v4 }
 0x73d   : > { %v12200_v22 = vadd.f32 %v12199_v14, %v12198_v28  ;;  %v12239_v23 = vrot.slane %v12238_v43, 4  ;;  %v12206_v12 = vrot.slane %v12205_v24, 4  ;;  %v12245_v53 = vadd.f32 %v12223_v5, %v12219_v20 }
 0x73e   : > { %v12339_v14 = vrot.slane %v16773_v25, %v12308_v17 }
 0x73f   : > { %v12201_v2 = vrot.slane %v12200_v22, 2  ;;  %v12240_v21 = vadd.f32 %v12239_v23, %v12238_v43  ;;  %v12207_v7 = vadd.f32 %v12206_v12, %v12205_v24  ;;  %v12246_v10 = vrot.slane %v12245_v53, 4 }
 0x741   : > { %v12202_v27 = vadd.f32 %v12201_v2, %v12200_v22  ;;  %v12241_v48 = vrot.slane %v12240_v21, 2  ;;  %v12208_v8 = vrot.slane %v12207_v7, 2  ;;  %v12247_v56 = vadd.f32 %v12246_v10, %v12245_v53 }
 0x743   : > { %v12203_v16 = vrot.slane %v12202_v27, 1  ;;  %v12242_v26 = vadd.f32 %v12241_v48, %v12240_v21  ;;  %v12209_v30 = vadd.f32 %v12208_v8, %v12207_v7  ;;  %v12248_v39 = vrot.slane %v12247_v56, 2  ;;  %v12426_v48 = vld [vmem:[%s18641_s30] sm:$0xff] (%p17000_p9) }
 0x744   : > { %12427 = vst [vmem:[%s12413_s14] sm:$0xff] (%p17000_p9), %v12426_v48 }
 0x745   : > { %v12204_v13 = vadd.f32 %v12203_v16, %v12202_v27  ;;  %v12243_v40 = vrot.slane %v12242_v26, 1  ;;  %v12210_v33 = vrot.slane %v12209_v30, 1  ;;  %v12249_v51 = vadd.f32 %v12248_v39, %v12247_v56  ;;  %v12430_v56 = vld [vmem:[%s18641_s30 + $0x10] sm:$0xff] (%p17000_p9) }
 0x746   : > { %12431 = vst [vmem:[%s12413_s14 + $0x20] sm:$0xff] (%p17000_p9), %v12430_v56 }
 0x747   : > { %v12214_v47 = vmul.f32 0.5, %v12204_v13  ;;  %v12244_v55 = vadd.f32 %v12243_v40, %v12242_v26  ;;  %v12211_v19 = vadd.f32 %v12210_v33, %v12209_v30  ;;  %v12250_v32 = vrot.slane %v12249_v51, 1 }
 0x749   : > { %v12254_v31 = vmul.f32 0.5, %v12244_v55  ;;  %v12258_v15 = vmul.f32 %v12214_v47, %v12214_v47  ;;  %v12215_v37 = vmul.f32 0.5, %v12211_v19  ;;  %v12251_v41 = vadd.f32 %v12250_v32, %v12249_v51 }
 0x74a   : > { %v12270_v60 = vsub.f32 %v12176_v49, %v12214_v47  ;;  %v12274_v35 = vsub.f32 %v12180_v9, %v12214_v47 }
 0x74b   : > { %v12262_v50 = vsub.f32 %v12254_v31, %v12258_v15  ;;  %v12255_v38 = vmul.f32 0.5, %v12251_v41  ;;  %v12259_v58 = vmul.f32 %v12215_v37, %v12215_v37  ;;  %v12271_v6 = vsub.f32 %v19483_v44, %v12215_v37 }
 0x74c   : > { %v12275_v42 = vsub.f32 %v19485_v4, %v12215_v37 }
 0x74d   : > { %v12266_v54 = vmax.f32 %v12262_v50, 0.0  ;;  %v12263_v59 = vsub.f32 %v12255_v38, %v12259_v58 }
 0x74f   : > { %v12278_v36 = vadd.f32 1e-05, %v12266_v54  ;;  %v12267_v57 = vmax.f32 %v12263_v59, 0.0 }
 0x751   : > { %16719 = vrsqrt.f32 %v12278_v36  ;;  %v12279_v52 = vadd.f32 1e-05, %v12267_v57 }
 0x753   : > { %16721 = vrsqrt.f32 %v12279_v52 }
 0x75e   : > { %v16720_v11 = vpop.eup %16719 }
 0x75f   : > { %v12286_v1 = vmul.f32 %v16720_v11, %v12270_v60  ;;  %v12290_v46 = vmul.f32 %v16720_v11, %v12274_v35 }
 0x760   : > { %v16722_v62 = vpop.eup %16721 }
 0x761   : > { %v12316_v45 = vmul.f32 %v12305_v0, %v12286_v1  ;;  %v12320_v28 = vmul.f32 %v12305_v0, %v12290_v46  ;;  %v12287_v61 = vmul.f32 %v16722_v62, %v12271_v6  ;;  %v12291_v20 = vmul.f32 %v16722_v62, %v12275_v42 }
 0x763   : > { %v12346_v49 = vadd.f32 %v12335_v29, %v12316_v45  ;;  %v12350_v9 = vadd.f32 %v12335_v29, %v12320_v28  ;;  %v12317_v43 = vmul.f32 %v12309_v63, %v12287_v61  ;;  %v12321_v24 = vmul.f32 %v12309_v63, %v12291_v20 }
 0x765   : > { %v12362_v5 = vmul.f32 0.2, %v12346_v49  ;;  %v12366_v22 = vmul.f32 0.2, %v12350_v9  ;;  %v12347_v23 = vadd.f32 %v12339_v14, %v12317_v43  ;;  %v12351_v12 = vadd.f32 %v12339_v14, %v12321_v24 }
 0x766   : > { %vm12354_vm4 = vcmp.gt.f32.partialorder %v12346_v49, 0.0  ;;  %vm12358_vm5 = vcmp.gt.f32.partialorder %v12350_v9, 0.0 }
 0x767   : > { %vm12355_vm6 = vcmp.gt.f32.partialorder %v12347_v23, 0.0  ;;  %vm12359_vm7 = vcmp.gt.f32.partialorder %v12351_v12, 0.0  ;;  %v12363_v44 = vmul.f32 0.2, %v12347_v23  ;;  %v12367_v4 = vmul.f32 0.2, %v12351_v12 }
 0x768   : > { %v12370_v53 = vsel %vm12354_vm4, %v12346_v49, %v12362_v5  ;;  %v12374_v2 = vsel %vm12358_vm5, %v12350_v9, %v12366_v22  ;;  %12410 = sbr.rel (!%p17000_p9) target bundleno = 1909 (0x775), region = 52 }
 0x769   : > { %v12371_v21 = vsel %vm12355_vm6, %v12347_v23, %v12363_v44  ;;  %v12375_v7 = vsel %vm12359_vm7, %v12351_v12, %v12367_v4 }
 0x76a   : > { %v14215_v10 = vpack.c.bf16 %v12371_v21, %v12370_v53  ;;  %v14217_v27 = vpack.c.bf16 %v12375_v7, %v12374_v2 }
 0x76c   : > { %12401 = vst [vmem:[%s18641_s30 + $0x8] sm:$0xff] %v14215_v10  ;;  %12403 = vst [vmem:[%s18641_s30 + $0x18] sm:$0xff] %v14217_v27 }
 0x773   : > { %v12428_v8 = vld [vmem:[%s18641_s30 + $0x8] sm:$0xff]  ;;  %v12432_v16 = vld [vmem:[%s18641_s30 + $0x18] sm:$0xff] }
 0x774   : > { %12429 = vst [vmem:[%s12413_s14 + $0x8] sm:$0xff] %v12428_v8  ;;  %12433 = vst [vmem:[%s12413_s14 + $0x28] sm:$0xff] %v12432_v16 }
 0x775 PF: > { %s20_s20 = sadd.s32 1, %s16912_s20   ;;  %s19591_s15 = smov %s16896_s16 }
 0x776   : > { %p17_p8 = scmp.ge.s32.totalorder %s20_s20, 4   ;;  %s19592_s16 = smov %s16900_s17 }
 0x777   : > { %s19593_s17 = smov %s16998_s27  ;;  %s19594_s18 = smov %s16908_s19 }
 0x778   : > { %s19595_s19 = smov %s19597_s22  ;;  %19 = sbr.rel (!%p17_p8) target bundleno = 9 (0x9), region = 126 }
 0x77d   :  { %12449 = vsyncpa [#allocation3], 1 }
 0x77e   :  { %12451 = vsyncpa [#allocation3 + $0x1], 1 }
 0x77f   :  { %12452 = vsyncpa [#allocation5], 1 }
 0x780   :  { %12454 = vsyncpa [#allocation5 + $0x1], 1 }

</bundles_post_ra>
